<compile_context>
chip_gen: v7x
topology: tpu7x:2x2x1
jax: 0.10.0
libtpu: 0.0.40
codegen_flags: <defaults>
</compile_context>

<pallas_src>
import jax
import jax.numpy as jnp
from jax.experimental import pallas as pl
from jax.experimental.pallas import tpu as pltpu

C_IN = 24        # Encoder input channels
C_MID = 256      # hidden channels
C_OUT = 512      # output channels
N_MID = 13       # live 1x1 convs inside BasicBlock_3 (3 BB2 * (3 BB1 + 1 end) + BB3 end)
_BB1_IDX = (0, 1, 2, 4, 5, 6, 8, 9, 10)   # convs whose input was doubled in place


def _encoder_kernel(x_ref, ws_ref, bs_ref, wm_ref, bm_ref, wo_ref, bo_ref, o_ref):
    """One channel-major tile of positions: (C_IN, T) -> (C_OUT, T)."""
    x = x_ref[...]                                            # (24, T) f32

    # start: Conv1d(24, 256, 1)  — tiny K, keep f32 operands (feeds the f32 residual)
    h0 = jnp.dot(ws_ref[...], x, preferred_element_type=jnp.float32) + bs_ref[...]

    def conv(h, i):
        # 1x1 conv `i`: bf16 MXU operands, f32 accumulate + f32 bias.
        return jnp.dot(wm_ref[i], h.astype(jnp.bfloat16),
                       preferred_element_type=jnp.float32) + bm_ref[i]

    def bb1(a, i):                      # BasicBlock_1: relu(end(2*a)); 2x folded into wm[i]
        return jax.nn.relu(conv(a, i))

    def bb2(a, base):                   # BasicBlock_2 (identity doubled in place by 1st BB1)
        a2 = a + a
        r = bb1(a, base)
        r = bb1(r, base + 1)
        r = bb1(r, base + 2)
        return jax.nn.relu(conv(r + a2, base + 3))

    # BasicBlock_3
    c = bb2(h0, 0)
    c = bb2(c, 4)
    c = bb2(c, 8)
    hb = jax.nn.relu(conv(c + (h0 + h0), 12))

    # conv2: Conv1d(256, 512, 1) + sigmoid  (f32 bias / sigmoid)
    o_ref[...] = jax.nn.sigmoid(
        jnp.dot(wo_ref[...], hb.astype(jnp.bfloat16),
                preferred_element_type=jnp.float32) + bo_ref[...]
    ).astype(o_ref.dtype)


def _vmem_capacity_bytes():
    try:
        return int(pltpu.get_tpu_info().vmem_capacity_bytes)
    except Exception:
        return 64 * 1024 * 1024          # conservative (v7x-sized) fallback


def _pick_tile_l(L, B):
    """Position tile along L: as large as the VMEM budget allows (amortizes MXU weight
    pushes + ~0.35us/step overhead), a multiple of 128 (lane-dense stores), an exact
    divisor of L, and leaving >= 2 total grid steps when possible (v7x megacore)."""
    if L % 128 != 0:
        return L                         # full-row block (block dim == array dim is legal)
    cap = 2048 if _vmem_capacity_bytes() >= (96 << 20) else 1024   # v5e/v6e vs v7x
    if B == 1:
        cap = min(cap, max(128, (L // 2) // 128 * 128))            # keep >= 2 grid steps
    t = min(L, cap)
    while L % t != 0:
        t -= 128
    return t


def init_encoder_params(seed=0):
    """Deterministic params mimicking PyTorch Conv1d init U(-1/sqrt(fan_in), 1/sqrt(fan_in)).

    Weights are stored as (out_channels, in_channels) — PyTorch Conv1d(k=1) layout — so
    both kernel and reference compute W @ x.  Only the 15 convs that reach the output
    are materialized (BasicBlock_0's k=3 conv / tanh / sigmoid branches are dead code).
    """
    def conv_p(k, fan_in, fan_out):
        kw, kb = jax.random.split(k)
        bound = 1.0 / (fan_in ** 0.5)
        w = jax.random.uniform(kw, (fan_out, fan_in), jnp.float32, -bound, bound)
        b = jax.random.uniform(kb, (fan_out,), jnp.float32, -bound, bound)
        return w, b

    keys = jax.random.split(jax.random.PRNGKey(seed), 2 + N_MID)
    w_start, b_start = conv_p(keys[0], C_IN, C_MID)
    mids = [conv_p(keys[1 + i], C_MID, C_MID) for i in range(N_MID)]
    w_mid = jnp.stack([m[0] for m in mids])          # (13, 256, 256)
    b_mid = jnp.stack([m[1] for m in mids])          # (13, 256)
    w_out, b_out = conv_p(keys[1 + N_MID], C_MID, C_OUT)
    return dict(w_start=w_start, b_start=b_start,
                w_mid=w_mid, b_mid=b_mid,
                w_out=w_out, b_out=b_out)


def encoder_forward(x_bcl, params):
    """x_bcl: (B, 24, L) float32.  Returns (B, 512, L) float32 (== torch Encoder(x))."""
    B, C, L = x_bcl.shape
    assert C == C_IN
    tile_l = _pick_tile_l(L, B)
    grid = (B, L // tile_l)

    # Fold the in-place 2x into the 9 BB1 weights (exact power-of-two scale) and store
    # the big MXU operands in bf16 (halves VMEM + vld traffic feeding the MXU).
    scale = jnp.array([2.0 if i in _BB1_IDX else 1.0 for i in range(N_MID)],
                      jnp.float32)[:, None, None]
    wm = (params["w_mid"] * scale).astype(jnp.bfloat16)      # (13, 256, 256) bf16
    wo = params["w_out"].astype(jnp.bfloat16)                # (512, 256)     bf16
    ws = params["w_start"]                                   # (256, 24)      f32
    bs = params["b_start"].reshape(C_MID, 1)                 # (256, 1)
    bm = params["b_mid"].reshape(N_MID, C_MID, 1)            # (13, 256, 1)
    bo = params["b_out"].reshape(C_OUT, 1)                   # (512, 1)

    return pl.pallas_call(
        _encoder_kernel,
        out_shape=jax.ShapeDtypeStruct((B, C_OUT, L), jnp.float32),
        grid_spec=pltpu.PrefetchScalarGridSpec(
            num_scalar_prefetch=0,
            grid=grid,
            in_specs=[
                pl.BlockSpec((None, C_IN, tile_l), lambda b, l: (b, 0, l)),    # x tile
                pl.BlockSpec((C_MID, C_IN), lambda b, l: (0, 0)),              # w_start
                pl.BlockSpec((C_MID, 1), lambda b, l: (0, 0)),                 # b_start
                pl.BlockSpec((N_MID, C_MID, C_MID), lambda b, l: (0, 0, 0)),   # w_mid
                pl.BlockSpec((N_MID, C_MID, 1), lambda b, l: (0, 0, 0)),       # b_mid
                pl.BlockSpec((C_OUT, C_MID), lambda b, l: (0, 0)),             # w_out
                pl.BlockSpec((C_OUT, 1), lambda b, l: (0, 0)),                 # b_out
            ],
            out_specs=pl.BlockSpec((None, C_OUT, tile_l), lambda b, l: (b, 0, l)),
        ),
        compiler_params=pltpu.CompilerParams(
            dimension_semantics=("parallel", "parallel"),    # shards across TCs on v7x
            vmem_limit_bytes=48 * 1024 * 1024,               # <= ~28 MiB actually used
        ),
    )(x_bcl, ws, bs, wm, bm, wo, bo)


def _ref_forward(x_bcl, params):
    """Pure-JAX f32 reference mirroring the PyTorch data flow (incl. in-place doubling)."""
    hi = jax.lax.Precision.HIGHEST
    wm, bm = params["w_mid"], params["b_mid"]

    def conv1x1(h, w, b):                                    # w: (Cout, Cin)
        return jnp.einsum("oc,bcl->bol", w, h, precision=hi) + b[None, :, None]

    h0 = conv1x1(x_bcl, params["w_start"], params["b_start"])

    def bb1(a, i):
        return jax.nn.relu(conv1x1(2.0 * a, wm[i], bm[i]))

    def bb2(a, base):
        r = bb1(a, base)
        r = bb1(r, base + 1)
        r = bb1(r, base + 2)
        return jax.nn.relu(conv1x1(r + 2.0 * a, wm[base + 3], bm[base + 3]))

    c = bb2(h0, 0)
    c = bb2(c, 4)
    c = bb2(c, 8)
    hb = jax.nn.relu(conv1x1(c + 2.0 * h0, wm[12], bm[12]))
    return jax.nn.sigmoid(conv1x1(hb, params["w_out"], params["b_out"]))


if __name__ == "__main__":
    params = init_encoder_params(seed=0)
    x = jax.random.normal(jax.random.PRNGKey(0), (2, C_IN, 16), jnp.float32)

    fwd = jax.jit(encoder_forward)
    out = fwd(x, params)
    jax.block_until_ready(out)

    ref = _ref_forward(x, params)
    assert out.shape == (2, C_OUT, 16)
    # bf16 MXU operands (f32 accumulation) across 14 chained 256-wide layers introduce
    # a few-e-3 max absolute error at the post-sigmoid output vs the f32-HIGHEST ref.
    max_err = float(jnp.max(jnp.abs(out - ref)))
    assert max_err < 1e-2, f"mismatch vs reference: max abs err {max_err}"

    print("KERNEL_OK")
</pallas_src>

<mosaic_0001>
module attributes {stable_mosaic.version = 11 : i64} {
  func.func @_encoder_kernel(%arg0: i32, %arg1: i32, %arg2: memref<1x24x16xf32, #tpu.memory_space<vmem>>, %arg3: memref<256x24xf32, #tpu.memory_space<vmem>>, %arg4: memref<256x1xf32, #tpu.memory_space<vmem>>, %arg5: memref<13x256x256xbf16, #tpu.memory_space<vmem>>, %arg6: memref<13x256x1xf32, #tpu.memory_space<vmem>>, %arg7: memref<512x256xbf16, #tpu.memory_space<vmem>>, %arg8: memref<512x1xf32, #tpu.memory_space<vmem>>, %arg9: memref<1x512x16xf32, #tpu.memory_space<vmem>>) attributes {dimension_semantics = [#tpu.dimension_semantics<parallel>, #tpu.dimension_semantics<parallel>], iteration_bounds = array<i64: 2, 1>, scalar_prefetch = 0 : i64, scratch_operands = 0 : i64, tpu.core_type = #tpu.core_type<tc>, window_params = [{transform_indices = @transform_0, window_bounds = array<i64: 1, 24, 16>}, {pipeline_mode = #tpu.pipeline_mode<synchronous>, transform_indices = @transform_1, window_bounds = array<i64: 256, 24>}, {pipeline_mode = #tpu.pipeline_mode<synchronous>, transform_indices = @transform_2, window_bounds = array<i64: 256, 1>}, {pipeline_mode = #tpu.pipeline_mode<synchronous>, transform_indices = @transform_3, window_bounds = array<i64: 13, 256, 256>}, {pipeline_mode = #tpu.pipeline_mode<synchronous>, transform_indices = @transform_4, window_bounds = array<i64: 13, 256, 1>}, {pipeline_mode = #tpu.pipeline_mode<synchronous>, transform_indices = @transform_5, window_bounds = array<i64: 512, 256>}, {pipeline_mode = #tpu.pipeline_mode<synchronous>, transform_indices = @transform_6, window_bounds = array<i64: 512, 1>}, {transform_indices = @transform_7, window_bounds = array<i64: 1, 512, 16>}]} {
    %c0 = arith.constant 0 : index
    %c0_0 = arith.constant 0 : index
    %c0_1 = arith.constant 0 : index
    %0 = vector.load %arg2[%c0, %c0_0, %c0_1] : memref<1x24x16xf32, #tpu.memory_space<vmem>>, vector<1x24x16xf32>
    %1 = vector.shape_cast %0 : vector<1x24x16xf32> to vector<24x16xf32>
    %c0_2 = arith.constant 0 : index
    %c0_3 = arith.constant 0 : index
    %2 = vector.load %arg3[%c0_2, %c0_3] : memref<256x24xf32, #tpu.memory_space<vmem>>, vector<256x24xf32>
    %cst = arith.constant dense<0.000000e+00> : vector<256x16xf32>
    %3 = tpu.matmul %2, %1, %cst {dimension_numbers = #tpu.dot_dimension_numbers<[1], [0], [0], [1], [0, 0, 1, 1], [], []>} : vector<256x24xf32>, vector<24x16xf32>, vector<256x16xf32> -> vector<256x16xf32>
    %c0_4 = arith.constant 0 : index
    %c0_5 = arith.constant 0 : index
    %4 = vector.load %arg4[%c0_4, %c0_5] : memref<256x1xf32, #tpu.memory_space<vmem>>, vector<256x1xf32>
    %5 = vector.broadcast %4 : vector<256x1xf32> to vector<256x16xf32>
    %6 = arith.addf %3, %5 : vector<256x16xf32>
    %7 = arith.addf %6, %6 : vector<256x16xf32>
    %c0_6 = arith.constant 0 : index
    %c0_7 = arith.constant 0 : index
    %c0_8 = arith.constant 0 : index
    %8 = vector.load %arg5[%c0_6, %c0_7, %c0_8] : memref<13x256x256xbf16, #tpu.memory_space<vmem>>, vector<1x256x256xbf16>
    %9 = vector.shape_cast %8 : vector<1x256x256xbf16> to vector<256x256xbf16>
    %10 = arith.truncf %6 : vector<256x16xf32> to vector<256x16xbf16>
    %cst_9 = arith.constant dense<0.000000e+00> : vector<256x16xf32>
    %11 = tpu.matmul %9, %10, %cst_9 {dimension_numbers = #tpu.dot_dimension_numbers<[1], [0], [0], [1], [0, 0, 1, 1], [], []>} : vector<256x256xbf16>, vector<256x16xbf16>, vector<256x16xf32> -> vector<256x16xf32>
    %c0_10 = arith.constant 0 : index
    %c0_11 = arith.constant 0 : index
    %c0_12 = arith.constant 0 : index
    %12 = vector.load %arg6[%c0_10, %c0_11, %c0_12] : memref<13x256x1xf32, #tpu.memory_space<vmem>>, vector<1x256x1xf32>
    %13 = vector.shape_cast %12 : vector<1x256x1xf32> to vector<256x1xf32>
    %14 = vector.broadcast %13 : vector<256x1xf32> to vector<256x16xf32>
    %15 = arith.addf %11, %14 : vector<256x16xf32>
    %cst_13 = arith.constant 0.000000e+00 : f32
    %16 = vector.broadcast %cst_13 : f32 to vector<256x16xf32>
    %17 = arith.maximumf %15, %16 : vector<256x16xf32>
    %c1 = arith.constant 1 : index
    %c0_14 = arith.constant 0 : index
    %c0_15 = arith.constant 0 : index
    %18 = vector.load %arg5[%c1, %c0_14, %c0_15] : memref<13x256x256xbf16, #tpu.memory_space<vmem>>, vector<1x256x256xbf16>
    %19 = vector.shape_cast %18 : vector<1x256x256xbf16> to vector<256x256xbf16>
    %20 = arith.truncf %17 : vector<256x16xf32> to vector<256x16xbf16>
    %cst_16 = arith.constant dense<0.000000e+00> : vector<256x16xf32>
    %21 = tpu.matmul %19, %20, %cst_16 {dimension_numbers = #tpu.dot_dimension_numbers<[1], [0], [0], [1], [0, 0, 1, 1], [], []>} : vector<256x256xbf16>, vector<256x16xbf16>, vector<256x16xf32> -> vector<256x16xf32>
    %c1_17 = arith.constant 1 : index
    %c0_18 = arith.constant 0 : index
    %c0_19 = arith.constant 0 : index
    %22 = vector.load %arg6[%c1_17, %c0_18, %c0_19] : memref<13x256x1xf32, #tpu.memory_space<vmem>>, vector<1x256x1xf32>
    %23 = vector.shape_cast %22 : vector<1x256x1xf32> to vector<256x1xf32>
    %24 = vector.broadcast %23 : vector<256x1xf32> to vector<256x16xf32>
    %25 = arith.addf %21, %24 : vector<256x16xf32>
    %cst_20 = arith.constant 0.000000e+00 : f32
    %26 = vector.broadcast %cst_20 : f32 to vector<256x16xf32>
    %27 = arith.maximumf %25, %26 : vector<256x16xf32>
    %c2 = arith.constant 2 : index
    %c0_21 = arith.constant 0 : index
    %c0_22 = arith.constant 0 : index
    %28 = vector.load %arg5[%c2, %c0_21, %c0_22] : memref<13x256x256xbf16, #tpu.memory_space<vmem>>, vector<1x256x256xbf16>
    %29 = vector.shape_cast %28 : vector<1x256x256xbf16> to vector<256x256xbf16>
    %30 = arith.truncf %27 : vector<256x16xf32> to vector<256x16xbf16>
    %cst_23 = arith.constant dense<0.000000e+00> : vector<256x16xf32>
    %31 = tpu.matmul %29, %30, %cst_23 {dimension_numbers = #tpu.dot_dimension_numbers<[1], [0], [0], [1], [0, 0, 1, 1], [], []>} : vector<256x256xbf16>, vector<256x16xbf16>, vector<256x16xf32> -> vector<256x16xf32>
    %c2_24 = arith.constant 2 : index
    %c0_25 = arith.constant 0 : index
    %c0_26 = arith.constant 0 : index
    %32 = vector.load %arg6[%c2_24, %c0_25, %c0_26] : memref<13x256x1xf32, #tpu.memory_space<vmem>>, vector<1x256x1xf32>
    %33 = vector.shape_cast %32 : vector<1x256x1xf32> to vector<256x1xf32>
    %34 = vector.broadcast %33 : vector<256x1xf32> to vector<256x16xf32>
    %35 = arith.addf %31, %34 : vector<256x16xf32>
    %cst_27 = arith.constant 0.000000e+00 : f32
    %36 = vector.broadcast %cst_27 : f32 to vector<256x16xf32>
    %37 = arith.maximumf %35, %36 : vector<256x16xf32>
    %38 = arith.addf %37, %7 : vector<256x16xf32>
    %c3 = arith.constant 3 : index
    %c0_28 = arith.constant 0 : index
    %c0_29 = arith.constant 0 : index
    %39 = vector.load %arg5[%c3, %c0_28, %c0_29] : memref<13x256x256xbf16, #tpu.memory_space<vmem>>, vector<1x256x256xbf16>
    %40 = vector.shape_cast %39 : vector<1x256x256xbf16> to vector<256x256xbf16>
    %41 = arith.truncf %38 : vector<256x16xf32> to vector<256x16xbf16>
    %cst_30 = arith.constant dense<0.000000e+00> : vector<256x16xf32>
    %42 = tpu.matmul %40, %41, %cst_30 {dimension_numbers = #tpu.dot_dimension_numbers<[1], [0], [0], [1], [0, 0, 1, 1], [], []>} : vector<256x256xbf16>, vector<256x16xbf16>, vector<256x16xf32> -> vector<256x16xf32>
    %c3_31 = arith.constant 3 : index
    %c0_32 = arith.constant 0 : index
    %c0_33 = arith.constant 0 : index
    %43 = vector.load %arg6[%c3_31, %c0_32, %c0_33] : memref<13x256x1xf32, #tpu.memory_space<vmem>>, vector<1x256x1xf32>
    %44 = vector.shape_cast %43 : vector<1x256x1xf32> to vector<256x1xf32>
    %45 = vector.broadcast %44 : vector<256x1xf32> to vector<256x16xf32>
    %46 = arith.addf %42, %45 : vector<256x16xf32>
    %cst_34 = arith.constant 0.000000e+00 : f32
    %47 = vector.broadcast %cst_34 : f32 to vector<256x16xf32>
    %48 = arith.maximumf %46, %47 : vector<256x16xf32>
    %49 = arith.addf %48, %48 : vector<256x16xf32>
    %c4 = arith.constant 4 : index
    %c0_35 = arith.constant 0 : index
    %c0_36 = arith.constant 0 : index
    %50 = vector.load %arg5[%c4, %c0_35, %c0_36] : memref<13x256x256xbf16, #tpu.memory_space<vmem>>, vector<1x256x256xbf16>
    %51 = vector.shape_cast %50 : vector<1x256x256xbf16> to vector<256x256xbf16>
    %52 = arith.truncf %48 : vector<256x16xf32> to vector<256x16xbf16>
    %cst_37 = arith.constant dense<0.000000e+00> : vector<256x16xf32>
    %53 = tpu.matmul %51, %52, %cst_37 {dimension_numbers = #tpu.dot_dimension_numbers<[1], [0], [0], [1], [0, 0, 1, 1], [], []>} : vector<256x256xbf16>, vector<256x16xbf16>, vector<256x16xf32> -> vector<256x16xf32>
    %c4_38 = arith.constant 4 : index
    %c0_39 = arith.constant 0 : index
    %c0_40 = arith.constant 0 : index
    %54 = vector.load %arg6[%c4_38, %c0_39, %c0_40] : memref<13x256x1xf32, #tpu.memory_space<vmem>>, vector<1x256x1xf32>
    %55 = vector.shape_cast %54 : vector<1x256x1xf32> to vector<256x1xf32>
    %56 = vector.broadcast %55 : vector<256x1xf32> to vector<256x16xf32>
    %57 = arith.addf %53, %56 : vector<256x16xf32>
    %cst_41 = arith.constant 0.000000e+00 : f32
    %58 = vector.broadcast %cst_41 : f32 to vector<256x16xf32>
    %59 = arith.maximumf %57, %58 : vector<256x16xf32>
    %c5 = arith.constant 5 : index
    %c0_42 = arith.constant 0 : index
    %c0_43 = arith.constant 0 : index
    %60 = vector.load %arg5[%c5, %c0_42, %c0_43] : memref<13x256x256xbf16, #tpu.memory_space<vmem>>, vector<1x256x256xbf16>
    %61 = vector.shape_cast %60 : vector<1x256x256xbf16> to vector<256x256xbf16>
    %62 = arith.truncf %59 : vector<256x16xf32> to vector<256x16xbf16>
    %cst_44 = arith.constant dense<0.000000e+00> : vector<256x16xf32>
    %63 = tpu.matmul %61, %62, %cst_44 {dimension_numbers = #tpu.dot_dimension_numbers<[1], [0], [0], [1], [0, 0, 1, 1], [], []>} : vector<256x256xbf16>, vector<256x16xbf16>, vector<256x16xf32> -> vector<256x16xf32>
    %c5_45 = arith.constant 5 : index
    %c0_46 = arith.constant 0 : index
    %c0_47 = arith.constant 0 : index
    %64 = vector.load %arg6[%c5_45, %c0_46, %c0_47] : memref<13x256x1xf32, #tpu.memory_space<vmem>>, vector<1x256x1xf32>
    %65 = vector.shape_cast %64 : vector<1x256x1xf32> to vector<256x1xf32>
    %66 = vector.broadcast %65 : vector<256x1xf32> to vector<256x16xf32>
    %67 = arith.addf %63, %66 : vector<256x16xf32>
    %cst_48 = arith.constant 0.000000e+00 : f32
    %68 = vector.broadcast %cst_48 : f32 to vector<256x16xf32>
    %69 = arith.maximumf %67, %68 : vector<256x16xf32>
    %c6 = arith.constant 6 : index
    %c0_49 = arith.constant 0 : index
    %c0_50 = arith.constant 0 : index
    %70 = vector.load %arg5[%c6, %c0_49, %c0_50] : memref<13x256x256xbf16, #tpu.memory_space<vmem>>, vector<1x256x256xbf16>
    %71 = vector.shape_cast %70 : vector<1x256x256xbf16> to vector<256x256xbf16>
    %72 = arith.truncf %69 : vector<256x16xf32> to vector<256x16xbf16>
    %cst_51 = arith.constant dense<0.000000e+00> : vector<256x16xf32>
    %73 = tpu.matmul %71, %72, %cst_51 {dimension_numbers = #tpu.dot_dimension_numbers<[1], [0], [0], [1], [0, 0, 1, 1], [], []>} : vector<256x256xbf16>, vector<256x16xbf16>, vector<256x16xf32> -> vector<256x16xf32>
    %c6_52 = arith.constant 6 : index
    %c0_53 = arith.constant 0 : index
    %c0_54 = arith.constant 0 : index
    %74 = vector.load %arg6[%c6_52, %c0_53, %c0_54] : memref<13x256x1xf32, #tpu.memory_space<vmem>>, vector<1x256x1xf32>
    %75 = vector.shape_cast %74 : vector<1x256x1xf32> to vector<256x1xf32>
    %76 = vector.broadcast %75 : vector<256x1xf32> to vector<256x16xf32>
    %77 = arith.addf %73, %76 : vector<256x16xf32>
    %cst_55 = arith.constant 0.000000e+00 : f32
    %78 = vector.broadcast %cst_55 : f32 to vector<256x16xf32>
    %79 = arith.maximumf %77, %78 : vector<256x16xf32>
    %80 = arith.addf %79, %49 : vector<256x16xf32>
    %c7 = arith.constant 7 : index
    %c0_56 = arith.constant 0 : index
    %c0_57 = arith.constant 0 : index
    %81 = vector.load %arg5[%c7, %c0_56, %c0_57] : memref<13x256x256xbf16, #tpu.memory_space<vmem>>, vector<1x256x256xbf16>
    %82 = vector.shape_cast %81 : vector<1x256x256xbf16> to vector<256x256xbf16>
    %83 = arith.truncf %80 : vector<256x16xf32> to vector<256x16xbf16>
    %cst_58 = arith.constant dense<0.000000e+00> : vector<256x16xf32>
    %84 = tpu.matmul %82, %83, %cst_58 {dimension_numbers = #tpu.dot_dimension_numbers<[1], [0], [0], [1], [0, 0, 1, 1], [], []>} : vector<256x256xbf16>, vector<256x16xbf16>, vector<256x16xf32> -> vector<256x16xf32>
    %c7_59 = arith.constant 7 : index
    %c0_60 = arith.constant 0 : index
    %c0_61 = arith.constant 0 : index
    %85 = vector.load %arg6[%c7_59, %c0_60, %c0_61] : memref<13x256x1xf32, #tpu.memory_space<vmem>>, vector<1x256x1xf32>
    %86 = vector.shape_cast %85 : vector<1x256x1xf32> to vector<256x1xf32>
    %87 = vector.broadcast %86 : vector<256x1xf32> to vector<256x16xf32>
    %88 = arith.addf %84, %87 : vector<256x16xf32>
    %cst_62 = arith.constant 0.000000e+00 : f32
    %89 = vector.broadcast %cst_62 : f32 to vector<256x16xf32>
    %90 = arith.maximumf %88, %89 : vector<256x16xf32>
    %91 = arith.addf %90, %90 : vector<256x16xf32>
    %c8 = arith.constant 8 : index
    %c0_63 = arith.constant 0 : index
    %c0_64 = arith.constant 0 : index
    %92 = vector.load %arg5[%c8, %c0_63, %c0_64] : memref<13x256x256xbf16, #tpu.memory_space<vmem>>, vector<1x256x256xbf16>
    %93 = vector.shape_cast %92 : vector<1x256x256xbf16> to vector<256x256xbf16>
    %94 = arith.truncf %90 : vector<256x16xf32> to vector<256x16xbf16>
    %cst_65 = arith.constant dense<0.000000e+00> : vector<256x16xf32>
    %95 = tpu.matmul %93, %94, %cst_65 {dimension_numbers = #tpu.dot_dimension_numbers<[1], [0], [0], [1], [0, 0, 1, 1], [], []>} : vector<256x256xbf16>, vector<256x16xbf16>, vector<256x16xf32> -> vector<256x16xf32>
    %c8_66 = arith.constant 8 : index
    %c0_67 = arith.constant 0 : index
    %c0_68 = arith.constant 0 : index
    %96 = vector.load %arg6[%c8_66, %c0_67, %c0_68] : memref<13x256x1xf32, #tpu.memory_space<vmem>>, vector<1x256x1xf32>
    %97 = vector.shape_cast %96 : vector<1x256x1xf32> to vector<256x1xf32>
    %98 = vector.broadcast %97 : vector<256x1xf32> to vector<256x16xf32>
    %99 = arith.addf %95, %98 : vector<256x16xf32>
    %cst_69 = arith.constant 0.000000e+00 : f32
    %100 = vector.broadcast %cst_69 : f32 to vector<256x16xf32>
    %101 = arith.maximumf %99, %100 : vector<256x16xf32>
    %c9 = arith.constant 9 : index
    %c0_70 = arith.constant 0 : index
    %c0_71 = arith.constant 0 : index
    %102 = vector.load %arg5[%c9, %c0_70, %c0_71] : memref<13x256x256xbf16, #tpu.memory_space<vmem>>, vector<1x256x256xbf16>
    %103 = vector.shape_cast %102 : vector<1x256x256xbf16> to vector<256x256xbf16>
    %104 = arith.truncf %101 : vector<256x16xf32> to vector<256x16xbf16>
    %cst_72 = arith.constant dense<0.000000e+00> : vector<256x16xf32>
    %105 = tpu.matmul %103, %104, %cst_72 {dimension_numbers = #tpu.dot_dimension_numbers<[1], [0], [0], [1], [0, 0, 1, 1], [], []>} : vector<256x256xbf16>, vector<256x16xbf16>, vector<256x16xf32> -> vector<256x16xf32>
    %c9_73 = arith.constant 9 : index
    %c0_74 = arith.constant 0 : index
    %c0_75 = arith.constant 0 : index
    %106 = vector.load %arg6[%c9_73, %c0_74, %c0_75] : memref<13x256x1xf32, #tpu.memory_space<vmem>>, vector<1x256x1xf32>
    %107 = vector.shape_cast %106 : vector<1x256x1xf32> to vector<256x1xf32>
    %108 = vector.broadcast %107 : vector<256x1xf32> to vector<256x16xf32>
    %109 = arith.addf %105, %108 : vector<256x16xf32>
    %cst_76 = arith.constant 0.000000e+00 : f32
    %110 = vector.broadcast %cst_76 : f32 to vector<256x16xf32>
    %111 = arith.maximumf %109, %110 : vector<256x16xf32>
    %c10 = arith.constant 10 : index
    %c0_77 = arith.constant 0 : index
    %c0_78 = arith.constant 0 : index
    %112 = vector.load %arg5[%c10, %c0_77, %c0_78] : memref<13x256x256xbf16, #tpu.memory_space<vmem>>, vector<1x256x256xbf16>
    %113 = vector.shape_cast %112 : vector<1x256x256xbf16> to vector<256x256xbf16>
    %114 = arith.truncf %111 : vector<256x16xf32> to vector<256x16xbf16>
    %cst_79 = arith.constant dense<0.000000e+00> : vector<256x16xf32>
    %115 = tpu.matmul %113, %114, %cst_79 {dimension_numbers = #tpu.dot_dimension_numbers<[1], [0], [0], [1], [0, 0, 1, 1], [], []>} : vector<256x256xbf16>, vector<256x16xbf16>, vector<256x16xf32> -> vector<256x16xf32>
    %c10_80 = arith.constant 10 : index
    %c0_81 = arith.constant 0 : index
    %c0_82 = arith.constant 0 : index
    %116 = vector.load %arg6[%c10_80, %c0_81, %c0_82] : memref<13x256x1xf32, #tpu.memory_space<vmem>>, vector<1x256x1xf32>
    %117 = vector.shape_cast %116 : vector<1x256x1xf32> to vector<256x1xf32>
    %118 = vector.broadcast %117 : vector<256x1xf32> to vector<256x16xf32>
    %119 = arith.addf %115, %118 : vector<256x16xf32>
    %cst_83 = arith.constant 0.000000e+00 : f32
    %120 = vector.broadcast %cst_83 : f32 to vector<256x16xf32>
    %121 = arith.maximumf %119, %120 : vector<256x16xf32>
    %122 = arith.addf %121, %91 : vector<256x16xf32>
    %c11 = arith.constant 11 : index
    %c0_84 = arith.constant 0 : index
    %c0_85 = arith.constant 0 : index
    %123 = vector.load %arg5[%c11, %c0_84, %c0_85] : memref<13x256x256xbf16, #tpu.memory_space<vmem>>, vector<1x256x256xbf16>
    %124 = vector.shape_cast %123 : vector<1x256x256xbf16> to vector<256x256xbf16>
    %125 = arith.truncf %122 : vector<256x16xf32> to vector<256x16xbf16>
    %cst_86 = arith.constant dense<0.000000e+00> : vector<256x16xf32>
    %126 = tpu.matmul %124, %125, %cst_86 {dimension_numbers = #tpu.dot_dimension_numbers<[1], [0], [0], [1], [0, 0, 1, 1], [], []>} : vector<256x256xbf16>, vector<256x16xbf16>, vector<256x16xf32> -> vector<256x16xf32>
    %c11_87 = arith.constant 11 : index
    %c0_88 = arith.constant 0 : index
    %c0_89 = arith.constant 0 : index
    %127 = vector.load %arg6[%c11_87, %c0_88, %c0_89] : memref<13x256x1xf32, #tpu.memory_space<vmem>>, vector<1x256x1xf32>
    %128 = vector.shape_cast %127 : vector<1x256x1xf32> to vector<256x1xf32>
    %129 = vector.broadcast %128 : vector<256x1xf32> to vector<256x16xf32>
    %130 = arith.addf %126, %129 : vector<256x16xf32>
    %cst_90 = arith.constant 0.000000e+00 : f32
    %131 = vector.broadcast %cst_90 : f32 to vector<256x16xf32>
    %132 = arith.maximumf %130, %131 : vector<256x16xf32>
    %133 = arith.addf %6, %6 : vector<256x16xf32>
    %134 = arith.addf %132, %133 : vector<256x16xf32>
    %c12 = arith.constant 12 : index
    %c0_91 = arith.constant 0 : index
    %c0_92 = arith.constant 0 : index
    %135 = vector.load %arg5[%c12, %c0_91, %c0_92] : memref<13x256x256xbf16, #tpu.memory_space<vmem>>, vector<1x256x256xbf16>
    %136 = vector.shape_cast %135 : vector<1x256x256xbf16> to vector<256x256xbf16>
    %137 = arith.truncf %134 : vector<256x16xf32> to vector<256x16xbf16>
    %cst_93 = arith.constant dense<0.000000e+00> : vector<256x16xf32>
    %138 = tpu.matmul %136, %137, %cst_93 {dimension_numbers = #tpu.dot_dimension_numbers<[1], [0], [0], [1], [0, 0, 1, 1], [], []>} : vector<256x256xbf16>, vector<256x16xbf16>, vector<256x16xf32> -> vector<256x16xf32>
    %c12_94 = arith.constant 12 : index
    %c0_95 = arith.constant 0 : index
    %c0_96 = arith.constant 0 : index
    %139 = vector.load %arg6[%c12_94, %c0_95, %c0_96] : memref<13x256x1xf32, #tpu.memory_space<vmem>>, vector<1x256x1xf32>
    %140 = vector.shape_cast %139 : vector<1x256x1xf32> to vector<256x1xf32>
    %141 = vector.broadcast %140 : vector<256x1xf32> to vector<256x16xf32>
    %142 = arith.addf %138, %141 : vector<256x16xf32>
    %cst_97 = arith.constant 0.000000e+00 : f32
    %143 = vector.broadcast %cst_97 : f32 to vector<256x16xf32>
    %144 = arith.maximumf %142, %143 : vector<256x16xf32>
    %c0_98 = arith.constant 0 : index
    %c0_99 = arith.constant 0 : index
    %145 = vector.load %arg7[%c0_98, %c0_99] : memref<512x256xbf16, #tpu.memory_space<vmem>>, vector<512x256xbf16>
    %146 = arith.truncf %144 : vector<256x16xf32> to vector<256x16xbf16>
    %cst_100 = arith.constant dense<0.000000e+00> : vector<512x16xf32>
    %147 = tpu.matmul %145, %146, %cst_100 {dimension_numbers = #tpu.dot_dimension_numbers<[1], [0], [0], [1], [0, 0, 1, 1], [], []>} : vector<512x256xbf16>, vector<256x16xbf16>, vector<512x16xf32> -> vector<512x16xf32>
    %c0_101 = arith.constant 0 : index
    %c0_102 = arith.constant 0 : index
    %148 = vector.load %arg8[%c0_101, %c0_102] : memref<512x1xf32, #tpu.memory_space<vmem>>, vector<512x1xf32>
    %149 = vector.broadcast %148 : vector<512x1xf32> to vector<512x16xf32>
    %150 = arith.addf %147, %149 : vector<512x16xf32>
    %151 = arith.negf %150 : vector<512x16xf32>
    %152 = math.exp %151 : vector<512x16xf32>
    %cst_103 = arith.constant 1.000000e+00 : f32
    %153 = vector.broadcast %cst_103 : f32 to vector<512x16xf32>
    %154 = arith.addf %153, %152 : vector<512x16xf32>
    %155 = arith.divf %153, %154 : vector<512x16xf32>
    %c0_104 = arith.constant 0 : index
    %c0_105 = arith.constant 0 : index
    %c0_106 = arith.constant 0 : index
    %156 = vector.load %arg9[%c0_104, %c0_105, %c0_106] : memref<1x512x16xf32, #tpu.memory_space<vmem>>, vector<1x512x16xf32>
    %157 = vector.shape_cast %156 : vector<1x512x16xf32> to vector<512x16xf32>
    %158 = vector.shape_cast %155 : vector<512x16xf32> to vector<1x512x16xf32>
    tpu.vector_store %arg9[%c0_104, %c0_105, %c0_106], %158 {strides = array<i32>} : memref<1x512x16xf32, #tpu.memory_space<vmem>>, vector<1x512x16xf32>,
    return
  }
  func.func @transform_0(%arg0: i32, %arg1: i32) -> (i32, i32, i32) {
    %c0_i32 = arith.constant 0 : i32
    %c0_i32_0 = arith.constant 0 : i32
    return %arg0, %c0_i32, %arg1 : i32, i32, i32
  }
  func.func @transform_1(%arg0: i32, %arg1: i32) -> (i32, i32) {
    %c0_i32 = arith.constant 0 : i32
    %c0_i32_0 = arith.constant 0 : i32
    %c0_i32_1 = arith.constant 0 : i32
    return %c0_i32, %c0_i32_0 : i32, i32
  }
  func.func @transform_2(%arg0: i32, %arg1: i32) -> (i32, i32) {
    %c0_i32 = arith.constant 0 : i32
    %c0_i32_0 = arith.constant 0 : i32
    %c0_i32_1 = arith.constant 0 : i32
    return %c0_i32, %c0_i32_0 : i32, i32
  }
  func.func @transform_3(%arg0: i32, %arg1: i32) -> (i32, i32, i32) {
    %c0_i32 = arith.constant 0 : i32
    %c0_i32_0 = arith.constant 0 : i32
    %c0_i32_1 = arith.constant 0 : i32
    %c0_i32_2 = arith.constant 0 : i32
    return %c0_i32, %c0_i32_0, %c0_i32_1 : i32, i32, i32
  }
  func.func @transform_4(%arg0: i32, %arg1: i32) -> (i32, i32, i32) {
    %c0_i32 = arith.constant 0 : i32
    %c0_i32_0 = arith.constant 0 : i32
    %c0_i32_1 = arith.constant 0 : i32
    %c0_i32_2 = arith.constant 0 : i32
    return %c0_i32, %c0_i32_0, %c0_i32_1 : i32, i32, i32
  }
  func.func @transform_5(%arg0: i32, %arg1: i32) -> (i32, i32) {
    %c0_i32 = arith.constant 0 : i32
    %c0_i32_0 = arith.constant 0 : i32
    %c0_i32_1 = arith.constant 0 : i32
    return %c0_i32, %c0_i32_0 : i32, i32
  }
  func.func @transform_6(%arg0: i32, %arg1: i32) -> (i32, i32) {
    %c0_i32 = arith.constant 0 : i32
    %c0_i32_0 = arith.constant 0 : i32
    %c0_i32_1 = arith.constant 0 : i32
    return %c0_i32, %c0_i32_0 : i32, i32
  }
  func.func @transform_7(%arg0: i32, %arg1: i32) -> (i32, i32, i32) {
    %c0_i32 = arith.constant 0 : i32
    %c0_i32_0 = arith.constant 0 : i32
    return %arg0, %c0_i32, %arg1 : i32, i32, i32
  }
}

</mosaic_0001>

<bundles_post_ra>
// kernel: encoder_forward.1
= control target key start
LH: loop header
LB: loop body
LE: loop exit
PB: predicated region body
PF: predicated region fallthrough
CT: control target
= control target key end

     0   :  { %s14411_s24 = smov 0   ;;  %s14413_s25 = smov 0   ;;  %s20056_s0 = inlined_call_operand.vmem [shape: f32[2,24,16], index: 0, kind: input, shape index: {}]   ;;  %s20057_s1 = inlined_call_operand.vmem [shape: f32[256,24], index: 1, kind: input, shape index: {}]   ;;  %s20058_s2 = inlined_call_operand.vmem [shape: f32[256,1], index: 2, kind: input, shape index: {}]   ;;  %s20059_s3 = inlined_call_operand.vmem [shape: bf16[13,256,256], index: 3, kind: input, shape index: {}]   ;;  %s20060_s4 = inlined_call_operand.vmem [shape: f32[13,256,1], index: 4, kind: input, shape index: {}]   ;;  %s20061_s5 = inlined_call_operand.vmem [shape: bf16[512,256], index: 5, kind: input, shape index: {}]   ;;  %s20062_s6 = inlined_call_operand.vmem [shape: f32[512,1], index: 6, kind: input, shape index: {}]   ;;  %s20063_s7 = inlined_call_operand.vmem [shape: f32[2,512,16], index: 7, kind: output, shape index: {}]  }
   0x1   :  { %s14415_s26 = smov 0  }
   0x2 LB: > { %s29_s27 = sadd.s32 1, %s14364_s25  ;;  %p10426_p0 = scmp.ge.s32.totalorder %s14368_s26, 1  ;;  %s14368_s26 = sphi %s14415_s26, %s17_s26   ;;  %s14364_s25 = sphi %s14413_s25, %s20959_s25   ;;  %s14360_s24 = sphi %s14411_s24, %s20958_s24  }
   0x3   : > { %p31_p1 = scmp.ge.s32.totalorder %s29_s27, 2  ;;  %p256_p2 = scmp.lt.s32.totalorder %s14368_s26, 3 }
   0x5   : > { %s20961_s27 = smov (%p31_p1, %s29_s27), 0  ;;  %p257_p3 = pnand %p10426_p0, %p256_p2 }
   0x7   : > { %260 = sbr.rel (%p257_p3) target bundleno = 5273 (0x1499), region = 48 }
   0xe   : > { %v362_v0 = vld [vmem:[%s20058_s2 + $0x80] sm:$0xff]  ;;  %p294_p4 = scmp.lt.s32.totalorder %s14360_s24, 1  ;;  %vm538_vm0 = vcmask 195584   ;;  %v20064_v2 = vmov 0   ;;  %v363_v4 = vld [vmem:[%s20058_s2 + $0x88] sm:$0xff]  ;;  %v364_v6 = vld [vmem:[%s20058_s2 + $0x90] sm:$0xff] }
   0xf   : > { %v346_v1 = vld [vmem:[%s20058_s2] sm:$0xff]  ;;  %13369 = vset.pattern.permute.xlu1 %v20064_v2  ;;  %13368 = vset.pattern.permute.xlu0 %v20064_v2  ;;  %v347_v5 = vld [vmem:[%s20058_s2 + $0x8] sm:$0xff]  ;;  %v365_v7 = vld [vmem:[%s20058_s2 + $0x98] sm:$0xff]  ;;  %vm10274_vm1 = vcmask 130048  }
  0x10   : > { %460 = vperm.xlu0 %13368, %v362_v0   ;;  %380 = vperm.xlu1 %13369, %v346_v1   ;;  %s20963_s24 = smov (!%p294_p4, %s14360_s24), 1  ;;  %v314_v3 = vld [vmem:[%s20057_s1] sm:$0xff]  ;;  %v348_v12 = vld [vmem:[%s20058_s2 + $0x10] sm:$0xff]  ;;  %v349_v13 = vld [vmem:[%s20058_s2 + $0x18] sm:$0xff] }
  0x11   : > { %13274 = vmatprep.mubr.msk.f32.mxu0 %vm538_vm0, %v314_v3  ;;  %s13342_s15 = smul.u32 24, %s20963_s24  ;;  %v315_v14 = vld [vmem:[%s20057_s1 + $0x8] sm:$0xff]  ;;  %v366_v15 = vld [vmem:[%s20058_s2 + $0xa0] sm:$0xff]  ;;  %v316_v17 = vld [vmem:[%s20057_s1 + $0x10] sm:$0xff]  ;;  %s11776_s18 = sshll.u32 %s20963_s24, 9 }
  0x12   : > { %v367_v16 = vld [vmem:[%s20058_s2 + $0xa8] sm:$0xff]  ;;  %v317_v18 = vld [vmem:[%s20057_s1 + $0x18] sm:$0xff]  ;;  %v350_v19 = vld [vmem:[%s20058_s2 + $0x20] sm:$0xff]  ;;  %s19911_s23 = scalar_lea.vmem %s20063_s7, %s11776_s18 }
  0x13   : > { %s301_s20 = scalar_lea.vmem %s20056_s0, %s13342_s15  ;;  %v351_v20 = vld [vmem:[%s20058_s2 + $0x28] sm:$0xff]  ;;  %v318_v21 = vld [vmem:[%s20057_s1 + $0x20] sm:$0xff]  ;;  %v368_v23 = vld [vmem:[%s20058_s2 + $0xb0] sm:$0xff] }
  0x14   : > { %465 = vperm.xlu0 %13368, %v363_v4   ;;  %385 = vperm.xlu1 %13369, %v347_v5   ;;  %v311_v8 = vld [vmem:[%s301_s20] sm:$0xff]  ;;  %v312_v9 = vld [vmem:[%s301_s20 + $0x8] sm:$0xff]  ;;  %v313_v11 = vld [vmem:[%s301_s20 + $0x10] sm:$0xff] }
  0x15   : > { %v13322_v10 = vpack.c.bf16 %v312_v9, %v311_v8  ;;  %v319_v22 = vld [vmem:[%s20057_s1 + $0x28] sm:$0xff]  ;;  %v369_v24 = vld [vmem:[%s20058_s2 + $0xb8] sm:$0xff]  ;;  %v320_v25 = vld [vmem:[%s20057_s1 + $0x30] sm:$0xff] }
  0x16   : > { %v321_v26 = vld [vmem:[%s20057_s1 + $0x38] sm:$0xff]  ;;  %v352_v27 = vld [vmem:[%s20058_s2 + $0x30] sm:$0xff]  ;;  %v322_v29 = vld [vmem:[%s20057_s1 + $0x40] sm:$0xff] }
  0x17   : > { %13323 = vmatprep.subr.bf16.mxu0 %v13322_v10  ;;  %v353_v28 = vld [vmem:[%s20058_s2 + $0x38] sm:$0xff]  ;;  %v323_v30 = vld [vmem:[%s20057_s1 + $0x48] sm:$0xff]  ;;  %v370_v31 = vld [vmem:[%s20058_s2 + $0xc0] sm:$0xff] }
  0x18   : > { %470 = vperm.xlu0 %13368, %v364_v6   ;;  %475 = vperm.xlu1 %13369, %v365_v7   ;;  %v371_v32 = vld [vmem:[%s20058_s2 + $0xc8] sm:$0xff]  ;;  %v324_v33 = vld [vmem:[%s20057_s1 + $0x50] sm:$0xff]  ;;  %v325_v34 = vld [vmem:[%s20057_s1 + $0x58] sm:$0xff] }
  0x19   : > { %13325 = vmatpush3.bf16.msra.mxu0 %v13322_v10  ;;  %v354_v35 = vld [vmem:[%s20058_s2 + $0x40] sm:$0xff]  ;;  %v355_v36 = vld [vmem:[%s20058_s2 + $0x48] sm:$0xff]  ;;  %v372_v39 = vld [vmem:[%s20058_s2 + $0xd0] sm:$0xff] }
  0x1a   : > { %13272 = vmatprep.subr.mxu0 %v313_v11  ;;  %v326_v37 = vld [vmem:[%s20057_s1 + $0x60] sm:$0xff]  ;;  %v327_v38 = vld [vmem:[%s20057_s1 + $0x68] sm:$0xff]  ;;  %v373_v40 = vld [vmem:[%s20058_s2 + $0xd8] sm:$0xff] }
  0x1b   : > { %v328_v41 = vld [vmem:[%s20057_s1 + $0x70] sm:$0xff]  ;;  %v329_v42 = vld [vmem:[%s20057_s1 + $0x78] sm:$0xff]  ;;  %v330_v45 = vld [vmem:[%s20057_s1 + $0x80] sm:$0xff] }
  0x1c   : > { %390 = vperm.xlu0 %13368, %v348_v12   ;;  %395 = vperm.xlu1 %13369, %v349_v13   ;;  %v356_v43 = vld [vmem:[%s20058_s2 + $0x50] sm:$0xff]  ;;  %v357_v44 = vld [vmem:[%s20058_s2 + $0x58] sm:$0xff]  ;;  %v331_v46 = vld [vmem:[%s20057_s1 + $0x88] sm:$0xff] }
  0x1d   : > { %13273 = vmatpush3.msra.mxu0 %v313_v11  ;;  %v374_v47 = vld [vmem:[%s20058_s2 + $0xe0] sm:$0xff]  ;;  %v375_v48 = vld [vmem:[%s20058_s2 + $0xe8] sm:$0xff]  ;;  %v332_v49 = vld [vmem:[%s20057_s1 + $0x90] sm:$0xff] }
  0x1e   : > { %13275 = vmatmul.mubr.msk.f32.vlgmr.msra.gmra.mrb[0].mxu0 %vm538_vm0, %v315_v14  ;;  %v333_v50 = vld [vmem:[%s20057_s1 + $0x98] sm:$0xff]  ;;  %v358_v51 = vld [vmem:[%s20058_s2 + $0x60] sm:$0xff]  ;;  %v359_v52 = vld [vmem:[%s20058_s2 + $0x68] sm:$0xff] }
  0x1f   : > { %13277 = vmatprep.mubr.msk.f32.mxu0 %vm538_vm0, %v316_v17  ;;  %v334_v53 = vld [vmem:[%s20057_s1 + $0xa0] sm:$0xff]  ;;  %v335_v54 = vld [vmem:[%s20057_s1 + $0xa8] sm:$0xff]  ;;  %v376_v55 = vld [vmem:[%s20058_s2 + $0xf0] sm:$0xff] }
  0x20   : > { %480 = vperm.xlu0 %13368, %v366_v15   ;;  %485 = vperm.xlu1 %13369, %v367_v16   ;;  %v377_v56 = vld [vmem:[%s20058_s2 + $0xf8] sm:$0xff]  ;;  %v336_v57 = vld [vmem:[%s20057_s1 + $0xb0] sm:$0xff]  ;;  %v338_v61 = vld [vmem:[%s20057_s1 + $0xc0] sm:$0xff] }
  0x21   : > { %v337_v58 = vld [vmem:[%s20057_s1 + $0xb8] sm:$0xff]  ;;  %v360_v59 = vld [vmem:[%s20058_s2 + $0x70] sm:$0xff]  ;;  %v339_v62 = vld [vmem:[%s20057_s1 + $0xc8] sm:$0xff] }
  0x22   : > { %13278 = vmatmul.mubr.msk.f32.gmra.mrb[2].mxu0 %vm538_vm0, %v317_v18  ;;  %v361_v60 = vld [vmem:[%s20058_s2 + $0x78] sm:$0xff]  ;;  %v956_v63 = vld [vmem:[%s20060_s4 + $0x80] sm:$0xff]  ;;  %v957_v0 = vld [vmem:[%s20060_s4 + $0x88] sm:$0xff] }
  0x23   : > { %13280 = vmatprep.mubr.msk.f32.mxu0 %vm538_vm0, %v318_v21  ;;  %v340_v1 = vld [vmem:[%s20057_s1 + $0xd0] sm:$0xff]  ;;  %v341_v3 = vld [vmem:[%s20057_s1 + $0xd8] sm:$0xff]  ;;  %v940_v4 = vld [vmem:[%s20060_s4] sm:$0xff] }
  0x24   : > { %400 = vperm.xlu0 %13368, %v350_v19   ;;  %405 = vperm.xlu1 %13369, %v351_v20   ;;  %v941_v5 = vld [vmem:[%s20060_s4 + $0x8] sm:$0xff]  ;;  %v342_v6 = vld [vmem:[%s20057_s1 + $0xe0] sm:$0xff]  ;;  %v958_v8 = vld [vmem:[%s20060_s4 + $0x90] sm:$0xff] }
  0x25   : > { %v343_v7 = vld [vmem:[%s20057_s1 + $0xe8] sm:$0xff]  ;;  %v959_v9 = vld [vmem:[%s20060_s4 + $0x98] sm:$0xff]  ;;  %v344_v10 = vld [vmem:[%s20057_s1 + $0xf0] sm:$0xff] }
  0x26   : > { %13281 = vmatmul.mubr.msk.f32.gmra.mrb[4].mxu0 %vm538_vm0, %v319_v22  ;;  %v345_v11 = vld [vmem:[%s20057_s1 + $0xf8] sm:$0xff]  ;;  %v942_v12 = vld [vmem:[%s20060_s4 + $0x10] sm:$0xff]  ;;  %v960_v14 = vld [vmem:[%s20060_s4 + $0xa0] sm:$0xff] }
  0x27   : > { %13283 = vmatprep.mubr.msk.f32.mxu0 %vm538_vm0, %v320_v25  ;;  %v943_v13 = vld [vmem:[%s20060_s4 + $0x18] sm:$0xff]  ;;  %v961_v15 = vld [vmem:[%s20060_s4 + $0xa8] sm:$0xff]  ;;  %v944_v16 = vld [vmem:[%s20060_s4 + $0x20] sm:$0xff] }
  0x28   : > { %490 = vperm.xlu0 %13368, %v368_v23   ;;  %495 = vperm.xlu1 %13369, %v369_v24   ;;  %v945_v17 = vld [vmem:[%s20060_s4 + $0x28] sm:$0xff]  ;;  %v962_v18 = vld [vmem:[%s20060_s4 + $0xb0] sm:$0xff]  ;;  %v963_v19 = vld [vmem:[%s20060_s4 + $0xb8] sm:$0xff] }
  0x29   : > { %v946_v20 = vld [vmem:[%s20060_s4 + $0x30] sm:$0xff]  ;;  %v947_v21 = vld [vmem:[%s20060_s4 + $0x38] sm:$0xff]  ;;  %v964_v22 = vld [vmem:[%s20060_s4 + $0xc0] sm:$0xff] }
  0x2a   : > { %13284 = vmatmul.mubr.msk.f32.gmra.mrb[6].mxu0 %vm538_vm0, %v321_v26  ;;  %v965_v23 = vld [vmem:[%s20060_s4 + $0xc8] sm:$0xff]  ;;  %v948_v24 = vld [vmem:[%s20060_s4 + $0x40] sm:$0xff]  ;;  %v966_v26 = vld [vmem:[%s20060_s4 + $0xd0] sm:$0xff] }
  0x2b   : > { %13286 = vmatprep.mubr.msk.f32.mxu0 %vm538_vm0, %v322_v29  ;;  %v949_v25 = vld [vmem:[%s20060_s4 + $0x48] sm:$0xff]  ;;  %v951_v29 = vld [vmem:[%s20060_s4 + $0x58] sm:$0xff] }
  0x2c   : > { %410 = vperm.xlu0 %13368, %v352_v27   ;;  %415 = vperm.xlu1 %13369, %v353_v28   ;;  %v967_v27 = vld [vmem:[%s20060_s4 + $0xd8] sm:$0xff]  ;;  %v950_v28 = vld [vmem:[%s20060_s4 + $0x50] sm:$0xff] }
  0x2e   : > { %13287 = vmatmul.mubr.msk.f32.gmra.mrb[8].mxu0 %vm538_vm0, %v323_v30  ;;  %v968_v30 = vld [vmem:[%s20060_s4 + $0xe0] sm:$0xff] }
  0x2f   : > { %13289 = vmatprep.mubr.msk.f32.mxu0 %vm538_vm0, %v324_v33  ;;  %v953_v33 = vld [vmem:[%s20060_s4 + $0x68] sm:$0xff] }
  0x30   : > { %500 = vperm.xlu0 %13368, %v370_v31   ;;  %505 = vperm.xlu1 %13369, %v371_v32   ;;  %v969_v31 = vld [vmem:[%s20060_s4 + $0xe8] sm:$0xff]  ;;  %v952_v32 = vld [vmem:[%s20060_s4 + $0x60] sm:$0xff] }
  0x32   : > { %13290 = vmatmul.mubr.msk.f32.gmra.mrb[10].mxu0 %vm538_vm0, %v325_v34  ;;  %v970_v34 = vld [vmem:[%s20060_s4 + $0xf0] sm:$0xff] }
  0x33   : > { %13292 = vmatprep.mubr.msk.f32.mxu0 %vm538_vm0, %v326_v37  ;;  %v955_v37 = vld [vmem:[%s20060_s4 + $0x78] sm:$0xff] }
  0x34   : > { %420 = vperm.xlu0 %13368, %v354_v35   ;;  %425 = vperm.xlu1 %13369, %v355_v36   ;;  %v971_v35 = vld [vmem:[%s20060_s4 + $0xf8] sm:$0xff]  ;;  %v954_v36 = vld [vmem:[%s20060_s4 + $0x70] sm:$0xff] }
  0x36   : > { %13293 = vmatmul.mubr.msk.f32.gmra.mrb[12].mxu0 %vm538_vm0, %v327_v38  ;;  %v10542_v38 = vld [vmem:[%s20060_s4 + $0x180] sm:$0xff] }
  0x37   : > { %13295 = vmatprep.mubr.msk.f32.mxu0 %vm538_vm0, %v328_v41 }
  0x38   : > { %510 = vperm.xlu0 %13368, %v372_v39   ;;  %515 = vperm.xlu1 %13369, %v373_v40   ;;  %v10543_v39 = vld [vmem:[%s20060_s4 + $0x188] sm:$0xff] }
  0x3a   : > { %13296 = vmatmul.mubr.msk.f32.gmra.mrb[14].mxu0 %vm538_vm0, %v329_v42  ;;  %v10526_v42 = vld [vmem:[%s20060_s4 + $0x100] sm:$0xff] }
  0x3b   : > { %13298 = vmatprep.mubr.msk.f32.mxu0 %vm538_vm0, %v330_v45 }
  0x3c   : > { %430 = vperm.xlu0 %13368, %v356_v43   ;;  %435 = vperm.xlu1 %13369, %v357_v44   ;;  %v10527_v43 = vld [vmem:[%s20060_s4 + $0x108] sm:$0xff] }
  0x3e   : > { %13299 = vmatmul.mubr.msk.f32.gmra.mrb[16].mxu0 %vm538_vm0, %v331_v46  ;;  %v10544_v46 = vld [vmem:[%s20060_s4 + $0x190] sm:$0xff] }
  0x3f   : > { %13301 = vmatprep.mubr.msk.f32.mxu0 %vm538_vm0, %v332_v49 }
  0x40   : > { %520 = vperm.xlu0 %13368, %v374_v47   ;;  %525 = vperm.xlu1 %13369, %v375_v48   ;;  %v10545_v47 = vld [vmem:[%s20060_s4 + $0x198] sm:$0xff] }
  0x42   : > { %13302 = vmatmul.mubr.msk.f32.gmra.mrb[18].mxu0 %vm538_vm0, %v333_v50  ;;  %v10528_v50 = vld [vmem:[%s20060_s4 + $0x110] sm:$0xff] }
  0x43   : > { %13304 = vmatprep.mubr.msk.f32.mxu0 %vm538_vm0, %v334_v53 }
  0x44   : > { %440 = vperm.xlu0 %13368, %v358_v51   ;;  %445 = vperm.xlu1 %13369, %v359_v52   ;;  %v10529_v51 = vld [vmem:[%s20060_s4 + $0x118] sm:$0xff] }
  0x46   : > { %13305 = vmatmul.mubr.msk.f32.gmra.mrb[20].mxu0 %vm538_vm0, %v335_v54  ;;  %v10546_v54 = vld [vmem:[%s20060_s4 + $0x1a0] sm:$0xff] }
  0x47   : > { %13307 = vmatprep.mubr.msk.f32.mxu0 %vm538_vm0, %v336_v57 }
  0x48   : > { %530 = vperm.xlu0 %13368, %v376_v55   ;;  %535 = vperm.xlu1 %13369, %v377_v56   ;;  %v10547_v55 = vld [vmem:[%s20060_s4 + $0x1a8] sm:$0xff] }
  0x4a   : > { %13308 = vmatmul.mubr.msk.f32.gmra.mrb[22].mxu0 %vm538_vm0, %v337_v58  ;;  %v10530_v58 = vld [vmem:[%s20060_s4 + $0x120] sm:$0xff] }
  0x4b   : > { %13310 = vmatprep.mubr.msk.f32.mxu0 %vm538_vm0, %v338_v61 }
  0x4c   : > { %450 = vperm.xlu0 %13368, %v360_v59   ;;  %455 = vperm.xlu1 %13369, %v361_v60   ;;  %v10531_v59 = vld [vmem:[%s20060_s4 + $0x128] sm:$0xff] }
  0x4e   : > { %13311 = vmatmul.mubr.msk.f32.gmra.mrb[24].mxu0 %vm538_vm0, %v339_v62  ;;  %v10548_v62 = vld [vmem:[%s20060_s4 + $0x1b0] sm:$0xff] }
  0x4f   : > { %13313 = vmatprep.mubr.msk.f32.mxu0 %vm538_vm0, %v340_v1 }
  0x50   : > { %1054 = vperm.xlu0 %13368, %v956_v63   ;;  %1059 = vperm.xlu1 %13369, %v957_v0   ;;  %v10549_v63 = vld [vmem:[%s20060_s4 + $0x1b8] sm:$0xff] }
  0x52   : > { %13314 = vmatmul.mubr.msk.f32.gmra.mrb[26].mxu0 %vm538_vm0, %v341_v3  ;;  %v10532_v3 = vld [vmem:[%s20060_s4 + $0x130] sm:$0xff] }
  0x53   : > { %13316 = vmatprep.mubr.msk.f32.mxu0 %vm538_vm0, %v342_v6 }
  0x54   : > { %974 = vperm.xlu0 %13368, %v940_v4   ;;  %979 = vperm.xlu1 %13369, %v941_v5   ;;  %v10533_v4 = vld [vmem:[%s20060_s4 + $0x138] sm:$0xff] }
  0x56   : > { %13317 = vmatmul.mubr.msk.f32.gmra.mrb[28].mxu0 %vm538_vm0, %v343_v7  ;;  %v10550_v7 = vld [vmem:[%s20060_s4 + $0x1c0] sm:$0xff] }
  0x57   : > { %13319 = vmatprep.mubr.msk.f32.mxu0 %vm538_vm0, %v344_v10 }
  0x58   : > { %1064 = vperm.xlu0 %13368, %v958_v8   ;;  %1069 = vperm.xlu1 %13369, %v959_v9   ;;  %v10551_v8 = vld [vmem:[%s20060_s4 + $0x1c8] sm:$0xff] }
  0x5a   : > { %13320 = vmatmul.mubr.msk.f32.gmra.mrb[30].mxu0 %vm538_vm0, %v345_v11  ;;  %v10534_v11 = vld [vmem:[%s20060_s4 + $0x140] sm:$0xff] }
  0x5c   : > { %984 = vperm.xlu0 %13368, %v942_v12   ;;  %989 = vperm.xlu1 %13369, %v943_v13   ;;  %v10535_v12 = vld [vmem:[%s20060_s4 + $0x148] sm:$0xff] }
  0x60   : > { %1074 = vperm.xlu0 %13368, %v960_v14   ;;  %1079 = vperm.xlu1 %13369, %v961_v15   ;;  %v10552_v15 = vld [vmem:[%s20060_s4 + $0x1d0] sm:$0xff] }
  0x64   : > { %994 = vperm.xlu0 %13368, %v944_v16   ;;  %999 = vperm.xlu1 %13369, %v945_v17   ;;  %v10553_v16 = vld [vmem:[%s20060_s4 + $0x1d8] sm:$0xff]  ;;  %v13372_v17 = vld [vmem:[%s20059_s3 + $0x4] ss:$8 sps:$4 sm:$0xff]  }
  0x65   : > { %1324 = vmatprep.mubr.bf16.mxu1 %v13372_v17  ;;  %v10626_v17 = vld [vmem:[%s20060_s4 + $0x220] sm:$0xff] }
  0x68   : > { %1084 = vperm.xlu0 %13368, %v962_v18   ;;  %1089 = vperm.xlu1 %13369, %v963_v19  }
  0x6c   : > { %1004 = vperm.xlu0 %13368, %v946_v20   ;;  %1009 = vperm.xlu1 %13369, %v947_v21   ;;  %v10536_v20 = vld [vmem:[%s20060_s4 + $0x150] sm:$0xff]  ;;  %v10537_v21 = vld [vmem:[%s20060_s4 + $0x158] sm:$0xff] }
  0x70   : > { %1094 = vperm.xlu0 %13368, %v964_v22   ;;  %1099 = vperm.xlu1 %13369, %v965_v23  }
  0x74   : > { %1014 = vperm.xlu0 %13368, %v948_v24   ;;  %1019 = vperm.xlu1 %13369, %v949_v25   ;;  %v10554_v24 = vld [vmem:[%s20060_s4 + $0x1e0] sm:$0xff]  ;;  %v10555_v25 = vld [vmem:[%s20060_s4 + $0x1e8] sm:$0xff] }
  0x78   : > { %1104 = vperm.xlu0 %13368, %v966_v26   ;;  %1109 = vperm.xlu1 %13369, %v967_v27  }
  0x7c   : > { %1024 = vperm.xlu0 %13368, %v950_v28   ;;  %1029 = vperm.xlu1 %13369, %v951_v29   ;;  %v10538_v28 = vld [vmem:[%s20060_s4 + $0x160] sm:$0xff]  ;;  %v10539_v29 = vld [vmem:[%s20060_s4 + $0x168] sm:$0xff] }
  0x80   : > { %1114 = vperm.xlu0 %13368, %v968_v30   ;;  %1119 = vperm.xlu1 %13369, %v969_v31  }
  0x84   : > { %1034 = vperm.xlu0 %13368, %v952_v32   ;;  %1039 = vperm.xlu1 %13369, %v953_v33   ;;  %v10556_v32 = vld [vmem:[%s20060_s4 + $0x1f0] sm:$0xff]  ;;  %v10557_v33 = vld [vmem:[%s20060_s4 + $0x1f8] sm:$0xff] }
  0x88   : > { %1124 = vperm.xlu0 %13368, %v970_v34   ;;  %1129 = vperm.xlu1 %13369, %v971_v35  }
  0x8c   : > { %1044 = vperm.xlu0 %13368, %v954_v36   ;;  %1049 = vperm.xlu1 %13369, %v955_v37   ;;  %v10540_v36 = vld [vmem:[%s20060_s4 + $0x170] sm:$0xff]  ;;  %v10541_v37 = vld [vmem:[%s20060_s4 + $0x178] sm:$0xff] }
  0x8f   : > { %v14763_v40 = vpop.permute.xlu0 %460  ;;  %v14765_v41 = vpop.permute.xlu1 %380 }
  0x90   : > { %1649 = vperm.xlu0 %13368, %v10542_v38   ;;  %1654 = vperm.xlu1 %13369, %v10543_v39  }
  0x93   : > { %v14773_v44 = vpop.permute.xlu0 %465  ;;  %v14775_v45 = vpop.permute.xlu1 %385 }
  0x94   : > { %1569 = vperm.xlu0 %13368, %v10526_v42   ;;  %1574 = vperm.xlu1 %13369, %v10527_v43   ;;  %v10638_v42 = vld [vmem:[%s20060_s4 + $0x280] sm:$0xff]  ;;  %v10639_v43 = vld [vmem:[%s20060_s4 + $0x288] sm:$0xff] }
  0x97   : > { %v14783_v48 = vpop.permute.xlu0 %470  ;;  %v14785_v49 = vpop.permute.xlu1 %475 }
  0x98   : > { %1659 = vperm.xlu0 %13368, %v10544_v46   ;;  %1664 = vperm.xlu1 %13369, %v10545_v47  }
  0x9b   : > { %v14793_v52 = vpop.permute.xlu0 %390  ;;  %v14795_v53 = vpop.permute.xlu1 %395 }
  0x9c   : > { %1579 = vperm.xlu0 %13368, %v10528_v50   ;;  %1584 = vperm.xlu1 %13369, %v10529_v51   ;;  %v10622_v50 = vld [vmem:[%s20060_s4 + $0x200] sm:$0xff]  ;;  %v10623_v51 = vld [vmem:[%s20060_s4 + $0x208] sm:$0xff] }
  0x9f   : > { %v14803_v56 = vpop.permute.xlu0 %480  ;;  %v14805_v57 = vpop.permute.xlu1 %485 }
  0xa0   : > { %1669 = vperm.xlu0 %13368, %v10546_v54   ;;  %1674 = vperm.xlu1 %13369, %v10547_v55  }
  0xa3   : > { %v14813_v60 = vpop.permute.xlu0 %400  ;;  %v14815_v61 = vpop.permute.xlu1 %405 }
  0xa4   : > { %1589 = vperm.xlu0 %13368, %v10530_v58   ;;  %1594 = vperm.xlu1 %13369, %v10531_v59   ;;  %v10640_v58 = vld [vmem:[%s20060_s4 + $0x290] sm:$0xff]  ;;  %v10641_v59 = vld [vmem:[%s20060_s4 + $0x298] sm:$0xff] }
  0xa7   : > { %v14823_v0 = vpop.permute.xlu0 %490  ;;  %v14825_v1 = vpop.permute.xlu1 %495 }
  0xa8   : > { %1679 = vperm.xlu0 %13368, %v10548_v62   ;;  %1684 = vperm.xlu1 %13369, %v10549_v63  }
  0xab   : > { %v14833_v5 = vpop.permute.xlu0 %410  ;;  %v14835_v6 = vpop.permute.xlu1 %415 }
  0xac   : > { %1599 = vperm.xlu0 %13368, %v10532_v3   ;;  %1604 = vperm.xlu1 %13369, %v10533_v4   ;;  %v10624_v3 = vld [vmem:[%s20060_s4 + $0x210] sm:$0xff]  ;;  %v10625_v4 = vld [vmem:[%s20060_s4 + $0x218] sm:$0xff] }
  0xaf   : > { %v14843_v9 = vpop.permute.xlu0 %500  ;;  %v14845_v10 = vpop.permute.xlu1 %505 }
  0xb0   : > { %1689 = vperm.xlu0 %13368, %v10550_v7   ;;  %1694 = vperm.xlu1 %13369, %v10551_v8  }
  0xb3   : > { %v14853_v13 = vpop.permute.xlu0 %420  ;;  %v14855_v14 = vpop.permute.xlu1 %425 }
  0xb4   : > { %1609 = vperm.xlu0 %13368, %v10534_v11   ;;  %1614 = vperm.xlu1 %13369, %v10535_v12   ;;  %v10642_v11 = vld [vmem:[%s20060_s4 + $0x2a0] sm:$0xff]  ;;  %v10643_v12 = vld [vmem:[%s20060_s4 + $0x2a8] sm:$0xff] }
  0xb7   : > { %v14866_v18 = vpop.permute.xlu0 %510  ;;  %v14868_v19 = vpop.permute.xlu1 %515 }
  0xb8   : > { %1699 = vperm.xlu0 %13368, %v10552_v15   ;;  %1704 = vperm.xlu1 %13369, %v10553_v16  }
  0xbb   : > { %v14876_v22 = vpop.permute.xlu0 %430  ;;  %v14878_v23 = vpop.permute.xlu1 %435 }
  0xbc   : > { %1619 = vperm.xlu0 %13368, %v10536_v20   ;;  %1624 = vperm.xlu1 %13369, %v10537_v21   ;;  %v10627_v20 = vld [vmem:[%s20060_s4 + $0x228] sm:$0xff] }
  0xbf   : > { %v14886_v26 = vpop.permute.xlu0 %520  ;;  %v14888_v27 = vpop.permute.xlu1 %525 }
  0xc0   : > { %1709 = vperm.xlu0 %13368, %v10554_v24   ;;  %1714 = vperm.xlu1 %13369, %v10555_v25   ;;  %v10644_v25 = vld [vmem:[%s20060_s4 + $0x2b0] sm:$0xff] }
  0xc3   : > { %v14896_v30 = vpop.permute.xlu0 %440  ;;  %v14898_v31 = vpop.permute.xlu1 %445 }
  0xc4   : > { %1629 = vperm.xlu0 %13368, %v10538_v28   ;;  %1634 = vperm.xlu1 %13369, %v10539_v29   ;;  %v10645_v28 = vld [vmem:[%s20060_s4 + $0x2b8] sm:$0xff] }
  0xc7   : > { %v14906_v34 = vpop.permute.xlu0 %530  ;;  %v14908_v35 = vpop.permute.xlu1 %535 }
  0xc8   : > { %1719 = vperm.xlu0 %13368, %v10556_v32   ;;  %1724 = vperm.xlu1 %13369, %v10557_v33   ;;  %v10628_v33 = vld [vmem:[%s20060_s4 + $0x230] sm:$0xff] }
  0xcb   : > { %v14916_v38 = vpop.permute.xlu0 %450  ;;  %v14918_v39 = vpop.permute.xlu1 %455 }
  0xcc   : > { %1639 = vperm.xlu0 %13368, %v10540_v36   ;;  %1644 = vperm.xlu1 %13369, %v10541_v37   ;;  %v10629_v36 = vld [vmem:[%s20060_s4 + $0x238] sm:$0xff] }
  0xcf   : > { %v14926_v46 = vpop.permute.xlu0 %1054  ;;  %v14928_v47 = vpop.permute.xlu1 %1059 }
  0xd0   : > { %2244 = vperm.xlu0 %13368, %v10638_v42   ;;  %2249 = vperm.xlu1 %13369, %v10639_v43   ;;  %v10646_v43 = vld [vmem:[%s20060_s4 + $0x2c0] sm:$0xff] }
  0xd3   : > { %v14936_v54 = vpop.permute.xlu0 %974  ;;  %v14938_v55 = vpop.permute.xlu1 %979 }
  0xd4   : > { %2164 = vperm.xlu0 %13368, %v10622_v50   ;;  %2169 = vperm.xlu1 %13369, %v10623_v51   ;;  %v10647_v50 = vld [vmem:[%s20060_s4 + $0x2c8] sm:$0xff] }
  0xd7   : > { %v14946_v62 = vpop.permute.xlu0 %1064  ;;  %v14948_v63 = vpop.permute.xlu1 %1069 }
  0xd8   : > { %2254 = vperm.xlu0 %13368, %v10640_v58   ;;  %2259 = vperm.xlu1 %13369, %v10641_v59   ;;  %v10630_v59 = vld [vmem:[%s20060_s4 + $0x240] sm:$0xff] }
  0xdb   : > { %v14956_v7 = vpop.permute.xlu0 %984  ;;  %v14958_v8 = vpop.permute.xlu1 %989 }
  0xdc   : > { %2174 = vperm.xlu0 %13368, %v10624_v3   ;;  %2179 = vperm.xlu1 %13369, %v10625_v4   ;;  %v10631_v3 = vld [vmem:[%s20060_s4 + $0x248] sm:$0xff] }
  0xdf   : > { %v14966_v15 = vpop.permute.xlu0 %1074  ;;  %v14968_v16 = vpop.permute.xlu1 %1079 }
  0xe0   : > { %20145 = vst [vmem:[#allocation2_spill] sm:$0xff] %v14968_v16  ;;  %2264 = vperm.xlu0 %13368, %v10642_v11   ;;  %2269 = vperm.xlu1 %13369, %v10643_v12  }
  0xe3   : > { %v14976_v21 = vpop.permute.xlu0 %994  ;;  %v14978_v24 = vpop.permute.xlu1 %999 }
  0xe4   : > { %2184 = vperm.xlu0 %13368, %v10626_v17   ;;  %2189 = vperm.xlu1 %13369, %v10627_v20  }
  0xe7   : > { %v14986_v29 = vpop.permute.xlu0 %1084  ;;  %v14988_v32 = vpop.permute.xlu1 %1089 }
  0xe8   : > { %20146 = vst [vmem:[#allocation3_spill] sm:$0xff] %v14986_v29  ;;  %20147 = vst [vmem:[#allocation4_spill] sm:$0xff] %v14988_v32  ;;  %2274 = vperm.xlu0 %13368, %v10644_v25   ;;  %2279 = vperm.xlu1 %13369, %v10645_v28   ;;  %v10648_v25 = vld [vmem:[%s20060_s4 + $0x2d0] sm:$0xff]  ;;  %v10718_v29 = vld [vmem:[%s20060_s4 + $0x300] sm:$0xff] }
  0xeb   : > { %v14996_v37 = vpop.permute.xlu0 %1004  ;;  %v14998_v42 = vpop.permute.xlu1 %1009 }
  0xec   : > { %2194 = vperm.xlu0 %13368, %v10628_v33   ;;  %2199 = vperm.xlu1 %13369, %v10629_v36   ;;  %v10649_v33 = vld [vmem:[%s20060_s4 + $0x2d8] sm:$0xff] }
  0xef   : > { %v15006_v51 = vpop.permute.xlu0 %1094  ;;  %v15008_v58 = vpop.permute.xlu1 %1099 }
  0xf0   : > { %20148 = vst [vmem:[#allocation5_spill] sm:$0xff] %v15006_v51  ;;  %20149 = vst [vmem:[#allocation6_spill] sm:$0xff] %v15008_v58  ;;  %2284 = vperm.xlu0 %13368, %v10646_v43   ;;  %2289 = vperm.xlu1 %13369, %v10647_v50   ;;  %v10636_v51 = vld [vmem:[%s20060_s4 + $0x270] sm:$0xff] }
  0xf1   : > { %v13276_v4 = vpop.f32.mrb[0].mxu0 }
  0xf2   : > { %v701_v11 = vpop.f32.mrb[1].mxu0  ;;  %v15019_v17 = vadd.f32 %v13276_v4, %v14775_v45  ;;  %v10650_v45 = vld [vmem:[%s20060_s4 + $0x2e0] sm:$0xff] }
  0xf3   : > { %v15016_v12 = vpop.permute.xlu0 %1014  ;;  %v15021_v20 = vpop.permute.xlu1 %1019  ;;  %v15027_v28 = vadd.f32 %v701_v11, %v14765_v41  ;;  %v10632_v41 = vld [vmem:[%s20060_s4 + $0x250] sm:$0xff]  ;;  %v10633_v11 = vld [vmem:[%s20060_s4 + $0x258] sm:$0xff] }
  0xf4   : > { %20150 = vst [vmem:[#allocation7_spill] sm:$0xff] %v15019_v17  ;;  %2204 = vperm.xlu0 %13368, %v10630_v59   ;;  %2209 = vperm.xlu1 %13369, %v10631_v3  }
  0xf5   : > { %20151 = vst [vmem:[#allocation8_spill] sm:$0xff] %v15027_v28  ;;  %v13279_v36 = vpop.f32.mrb[2].mxu0 }
  0xf6   : > { %v15035_v43 = vadd.f32 %v13279_v36, %v14795_v53  ;;  %v711_v50 = vpop.f32.mrb[3].mxu0  ;;  %v10651_v36 = vld [vmem:[%s20060_s4 + $0x2e8] sm:$0xff] }
  0xf7   : > { %v15037_v59 = vpop.permute.xlu0 %1104  ;;  %v15040_v3 = vadd.f32 %v711_v50, %v14793_v52  ;;  %v15042_v4 = vpop.permute.xlu1 %1109 }
  0xf8   : > { %20152 = vst [vmem:[#allocation9_spill] sm:$0xff] %v15035_v43  ;;  %20153 = vst [vmem:[#allocation10_spill] sm:$0xff] %v15037_v59  ;;  %2294 = vperm.xlu0 %13368, %v10648_v25   ;;  %2299 = vperm.xlu1 %13369, %v10649_v33   ;;  %v10634_v59 = vld [vmem:[%s20060_s4 + $0x260] sm:$0xff] }
  0xf9   : > { %20154 = vst [vmem:[#allocation11_spill] sm:$0xff] %v15040_v3  ;;  %20155 = vst [vmem:[#allocation12_spill] sm:$0xff] %v15042_v4  ;;  %v13282_v53 = vpop.f32.mrb[4].mxu0 }
  0xfa   : > { %v15053_v2 = vadd.f32 %v13282_v53, %v14815_v61  ;;  %v721_v52 = vpop.f32.mrb[5].mxu0  ;;  %v10635_v53 = vld [vmem:[%s20060_s4 + $0x268] sm:$0xff] }
  0xfb   : > { %v15055_v50 = vpop.permute.xlu0 %1024  ;;  %v15058_v25 = vadd.f32 %v721_v52, %v14813_v60  ;;  %v15060_v33 = vpop.permute.xlu1 %1029 }
  0xfc   : > { %20156 = vst [vmem:[#allocation13_spill] sm:$0xff] %v15053_v2  ;;  %2214 = vperm.xlu0 %13368, %v10632_v41   ;;  %2219 = vperm.xlu1 %13369, %v10633_v11  }
  0xfd   : > { %20157 = vst [vmem:[#allocation14_spill] sm:$0xff] %v15058_v25  ;;  %v13285_v61 = vpop.f32.mrb[6].mxu0 }
  0xfe   : > { %v15071_v4 = vadd.f32 %v13285_v61, %v14835_v6  ;;  %v731_v60 = vpop.f32.mrb[7].mxu0  ;;  %v10653_v61 = vld [vmem:[%s20060_s4 + $0x2f8] sm:$0xff] }
  0xff   : > { %v15073_v52 = vpop.permute.xlu0 %1114  ;;  %v15076_v41 = vadd.f32 %v731_v60, %v14833_v5  ;;  %v15078_v11 = vpop.permute.xlu1 %1119 }
 0x100   : > { %20158 = vst [vmem:[#allocation15_spill] sm:$0xff] %v15071_v4  ;;  %20159 = vst [vmem:[#allocation16_spill] sm:$0xff] %v15073_v52  ;;  %2304 = vperm.xlu0 %13368, %v10650_v45   ;;  %2309 = vperm.xlu1 %13369, %v10651_v36  }
 0x101   : > { %20160 = vst [vmem:[#allocation17_spill] sm:$0xff] %v15076_v41  ;;  %20161 = vst [vmem:[#allocation18_spill] sm:$0xff] %v15078_v11  ;;  %v13288_v6 = vpop.f32.mrb[8].mxu0  ;;  %v10652_v11 = vld [vmem:[%s20060_s4 + $0x2f0] sm:$0xff] }
 0x102   : > { %v15089_v52 = vadd.f32 %v13288_v6, %v14855_v14  ;;  %v741_v5 = vpop.f32.mrb[9].mxu0  ;;  %v10637_v6 = vld [vmem:[%s20060_s4 + $0x278] sm:$0xff] }
 0x103   : > { %v15091_v60 = vpop.permute.xlu0 %1034  ;;  %v15094_v45 = vadd.f32 %v741_v5, %v14853_v13  ;;  %v15096_v36 = vpop.permute.xlu1 %1039 }
 0x104   : > { %20162 = vst [vmem:[#allocation19_spill] sm:$0xff] %v15089_v52  ;;  %2224 = vperm.xlu0 %13368, %v10634_v59   ;;  %2229 = vperm.xlu1 %13369, %v10635_v53  }
 0x105   : > { %20163 = vst [vmem:[#allocation20_spill] sm:$0xff] %v15094_v45  ;;  %v13291_v14 = vpop.f32.mrb[10].mxu0 }
 0x106   : > { %v15107_v58 = vadd.f32 %v13291_v14, %v14878_v23  ;;  %v751_v13 = vpop.f32.mrb[11].mxu0  ;;  %v10735_v14 = vld [vmem:[%s20060_s4 + $0x388] sm:$0xff] }
 0x107   : > { %v15109_v5 = vpop.permute.xlu0 %1124  ;;  %v15112_v59 = vadd.f32 %v751_v13, %v14876_v22  ;;  %v15114_v53 = vpop.permute.xlu1 %1129 }
 0x108   : > { %20164 = vst [vmem:[#allocation21_spill] sm:$0xff] %v15107_v58  ;;  %20165 = vst [vmem:[#allocation22_spill] sm:$0xff] %v15109_v5  ;;  %2314 = vperm.xlu0 %13368, %v10652_v11   ;;  %2319 = vperm.xlu1 %13369, %v10653_v61  }
 0x109   : > { %20166 = vst [vmem:[#allocation23_spill] sm:$0xff] %v15112_v59  ;;  %20167 = vst [vmem:[#allocation24_spill] sm:$0xff] %v15114_v53  ;;  %v13294_v23 = vpop.f32.mrb[12].mxu0  ;;  %v10734_v53 = vld [vmem:[%s20060_s4 + $0x380] sm:$0xff] }
 0x10a   : > { %v15125_v5 = vadd.f32 %v13294_v23, %v14898_v31  ;;  %v761_v22 = vpop.f32.mrb[13].mxu0  ;;  %v10719_v23 = vld [vmem:[%s20060_s4 + $0x308] sm:$0xff] }
 0x10b   : > { %v15127_v13 = vpop.permute.xlu0 %1044  ;;  %v15130_v11 = vadd.f32 %v761_v22, %v14896_v30  ;;  %v15132_v61 = vpop.permute.xlu1 %1049 }
 0x10c   : > { %20168 = vst [vmem:[#allocation25_spill] sm:$0xff] %v15125_v5  ;;  %2234 = vperm.xlu0 %13368, %v10636_v51   ;;  %2239 = vperm.xlu1 %13369, %v10637_v6  }
 0x10d   : > { %20169 = vst [vmem:[#allocation26_spill] sm:$0xff] %v15130_v11  ;;  %v13297_v31 = vpop.f32.mrb[14].mxu0 }
 0x10e   : > { %v15143_v32 = vadd.f32 %v13297_v31, %v14918_v39  ;;  %v771_v30 = vpop.f32.mrb[15].mxu0 }
 0x10f   : > { %v15145_v22 = vpop.permute.xlu0 %1649  ;;  %v15148_v51 = vadd.f32 %v771_v30, %v14916_v38  ;;  %v15150_v6 = vpop.permute.xlu1 %1654  ;;  %v10736_v30 = vld [vmem:[%s20060_s4 + $0x390] sm:$0xff] }
 0x110   : > { %20170 = vst [vmem:[#allocation27_spill] sm:$0xff] %v15143_v32  ;;  %20171 = vst [vmem:[#allocation28_spill] sm:$0xff] %v15145_v22  ;;  %2871 = vperm.xlu0 %13368, %v10734_v53   ;;  %2876 = vperm.xlu1 %13369, %v10735_v14  }
 0x111   : > { %20172 = vst [vmem:[#allocation29_spill] sm:$0xff] %v15148_v51  ;;  %20173 = vst [vmem:[#allocation30_spill] sm:$0xff] %v15150_v6  ;;  %v13300_v39 = vpop.f32.mrb[16].mxu0 }
 0x112   : > { %v781_v22 = vpop.f32.mrb[17].mxu0  ;;  %v15163_v38 = vadd.f32 %v13300_v39, %v14773_v44  ;;  %v10737_v44 = vld [vmem:[%s20060_s4 + $0x398] sm:$0xff] }
 0x113   : > { %v15160_v16 = vpop.permute.xlu0 %1569  ;;  %v15165_v53 = vpop.permute.xlu1 %1574  ;;  %v15168_v14 = vadd.f32 %v781_v22, %v14763_v40 }
 0x114   : > { %20174 = vst [vmem:[#allocation31_spill] sm:$0xff] %v15163_v38  ;;  %2791 = vperm.xlu0 %13368, %v10718_v29   ;;  %2796 = vperm.xlu1 %13369, %v10719_v23  }
 0x115   : > { %20175 = vst [vmem:[#allocation32_spill] sm:$0xff] %v15168_v14  ;;  %v13303_v6 = vpop.f32.mrb[18].mxu0  ;;  %v932_v31 = vpack.c.bf16 %v15163_v38, %v15168_v14  ;;  %v20178_v38 = vpack.c.bf16 %v15019_v17, %v15027_v28  ;;  %v11119_v28 = vld [vmem:[%s20060_s4 + $0x788] sm:$0xff] }
 0x116   : > { %v15179_v39 = vadd.f32 %v13303_v6, %v14785_v49  ;;  %v791_v29 = vpop.f32.mrb[19].mxu0  ;;  %v10720_v49 = vld [vmem:[%s20060_s4 + $0x310] sm:$0xff] }
 0x117   : > { %v15181_v23 = vpop.permute.xlu0 %1659  ;;  %v15184_v40 = vadd.f32 %v791_v29, %v14783_v48  ;;  %v15186_v22 = vpop.permute.xlu1 %1664  ;;  %11812 = vmatprep.subr.bf16.mxu1 %v932_v31  ;;  %v10721_v48 = vld [vmem:[%s20060_s4 + $0x318] sm:$0xff] }
 0x118   : > { %20176 = vst [vmem:[#allocation33_spill] sm:$0xff] %v15179_v39  ;;  %2881 = vperm.xlu0 %13368, %v10736_v30   ;;  %2886 = vperm.xlu1 %13369, %v10737_v44  }
 0x119   : > { %20177 = vst [vmem:[#allocation34_spill] sm:$0xff] %v15184_v40  ;;  %11813 = vmatpush3.bf16.msra.mxu1 %v20178_v38  ;;  %v13306_v6 = vpop.f32.mrb[20].mxu0  ;;  %v933_v14 = vpack.c.bf16 %v15179_v39, %v15184_v40  ;;  %v20181_v40 = vpack.c.bf16 %v15035_v43, %v15040_v3 }
 0x11a   : > { %v15200_v31 = vadd.f32 %v13306_v6, %v14805_v57  ;;  %v801_v30 = vpop.f32.mrb[21].mxu0  ;;  %v10738_v57 = vld [vmem:[%s20060_s4 + $0x3a0] sm:$0xff] }
 0x11b   : > { %v15202_v44 = vpop.permute.xlu0 %1579  ;;  %v15205_v38 = vadd.f32 %v801_v30, %v14803_v56  ;;  %v15207_v29 = vpop.permute.xlu1 %1584  ;;  %11814 = vmatprep.subr.bf16.mxu1 %v933_v14  ;;  %v10739_v56 = vld [vmem:[%s20060_s4 + $0x3a8] sm:$0xff] }
 0x11c   : > { %20179 = vst [vmem:[#allocation35_spill] sm:$0xff] %v15200_v31  ;;  %2801 = vperm.xlu0 %13368, %v10720_v49   ;;  %2806 = vperm.xlu1 %13369, %v10721_v48  }
 0x11d   : > { %20180 = vst [vmem:[#allocation36_spill] sm:$0xff] %v15205_v38  ;;  %11815 = vmatpush3.bf16.msra.mxu1 %v20181_v40  ;;  %v13309_v6 = vpop.f32.mrb[22].mxu0  ;;  %v934_v39 = vpack.c.bf16 %v15200_v31, %v15205_v38  ;;  %v20184_v38 = vpack.c.bf16 %v15053_v2, %v15058_v25  ;;  %v10815_v25 = vld [vmem:[%s20060_s4 + $0x408] sm:$0xff] }
 0x11e   : > { %v15221_v14 = vadd.f32 %v13309_v6, %v14825_v1  ;;  %v811_v49 = vpop.f32.mrb[23].mxu0  ;;  %v10722_v1 = vld [vmem:[%s20060_s4 + $0x320] sm:$0xff] }
 0x11f   : > { %v15223_v48 = vpop.permute.xlu0 %1669  ;;  %v15226_v40 = vadd.f32 %v811_v49, %v14823_v0  ;;  %v15228_v30 = vpop.permute.xlu1 %1674  ;;  %11816 = vmatprep.subr.bf16.mxu1 %v934_v39  ;;  %v10723_v0 = vld [vmem:[%s20060_s4 + $0x328] sm:$0xff] }
 0x120   : > { %20182 = vst [vmem:[#allocation37_spill] sm:$0xff] %v15221_v14  ;;  %2891 = vperm.xlu0 %13368, %v10738_v57   ;;  %2896 = vperm.xlu1 %13369, %v10739_v56  }
 0x121   : > { %20183 = vst [vmem:[#allocation38_spill] sm:$0xff] %v15226_v40  ;;  %11817 = vmatpush3.bf16.msra.mxu1 %v20184_v38  ;;  %v13312_v6 = vpop.f32.mrb[24].mxu0  ;;  %v935_v31 = vpack.c.bf16 %v15221_v14, %v15226_v40  ;;  %v20187_v40 = vpack.c.bf16 %v15071_v4, %v15076_v41 }
 0x122   : > { %v15242_v39 = vadd.f32 %v13312_v6, %v14845_v10  ;;  %v821_v57 = vpop.f32.mrb[25].mxu0  ;;  %v10740_v10 = vld [vmem:[%s20060_s4 + $0x3b0] sm:$0xff] }
 0x123   : > { %v15244_v56 = vpop.permute.xlu0 %1589  ;;  %v15247_v38 = vadd.f32 %v821_v57, %v14843_v9  ;;  %v15249_v49 = vpop.permute.xlu1 %1594  ;;  %11818 = vmatprep.subr.bf16.mxu1 %v935_v31  ;;  %v10741_v9 = vld [vmem:[%s20060_s4 + $0x3b8] sm:$0xff] }
 0x124   : > { %20185 = vst [vmem:[#allocation39_spill] sm:$0xff] %v15242_v39  ;;  %2811 = vperm.xlu0 %13368, %v10722_v1   ;;  %2816 = vperm.xlu1 %13369, %v10723_v0  }
 0x125   : > { %20186 = vst [vmem:[#allocation40_spill] sm:$0xff] %v15247_v38  ;;  %11819 = vmatpush3.bf16.msra.mxu1 %v20187_v40  ;;  %v13315_v6 = vpop.f32.mrb[26].mxu0  ;;  %v936_v14 = vpack.c.bf16 %v15242_v39, %v15247_v38  ;;  %v20190_v38 = vpack.c.bf16 %v15089_v52, %v15094_v45  ;;  %v10733_v45 = vld [vmem:[%s20060_s4 + $0x378] sm:$0xff] }
 0x126   : > { %v15263_v31 = vadd.f32 %v13315_v6, %v14868_v19  ;;  %v831_v1 = vpop.f32.mrb[27].mxu0  ;;  %v10724_v19 = vld [vmem:[%s20060_s4 + $0x330] sm:$0xff] }
 0x127   : > { %v15265_v0 = vpop.permute.xlu0 %1679  ;;  %v15268_v40 = vadd.f32 %v831_v1, %v14866_v18  ;;  %v15270_v57 = vpop.permute.xlu1 %1684  ;;  %11820 = vmatprep.subr.bf16.mxu1 %v936_v14  ;;  %v10725_v18 = vld [vmem:[%s20060_s4 + $0x338] sm:$0xff] }
 0x128   : > { %20188 = vst [vmem:[#allocation41_spill] sm:$0xff] %v15263_v31  ;;  %2901 = vperm.xlu0 %13368, %v10740_v10   ;;  %2906 = vperm.xlu1 %13369, %v10741_v9  }
 0x129   : > { %20189 = vst [vmem:[#allocation42_spill] sm:$0xff] %v15268_v40  ;;  %11821 = vmatpush3.bf16.msra.mxu1 %v20190_v38  ;;  %v13318_v6 = vpop.f32.mrb[28].mxu0  ;;  %v937_v39 = vpack.c.bf16 %v15263_v31, %v15268_v40  ;;  %v20193_v40 = vpack.c.bf16 %v15107_v58, %v15112_v59 }
 0x12a   : > { %v15284_v14 = vadd.f32 %v13318_v6, %v14888_v27  ;;  %v841_v10 = vpop.f32.mrb[29].mxu0  ;;  %v10742_v27 = vld [vmem:[%s20060_s4 + $0x3c0] sm:$0xff] }
 0x12b   : > { %v15286_v9 = vpop.permute.xlu0 %1599  ;;  %v15289_v38 = vadd.f32 %v841_v10, %v14886_v26  ;;  %v15291_v1 = vpop.permute.xlu1 %1604  ;;  %11822 = vmatprep.subr.bf16.mxu1 %v937_v39  ;;  %v10743_v26 = vld [vmem:[%s20060_s4 + $0x3c8] sm:$0xff] }
 0x12c   : > { %20191 = vst [vmem:[#allocation43_spill] sm:$0xff] %v15284_v14  ;;  %2821 = vperm.xlu0 %13368, %v10724_v19   ;;  %2826 = vperm.xlu1 %13369, %v10725_v18  }
 0x12d   : > { %20192 = vst [vmem:[#allocation44_spill] sm:$0xff] %v15289_v38  ;;  %11823 = vmatpush3.bf16.msra.mxu1 %v20193_v40  ;;  %v13321_v6 = vpop.f32.mrb[30].mxu0  ;;  %v938_v31 = vpack.c.bf16 %v15284_v14, %v15289_v38  ;;  %v20196_v38 = vpack.c.bf16 %v15125_v5, %v15130_v11  ;;  %v10731_v11 = vld [vmem:[%s20060_s4 + $0x368] sm:$0xff] }
 0x12e   : > { %v15305_v39 = vadd.f32 %v13321_v6, %v14908_v35  ;;  %v851_v19 = vpop.f32.mrb[31].mxu0  ;;  %v10726_v35 = vld [vmem:[%s20060_s4 + $0x340] sm:$0xff] }
 0x12f   : > { %v15307_v18 = vpop.permute.xlu0 %1689  ;;  %v15310_v40 = vadd.f32 %v851_v19, %v14906_v34  ;;  %v15312_v10 = vpop.permute.xlu1 %1694  ;;  %11824 = vmatprep.subr.bf16.mxu1 %v938_v31  ;;  %v10727_v34 = vld [vmem:[%s20060_s4 + $0x348] sm:$0xff] }
 0x130   : > { %20194 = vst [vmem:[#allocation45_spill] sm:$0xff] %v15305_v39  ;;  %2911 = vperm.xlu0 %13368, %v10742_v27   ;;  %2916 = vperm.xlu1 %13369, %v10743_v26   ;;  %v20197_v27 = vpack.c.bf16 %v15143_v32, %v15148_v51  ;;  %v10744_v26 = vld [vmem:[%s20060_s4 + $0x3d0] sm:$0xff] }
 0x131   : > { %20195 = vst [vmem:[#allocation46_spill] sm:$0xff] %v15310_v40  ;;  %11825 = vmatpush3.bf16.msra.mxu1 %v20196_v38  ;;  %v939_v6 = vpack.c.bf16 %v15305_v39, %v15310_v40  ;;  %v13370_v38 = vld [vmem:[%s20059_s3] ss:$8 sps:$4 sm:$0xff]   ;;  %v13373_v40 = vld [vmem:[%s20059_s3 + $0x14] ss:$8 sps:$4 sm:$0xff]  }
 0x133   : > { %v15325_v19 = vpop.permute.xlu0 %1609  ;;  %v15327_v31 = vpop.permute.xlu1 %1614  ;;  %11826 = vmatprep.subr.bf16.mxu1 %v939_v6 }
 0x134   : > { %2831 = vperm.xlu0 %13368, %v10726_v35   ;;  %2836 = vperm.xlu1 %13369, %v10727_v34   ;;  %v10745_v35 = vld [vmem:[%s20060_s4 + $0x3d8] sm:$0xff]  ;;  %v10728_v34 = vld [vmem:[%s20060_s4 + $0x350] sm:$0xff] }
 0x135   : > { %11827 = vmatpush3.bf16.msra.mxu1 %v20197_v27  ;;  %v10729_v27 = vld [vmem:[%s20060_s4 + $0x358] sm:$0xff] }
 0x137   : > { %v15344_v6 = vpop.permute.xlu0 %1699  ;;  %v15346_v39 = vpop.permute.xlu1 %1704 }
 0x138   : > { %1325 = vmatmul.mubr.bf16.vlgmr.msra.gmra.mrb[0].mxu1 %v13370_v38  ;;  %2921 = vperm.xlu0 %13368, %v10744_v26   ;;  %v13375_v38 = vld [vmem:[%s20059_s3 + $0x10] ss:$8 sps:$4 sm:$0xff]   ;;  %v10746_v26 = vld [vmem:[%s20060_s4 + $0x3e0] sm:$0xff] }
 0x139   : > { %2926 = vperm.xlu1 %13369, %v10745_v35   ;;  %1332 = vmatprep.mubr.bf16.mxu1 %v13373_v40  ;;  %v13376_v40 = vld [vmem:[%s20059_s3 + $0x24] ss:$8 sps:$4 sm:$0xff]  }
 0x13a   : > { %v10747_v35 = vld [vmem:[%s20060_s4 + $0x3e8] sm:$0xff] }
 0x13b   : > { %v15354_v14 = vpop.permute.xlu0 %1619  ;;  %v15356_v51 = vpop.permute.xlu1 %1624 }
 0x13c   : > { %2841 = vperm.xlu0 %13368, %v10728_v34  }
 0x13d   : > { %2846 = vperm.xlu1 %13369, %v10729_v27   ;;  %v10730_v27 = vld [vmem:[%s20060_s4 + $0x360] sm:$0xff] }
 0x13f   : > { %v15370_v32 = vpop.permute.xlu0 %1709  ;;  %v15372_v34 = vpop.permute.xlu1 %1714 }
 0x140   : > { %1333 = vmatmul.mubr.bf16.gmra.mrb[4].mxu1 %v13375_v38  ;;  %2931 = vperm.xlu0 %13368, %v10746_v26   ;;  %v13378_v38 = vld [vmem:[%s20059_s3 + $0x20] ss:$8 sps:$4 sm:$0xff]   ;;  %v10748_v26 = vld [vmem:[%s20060_s4 + $0x3f0] sm:$0xff] }
 0x141   : > { %2936 = vperm.xlu1 %13369, %v10747_v35   ;;  %1340 = vmatprep.mubr.bf16.mxu1 %v13376_v40  ;;  %v13379_v40 = vld [vmem:[%s20059_s3 + $0x34] ss:$8 sps:$4 sm:$0xff]  }
 0x142   : > { %v10749_v35 = vld [vmem:[%s20060_s4 + $0x3f8] sm:$0xff] }
 0x143   : > { %v15380_v5 = vpop.permute.xlu0 %1629  ;;  %v15382_v59 = vpop.permute.xlu1 %1634 }
 0x144   : > { %2851 = vperm.xlu0 %13368, %v10730_v27  }
 0x145   : > { %2856 = vperm.xlu1 %13369, %v10731_v11   ;;  %v10732_v11 = vld [vmem:[%s20060_s4 + $0x370] sm:$0xff] }
 0x147   : > { %v15396_v58 = vpop.permute.xlu0 %1719  ;;  %v15398_v27 = vpop.permute.xlu1 %1724 }
 0x148   : > { %20198 = vst [vmem:[#allocation47_spill] sm:$0xff] %v15398_v27  ;;  %1341 = vmatmul.mubr.bf16.gmra.mrb[8].mxu1 %v13378_v38  ;;  %2941 = vperm.xlu0 %13368, %v10748_v26   ;;  %v13381_v38 = vld [vmem:[%s20059_s3 + $0x30] ss:$8 sps:$4 sm:$0xff]   ;;  %v10830_v26 = vld [vmem:[%s20060_s4 + $0x480] sm:$0xff] }
 0x149   : > { %2946 = vperm.xlu1 %13369, %v10749_v35   ;;  %1348 = vmatprep.mubr.bf16.mxu1 %v13379_v40  ;;  %v13382_v40 = vld [vmem:[%s20059_s3 + $0x44] ss:$8 sps:$4 sm:$0xff]  }
 0x14a   : > { %v10831_v35 = vld [vmem:[%s20060_s4 + $0x488] sm:$0xff] }
 0x14b   : > { %v15406_v52 = vpop.permute.xlu0 %1639  ;;  %v15408_v41 = vpop.permute.xlu1 %1644 }
 0x14c   : > { %2861 = vperm.xlu0 %13368, %v10732_v11  }
 0x14d   : > { %2866 = vperm.xlu1 %13369, %v10733_v45   ;;  %v10814_v45 = vld [vmem:[%s20060_s4 + $0x400] sm:$0xff] }
 0x14f   : > { %v15422_v4 = vpop.permute.xlu0 %2244  ;;  %v15424_v11 = vpop.permute.xlu1 %2249 }
 0x150   : > { %20199 = vst [vmem:[#allocation48_spill] sm:$0xff] %v15422_v4  ;;  %20200 = vst [vmem:[#allocation49_spill] sm:$0xff] %v15424_v11  ;;  %1349 = vmatmul.mubr.bf16.gmra.mrb[12].mxu1 %v13381_v38  ;;  %3498 = vperm.xlu0 %13368, %v10830_v26   ;;  %v13384_v38 = vld [vmem:[%s20059_s3 + $0x40] ss:$8 sps:$4 sm:$0xff]   ;;  %v10832_v26 = vld [vmem:[%s20060_s4 + $0x490] sm:$0xff] }
 0x151   : > { %3503 = vperm.xlu1 %13369, %v10831_v35   ;;  %1356 = vmatprep.mubr.bf16.mxu1 %v13382_v40  ;;  %v13385_v40 = vld [vmem:[%s20059_s3 + $0x54] ss:$8 sps:$4 sm:$0xff]  }
 0x152   : > { %v10833_v35 = vld [vmem:[%s20060_s4 + $0x498] sm:$0xff] }
 0x153   : > { %v15432_v2 = vpop.permute.xlu0 %2164  ;;  %v15434_v3 = vpop.permute.xlu1 %2169  ;;  %v10817_v4 = vld [vmem:[%s20060_s4 + $0x418] sm:$0xff] }
 0x154   : > { %20201 = vst [vmem:[#allocation50_spill] sm:$0xff] %v15432_v2  ;;  %20202 = vst [vmem:[#allocation51_spill] sm:$0xff] %v15434_v3  ;;  %3418 = vperm.xlu0 %13368, %v10814_v45  }
 0x155   : > { %3423 = vperm.xlu1 %13369, %v10815_v25   ;;  %v10816_v25 = vld [vmem:[%s20060_s4 + $0x410] sm:$0xff] }
 0x157   : > { %v15448_v11 = vpop.permute.xlu0 %2254  ;;  %v15450_v45 = vpop.permute.xlu1 %2259 }
 0x158   : > { %20203 = vst [vmem:[#allocation52_spill] sm:$0xff] %v15448_v11  ;;  %20204 = vst [vmem:[#allocation53_spill] sm:$0xff] %v15450_v45  ;;  %1357 = vmatmul.mubr.bf16.gmra.mrb[16].mxu1 %v13384_v38  ;;  %3508 = vperm.xlu0 %13368, %v10832_v26   ;;  %v13387_v38 = vld [vmem:[%s20059_s3 + $0x50] ss:$8 sps:$4 sm:$0xff]   ;;  %v10834_v26 = vld [vmem:[%s20060_s4 + $0x4a0] sm:$0xff] }
 0x159   : > { %3513 = vperm.xlu1 %13369, %v10833_v35   ;;  %1364 = vmatprep.mubr.bf16.mxu1 %v13385_v40  ;;  %v13388_v40 = vld [vmem:[%s20059_s3 + $0x64] ss:$8 sps:$4 sm:$0xff]  }
 0x15a   : > { %v10835_v35 = vld [vmem:[%s20060_s4 + $0x4a8] sm:$0xff] }
 0x15b   : > { %v15458_v43 = vpop.permute.xlu0 %2174  ;;  %v15460_v17 = vpop.permute.xlu1 %2179  ;;  %v10819_v11 = vld [vmem:[%s20060_s4 + $0x428] sm:$0xff] }
 0x15c   : > { %20205 = vst [vmem:[#allocation54_spill] sm:$0xff] %v15458_v43  ;;  %20206 = vst [vmem:[#allocation55_spill] sm:$0xff] %v15460_v17  ;;  %3428 = vperm.xlu0 %13368, %v10816_v25  }
 0x15d   : > { %3433 = vperm.xlu1 %13369, %v10817_v4   ;;  %v10818_v4 = vld [vmem:[%s20060_s4 + $0x420] sm:$0xff] }
 0x15f   : > { %v15474_v45 = vpop.permute.xlu0 %2264  ;;  %v15476_v25 = vpop.permute.xlu1 %2269 }
 0x160   : > { %20207 = vst [vmem:[#allocation56_spill] sm:$0xff] %v15474_v45  ;;  %20208 = vst [vmem:[#allocation57_spill] sm:$0xff] %v15476_v25  ;;  %1365 = vmatmul.mubr.bf16.gmra.mrb[20].mxu1 %v13387_v38  ;;  %3518 = vperm.xlu0 %13368, %v10834_v26   ;;  %v13390_v38 = vld [vmem:[%s20059_s3 + $0x60] ss:$8 sps:$4 sm:$0xff]   ;;  %v10836_v26 = vld [vmem:[%s20060_s4 + $0x4b0] sm:$0xff] }
 0x161   : > { %3523 = vperm.xlu1 %13369, %v10835_v35   ;;  %1372 = vmatprep.mubr.bf16.mxu1 %v13388_v40  ;;  %v13391_v40 = vld [vmem:[%s20059_s3 + $0x74] ss:$8 sps:$4 sm:$0xff]  }
 0x162   : > { %v10837_v35 = vld [vmem:[%s20060_s4 + $0x4b8] sm:$0xff] }
 0x163   : > { %v15484_v17 = vpop.permute.xlu0 %2184  ;;  %v15486_v43 = vpop.permute.xlu1 %2189  ;;  %v10821_v45 = vld [vmem:[%s20060_s4 + $0x438] sm:$0xff] }
 0x164   : > { %20209 = vst [vmem:[#allocation58_spill] sm:$0xff] %v15484_v17  ;;  %20210 = vst [vmem:[#allocation59_spill] sm:$0xff] %v15486_v43  ;;  %3438 = vperm.xlu0 %13368, %v10818_v4  }
 0x165   : > { %3443 = vperm.xlu1 %13369, %v10819_v11   ;;  %v10820_v11 = vld [vmem:[%s20060_s4 + $0x430] sm:$0xff] }
 0x167   : > { %v15500_v25 = vpop.permute.xlu0 %2274  ;;  %v15502_v4 = vpop.permute.xlu1 %2279 }
 0x168   : > { %20211 = vst [vmem:[#allocation60_spill] sm:$0xff] %v15500_v25  ;;  %20212 = vst [vmem:[#allocation61_spill] sm:$0xff] %v15502_v4  ;;  %1373 = vmatmul.mubr.bf16.gmra.mrb[24].mxu1 %v13390_v38  ;;  %3528 = vperm.xlu0 %13368, %v10836_v26   ;;  %v13393_v38 = vld [vmem:[%s20059_s3 + $0x70] ss:$8 sps:$4 sm:$0xff]   ;;  %v10838_v26 = vld [vmem:[%s20060_s4 + $0x4c0] sm:$0xff] }
 0x169   : > { %3533 = vperm.xlu1 %13369, %v10837_v35   ;;  %1380 = vmatprep.mubr.bf16.mxu1 %v13391_v40  ;;  %v13394_v40 = vld [vmem:[%s20059_s3 + $0x84] ss:$8 sps:$4 sm:$0xff]  }
 0x16a   : > { %v10839_v35 = vld [vmem:[%s20060_s4 + $0x4c8] sm:$0xff] }
 0x16b   : > { %v15510_v43 = vpop.permute.xlu0 %2194  ;;  %v15512_v17 = vpop.permute.xlu1 %2199  ;;  %v10823_v25 = vld [vmem:[%s20060_s4 + $0x448] sm:$0xff] }
 0x16c   : > { %20213 = vst [vmem:[#allocation62_spill] sm:$0xff] %v15510_v43  ;;  %20214 = vst [vmem:[#allocation63_spill] sm:$0xff] %v15512_v17  ;;  %3448 = vperm.xlu0 %13368, %v10820_v11  }
 0x16d   : > { %3453 = vperm.xlu1 %13369, %v10821_v45   ;;  %v10822_v45 = vld [vmem:[%s20060_s4 + $0x440] sm:$0xff] }
 0x16f   : > { %v15526_v4 = vpop.permute.xlu0 %2284  ;;  %v15528_v11 = vpop.permute.xlu1 %2289 }
 0x170   : > { %20215 = vst [vmem:[#allocation64_spill] sm:$0xff] %v15526_v4  ;;  %20216 = vst [vmem:[#allocation65_spill] sm:$0xff] %v15528_v11  ;;  %1381 = vmatmul.mubr.bf16.gmra.mrb[28].mxu1 %v13393_v38  ;;  %3538 = vperm.xlu0 %13368, %v10838_v26   ;;  %v13396_v38 = vld [vmem:[%s20059_s3 + $0x80] ss:$8 sps:$4 sm:$0xff]   ;;  %v10840_v26 = vld [vmem:[%s20060_s4 + $0x4d0] sm:$0xff] }
 0x171   : > { %3543 = vperm.xlu1 %13369, %v10839_v35   ;;  %1388 = vmatprep.mubr.bf16.mxu1 %v13394_v40  ;;  %v13397_v40 = vld [vmem:[%s20059_s3 + $0x94] ss:$8 sps:$4 sm:$0xff]  }
 0x172   : > { %v10841_v35 = vld [vmem:[%s20060_s4 + $0x4d8] sm:$0xff] }
 0x173   : > { %v15536_v17 = vpop.permute.xlu0 %2204  ;;  %v15538_v43 = vpop.permute.xlu1 %2209  ;;  %v10825_v4 = vld [vmem:[%s20060_s4 + $0x458] sm:$0xff] }
 0x174   : > { %20217 = vst [vmem:[#allocation66_spill] sm:$0xff] %v15536_v17  ;;  %20218 = vst [vmem:[#allocation67_spill] sm:$0xff] %v15538_v43  ;;  %3458 = vperm.xlu0 %13368, %v10822_v45  }
 0x175   : > { %3463 = vperm.xlu1 %13369, %v10823_v25   ;;  %v10824_v25 = vld [vmem:[%s20060_s4 + $0x450] sm:$0xff] }
 0x177   : > { %v15552_v11 = vpop.permute.xlu0 %2294  ;;  %v15554_v45 = vpop.permute.xlu1 %2299 }
 0x178   : > { %20219 = vst [vmem:[#allocation68_spill] sm:$0xff] %v15552_v11  ;;  %20220 = vst [vmem:[#allocation69_spill] sm:$0xff] %v15554_v45  ;;  %1389 = vmatmul.mubr.bf16.gmra.mrb[32].mxu1 %v13396_v38  ;;  %3548 = vperm.xlu0 %13368, %v10840_v26   ;;  %v13399_v38 = vld [vmem:[%s20059_s3 + $0x90] ss:$8 sps:$4 sm:$0xff]   ;;  %v10842_v26 = vld [vmem:[%s20060_s4 + $0x4e0] sm:$0xff] }
 0x179   : > { %3553 = vperm.xlu1 %13369, %v10841_v35   ;;  %1396 = vmatprep.mubr.bf16.mxu1 %v13397_v40  ;;  %v13400_v40 = vld [vmem:[%s20059_s3 + $0xa4] ss:$8 sps:$4 sm:$0xff]  }
 0x17a   : > { %v10843_v35 = vld [vmem:[%s20060_s4 + $0x4e8] sm:$0xff] }
 0x17b   : > { %v15562_v43 = vpop.permute.xlu0 %2214  ;;  %v15564_v17 = vpop.permute.xlu1 %2219  ;;  %v10827_v11 = vld [vmem:[%s20060_s4 + $0x468] sm:$0xff] }
 0x17c   : > { %20221 = vst [vmem:[#allocation70_spill] sm:$0xff] %v15562_v43  ;;  %20222 = vst [vmem:[#allocation71_spill] sm:$0xff] %v15564_v17  ;;  %3468 = vperm.xlu0 %13368, %v10824_v25  }
 0x17d   : > { %3473 = vperm.xlu1 %13369, %v10825_v4   ;;  %v10826_v4 = vld [vmem:[%s20060_s4 + $0x460] sm:$0xff] }
 0x17f   : > { %v15578_v45 = vpop.permute.xlu0 %2304  ;;  %v15580_v25 = vpop.permute.xlu1 %2309 }
 0x180   : > { %20223 = vst [vmem:[#allocation72_spill] sm:$0xff] %v15578_v45  ;;  %20224 = vst [vmem:[#allocation73_spill] sm:$0xff] %v15580_v25  ;;  %1397 = vmatmul.mubr.bf16.gmra.mrb[36].mxu1 %v13399_v38  ;;  %3558 = vperm.xlu0 %13368, %v10842_v26   ;;  %v13402_v38 = vld [vmem:[%s20059_s3 + $0xa0] ss:$8 sps:$4 sm:$0xff]   ;;  %v10844_v26 = vld [vmem:[%s20060_s4 + $0x4f0] sm:$0xff] }
 0x181   : > { %3563 = vperm.xlu1 %13369, %v10843_v35   ;;  %1404 = vmatprep.mubr.bf16.mxu1 %v13400_v40  ;;  %v13403_v40 = vld [vmem:[%s20059_s3 + $0xb4] ss:$8 sps:$4 sm:$0xff]  }
 0x182   : > { %v10845_v35 = vld [vmem:[%s20060_s4 + $0x4f8] sm:$0xff] }
 0x183   : > { %v15588_v17 = vpop.permute.xlu0 %2224  ;;  %v15590_v43 = vpop.permute.xlu1 %2229  ;;  %v10829_v45 = vld [vmem:[%s20060_s4 + $0x478] sm:$0xff] }
 0x184   : > { %20225 = vst [vmem:[#allocation74_spill] sm:$0xff] %v15588_v17  ;;  %20226 = vst [vmem:[#allocation75_spill] sm:$0xff] %v15590_v43  ;;  %3478 = vperm.xlu0 %13368, %v10826_v4  }
 0x185   : > { %3483 = vperm.xlu1 %13369, %v10827_v11   ;;  %v10828_v11 = vld [vmem:[%s20060_s4 + $0x470] sm:$0xff] }
 0x187   : > { %v15604_v25 = vpop.permute.xlu0 %2314  ;;  %v15606_v4 = vpop.permute.xlu1 %2319 }
 0x188   : > { %20227 = vst [vmem:[#allocation76_spill] sm:$0xff] %v15604_v25  ;;  %20228 = vst [vmem:[#allocation77_spill] sm:$0xff] %v15606_v4  ;;  %1405 = vmatmul.mubr.bf16.gmra.mrb[40].mxu1 %v13402_v38  ;;  %3568 = vperm.xlu0 %13368, %v10844_v26   ;;  %v13405_v38 = vld [vmem:[%s20059_s3 + $0xb0] ss:$8 sps:$4 sm:$0xff]   ;;  %v10926_v26 = vld [vmem:[%s20060_s4 + $0x580] sm:$0xff] }
 0x189   : > { %3573 = vperm.xlu1 %13369, %v10845_v35   ;;  %1412 = vmatprep.mubr.bf16.mxu1 %v13403_v40  ;;  %v13406_v40 = vld [vmem:[%s20059_s3 + $0xc4] ss:$8 sps:$4 sm:$0xff]  }
 0x18a   : > { %v10927_v35 = vld [vmem:[%s20060_s4 + $0x588] sm:$0xff] }
 0x18b   : > { %v15614_v43 = vpop.permute.xlu0 %2234  ;;  %v15616_v17 = vpop.permute.xlu1 %2239  ;;  %v10911_v25 = vld [vmem:[%s20060_s4 + $0x508] sm:$0xff] }
 0x18c   : > { %20229 = vst [vmem:[#allocation78_spill] sm:$0xff] %v15614_v43  ;;  %20230 = vst [vmem:[#allocation79_spill] sm:$0xff] %v15616_v17  ;;  %3488 = vperm.xlu0 %13368, %v10828_v11  }
 0x18d   : > { %3493 = vperm.xlu1 %13369, %v10829_v45   ;;  %v10910_v45 = vld [vmem:[%s20060_s4 + $0x500] sm:$0xff] }
 0x18f   : > { %v15630_v4 = vpop.permute.xlu0 %2871  ;;  %v15632_v11 = vpop.permute.xlu1 %2876 }
 0x190   : > { %20231 = vst [vmem:[#allocation80_spill] sm:$0xff] %v15630_v4  ;;  %20232 = vst [vmem:[#allocation81_spill] sm:$0xff] %v15632_v11  ;;  %1413 = vmatmul.mubr.bf16.gmra.mrb[44].mxu1 %v13405_v38  ;;  %4093 = vperm.xlu0 %13368, %v10926_v26   ;;  %v13408_v38 = vld [vmem:[%s20059_s3 + $0xc0] ss:$8 sps:$4 sm:$0xff]   ;;  %v10928_v26 = vld [vmem:[%s20060_s4 + $0x590] sm:$0xff] }
 0x191   : > { %4098 = vperm.xlu1 %13369, %v10927_v35   ;;  %1420 = vmatprep.mubr.bf16.mxu1 %v13406_v40  ;;  %v13409_v40 = vld [vmem:[%s20059_s3 + $0xd4] ss:$8 sps:$4 sm:$0xff]  }
 0x192   : > { %v10929_v35 = vld [vmem:[%s20060_s4 + $0x598] sm:$0xff] }
 0x193   : > { %v15640_v17 = vpop.permute.xlu0 %2791  ;;  %v15642_v43 = vpop.permute.xlu1 %2796  ;;  %v10913_v4 = vld [vmem:[%s20060_s4 + $0x518] sm:$0xff] }
 0x194   : > { %20233 = vst [vmem:[#allocation82_spill] sm:$0xff] %v15640_v17  ;;  %20234 = vst [vmem:[#allocation83_spill] sm:$0xff] %v15642_v43  ;;  %4013 = vperm.xlu0 %13368, %v10910_v45  }
 0x195   : > { %4018 = vperm.xlu1 %13369, %v10911_v25   ;;  %v10912_v25 = vld [vmem:[%s20060_s4 + $0x510] sm:$0xff] }
 0x197   : > { %v15656_v11 = vpop.permute.xlu0 %2881  ;;  %v15658_v45 = vpop.permute.xlu1 %2886 }
 0x198   : > { %20235 = vst [vmem:[#allocation84_spill] sm:$0xff] %v15656_v11  ;;  %20236 = vst [vmem:[#allocation85_spill] sm:$0xff] %v15658_v45  ;;  %1421 = vmatmul.mubr.bf16.gmra.mrb[48].mxu1 %v13408_v38  ;;  %4103 = vperm.xlu0 %13368, %v10928_v26   ;;  %v13411_v38 = vld [vmem:[%s20059_s3 + $0xd0] ss:$8 sps:$4 sm:$0xff]   ;;  %v10930_v26 = vld [vmem:[%s20060_s4 + $0x5a0] sm:$0xff] }
 0x199   : > { %4108 = vperm.xlu1 %13369, %v10929_v35   ;;  %1428 = vmatprep.mubr.bf16.mxu1 %v13409_v40  ;;  %v13412_v40 = vld [vmem:[%s20059_s3 + $0xe4] ss:$8 sps:$4 sm:$0xff]  }
 0x19a   : > { %v10931_v35 = vld [vmem:[%s20060_s4 + $0x5a8] sm:$0xff] }
 0x19b   : > { %v15666_v43 = vpop.permute.xlu0 %2801  ;;  %v15668_v17 = vpop.permute.xlu1 %2806  ;;  %v10915_v11 = vld [vmem:[%s20060_s4 + $0x528] sm:$0xff] }
 0x19c   : > { %20237 = vst [vmem:[#allocation86_spill] sm:$0xff] %v15666_v43  ;;  %20238 = vst [vmem:[#allocation87_spill] sm:$0xff] %v15668_v17  ;;  %4023 = vperm.xlu0 %13368, %v10912_v25  }
 0x19d   : > { %4028 = vperm.xlu1 %13369, %v10913_v4   ;;  %v10914_v4 = vld [vmem:[%s20060_s4 + $0x520] sm:$0xff] }
 0x19f   : > { %v15682_v45 = vpop.permute.xlu0 %2891  ;;  %v15684_v25 = vpop.permute.xlu1 %2896 }
 0x1a0   : > { %20239 = vst [vmem:[#allocation88_spill] sm:$0xff] %v15682_v45  ;;  %20240 = vst [vmem:[#allocation89_spill] sm:$0xff] %v15684_v25  ;;  %1429 = vmatmul.mubr.bf16.gmra.mrb[52].mxu1 %v13411_v38  ;;  %4113 = vperm.xlu0 %13368, %v10930_v26   ;;  %v13414_v38 = vld [vmem:[%s20059_s3 + $0xe0] ss:$8 sps:$4 sm:$0xff]   ;;  %v10932_v26 = vld [vmem:[%s20060_s4 + $0x5b0] sm:$0xff] }
 0x1a1   : > { %4118 = vperm.xlu1 %13369, %v10931_v35   ;;  %1436 = vmatprep.mubr.bf16.mxu1 %v13412_v40  ;;  %v13415_v40 = vld [vmem:[%s20059_s3 + $0xf4] ss:$8 sps:$4 sm:$0xff]  }
 0x1a2   : > { %v10933_v35 = vld [vmem:[%s20060_s4 + $0x5b8] sm:$0xff] }
 0x1a3   : > { %v15692_v17 = vpop.permute.xlu0 %2811  ;;  %v15694_v43 = vpop.permute.xlu1 %2816  ;;  %v10917_v45 = vld [vmem:[%s20060_s4 + $0x538] sm:$0xff] }
 0x1a4   : > { %20241 = vst [vmem:[#allocation90_spill] sm:$0xff] %v15692_v17  ;;  %20242 = vst [vmem:[#allocation91_spill] sm:$0xff] %v15694_v43  ;;  %4033 = vperm.xlu0 %13368, %v10914_v4  }
 0x1a5   : > { %4038 = vperm.xlu1 %13369, %v10915_v11   ;;  %v10916_v11 = vld [vmem:[%s20060_s4 + $0x530] sm:$0xff] }
 0x1a7   : > { %v15708_v25 = vpop.permute.xlu0 %2901  ;;  %v15710_v4 = vpop.permute.xlu1 %2906 }
 0x1a8   : > { %20243 = vst [vmem:[#allocation92_spill] sm:$0xff] %v15708_v25  ;;  %20244 = vst [vmem:[#allocation93_spill] sm:$0xff] %v15710_v4  ;;  %1437 = vmatmul.mubr.bf16.gmra.mrb[56].mxu1 %v13414_v38  ;;  %4123 = vperm.xlu0 %13368, %v10932_v26   ;;  %v13417_v38 = vld [vmem:[%s20059_s3 + $0xf0] ss:$8 sps:$4 sm:$0xff]   ;;  %v10934_v26 = vld [vmem:[%s20060_s4 + $0x5c0] sm:$0xff] }
 0x1a9   : > { %4128 = vperm.xlu1 %13369, %v10933_v35   ;;  %1444 = vmatprep.mubr.bf16.mxu1 %v13415_v40  ;;  %v10935_v40 = vld [vmem:[%s20060_s4 + $0x5c8] sm:$0xff] }
 0x1ab   : > { %v15718_v43 = vpop.permute.xlu0 %2821  ;;  %v15720_v17 = vpop.permute.xlu1 %2826 }
 0x1ac   : > { %20245 = vst [vmem:[#allocation94_spill] sm:$0xff] %v15718_v43  ;;  %20246 = vst [vmem:[#allocation95_spill] sm:$0xff] %v15720_v17  ;;  %4043 = vperm.xlu0 %13368, %v10916_v11   ;;  %v10918_v11 = vld [vmem:[%s20060_s4 + $0x540] sm:$0xff] }
 0x1ad   : > { %4048 = vperm.xlu1 %13369, %v10917_v45   ;;  %v10919_v45 = vld [vmem:[%s20060_s4 + $0x548] sm:$0xff] }
 0x1af   : > { %v15731_v35 = vpop.permute.xlu0 %2911  ;;  %v15733_v4 = vpop.permute.xlu1 %2916 }
 0x1b0   : > { %20247 = vst [vmem:[#allocation96_spill] sm:$0xff] %v15731_v35  ;;  %20248 = vst [vmem:[#allocation97_spill] sm:$0xff] %v15733_v4  ;;  %1445 = vmatmul.mubr.bf16.gmra.mrb[60].mxu1 %v13417_v38  ;;  %4133 = vperm.xlu0 %13368, %v10934_v26   ;;  %v10936_v38 = vld [vmem:[%s20060_s4 + $0x5d0] sm:$0xff]  ;;  %v10937_v26 = vld [vmem:[%s20060_s4 + $0x5d8] sm:$0xff] }
 0x1b1   : > { %4138 = vperm.xlu1 %13369, %v10935_v40   ;;  %v10920_v35 = vld [vmem:[%s20060_s4 + $0x550] sm:$0xff] }
 0x1b3   : > { %v15741_v25 = vpop.permute.xlu0 %2831  ;;  %v15743_v17 = vpop.permute.xlu1 %2836 }
 0x1b4   : > { %20249 = vst [vmem:[#allocation98_spill] sm:$0xff] %v15741_v25  ;;  %20250 = vst [vmem:[#allocation99_spill] sm:$0xff] %v15743_v17  ;;  %4053 = vperm.xlu0 %13368, %v10918_v11   ;;  %v10921_v11 = vld [vmem:[%s20060_s4 + $0x558] sm:$0xff] }
 0x1b5   : > { %4058 = vperm.xlu1 %13369, %v10919_v45  }
 0x1b7   : > { %v15751_v40 = vpop.permute.xlu0 %2921 }
 0x1b8   : > { %20251 = vst [vmem:[#allocation100_spill] sm:$0xff] %v15751_v40  ;;  %v15753_v4 = vpop.permute.xlu1 %2926  ;;  %4143 = vperm.xlu0 %13368, %v10936_v38   ;;  %v10939_v38 = vld [vmem:[%s20060_s4 + $0x5e8] sm:$0xff] }
 0x1b9   : > { %20252 = vst [vmem:[#allocation101_spill] sm:$0xff] %v15753_v4  ;;  %4148 = vperm.xlu1 %13369, %v10937_v26   ;;  %v10938_v4 = vld [vmem:[%s20060_s4 + $0x5e0] sm:$0xff] }
 0x1bb   : > { %v15761_v45 = vpop.permute.xlu0 %2841 }
 0x1bc   : > { %20253 = vst [vmem:[#allocation102_spill] sm:$0xff] %v15761_v45  ;;  %v15763_v17 = vpop.permute.xlu1 %2846  ;;  %4063 = vperm.xlu0 %13368, %v10920_v35   ;;  %v10923_v35 = vld [vmem:[%s20060_s4 + $0x568] sm:$0xff] }
 0x1bd   : > { %20254 = vst [vmem:[#allocation103_spill] sm:$0xff] %v15763_v17  ;;  %4068 = vperm.xlu1 %13369, %v10921_v11   ;;  %v10922_v17 = vld [vmem:[%s20060_s4 + $0x560] sm:$0xff] }
 0x1bf   : > { %v15771_v26 = vpop.permute.xlu0 %2931 }
 0x1c0   : > { %20255 = vst [vmem:[#allocation104_spill] sm:$0xff] %v15771_v26  ;;  %v15773_v40 = vpop.permute.xlu1 %2936  ;;  %4153 = vperm.xlu0 %13368, %v10938_v4   ;;  %v10941_v4 = vld [vmem:[%s20060_s4 + $0x5f8] sm:$0xff] }
 0x1c1   : > { %20256 = vst [vmem:[#allocation105_spill] sm:$0xff] %v15773_v40  ;;  %4158 = vperm.xlu1 %13369, %v10939_v38   ;;  %v10940_v40 = vld [vmem:[%s20060_s4 + $0x5f0] sm:$0xff] }
 0x1c3   : > { %v15781_v11 = vpop.permute.xlu0 %2851 }
 0x1c4   : > { %20257 = vst [vmem:[#allocation106_spill] sm:$0xff] %v15781_v11  ;;  %v15783_v45 = vpop.permute.xlu1 %2856  ;;  %4073 = vperm.xlu0 %13368, %v10922_v17   ;;  %v10925_v17 = vld [vmem:[%s20060_s4 + $0x578] sm:$0xff] }
 0x1c5   : > { %20258 = vst [vmem:[#allocation107_spill] sm:$0xff] %v15783_v45  ;;  %4078 = vperm.xlu1 %13369, %v10923_v35   ;;  %v10924_v45 = vld [vmem:[%s20060_s4 + $0x570] sm:$0xff] }
 0x1c7   : > { %v15791_v38 = vpop.permute.xlu0 %2941 }
 0x1c8   : > { %20259 = vst [vmem:[#allocation108_spill] sm:$0xff] %v15791_v38  ;;  %v15793_v26 = vpop.permute.xlu1 %2946  ;;  %4163 = vperm.xlu0 %13368, %v10940_v40   ;;  %v11023_v40 = vld [vmem:[%s20060_s4 + $0x688] sm:$0xff] }
 0x1c9   : > { %20260 = vst [vmem:[#allocation109_spill] sm:$0xff] %v15793_v26  ;;  %4168 = vperm.xlu1 %13369, %v10941_v4   ;;  %v11022_v26 = vld [vmem:[%s20060_s4 + $0x680] sm:$0xff] }
 0x1cb   : > { %v15801_v35 = vpop.permute.xlu0 %2861 }
 0x1cc   : > { %20261 = vst [vmem:[#allocation110_spill] sm:$0xff] %v15801_v35  ;;  %v15803_v11 = vpop.permute.xlu1 %2866  ;;  %4083 = vperm.xlu0 %13368, %v10924_v45   ;;  %v11007_v45 = vld [vmem:[%s20060_s4 + $0x608] sm:$0xff] }
 0x1cd   : > { %20262 = vst [vmem:[#allocation111_spill] sm:$0xff] %v15803_v11  ;;  %4088 = vperm.xlu1 %13369, %v10925_v17   ;;  %v11006_v11 = vld [vmem:[%s20060_s4 + $0x600] sm:$0xff] }
 0x1cf   : > { %v15811_v4 = vpop.permute.xlu0 %3498 }
 0x1d0   : > { %20263 = vst [vmem:[#allocation112_spill] sm:$0xff] %v15811_v4  ;;  %v15813_v38 = vpop.permute.xlu1 %3503  ;;  %4688 = vperm.xlu0 %13368, %v11022_v26   ;;  %v11025_v26 = vld [vmem:[%s20060_s4 + $0x698] sm:$0xff] }
 0x1d1   : > { %20264 = vst [vmem:[#allocation113_spill] sm:$0xff] %v15813_v38  ;;  %4693 = vperm.xlu1 %13369, %v11023_v40   ;;  %v11024_v38 = vld [vmem:[%s20060_s4 + $0x690] sm:$0xff] }
 0x1d3   : > { %v15821_v17 = vpop.permute.xlu0 %3418 }
 0x1d4   : > { %20265 = vst [vmem:[#allocation114_spill] sm:$0xff] %v15821_v17  ;;  %v15823_v35 = vpop.permute.xlu1 %3423  ;;  %4608 = vperm.xlu0 %13368, %v11006_v11   ;;  %v11009_v11 = vld [vmem:[%s20060_s4 + $0x618] sm:$0xff] }
 0x1d5   : > { %20266 = vst [vmem:[#allocation115_spill] sm:$0xff] %v15823_v35  ;;  %4613 = vperm.xlu1 %13369, %v11007_v45   ;;  %v11008_v35 = vld [vmem:[%s20060_s4 + $0x610] sm:$0xff] }
 0x1d7   : > { %v15831_v40 = vpop.permute.xlu0 %3508 }
 0x1d8   : > { %20267 = vst [vmem:[#allocation116_spill] sm:$0xff] %v15831_v40  ;;  %v15833_v4 = vpop.permute.xlu1 %3513  ;;  %4698 = vperm.xlu0 %13368, %v11024_v38   ;;  %v11027_v38 = vld [vmem:[%s20060_s4 + $0x6a8] sm:$0xff] }
 0x1d9   : > { %20268 = vst [vmem:[#allocation117_spill] sm:$0xff] %v15833_v4  ;;  %4703 = vperm.xlu1 %13369, %v11025_v26   ;;  %v11026_v4 = vld [vmem:[%s20060_s4 + $0x6a0] sm:$0xff] }
 0x1db   : > { %v15841_v45 = vpop.permute.xlu0 %3428 }
 0x1dc   : > { %20269 = vst [vmem:[#allocation118_spill] sm:$0xff] %v15841_v45  ;;  %v15843_v17 = vpop.permute.xlu1 %3433  ;;  %4618 = vperm.xlu0 %13368, %v11008_v35   ;;  %v11011_v35 = vld [vmem:[%s20060_s4 + $0x628] sm:$0xff] }
 0x1dd   : > { %20270 = vst [vmem:[#allocation119_spill] sm:$0xff] %v15843_v17  ;;  %4623 = vperm.xlu1 %13369, %v11009_v11   ;;  %v11010_v17 = vld [vmem:[%s20060_s4 + $0x620] sm:$0xff] }
 0x1df   : > { %v15851_v26 = vpop.permute.xlu0 %3518 }
 0x1e0   : > { %20271 = vst [vmem:[#allocation120_spill] sm:$0xff] %v15851_v26  ;;  %v15853_v40 = vpop.permute.xlu1 %3523  ;;  %4708 = vperm.xlu0 %13368, %v11026_v4   ;;  %v11029_v4 = vld [vmem:[%s20060_s4 + $0x6b8] sm:$0xff] }
 0x1e1   : > { %20272 = vst [vmem:[#allocation121_spill] sm:$0xff] %v15853_v40  ;;  %4713 = vperm.xlu1 %13369, %v11027_v38   ;;  %v11028_v40 = vld [vmem:[%s20060_s4 + $0x6b0] sm:$0xff] }
 0x1e3   : > { %v15861_v11 = vpop.permute.xlu0 %3438 }
 0x1e4   : > { %20273 = vst [vmem:[#allocation122_spill] sm:$0xff] %v15861_v11  ;;  %v15863_v45 = vpop.permute.xlu1 %3443  ;;  %4628 = vperm.xlu0 %13368, %v11010_v17   ;;  %v11013_v17 = vld [vmem:[%s20060_s4 + $0x638] sm:$0xff] }
 0x1e5   : > { %20274 = vst [vmem:[#allocation123_spill] sm:$0xff] %v15863_v45  ;;  %4633 = vperm.xlu1 %13369, %v11011_v35   ;;  %v11012_v45 = vld [vmem:[%s20060_s4 + $0x630] sm:$0xff] }
 0x1e7   : > { %v15871_v38 = vpop.permute.xlu0 %3528 }
 0x1e8   : > { %20275 = vst [vmem:[#allocation124_spill] sm:$0xff] %v15871_v38  ;;  %v15873_v26 = vpop.permute.xlu1 %3533  ;;  %4718 = vperm.xlu0 %13368, %v11028_v40   ;;  %v11031_v40 = vld [vmem:[%s20060_s4 + $0x6c8] sm:$0xff] }
 0x1e9   : > { %20276 = vst [vmem:[#allocation125_spill] sm:$0xff] %v15873_v26  ;;  %4723 = vperm.xlu1 %13369, %v11029_v4   ;;  %v11030_v26 = vld [vmem:[%s20060_s4 + $0x6c0] sm:$0xff] }
 0x1eb   : > { %v15881_v35 = vpop.permute.xlu0 %3448 }
 0x1ec   : > { %20277 = vst [vmem:[#allocation126_spill] sm:$0xff] %v15881_v35  ;;  %v15883_v11 = vpop.permute.xlu1 %3453  ;;  %4638 = vperm.xlu0 %13368, %v11012_v45   ;;  %v11015_v45 = vld [vmem:[%s20060_s4 + $0x648] sm:$0xff] }
 0x1ed   : > { %20278 = vst [vmem:[#allocation127_spill] sm:$0xff] %v15883_v11  ;;  %4643 = vperm.xlu1 %13369, %v11013_v17   ;;  %v11014_v11 = vld [vmem:[%s20060_s4 + $0x640] sm:$0xff] }
 0x1ef   : > { %v15891_v4 = vpop.permute.xlu0 %3538 }
 0x1f0   : > { %20279 = vst [vmem:[#allocation128_spill] sm:$0xff] %v15891_v4  ;;  %v15893_v38 = vpop.permute.xlu1 %3543  ;;  %4728 = vperm.xlu0 %13368, %v11030_v26   ;;  %v11033_v26 = vld [vmem:[%s20060_s4 + $0x6d8] sm:$0xff] }
 0x1f1   : > { %20280 = vst [vmem:[#allocation129_spill] sm:$0xff] %v15893_v38  ;;  %4733 = vperm.xlu1 %13369, %v11031_v40   ;;  %v11032_v38 = vld [vmem:[%s20060_s4 + $0x6d0] sm:$0xff] }
 0x1f3   : > { %v15901_v17 = vpop.permute.xlu0 %3458 }
 0x1f4   : > { %20281 = vst [vmem:[#allocation130_spill] sm:$0xff] %v15901_v17  ;;  %v15903_v35 = vpop.permute.xlu1 %3463  ;;  %4648 = vperm.xlu0 %13368, %v11014_v11   ;;  %v11017_v11 = vld [vmem:[%s20060_s4 + $0x658] sm:$0xff] }
 0x1f5   : > { %20282 = vst [vmem:[#allocation131_spill] sm:$0xff] %v15903_v35  ;;  %4653 = vperm.xlu1 %13369, %v11015_v45   ;;  %v11016_v35 = vld [vmem:[%s20060_s4 + $0x650] sm:$0xff] }
 0x1f7   : > { %v15911_v40 = vpop.permute.xlu0 %3548 }
 0x1f8   : > { %20283 = vst [vmem:[#allocation132_spill] sm:$0xff] %v15911_v40  ;;  %v15913_v4 = vpop.permute.xlu1 %3553  ;;  %4738 = vperm.xlu0 %13368, %v11032_v38   ;;  %v11035_v38 = vld [vmem:[%s20060_s4 + $0x6e8] sm:$0xff] }
 0x1f9   : > { %20284 = vst [vmem:[#allocation133_spill] sm:$0xff] %v15913_v4  ;;  %4743 = vperm.xlu1 %13369, %v11033_v26   ;;  %v11034_v4 = vld [vmem:[%s20060_s4 + $0x6e0] sm:$0xff] }
 0x1fb   : > { %v15921_v45 = vpop.permute.xlu0 %3468 }
 0x1fc   : > { %20285 = vst [vmem:[#allocation134_spill] sm:$0xff] %v15921_v45  ;;  %v15923_v17 = vpop.permute.xlu1 %3473  ;;  %4658 = vperm.xlu0 %13368, %v11016_v35   ;;  %v11019_v35 = vld [vmem:[%s20060_s4 + $0x668] sm:$0xff] }
 0x1fd   : > { %20286 = vst [vmem:[#allocation135_spill] sm:$0xff] %v15923_v17  ;;  %4663 = vperm.xlu1 %13369, %v11017_v11   ;;  %v11018_v17 = vld [vmem:[%s20060_s4 + $0x660] sm:$0xff] }
 0x1ff   : > { %v15931_v26 = vpop.permute.xlu0 %3558 }
 0x200   : > { %20287 = vst [vmem:[#allocation136_spill] sm:$0xff] %v15931_v26  ;;  %v15933_v40 = vpop.permute.xlu1 %3563  ;;  %4748 = vperm.xlu0 %13368, %v11034_v4   ;;  %v11037_v4 = vld [vmem:[%s20060_s4 + $0x6f8] sm:$0xff] }
 0x201   : > { %20288 = vst [vmem:[#allocation137_spill] sm:$0xff] %v15933_v40  ;;  %4753 = vperm.xlu1 %13369, %v11035_v38   ;;  %v11036_v40 = vld [vmem:[%s20060_s4 + $0x6f0] sm:$0xff] }
 0x203   : > { %v15941_v11 = vpop.permute.xlu0 %3478 }
 0x204   : > { %20289 = vst [vmem:[#allocation138_spill] sm:$0xff] %v15941_v11  ;;  %v15943_v45 = vpop.permute.xlu1 %3483  ;;  %4668 = vperm.xlu0 %13368, %v11018_v17   ;;  %v11021_v17 = vld [vmem:[%s20060_s4 + $0x678] sm:$0xff] }
 0x205   : > { %20290 = vst [vmem:[#allocation139_spill] sm:$0xff] %v15943_v45  ;;  %4673 = vperm.xlu1 %13369, %v11019_v35   ;;  %v11020_v45 = vld [vmem:[%s20060_s4 + $0x670] sm:$0xff] }
 0x207   : > { %v15951_v38 = vpop.permute.xlu0 %3568 }
 0x208   : > { %20291 = vst [vmem:[#allocation140_spill] sm:$0xff] %v15951_v38  ;;  %v15953_v26 = vpop.permute.xlu1 %3573  ;;  %4758 = vperm.xlu0 %13368, %v11036_v40   ;;  %v11118_v40 = vld [vmem:[%s20060_s4 + $0x780] sm:$0xff] }
 0x209   : > { %20292 = vst [vmem:[#allocation141_spill] sm:$0xff] %v15953_v26  ;;  %4763 = vperm.xlu1 %13369, %v11037_v4  }
 0x20b   : > { %v11828_v35 = vpop.f32.mrb[0].mxu1  ;;  %v15961_v11 = vpop.permute.xlu0 %3488 }
 0x20c   : > { %20293 = vst [vmem:[#allocation142_spill] sm:$0xff] %v15961_v11  ;;  %v15963_v25 = vpop.permute.xlu1 %3493  ;;  %v11829_v43 = vpop.f32.mrb[1].mxu1  ;;  %4678 = vperm.xlu0 %13368, %v11020_v45  }
 0x20d   : > { %20294 = vst [vmem:[#allocation143_spill] sm:$0xff] %v15963_v25  ;;  %v11830_v38 = vadd.f32 %v11829_v43, %v11828_v35  ;;  %4683 = vperm.xlu1 %13369, %v11021_v17   ;;  %v11831_v26 = vpop.f32.mrb[2].mxu1  ;;  %v13420_v43 = vld [vmem:[%s20059_s3 + $0x104] ss:$8 sps:$4 sm:$0xff]  }
 0x20e   : > { %v11832_v4 = vpop.f32.mrb[3].mxu1  ;;  %v11102_v17 = vld [vmem:[%s20060_s4 + $0x700] sm:$0xff]  ;;  %1919 = vmatprep.mubr.bf16.mxu0 %v13420_v43  ;;  %v11120_v43 = vld [vmem:[%s20060_s4 + $0x790] sm:$0xff] }
 0x20f   : > { %v1327_v3 = vadd.f32 %v11830_v38, %v14936_v54  ;;  %v11833_v2 = vadd.f32 %v11832_v4, %v11831_v26  ;;  %v15972_v11 = vpop.permute.xlu0 %4093  ;;  %v11103_v54 = vld [vmem:[%s20060_s4 + $0x708] sm:$0xff] }
 0x210   : > { %20295 = vst [vmem:[#allocation144_spill] sm:$0xff] %v15972_v11  ;;  %v15974_v25 = vpop.permute.xlu1 %4098  ;;  %5315 = vperm.xlu0 %13368, %v11118_v40   ;;  %v13423_v26 = vld [vmem:[%s20059_s3 + $0x164] ss:$8 sps:$4 sm:$0xff]  }
 0x211   : > { %20296 = vst [vmem:[#allocation145_spill] sm:$0xff] %v15974_v25  ;;  %v1330_v45 = vadd.f32 %v11833_v2, %v14938_v55  ;;  %5320 = vperm.xlu1 %13369, %v11119_v28   ;;  %v1453_v38 = vmax.f32 %v1327_v3, 0.0  ;;  %1967 = vmatprep.mubr.bf16.mxu1 %v13423_v26  ;;  %v11121_v3 = vld [vmem:[%s20060_s4 + $0x798] sm:$0xff]  ;;  %v11104_v26 = vld [vmem:[%s20060_s4 + $0x710] sm:$0xff] }
 0x213   : > { %v1454_v35 = vmax.f32 %v1330_v45, 0.0  ;;  %v11834_v40 = vpop.f32.mrb[4].mxu1  ;;  %v15989_v4 = vpop.permute.xlu0 %4013 }
 0x214   : > { %20297 = vst [vmem:[#allocation146_spill] sm:$0xff] %v15989_v4  ;;  %v15991_v2 = vpop.permute.xlu1 %4018  ;;  %v11835_v55 = vpop.f32.mrb[5].mxu1  ;;  %5235 = vperm.xlu0 %13368, %v11102_v17  }
 0x215   : > { %20298 = vst [vmem:[#allocation147_spill] sm:$0xff] %v15991_v2  ;;  %v11836_v28 = vadd.f32 %v11835_v55, %v11834_v40  ;;  %5240 = vperm.xlu1 %13369, %v11103_v54   ;;  %v11837_v25 = vpop.f32.mrb[6].mxu1  ;;  %v15996_v11 = vpack.c.bf16 %v1454_v35, %v1453_v38  ;;  %v11105_v38 = vld [vmem:[%s20060_s4 + $0x718] sm:$0xff] }
 0x216   : > { %v11838_v27 = vpop.f32.mrb[7].mxu1 }
 0x217   : > { %v1335_v45 = vadd.f32 %v11836_v28, %v14956_v7  ;;  %v11839_v2 = vadd.f32 %v11838_v27, %v11837_v25  ;;  %v16002_v4 = vpop.permute.xlu0 %4103 }
 0x218   : > { %20299 = vst [vmem:[#allocation148_spill] sm:$0xff] %v16002_v4  ;;  %v16004_v17 = vpop.permute.xlu1 %4108  ;;  %5325 = vperm.xlu0 %13368, %v11120_v43  }
 0x219   : > { %20300 = vst [vmem:[#allocation149_spill] sm:$0xff] %v16004_v17  ;;  %v1338_v54 = vadd.f32 %v11839_v2, %v14958_v8  ;;  %5330 = vperm.xlu1 %13369, %v11121_v3   ;;  %v1455_v35 = vmax.f32 %v1335_v45, 0.0  ;;  %v11122_v2 = vld [vmem:[%s20060_s4 + $0x7a0] sm:$0xff]  ;;  %v11123_v45 = vld [vmem:[%s20060_s4 + $0x7a8] sm:$0xff] }
 0x21b   : > { %v1456_v40 = vmax.f32 %v1338_v54, 0.0  ;;  %v11840_v7 = vpop.f32.mrb[8].mxu1  ;;  %v16013_v27 = vpop.permute.xlu0 %4023 }
 0x21c   : > { %v16015_v25 = vpop.permute.xlu1 %4028  ;;  %v11841_v55 = vpop.f32.mrb[9].mxu1  ;;  %5245 = vperm.xlu0 %13368, %v11104_v26  }
 0x21d   : > { %v11842_v28 = vadd.f32 %v11841_v55, %v11840_v7  ;;  %5250 = vperm.xlu1 %13369, %v11105_v38   ;;  %v11843_v8 = vpop.f32.mrb[10].mxu1  ;;  %v16020_v43 = vpack.c.bf16 %v1456_v40, %v1455_v35  ;;  %v11106_v35 = vld [vmem:[%s20060_s4 + $0x720] sm:$0xff]  ;;  %v11107_v40 = vld [vmem:[%s20060_s4 + $0x728] sm:$0xff] }
 0x21e   : > { %v11844_v3 = vpop.f32.mrb[11].mxu1 }
 0x21f   : > { %v1343_v54 = vadd.f32 %v11842_v28, %v14976_v21  ;;  %v11845_v17 = vadd.f32 %v11844_v3, %v11843_v8  ;;  %v16026_v4 = vpop.permute.xlu0 %4113 }
 0x220   : > { %20301 = vst [vmem:[#allocation150_spill] sm:$0xff] %v16026_v4  ;;  %v16028_v26 = vpop.permute.xlu1 %4118  ;;  %5335 = vperm.xlu0 %13368, %v11122_v2  }
 0x221   : > { %20302 = vst [vmem:[#allocation151_spill] sm:$0xff] %v16028_v26  ;;  %v1346_v38 = vadd.f32 %v11845_v17, %v14978_v24  ;;  %5340 = vperm.xlu1 %13369, %v11123_v45   ;;  %v1457_v7 = vmax.f32 %v1343_v54, 0.0  ;;  %v11124_v17 = vld [vmem:[%s20060_s4 + $0x7b0] sm:$0xff]  ;;  %v11125_v54 = vld [vmem:[%s20060_s4 + $0x7b8] sm:$0xff] }
 0x223   : > { %v1458_v55 = vmax.f32 %v1346_v38, 0.0  ;;  %v11846_v21 = vpop.f32.mrb[12].mxu1  ;;  %v16037_v28 = vpop.permute.xlu0 %4033 }
 0x224   : > { %v16039_v8 = vpop.permute.xlu1 %4038  ;;  %v11847_v3 = vpop.f32.mrb[13].mxu1  ;;  %5255 = vperm.xlu0 %13368, %v11106_v35  }
 0x225   : > { %20303 = vst [vmem:[#allocation152_spill] sm:$0xff] %v16039_v8  ;;  %v11848_v2 = vadd.f32 %v11847_v3, %v11846_v21  ;;  %5260 = vperm.xlu1 %13369, %v11107_v40   ;;  %v11849_v24 = vpop.f32.mrb[14].mxu1  ;;  %v16044_v45 = vpack.c.bf16 %v1458_v55, %v1457_v7  ;;  %v11108_v7 = vld [vmem:[%s20060_s4 + $0x730] sm:$0xff]  ;;  %v11109_v55 = vld [vmem:[%s20060_s4 + $0x738] sm:$0xff] }
 0x226   : > { %v11850_v26 = vpop.f32.mrb[15].mxu1 }
 0x227   : > { %v1351_v38 = vadd.f32 %v11848_v2, %v14996_v37  ;;  %v11851_v4 = vadd.f32 %v11850_v26, %v11849_v24  ;;  %v16050_v8 = vpop.permute.xlu0 %4123 }
 0x228   : > { %20304 = vst [vmem:[#allocation153_spill] sm:$0xff] %v16050_v8  ;;  %v16052_v35 = vpop.permute.xlu1 %4128  ;;  %5345 = vperm.xlu0 %13368, %v11124_v17  }
 0x229   : > { %20305 = vst [vmem:[#allocation154_spill] sm:$0xff] %v16052_v35  ;;  %v1354_v40 = vadd.f32 %v11851_v4, %v14998_v42  ;;  %5350 = vperm.xlu1 %13369, %v11125_v54   ;;  %v1459_v21 = vmax.f32 %v1351_v38, 0.0  ;;  %v11126_v4 = vld [vmem:[%s20060_s4 + $0x7c0] sm:$0xff]  ;;  %v11127_v38 = vld [vmem:[%s20060_s4 + $0x7c8] sm:$0xff] }
 0x22b   : > { %v1460_v3 = vmax.f32 %v1354_v40, 0.0  ;;  %v11852_v37 = vpop.f32.mrb[16].mxu1  ;;  %v16061_v26 = vpop.permute.xlu0 %4043 }
 0x22c   : > { %v16063_v2 = vpop.permute.xlu1 %4048  ;;  %v11853_v24 = vpop.f32.mrb[17].mxu1  ;;  %5265 = vperm.xlu0 %13368, %v11108_v7  }
 0x22d   : > { %20306 = vst [vmem:[#allocation155_spill] sm:$0xff] %v16063_v2  ;;  %v11854_v17 = vadd.f32 %v11853_v24, %v11852_v37  ;;  %5270 = vperm.xlu1 %13369, %v11109_v55   ;;  %v11855_v42 = vpop.f32.mrb[18].mxu1  ;;  %v16068_v54 = vpack.c.bf16 %v1460_v3, %v1459_v21  ;;  %v11110_v21 = vld [vmem:[%s20060_s4 + $0x740] sm:$0xff]  ;;  %v11111_v3 = vld [vmem:[%s20060_s4 + $0x748] sm:$0xff] }
 0x22e   : > { %v11856_v35 = vpop.f32.mrb[19].mxu1 }
 0x22f   : > { %v1359_v40 = vadd.f32 %v11854_v17, %v15016_v12  ;;  %v11857_v8 = vadd.f32 %v11856_v35, %v11855_v42  ;;  %v16074_v2 = vpop.permute.xlu0 %4133 }
 0x230   : > { %20307 = vst [vmem:[#allocation156_spill] sm:$0xff] %v16074_v2  ;;  %v16076_v7 = vpop.permute.xlu1 %4138  ;;  %5355 = vperm.xlu0 %13368, %v11126_v4  }
 0x231   : > { %20308 = vst [vmem:[#allocation157_spill] sm:$0xff] %v16076_v7  ;;  %v1362_v55 = vadd.f32 %v11857_v8, %v15021_v20  ;;  %5360 = vperm.xlu1 %13369, %v11127_v38   ;;  %v1461_v37 = vmax.f32 %v1359_v40, 0.0  ;;  %v11128_v8 = vld [vmem:[%s20060_s4 + $0x7d0] sm:$0xff]  ;;  %v11129_v40 = vld [vmem:[%s20060_s4 + $0x7d8] sm:$0xff] }
 0x233   : > { %v1462_v24 = vmax.f32 %v1362_v55, 0.0  ;;  %v11858_v12 = vpop.f32.mrb[20].mxu1  ;;  %v16085_v35 = vpop.permute.xlu0 %4053 }
 0x234   : > { %v16087_v17 = vpop.permute.xlu1 %4058  ;;  %v11859_v42 = vpop.f32.mrb[21].mxu1  ;;  %5275 = vperm.xlu0 %13368, %v11110_v21  }
 0x235   : > { %20309 = vst [vmem:[#allocation158_spill] sm:$0xff] %v16087_v17  ;;  %v11860_v4 = vadd.f32 %v11859_v42, %v11858_v12  ;;  %5280 = vperm.xlu1 %13369, %v11111_v3   ;;  %v11861_v20 = vpop.f32.mrb[22].mxu1  ;;  %v16092_v38 = vpack.c.bf16 %v1462_v24, %v1461_v37  ;;  %v11112_v37 = vld [vmem:[%s20060_s4 + $0x750] sm:$0xff]  ;;  %v11113_v24 = vld [vmem:[%s20060_s4 + $0x758] sm:$0xff] }
 0x236   : > { %v11862_v7 = vpop.f32.mrb[23].mxu1 }
 0x237   : > { %v1367_v55 = vadd.f32 %v11860_v4, %v15055_v50  ;;  %v11863_v2 = vadd.f32 %v11862_v7, %v11861_v20  ;;  %v16098_v17 = vpop.permute.xlu0 %4143 }
 0x238   : > { %20310 = vst [vmem:[#allocation159_spill] sm:$0xff] %v16098_v17  ;;  %v16100_v21 = vpop.permute.xlu1 %4148  ;;  %5365 = vperm.xlu0 %13368, %v11128_v8  }
 0x239   : > { %20311 = vst [vmem:[#allocation160_spill] sm:$0xff] %v16100_v21  ;;  %v1370_v3 = vadd.f32 %v11863_v2, %v15060_v33  ;;  %5370 = vperm.xlu1 %13369, %v11129_v40   ;;  %v1463_v12 = vmax.f32 %v1367_v55, 0.0  ;;  %v11130_v2 = vld [vmem:[%s20060_s4 + $0x7e0] sm:$0xff]  ;;  %v11131_v55 = vld [vmem:[%s20060_s4 + $0x7e8] sm:$0xff] }
 0x23b   : > { %v1464_v42 = vmax.f32 %v1370_v3, 0.0  ;;  %v11864_v50 = vpop.f32.mrb[24].mxu1  ;;  %v16109_v7 = vpop.permute.xlu0 %4063 }
 0x23c   : > { %v16111_v4 = vpop.permute.xlu1 %4068  ;;  %v11865_v20 = vpop.f32.mrb[25].mxu1  ;;  %5285 = vperm.xlu0 %13368, %v11112_v37  }
 0x23d   : > { %20312 = vst [vmem:[#allocation161_spill] sm:$0xff] %v16111_v4  ;;  %v11866_v8 = vadd.f32 %v11865_v20, %v11864_v50  ;;  %5290 = vperm.xlu1 %13369, %v11113_v24   ;;  %v11867_v33 = vpop.f32.mrb[26].mxu1  ;;  %v16116_v40 = vpack.c.bf16 %v1464_v42, %v1463_v12  ;;  %v11114_v12 = vld [vmem:[%s20060_s4 + $0x760] sm:$0xff]  ;;  %v11115_v42 = vld [vmem:[%s20060_s4 + $0x768] sm:$0xff] }
 0x23e   : > { %v11868_v21 = vpop.f32.mrb[27].mxu1 }
 0x23f   : > { %v1375_v3 = vadd.f32 %v11866_v8, %v15091_v60  ;;  %v11869_v17 = vadd.f32 %v11868_v21, %v11867_v33  ;;  %v16122_v4 = vpop.permute.xlu0 %4153 }
 0x240   : > { %20313 = vst [vmem:[#allocation162_spill] sm:$0xff] %v16122_v4  ;;  %v16124_v37 = vpop.permute.xlu1 %4158  ;;  %5375 = vperm.xlu0 %13368, %v11130_v2  }
 0x241   : > { %20314 = vst [vmem:[#allocation163_spill] sm:$0xff] %v16124_v37  ;;  %v1378_v24 = vadd.f32 %v11869_v17, %v15096_v36  ;;  %5380 = vperm.xlu1 %13369, %v11131_v55   ;;  %v1465_v50 = vmax.f32 %v1375_v3, 0.0  ;;  %v11132_v17 = vld [vmem:[%s20060_s4 + $0x7f0] sm:$0xff]  ;;  %v11133_v3 = vld [vmem:[%s20060_s4 + $0x7f8] sm:$0xff] }
 0x243   : > { %v1466_v20 = vmax.f32 %v1378_v24, 0.0  ;;  %v11870_v60 = vpop.f32.mrb[28].mxu1  ;;  %v16133_v21 = vpop.permute.xlu0 %4073 }
 0x244   : > { %v16135_v8 = vpop.permute.xlu1 %4078  ;;  %v11871_v33 = vpop.f32.mrb[29].mxu1  ;;  %5295 = vperm.xlu0 %13368, %v11114_v12  }
 0x245   : > { %20315 = vst [vmem:[#allocation164_spill] sm:$0xff] %v16135_v8  ;;  %v11872_v2 = vadd.f32 %v11871_v33, %v11870_v60  ;;  %5300 = vperm.xlu1 %13369, %v11115_v42   ;;  %v11873_v36 = vpop.f32.mrb[30].mxu1  ;;  %v16140_v55 = vpack.c.bf16 %v1466_v20, %v1465_v50  ;;  %v11116_v50 = vld [vmem:[%s20060_s4 + $0x770] sm:$0xff]  ;;  %v11117_v20 = vld [vmem:[%s20060_s4 + $0x778] sm:$0xff] }
 0x246   : > { %v11874_v37 = vpop.f32.mrb[31].mxu1 }
 0x247   : > { %v1383_v24 = vadd.f32 %v11872_v2, %v15127_v13  ;;  %v11875_v4 = vadd.f32 %v11874_v37, %v11873_v36  ;;  %v16146_v8 = vpop.permute.xlu0 %4163 }
 0x248   : > { %20316 = vst [vmem:[#allocation165_spill] sm:$0xff] %v16146_v8  ;;  %v16148_v12 = vpop.permute.xlu1 %4168  ;;  %5385 = vperm.xlu0 %13368, %v11132_v17  }
 0x249   : > { %20317 = vst [vmem:[#allocation166_spill] sm:$0xff] %v16148_v12  ;;  %v1386_v42 = vadd.f32 %v11875_v4, %v15132_v61  ;;  %5390 = vperm.xlu1 %13369, %v11133_v3   ;;  %v1467_v60 = vmax.f32 %v1383_v24, 0.0  ;;  %v11214_v4 = vld [vmem:[%s20060_s4 + $0x880] sm:$0xff]  ;;  %v11215_v24 = vld [vmem:[%s20060_s4 + $0x888] sm:$0xff] }
 0x24b   : > { %v1468_v33 = vmax.f32 %v1386_v42, 0.0  ;;  %v11876_v13 = vpop.f32.mrb[32].mxu1  ;;  %v16157_v37 = vpop.permute.xlu0 %4083 }
 0x24c   : > { %v16159_v2 = vpop.permute.xlu1 %4088  ;;  %v11877_v36 = vpop.f32.mrb[33].mxu1  ;;  %5305 = vperm.xlu0 %13368, %v11116_v50  }
 0x24d   : > { %20318 = vst [vmem:[#allocation167_spill] sm:$0xff] %v16159_v2  ;;  %v11878_v17 = vadd.f32 %v11877_v36, %v11876_v13  ;;  %5310 = vperm.xlu1 %13369, %v11117_v20   ;;  %v11879_v61 = vpop.f32.mrb[34].mxu1  ;;  %v16164_v3 = vpack.c.bf16 %v1468_v33, %v1467_v60  ;;  %v11198_v60 = vld [vmem:[%s20060_s4 + $0x800] sm:$0xff]  ;;  %v11199_v33 = vld [vmem:[%s20060_s4 + $0x808] sm:$0xff] }
 0x24e   : > { %v11880_v12 = vpop.f32.mrb[35].mxu1 }
 0x24f   : > { %v1391_v42 = vadd.f32 %v11878_v17, %v14926_v46  ;;  %v11881_v8 = vadd.f32 %v11880_v12, %v11879_v61  ;;  %v16170_v2 = vpop.permute.xlu0 %4688 }
 0x250   : > { %20319 = vst [vmem:[#allocation168_spill] sm:$0xff] %v16170_v2  ;;  %v16172_v50 = vpop.permute.xlu1 %4693  ;;  %5942 = vperm.xlu0 %13368, %v11214_v4   ;;  %v11217_v2 = vld [vmem:[%s20060_s4 + $0x898] sm:$0xff] }
 0x251   : > { %20320 = vst [vmem:[#allocation169_spill] sm:$0xff] %v16172_v50  ;;  %v1394_v20 = vadd.f32 %v11881_v8, %v14928_v47  ;;  %5947 = vperm.xlu1 %13369, %v11215_v24   ;;  %v1469_v46 = vmax.f32 %v1391_v42, 0.0  ;;  %v11216_v50 = vld [vmem:[%s20060_s4 + $0x890] sm:$0xff] }
 0x253   : > { %v11882_v13 = vpop.f32.mrb[36].mxu1  ;;  %v16181_v36 = vpop.permute.xlu0 %4608  ;;  %v1470_v12 = vmax.f32 %v1394_v20, 0.0 }
 0x254   : > { %v16183_v17 = vpop.permute.xlu1 %4613  ;;  %v11883_v61 = vpop.f32.mrb[37].mxu1  ;;  %5862 = vperm.xlu0 %13368, %v11198_v60  }
 0x255   : > { %20321 = vst [vmem:[#allocation170_spill] sm:$0xff] %v16183_v17  ;;  %v11884_v4 = vadd.f32 %v11883_v61, %v11882_v13  ;;  %5867 = vperm.xlu1 %13369, %v11199_v33   ;;  %v11885_v47 = vpop.f32.mrb[38].mxu1  ;;  %v1526_v8 = vpack.c.bf16 %v1470_v12, %v1469_v46  ;;  %v11200_v13 = vld [vmem:[%s20060_s4 + $0x810] sm:$0xff] }
 0x256   : > { %v11886_v24 = vpop.f32.mrb[39].mxu1 }
 0x257   : > { %v1399_v42 = vadd.f32 %v11884_v4, %v14946_v62  ;;  %v11887_v20 = vadd.f32 %v11886_v24, %v11885_v47  ;;  %11924 = vmatprep.subr.bf16.mxu0 %v1526_v8  ;;  %13326 = vmatprep.subr.bf16.mxu1 %v1526_v8  ;;  %v16192_v17 = vpop.permute.xlu0 %4698  ;;  %v11201_v62 = vld [vmem:[%s20060_s4 + $0x818] sm:$0xff]  ;;  %v11218_v24 = vld [vmem:[%s20060_s4 + $0x8a0] sm:$0xff] }
 0x258   : > { %20322 = vst [vmem:[#allocation171_spill] sm:$0xff] %v16192_v17  ;;  %v16194_v60 = vpop.permute.xlu1 %4703  ;;  %11925 = vmatpush3.bf16.msra.mxu0 %v15996_v11  ;;  %13334 = vmatpush3.bf16.msra.mxu1 %v15996_v11 }
 0x259   : > { %20323 = vst [vmem:[#allocation172_spill] sm:$0xff] %v16194_v60  ;;  %v1402_v33 = vadd.f32 %v11887_v20, %v14948_v63  ;;  %5952 = vperm.xlu0 %13368, %v11216_v50   ;;  %5957 = vperm.xlu1 %13369, %v11217_v2   ;;  %v1471_v61 = vmax.f32 %v1399_v42, 0.0  ;;  %v11219_v20 = vld [vmem:[%s20060_s4 + $0x8a8] sm:$0xff] }
 0x25b   : > { %v11888_v46 = vpop.f32.mrb[40].mxu1  ;;  %v16205_v12 = vpop.permute.xlu0 %4618  ;;  %v1472_v4 = vmax.f32 %v1402_v33, 0.0 }
 0x25c   : > { %v16207_v47 = vpop.permute.xlu1 %4623  ;;  %v11889_v11 = vpop.f32.mrb[41].mxu1 }
 0x25d   : > { %v11890_v8 = vadd.f32 %v11889_v11, %v11888_v46  ;;  %5872 = vperm.xlu0 %13368, %v11200_v13   ;;  %5877 = vperm.xlu1 %13369, %v11201_v62   ;;  %v11891_v63 = vpop.f32.mrb[42].mxu1  ;;  %v1527_v2 = vpack.c.bf16 %v1472_v4, %v1471_v61  ;;  %v20326_v62 = vld [vmem:[#allocation2_spill] sm:$0xff] }
 0x25e   : > { %v11892_v50 = vpop.f32.mrb[43].mxu1  ;;  %v11202_v61 = vld [vmem:[%s20060_s4 + $0x820] sm:$0xff] }
 0x25f   : > { %v1407_v42 = vadd.f32 %v11890_v8, %v14966_v15  ;;  %v11893_v33 = vadd.f32 %v11892_v50, %v11891_v63  ;;  %11926 = vmatprep.subr.bf16.mxu0 %v1527_v2  ;;  %13327 = vmatprep.subr.bf16.mxu1 %v1527_v2  ;;  %v16216_v60 = vpop.permute.xlu0 %4708  ;;  %v11203_v15 = vld [vmem:[%s20060_s4 + $0x828] sm:$0xff] }
 0x260   : > { %20324 = vst [vmem:[#allocation173_spill] sm:$0xff] %v16216_v60  ;;  %v16218_v13 = vpop.permute.xlu1 %4713  ;;  %11927 = vmatpush3.bf16.msra.mxu0 %v16020_v43  ;;  %13335 = vmatpush3.bf16.msra.mxu1 %v16020_v43  ;;  %v20327_v60 = vld [vmem:[#allocation3_spill] sm:$0xff] }
 0x261   : > { %20325 = vst [vmem:[#allocation174_spill] sm:$0xff] %v16218_v13  ;;  %v1410_v46 = vadd.f32 %v11893_v33, %v20326_v62  ;;  %5962 = vperm.xlu0 %13368, %v11218_v24   ;;  %5967 = vperm.xlu1 %13369, %v11219_v20   ;;  %v1473_v8 = vmax.f32 %v1407_v42, 0.0  ;;  %v11220_v62 = vld [vmem:[%s20060_s4 + $0x8b0] sm:$0xff]  ;;  %v11221_v13 = vld [vmem:[%s20060_s4 + $0x8b8] sm:$0xff] }
 0x263   : > { %v11894_v4 = vpop.f32.mrb[44].mxu1  ;;  %v16229_v11 = vpop.permute.xlu0 %4628  ;;  %v1474_v63 = vmax.f32 %v1410_v46, 0.0 }
 0x264   : > { %v16231_v2 = vpop.permute.xlu1 %4633  ;;  %v11895_v43 = vpop.f32.mrb[45].mxu1 }
 0x265   : > { %v11896_v50 = vadd.f32 %v11895_v43, %v11894_v4  ;;  %5882 = vperm.xlu0 %13368, %v11202_v61   ;;  %5887 = vperm.xlu1 %13369, %v11203_v15   ;;  %v11897_v24 = vpop.f32.mrb[46].mxu1  ;;  %v1528_v20 = vpack.c.bf16 %v1474_v63, %v1473_v8  ;;  %v20330_v15 = vld [vmem:[#allocation4_spill] sm:$0xff] }
 0x266   : > { %v11898_v33 = vpop.f32.mrb[47].mxu1  ;;  %v11204_v8 = vld [vmem:[%s20060_s4 + $0x830] sm:$0xff] }
 0x267   : > { %v1415_v42 = vadd.f32 %v11896_v50, %v20327_v60  ;;  %v11899_v46 = vadd.f32 %v11898_v33, %v11897_v24  ;;  %11928 = vmatprep.subr.bf16.mxu0 %v1528_v20  ;;  %13328 = vmatprep.subr.bf16.mxu1 %v1528_v20  ;;  %v16240_v17 = vpop.permute.xlu0 %4718  ;;  %v11205_v60 = vld [vmem:[%s20060_s4 + $0x838] sm:$0xff] }
 0x268   : > { %20328 = vst [vmem:[#allocation2_spill] sm:$0xff] %v16240_v17  ;;  %v16242_v61 = vpop.permute.xlu1 %4723  ;;  %11929 = vmatpush3.bf16.msra.mxu0 %v16044_v45  ;;  %13336 = vmatpush3.bf16.msra.mxu1 %v16044_v45  ;;  %v20332_v17 = vld [vmem:[#allocation5_spill] sm:$0xff] }
 0x269   : > { %20329 = vst [vmem:[#allocation3_spill] sm:$0xff] %v16242_v61  ;;  %v1418_v4 = vadd.f32 %v11899_v46, %v20330_v15  ;;  %5972 = vperm.xlu0 %13368, %v11220_v62   ;;  %5977 = vperm.xlu1 %13369, %v11221_v13   ;;  %v1475_v50 = vmax.f32 %v1415_v42, 0.0  ;;  %v11222_v15 = vld [vmem:[%s20060_s4 + $0x8c0] sm:$0xff]  ;;  %v11223_v61 = vld [vmem:[%s20060_s4 + $0x8c8] sm:$0xff] }
 0x26b   : > { %v11900_v63 = vpop.f32.mrb[48].mxu1  ;;  %v16253_v43 = vpop.permute.xlu0 %4638  ;;  %v1476_v24 = vmax.f32 %v1418_v4, 0.0 }
 0x26c   : > { %v16255_v20 = vpop.permute.xlu1 %4643  ;;  %v11901_v45 = vpop.f32.mrb[49].mxu1 }
 0x26d   : > { %20331 = vst [vmem:[#allocation4_spill] sm:$0xff] %v16255_v20  ;;  %v11902_v33 = vadd.f32 %v11901_v45, %v11900_v63  ;;  %5892 = vperm.xlu0 %13368, %v11204_v8   ;;  %5897 = vperm.xlu1 %13369, %v11205_v60   ;;  %v11903_v13 = vpop.f32.mrb[50].mxu1  ;;  %v1529_v62 = vpack.c.bf16 %v1476_v24, %v1475_v50  ;;  %v20335_v60 = vld [vmem:[#allocation6_spill] sm:$0xff] }
 0x26e   : > { %v11904_v46 = vpop.f32.mrb[51].mxu1  ;;  %v11206_v50 = vld [vmem:[%s20060_s4 + $0x840] sm:$0xff] }
 0x26f   : > { %v1423_v42 = vadd.f32 %v11902_v33, %v20332_v17  ;;  %v11905_v4 = vadd.f32 %v11904_v46, %v11903_v13  ;;  %11930 = vmatprep.subr.bf16.mxu0 %v1529_v62  ;;  %13329 = vmatprep.subr.bf16.mxu1 %v1529_v62  ;;  %v16264_v20 = vpop.permute.xlu0 %4728  ;;  %v11207_v17 = vld [vmem:[%s20060_s4 + $0x848] sm:$0xff] }
 0x270   : > { %20333 = vst [vmem:[#allocation5_spill] sm:$0xff] %v16264_v20  ;;  %v16266_v8 = vpop.permute.xlu1 %4733  ;;  %11931 = vmatpush3.bf16.msra.mxu0 %v16068_v54  ;;  %13337 = vmatpush3.bf16.msra.mxu1 %v16068_v54  ;;  %v20337_v20 = vld [vmem:[#allocation10_spill] sm:$0xff] }
 0x271   : > { %20334 = vst [vmem:[#allocation175_spill] sm:$0xff] %v16266_v8  ;;  %v1426_v63 = vadd.f32 %v11905_v4, %v20335_v60  ;;  %5982 = vperm.xlu0 %13368, %v11222_v15   ;;  %5987 = vperm.xlu1 %13369, %v11223_v61   ;;  %v1477_v33 = vmax.f32 %v1423_v42, 0.0  ;;  %v11224_v60 = vld [vmem:[%s20060_s4 + $0x8d0] sm:$0xff]  ;;  %v11225_v8 = vld [vmem:[%s20060_s4 + $0x8d8] sm:$0xff] }
 0x273   : > { %v11906_v24 = vpop.f32.mrb[52].mxu1  ;;  %v16277_v45 = vpop.permute.xlu0 %4648  ;;  %v1478_v13 = vmax.f32 %v1426_v63, 0.0 }
 0x274   : > { %v16279_v62 = vpop.permute.xlu1 %4653  ;;  %v11907_v54 = vpop.f32.mrb[53].mxu1 }
 0x275   : > { %20336 = vst [vmem:[#allocation6_spill] sm:$0xff] %v16279_v62  ;;  %v11908_v46 = vadd.f32 %v11907_v54, %v11906_v24  ;;  %5902 = vperm.xlu0 %13368, %v11206_v50   ;;  %5907 = vperm.xlu1 %13369, %v11207_v17   ;;  %v11909_v61 = vpop.f32.mrb[54].mxu1  ;;  %v1530_v15 = vpack.c.bf16 %v1478_v13, %v1477_v33  ;;  %v20340_v17 = vld [vmem:[#allocation12_spill] sm:$0xff] }
 0x276   : > { %v11910_v4 = vpop.f32.mrb[55].mxu1  ;;  %v11208_v33 = vld [vmem:[%s20060_s4 + $0x850] sm:$0xff] }
 0x277   : > { %v1431_v42 = vadd.f32 %v11908_v46, %v20337_v20  ;;  %v11911_v63 = vadd.f32 %v11910_v4, %v11909_v61  ;;  %11932 = vmatprep.subr.bf16.mxu0 %v1530_v15  ;;  %13330 = vmatprep.subr.bf16.mxu1 %v1530_v15  ;;  %v16288_v62 = vpop.permute.xlu0 %4738  ;;  %v11209_v20 = vld [vmem:[%s20060_s4 + $0x858] sm:$0xff] }
 0x278   : > { %20338 = vst [vmem:[#allocation10_spill] sm:$0xff] %v16288_v62  ;;  %v16290_v50 = vpop.permute.xlu1 %4743  ;;  %11933 = vmatpush3.bf16.msra.mxu0 %v16092_v38  ;;  %13338 = vmatpush3.bf16.msra.mxu1 %v16092_v38  ;;  %v20342_v62 = vld [vmem:[#allocation16_spill] sm:$0xff] }
 0x279   : > { %20339 = vst [vmem:[#allocation176_spill] sm:$0xff] %v16290_v50  ;;  %v1434_v24 = vadd.f32 %v11911_v63, %v20340_v17  ;;  %5992 = vperm.xlu0 %13368, %v11224_v60   ;;  %5997 = vperm.xlu1 %13369, %v11225_v8   ;;  %v1479_v46 = vmax.f32 %v1431_v42, 0.0  ;;  %v11226_v17 = vld [vmem:[%s20060_s4 + $0x8e0] sm:$0xff]  ;;  %v11227_v50 = vld [vmem:[%s20060_s4 + $0x8e8] sm:$0xff] }
 0x27b   : > { %v11912_v13 = vpop.f32.mrb[56].mxu1  ;;  %v16301_v54 = vpop.permute.xlu0 %4658  ;;  %v1480_v61 = vmax.f32 %v1434_v24, 0.0 }
 0x27c   : > { %v16303_v15 = vpop.permute.xlu1 %4663  ;;  %v11913_v38 = vpop.f32.mrb[57].mxu1 }
 0x27d   : > { %20341 = vst [vmem:[#allocation12_spill] sm:$0xff] %v16303_v15  ;;  %v11914_v4 = vadd.f32 %v11913_v38, %v11912_v13  ;;  %5912 = vperm.xlu0 %13368, %v11208_v33   ;;  %5917 = vperm.xlu1 %13369, %v11209_v20   ;;  %v11915_v8 = vpop.f32.mrb[58].mxu1  ;;  %v1531_v60 = vpack.c.bf16 %v1480_v61, %v1479_v46  ;;  %v20345_v20 = vld [vmem:[#allocation18_spill] sm:$0xff] }
 0x27e   : > { %v11916_v63 = vpop.f32.mrb[59].mxu1  ;;  %v11210_v46 = vld [vmem:[%s20060_s4 + $0x860] sm:$0xff] }
 0x27f   : > { %v1439_v42 = vadd.f32 %v11914_v4, %v20342_v62  ;;  %v11917_v24 = vadd.f32 %v11916_v63, %v11915_v8  ;;  %11934 = vmatprep.subr.bf16.mxu0 %v1531_v60  ;;  %13331 = vmatprep.subr.bf16.mxu1 %v1531_v60  ;;  %v16312_v15 = vpop.permute.xlu0 %4748  ;;  %v11211_v62 = vld [vmem:[%s20060_s4 + $0x868] sm:$0xff] }
 0x280   : > { %20343 = vst [vmem:[#allocation16_spill] sm:$0xff] %v16312_v15  ;;  %v16314_v33 = vpop.permute.xlu1 %4753  ;;  %11935 = vmatpush3.bf16.msra.mxu0 %v16116_v40  ;;  %13339 = vmatpush3.bf16.msra.mxu1 %v16116_v40  ;;  %v20347_v15 = vld [vmem:[#allocation22_spill] sm:$0xff] }
 0x281   : > { %20344 = vst [vmem:[#allocation177_spill] sm:$0xff] %v16314_v33  ;;  %v1442_v13 = vadd.f32 %v11917_v24, %v20345_v20  ;;  %6002 = vperm.xlu0 %13368, %v11226_v17   ;;  %6007 = vperm.xlu1 %13369, %v11227_v50   ;;  %v1481_v4 = vmax.f32 %v1439_v42, 0.0  ;;  %v11228_v20 = vld [vmem:[%s20060_s4 + $0x8f0] sm:$0xff]  ;;  %v11229_v33 = vld [vmem:[%s20060_s4 + $0x8f8] sm:$0xff] }
 0x283   : > { %v11918_v61 = vpop.f32.mrb[60].mxu1  ;;  %v16325_v38 = vpop.permute.xlu0 %4668  ;;  %v1482_v8 = vmax.f32 %v1442_v13, 0.0 }
 0x284   : > { %v16327_v60 = vpop.permute.xlu1 %4673  ;;  %v11919_v40 = vpop.f32.mrb[61].mxu1 }
 0x285   : > { %20346 = vst [vmem:[#allocation18_spill] sm:$0xff] %v16327_v60  ;;  %v11920_v63 = vadd.f32 %v11919_v40, %v11918_v61  ;;  %5922 = vperm.xlu0 %13368, %v11210_v46   ;;  %5927 = vperm.xlu1 %13369, %v11211_v62   ;;  %v11921_v50 = vpop.f32.mrb[62].mxu1  ;;  %v1532_v17 = vpack.c.bf16 %v1482_v8, %v1481_v4  ;;  %v20350_v62 = vld [vmem:[#allocation24_spill] sm:$0xff] }
 0x286   : > { %v11922_v24 = vpop.f32.mrb[63].mxu1  ;;  %v11212_v4 = vld [vmem:[%s20060_s4 + $0x870] sm:$0xff] }
 0x287   : > { %v1447_v42 = vadd.f32 %v11920_v63, %v20347_v15  ;;  %v11923_v13 = vadd.f32 %v11922_v24, %v11921_v50  ;;  %11936 = vmatprep.subr.bf16.mxu0 %v1532_v17  ;;  %13332 = vmatprep.subr.bf16.mxu1 %v1532_v17  ;;  %v16336_v60 = vpop.permute.xlu0 %4758  ;;  %v11213_v15 = vld [vmem:[%s20060_s4 + $0x878] sm:$0xff]  ;;  %v11311_v17 = vld [vmem:[%s20060_s4 + $0x988] sm:$0xff] }
 0x288   : > { %20348 = vst [vmem:[#allocation22_spill] sm:$0xff] %v16336_v60  ;;  %v16338_v46 = vpop.permute.xlu1 %4763  ;;  %11937 = vmatpush3.bf16.msra.mxu0 %v16140_v55  ;;  %13340 = vmatpush3.bf16.msra.mxu1 %v16140_v55 }
 0x289   : > { %20349 = vst [vmem:[#allocation178_spill] sm:$0xff] %v16338_v46  ;;  %v1450_v61 = vadd.f32 %v11923_v13, %v20350_v62  ;;  %6012 = vperm.xlu0 %13368, %v11228_v20   ;;  %6017 = vperm.xlu1 %13369, %v11229_v33   ;;  %v1483_v40 = vmax.f32 %v1447_v42, 0.0  ;;  %v11310_v33 = vld [vmem:[%s20060_s4 + $0x980] sm:$0xff]  ;;  %v13424_v62 = vld [vmem:[%s20059_s3 + $0x114] ss:$8 sps:$4 sm:$0xff]  }
 0x28a   : > { %v13418_v20 = vld [vmem:[%s20059_s3 + $0x100] ss:$8 sps:$4 sm:$0xff]  }
 0x28b   : > { %v16349_v8 = vpop.permute.xlu0 %4678  ;;  %v1484_v63 = vmax.f32 %v1450_v61, 0.0  ;;  %v13421_v42 = vld [vmem:[%s20059_s3 + $0x160] ss:$8 sps:$4 sm:$0xff]   ;;  %v13426_v61 = vld [vmem:[%s20059_s3 + $0x174] ss:$8 sps:$4 sm:$0xff]  }
 0x28c   : > { %20351 = vst [vmem:[#allocation24_spill] sm:$0xff] %v16349_v8  ;;  %v16351_v50 = vpop.permute.xlu1 %4683 }
 0x28d   : > { %20352 = vst [vmem:[#allocation179_spill] sm:$0xff] %v16351_v50  ;;  %5932 = vperm.xlu0 %13368, %v11212_v4   ;;  %5937 = vperm.xlu1 %13369, %v11213_v15   ;;  %v1533_v55 = vpack.c.bf16 %v1484_v63, %v1483_v40  ;;  %v11294_v4 = vld [vmem:[%s20060_s4 + $0x900] sm:$0xff]  ;;  %v11295_v15 = vld [vmem:[%s20060_s4 + $0x908] sm:$0xff]  ;;  %v11312_v63 = vld [vmem:[%s20060_s4 + $0x990] sm:$0xff] }
 0x28f   : > { %11938 = vmatprep.subr.bf16.mxu0 %v1533_v55  ;;  %13333 = vmatprep.subr.bf16.mxu1 %v1533_v55  ;;  %v16359_v24 = vpop.permute.xlu0 %5315  ;;  %v11313_v55 = vld [vmem:[%s20060_s4 + $0x998] sm:$0xff] }
 0x290   : > { %20353 = vst [vmem:[#allocation180_spill] sm:$0xff] %v16359_v24  ;;  %v16367_v13 = vpop.permute.xlu1 %5320  ;;  %11939 = vmatpush3.bf16.msra.mxu0 %v16164_v3  ;;  %13341 = vmatpush3.bf16.msra.mxu1 %v16164_v3 }
 0x291   : > { %20354 = vst [vmem:[#allocation181_spill] sm:$0xff] %v16367_v13  ;;  %6537 = vperm.xlu0 %13368, %v11310_v33   ;;  %6542 = vperm.xlu1 %13369, %v11311_v17   ;;  %v13428_v17 = vld [vmem:[%s20059_s3 + $0x110] ss:$8 sps:$4 sm:$0xff]  }
 0x293   : > { %1920 = vmatmul.mubr.bf16.vlgmr.msra.gmra.mrb[32].mxu0 %v13418_v20  ;;  %1968 = vmatmul.mubr.bf16.vlgmr.msra.gmra.mrb[64].mxu1 %v13421_v42  ;;  %v16383_v3 = vpop.permute.xlu0 %5235  ;;  %v13429_v20 = vld [vmem:[%s20059_s3 + $0x170] ss:$8 sps:$4 sm:$0xff]  }
 0x294   : > { %20355 = vst [vmem:[#allocation182_spill] sm:$0xff] %v16383_v3  ;;  %v16385_v40 = vpop.permute.xlu1 %5240  ;;  %1927 = vmatprep.mubr.bf16.mxu0 %v13424_v62  ;;  %1975 = vmatprep.mubr.bf16.mxu1 %v13426_v61  ;;  %v13430_v62 = vld [vmem:[%s20059_s3 + $0x124] ss:$8 sps:$4 sm:$0xff]   ;;  %v11597_v3 = vld [vmem:[%s20060_s4 + $0xc78] sm:$0xff] }
 0x295   : > { %20356 = vst [vmem:[#allocation183_spill] sm:$0xff] %v16385_v40  ;;  %6457 = vperm.xlu0 %13368, %v11294_v4   ;;  %6462 = vperm.xlu1 %13369, %v11295_v15   ;;  %v13432_v61 = vld [vmem:[%s20059_s3 + $0x184] ss:$8 sps:$4 sm:$0xff]   ;;  %v11296_v4 = vld [vmem:[%s20060_s4 + $0x910] sm:$0xff]  ;;  %v11297_v15 = vld [vmem:[%s20060_s4 + $0x918] sm:$0xff] }
 0x297   : > { %v16393_v33 = vpop.permute.xlu0 %5325 }
 0x298   : > { %20357 = vst [vmem:[#allocation184_spill] sm:$0xff] %v16393_v33  ;;  %v16401_v42 = vpop.permute.xlu1 %5330 }
 0x299   : > { %20358 = vst [vmem:[#allocation185_spill] sm:$0xff] %v16401_v42  ;;  %6547 = vperm.xlu0 %13368, %v11312_v63   ;;  %6552 = vperm.xlu1 %13369, %v11313_v55   ;;  %v11314_v63 = vld [vmem:[%s20060_s4 + $0x9a0] sm:$0xff]  ;;  %v11315_v55 = vld [vmem:[%s20060_s4 + $0x9a8] sm:$0xff] }
 0x29b   : > { %1928 = vmatmul.mubr.bf16.gmra.mrb[36].mxu0 %v13428_v17  ;;  %1976 = vmatmul.mubr.bf16.gmra.mrb[68].mxu1 %v13429_v20  ;;  %v16415_v42 = vpop.permute.xlu0 %5245  ;;  %v13434_v17 = vld [vmem:[%s20059_s3 + $0x120] ss:$8 sps:$4 sm:$0xff]  }
 0x29c   : > { %20359 = vst [vmem:[#allocation186_spill] sm:$0xff] %v16415_v42  ;;  %v16417_v33 = vpop.permute.xlu1 %5250  ;;  %1935 = vmatprep.mubr.bf16.mxu0 %v13430_v62  ;;  %1983 = vmatprep.mubr.bf16.mxu1 %v13432_v61  ;;  %v13435_v20 = vld [vmem:[%s20059_s3 + $0x180] ss:$8 sps:$4 sm:$0xff]   ;;  %v13436_v61 = vld [vmem:[%s20059_s3 + $0x134] ss:$8 sps:$4 sm:$0xff]  }
 0x29d   : > { %20360 = vst [vmem:[#allocation187_spill] sm:$0xff] %v16417_v33  ;;  %6467 = vperm.xlu0 %13368, %v11296_v4   ;;  %6472 = vperm.xlu1 %13369, %v11297_v15   ;;  %v13438_v4 = vld [vmem:[%s20059_s3 + $0x194] ss:$8 sps:$4 sm:$0xff]   ;;  %v11298_v15 = vld [vmem:[%s20060_s4 + $0x920] sm:$0xff] }
 0x29f   : > { %v16425_v13 = vpop.permute.xlu0 %5335 }
 0x2a0   : > { %20361 = vst [vmem:[#allocation188_spill] sm:$0xff] %v16425_v13  ;;  %v16433_v62 = vpop.permute.xlu1 %5340  ;;  %v11299_v13 = vld [vmem:[%s20060_s4 + $0x928] sm:$0xff] }
 0x2a1   : > { %20362 = vst [vmem:[#allocation189_spill] sm:$0xff] %v16433_v62  ;;  %6557 = vperm.xlu0 %13368, %v11314_v63   ;;  %6562 = vperm.xlu1 %13369, %v11315_v55   ;;  %v11316_v63 = vld [vmem:[%s20060_s4 + $0x9b0] sm:$0xff]  ;;  %v11317_v55 = vld [vmem:[%s20060_s4 + $0x9b8] sm:$0xff] }
 0x2a3   : > { %1936 = vmatmul.mubr.bf16.gmra.mrb[40].mxu0 %v13434_v17  ;;  %1984 = vmatmul.mubr.bf16.gmra.mrb[72].mxu1 %v13435_v20  ;;  %v16447_v62 = vpop.permute.xlu0 %5255  ;;  %v13440_v17 = vld [vmem:[%s20059_s3 + $0x130] ss:$8 sps:$4 sm:$0xff]  }
 0x2a4   : > { %20363 = vst [vmem:[#allocation190_spill] sm:$0xff] %v16447_v62  ;;  %v16449_v24 = vpop.permute.xlu1 %5260  ;;  %1943 = vmatprep.mubr.bf16.mxu0 %v13436_v61  ;;  %1991 = vmatprep.mubr.bf16.mxu1 %v13438_v4  ;;  %v13441_v20 = vld [vmem:[%s20059_s3 + $0x190] ss:$8 sps:$4 sm:$0xff]   ;;  %v13444_v4 = vld [vmem:[%s20059_s3 + $0x1a4] ss:$8 sps:$4 sm:$0xff]  }
 0x2a5   : > { %20364 = vst [vmem:[#allocation191_spill] sm:$0xff] %v16449_v24  ;;  %6477 = vperm.xlu0 %13368, %v11298_v15   ;;  %6482 = vperm.xlu1 %13369, %v11299_v13   ;;  %v13442_v13 = vld [vmem:[%s20059_s3 + $0x144] ss:$8 sps:$4 sm:$0xff]   ;;  %v11300_v15 = vld [vmem:[%s20060_s4 + $0x930] sm:$0xff] }
 0x2a7   : > { %v16457_v33 = vpop.permute.xlu0 %5345 }
 0x2a8   : > { %20365 = vst [vmem:[#allocation192_spill] sm:$0xff] %v16457_v33  ;;  %v16465_v61 = vpop.permute.xlu1 %5350  ;;  %v11301_v33 = vld [vmem:[%s20060_s4 + $0x938] sm:$0xff] }
 0x2a9   : > { %20366 = vst [vmem:[#allocation193_spill] sm:$0xff] %v16465_v61  ;;  %6567 = vperm.xlu0 %13368, %v11316_v63   ;;  %6572 = vperm.xlu1 %13369, %v11317_v55   ;;  %v11318_v63 = vld [vmem:[%s20060_s4 + $0x9c0] sm:$0xff]  ;;  %v11319_v55 = vld [vmem:[%s20060_s4 + $0x9c8] sm:$0xff] }
 0x2ab   : > { %1944 = vmatmul.mubr.bf16.gmra.mrb[44].mxu0 %v13440_v17  ;;  %1992 = vmatmul.mubr.bf16.gmra.mrb[76].mxu1 %v13441_v20  ;;  %v16479_v61 = vpop.permute.xlu0 %5265  ;;  %v13446_v17 = vld [vmem:[%s20059_s3 + $0x140] ss:$8 sps:$4 sm:$0xff]  }
 0x2ac   : > { %20367 = vst [vmem:[#allocation194_spill] sm:$0xff] %v16479_v61  ;;  %v16481_v24 = vpop.permute.xlu1 %5270  ;;  %1951 = vmatprep.mubr.bf16.mxu0 %v13442_v13  ;;  %1999 = vmatprep.mubr.bf16.mxu1 %v13444_v4  ;;  %v13447_v20 = vld [vmem:[%s20059_s3 + $0x1a0] ss:$8 sps:$4 sm:$0xff]   ;;  %v13450_v4 = vld [vmem:[%s20059_s3 + $0x1b4] ss:$8 sps:$4 sm:$0xff]  }
 0x2ad   : > { %20368 = vst [vmem:[#allocation195_spill] sm:$0xff] %v16481_v24  ;;  %6487 = vperm.xlu0 %13368, %v11300_v15   ;;  %6492 = vperm.xlu1 %13369, %v11301_v33   ;;  %v13448_v33 = vld [vmem:[%s20059_s3 + $0x154] ss:$8 sps:$4 sm:$0xff]   ;;  %v11302_v15 = vld [vmem:[%s20060_s4 + $0x940] sm:$0xff] }
 0x2af   : > { %v16489_v62 = vpop.permute.xlu0 %5355 }
 0x2b0   : > { %20369 = vst [vmem:[#allocation196_spill] sm:$0xff] %v16489_v62  ;;  %v16497_v13 = vpop.permute.xlu1 %5360  ;;  %v11303_v62 = vld [vmem:[%s20060_s4 + $0x948] sm:$0xff] }
 0x2b1   : > { %20370 = vst [vmem:[#allocation197_spill] sm:$0xff] %v16497_v13  ;;  %6577 = vperm.xlu0 %13368, %v11318_v63   ;;  %6582 = vperm.xlu1 %13369, %v11319_v55   ;;  %v11320_v63 = vld [vmem:[%s20060_s4 + $0x9d0] sm:$0xff]  ;;  %v11321_v55 = vld [vmem:[%s20060_s4 + $0x9d8] sm:$0xff] }
 0x2b3   : > { %1952 = vmatmul.mubr.bf16.gmra.mrb[48].mxu0 %v13446_v17  ;;  %2000 = vmatmul.mubr.bf16.gmra.mrb[80].mxu1 %v13447_v20  ;;  %v16511_v13 = vpop.permute.xlu0 %5275  ;;  %v13452_v17 = vld [vmem:[%s20059_s3 + $0x150] ss:$8 sps:$4 sm:$0xff]  }
 0x2b4   : > { %20371 = vst [vmem:[#allocation198_spill] sm:$0xff] %v16511_v13  ;;  %v16513_v24 = vpop.permute.xlu1 %5280  ;;  %1959 = vmatprep.mubr.bf16.mxu0 %v13448_v33  ;;  %2007 = vmatprep.mubr.bf16.mxu1 %v13450_v4  ;;  %v13453_v20 = vld [vmem:[%s20059_s3 + $0x1b0] ss:$8 sps:$4 sm:$0xff]  }
 0x2b5   : > { %20372 = vst [vmem:[#allocation199_spill] sm:$0xff] %v16513_v24  ;;  %6497 = vperm.xlu0 %13368, %v11302_v15   ;;  %6502 = vperm.xlu1 %13369, %v11303_v62   ;;  %v13454_v62 = vld [vmem:[%s20059_s3 + $0x1c4] ss:$8 sps:$4 sm:$0xff]   ;;  %v11304_v4 = vld [vmem:[%s20060_s4 + $0x950] sm:$0xff]  ;;  %v11305_v15 = vld [vmem:[%s20060_s4 + $0x958] sm:$0xff] }
 0x2b7   : > { %v16521_v61 = vpop.permute.xlu0 %5365 }
 0x2b8   : > { %20373 = vst [vmem:[#allocation200_spill] sm:$0xff] %v16521_v61  ;;  %v16529_v33 = vpop.permute.xlu1 %5370 }
 0x2b9   : > { %20374 = vst [vmem:[#allocation201_spill] sm:$0xff] %v16529_v33  ;;  %6587 = vperm.xlu0 %13368, %v11320_v63   ;;  %6592 = vperm.xlu1 %13369, %v11321_v55   ;;  %v11322_v63 = vld [vmem:[%s20060_s4 + $0x9e0] sm:$0xff]  ;;  %v11323_v55 = vld [vmem:[%s20060_s4 + $0x9e8] sm:$0xff] }
 0x2bb   : > { %1960 = vmatmul.mubr.bf16.gmra.mrb[52].mxu0 %v13452_v17  ;;  %2008 = vmatmul.mubr.bf16.gmra.mrb[84].mxu1 %v13453_v20  ;;  %v16540_v61 = vpop.permute.xlu0 %5285  ;;  %v13456_v17 = vld [vmem:[%s20059_s3 + $0x1c0] ss:$8 sps:$4 sm:$0xff]  }
 0x2bc   : > { %20375 = vst [vmem:[#allocation202_spill] sm:$0xff] %v16540_v61  ;;  %v16542_v24 = vpop.permute.xlu1 %5290  ;;  %2015 = vmatprep.mubr.bf16.mxu1 %v13454_v62  ;;  %v13457_v62 = vld [vmem:[%s20059_s3 + $0x1d4] ss:$8 sps:$4 sm:$0xff]  }
 0x2bd   : > { %20376 = vst [vmem:[#allocation203_spill] sm:$0xff] %v16542_v24  ;;  %6507 = vperm.xlu0 %13368, %v11304_v4   ;;  %6512 = vperm.xlu1 %13369, %v11305_v15   ;;  %v11306_v4 = vld [vmem:[%s20060_s4 + $0x960] sm:$0xff]  ;;  %v11307_v15 = vld [vmem:[%s20060_s4 + $0x968] sm:$0xff] }
 0x2bf   : > { %v16550_v33 = vpop.permute.xlu0 %5375 }
 0x2c0   : > { %20377 = vst [vmem:[#allocation204_spill] sm:$0xff] %v16550_v33  ;;  %v16555_v20 = vpop.permute.xlu1 %5380 }
 0x2c1   : > { %20378 = vst [vmem:[#allocation205_spill] sm:$0xff] %v16555_v20  ;;  %6597 = vperm.xlu0 %13368, %v11322_v63   ;;  %6602 = vperm.xlu1 %13369, %v11323_v55   ;;  %v11324_v63 = vld [vmem:[%s20060_s4 + $0x9f0] sm:$0xff]  ;;  %v11325_v55 = vld [vmem:[%s20060_s4 + $0x9f8] sm:$0xff] }
 0x2c3   : > { %2016 = vmatmul.mubr.bf16.gmra.mrb[88].mxu1 %v13456_v17  ;;  %v16566_v33 = vpop.permute.xlu0 %5295  ;;  %v13459_v17 = vld [vmem:[%s20059_s3 + $0x1d0] ss:$8 sps:$4 sm:$0xff]  }
 0x2c4   : > { %20379 = vst [vmem:[#allocation206_spill] sm:$0xff] %v16566_v33  ;;  %v16568_v24 = vpop.permute.xlu1 %5300  ;;  %2023 = vmatprep.mubr.bf16.mxu1 %v13457_v62  ;;  %v13460_v62 = vld [vmem:[%s20059_s3 + $0x1e4] ss:$8 sps:$4 sm:$0xff]  }
 0x2c5   : > { %20380 = vst [vmem:[#allocation207_spill] sm:$0xff] %v16568_v24  ;;  %6517 = vperm.xlu0 %13368, %v11306_v4   ;;  %6522 = vperm.xlu1 %13369, %v11307_v15   ;;  %v11308_v4 = vld [vmem:[%s20060_s4 + $0x970] sm:$0xff]  ;;  %v11309_v15 = vld [vmem:[%s20060_s4 + $0x978] sm:$0xff] }
 0x2c7   : > { %v16576_v20 = vpop.permute.xlu0 %5385 }
 0x2c8   : > { %20381 = vst [vmem:[#allocation208_spill] sm:$0xff] %v16576_v20  ;;  %v16581_v33 = vpop.permute.xlu1 %5390 }
 0x2c9   : > { %20382 = vst [vmem:[#allocation209_spill] sm:$0xff] %v16581_v33  ;;  %6607 = vperm.xlu0 %13368, %v11324_v63   ;;  %6612 = vperm.xlu1 %13369, %v11325_v55   ;;  %v11406_v63 = vld [vmem:[%s20060_s4 + $0xa80] sm:$0xff]  ;;  %v11407_v55 = vld [vmem:[%s20060_s4 + $0xa88] sm:$0xff] }
 0x2cb   : > { %2024 = vmatmul.mubr.bf16.gmra.mrb[92].mxu1 %v13459_v17  ;;  %v16592_v20 = vpop.permute.xlu0 %5305  ;;  %v13462_v17 = vld [vmem:[%s20059_s3 + $0x1e0] ss:$8 sps:$4 sm:$0xff]  }
 0x2cc   : > { %20383 = vst [vmem:[#allocation210_spill] sm:$0xff] %v16592_v20  ;;  %v16594_v24 = vpop.permute.xlu1 %5310  ;;  %2031 = vmatprep.mubr.bf16.mxu1 %v13460_v62  ;;  %v13463_v62 = vld [vmem:[%s20059_s3 + $0x1f4] ss:$8 sps:$4 sm:$0xff]  }
 0x2cd   : > { %20384 = vst [vmem:[#allocation211_spill] sm:$0xff] %v16594_v24  ;;  %6527 = vperm.xlu0 %13368, %v11308_v4   ;;  %6532 = vperm.xlu1 %13369, %v11309_v15   ;;  %v11390_v4 = vld [vmem:[%s20060_s4 + $0xa00] sm:$0xff]  ;;  %v11391_v15 = vld [vmem:[%s20060_s4 + $0xa08] sm:$0xff] }
 0x2cf   : > { %v16602_v33 = vpop.permute.xlu0 %5942 }
 0x2d0   : > { %20385 = vst [vmem:[#allocation212_spill] sm:$0xff] %v16602_v33  ;;  %v16607_v20 = vpop.permute.xlu1 %5947 }
 0x2d1   : > { %20386 = vst [vmem:[#allocation213_spill] sm:$0xff] %v16607_v20  ;;  %7132 = vperm.xlu0 %13368, %v11406_v63   ;;  %7137 = vperm.xlu1 %13369, %v11407_v55   ;;  %v11408_v63 = vld [vmem:[%s20060_s4 + $0xa90] sm:$0xff]  ;;  %v11409_v55 = vld [vmem:[%s20060_s4 + $0xa98] sm:$0xff] }
 0x2d2   : > { %v13465_v20 = vld [vmem:[%s20059_s3 + $0x1f0] ss:$8 sps:$4 sm:$0xff]  }
 0x2d3   : > { %2032 = vmatmul.mubr.bf16.gmra.mrb[96].mxu1 %v13462_v17  ;;  %v16618_v33 = vpop.permute.xlu0 %5862 }
 0x2d4   : > { %20387 = vst [vmem:[#allocation214_spill] sm:$0xff] %v16618_v33  ;;  %v16620_v24 = vpop.permute.xlu1 %5867  ;;  %2039 = vmatprep.mubr.bf16.mxu1 %v13463_v62  ;;  %v11392_v62 = vld [vmem:[%s20060_s4 + $0xa10] sm:$0xff] }
 0x2d5   : > { %20388 = vst [vmem:[#allocation215_spill] sm:$0xff] %v16620_v24  ;;  %7052 = vperm.xlu0 %13368, %v11390_v4   ;;  %7057 = vperm.xlu1 %13369, %v11391_v15   ;;  %v11393_v4 = vld [vmem:[%s20060_s4 + $0xa18] sm:$0xff] }
 0x2d8   : > { %v16631_v17 = vpop.permute.xlu0 %5952  ;;  %v16633_v33 = vpop.permute.xlu1 %5957 }
 0x2d9   : > { %20389 = vst [vmem:[#allocation216_spill] sm:$0xff] %v16631_v17  ;;  %20390 = vst [vmem:[#allocation217_spill] sm:$0xff] %v16633_v33  ;;  %7142 = vperm.xlu0 %13368, %v11408_v63   ;;  %7147 = vperm.xlu1 %13369, %v11409_v55   ;;  %v11410_v63 = vld [vmem:[%s20060_s4 + $0xaa0] sm:$0xff]  ;;  %v11411_v55 = vld [vmem:[%s20060_s4 + $0xaa8] sm:$0xff] }
 0x2db   : > { %2040 = vmatmul.mubr.bf16.gmra.mrb[100].mxu1 %v13465_v20  ;;  %v11394_v20 = vld [vmem:[%s20060_s4 + $0xa20] sm:$0xff] }
 0x2dc   : > { %v16641_v15 = vpop.permute.xlu0 %5872  ;;  %v16643_v24 = vpop.permute.xlu1 %5877 }
 0x2dd   : > { %20391 = vst [vmem:[#allocation218_spill] sm:$0xff] %v16641_v15  ;;  %20392 = vst [vmem:[#allocation219_spill] sm:$0xff] %v16643_v24  ;;  %7062 = vperm.xlu0 %13368, %v11392_v62   ;;  %7067 = vperm.xlu1 %13369, %v11393_v4   ;;  %v11395_v62 = vld [vmem:[%s20060_s4 + $0xa28] sm:$0xff] }
 0x2e0   : > { %v16651_v33 = vpop.permute.xlu0 %5962  ;;  %v16653_v17 = vpop.permute.xlu1 %5967 }
 0x2e1   : > { %20393 = vst [vmem:[#allocation220_spill] sm:$0xff] %v16651_v33  ;;  %20394 = vst [vmem:[#allocation221_spill] sm:$0xff] %v16653_v17  ;;  %7152 = vperm.xlu0 %13368, %v11410_v63   ;;  %7157 = vperm.xlu1 %13369, %v11411_v55   ;;  %v11412_v17 = vld [vmem:[%s20060_s4 + $0xab0] sm:$0xff]  ;;  %v11413_v63 = vld [vmem:[%s20060_s4 + $0xab8] sm:$0xff] }
 0x2e4   : > { %v16661_v4 = vpop.permute.xlu0 %5882  ;;  %v16663_v24 = vpop.permute.xlu1 %5887 }
 0x2e5   : > { %20395 = vst [vmem:[#allocation222_spill] sm:$0xff] %v16661_v4  ;;  %20396 = vst [vmem:[#allocation223_spill] sm:$0xff] %v16663_v24  ;;  %7072 = vperm.xlu0 %13368, %v11394_v20   ;;  %7077 = vperm.xlu1 %13369, %v11395_v62   ;;  %v11396_v24 = vld [vmem:[%s20060_s4 + $0xa30] sm:$0xff]  ;;  %v11397_v20 = vld [vmem:[%s20060_s4 + $0xa38] sm:$0xff] }
 0x2e8   : > { %v16671_v55 = vpop.permute.xlu0 %5972  ;;  %v16673_v33 = vpop.permute.xlu1 %5977 }
 0x2e9   : > { %20397 = vst [vmem:[#allocation224_spill] sm:$0xff] %v16671_v55  ;;  %20398 = vst [vmem:[#allocation225_spill] sm:$0xff] %v16673_v33  ;;  %7162 = vperm.xlu0 %13368, %v11412_v17   ;;  %7167 = vperm.xlu1 %13369, %v11413_v63   ;;  %v11414_v33 = vld [vmem:[%s20060_s4 + $0xac0] sm:$0xff]  ;;  %v11415_v17 = vld [vmem:[%s20060_s4 + $0xac8] sm:$0xff] }
 0x2ec   : > { %v16681_v62 = vpop.permute.xlu0 %5892  ;;  %v16683_v4 = vpop.permute.xlu1 %5897 }
 0x2ed   : > { %20399 = vst [vmem:[#allocation226_spill] sm:$0xff] %v16681_v62  ;;  %20400 = vst [vmem:[#allocation227_spill] sm:$0xff] %v16683_v4  ;;  %7082 = vperm.xlu0 %13368, %v11396_v24   ;;  %7087 = vperm.xlu1 %13369, %v11397_v20   ;;  %v11398_v4 = vld [vmem:[%s20060_s4 + $0xa40] sm:$0xff]  ;;  %v11399_v24 = vld [vmem:[%s20060_s4 + $0xa48] sm:$0xff] }
 0x2f0   : > { %v16691_v63 = vpop.permute.xlu0 %5982  ;;  %v16693_v55 = vpop.permute.xlu1 %5987 }
 0x2f1   : > { %20401 = vst [vmem:[#allocation228_spill] sm:$0xff] %v16691_v63  ;;  %20402 = vst [vmem:[#allocation229_spill] sm:$0xff] %v16693_v55  ;;  %7172 = vperm.xlu0 %13368, %v11414_v33   ;;  %7177 = vperm.xlu1 %13369, %v11415_v17   ;;  %v11416_v55 = vld [vmem:[%s20060_s4 + $0xad0] sm:$0xff]  ;;  %v11417_v33 = vld [vmem:[%s20060_s4 + $0xad8] sm:$0xff] }
 0x2f4   : > { %v16701_v20 = vpop.permute.xlu0 %5902  ;;  %v16703_v62 = vpop.permute.xlu1 %5907 }
 0x2f5   : > { %20403 = vst [vmem:[#allocation230_spill] sm:$0xff] %v16701_v20  ;;  %20404 = vst [vmem:[#allocation231_spill] sm:$0xff] %v16703_v62  ;;  %7092 = vperm.xlu0 %13368, %v11398_v4   ;;  %7097 = vperm.xlu1 %13369, %v11399_v24   ;;  %v11400_v62 = vld [vmem:[%s20060_s4 + $0xa50] sm:$0xff]  ;;  %v11401_v4 = vld [vmem:[%s20060_s4 + $0xa58] sm:$0xff] }
 0x2f8   : > { %v16711_v17 = vpop.permute.xlu0 %5992  ;;  %v16713_v63 = vpop.permute.xlu1 %5997 }
 0x2f9   : > { %20405 = vst [vmem:[#allocation232_spill] sm:$0xff] %v16711_v17  ;;  %20406 = vst [vmem:[#allocation233_spill] sm:$0xff] %v16713_v63  ;;  %7182 = vperm.xlu0 %13368, %v11416_v55   ;;  %7187 = vperm.xlu1 %13369, %v11417_v33   ;;  %v11418_v63 = vld [vmem:[%s20060_s4 + $0xae0] sm:$0xff]  ;;  %v11419_v55 = vld [vmem:[%s20060_s4 + $0xae8] sm:$0xff] }
 0x2fc   : > { %v16721_v24 = vpop.permute.xlu0 %5912  ;;  %v16723_v20 = vpop.permute.xlu1 %5917 }
 0x2fd   : > { %20407 = vst [vmem:[#allocation234_spill] sm:$0xff] %v16721_v24  ;;  %20408 = vst [vmem:[#allocation235_spill] sm:$0xff] %v16723_v20  ;;  %7102 = vperm.xlu0 %13368, %v11400_v62   ;;  %7107 = vperm.xlu1 %13369, %v11401_v4   ;;  %v11402_v20 = vld [vmem:[%s20060_s4 + $0xa60] sm:$0xff]  ;;  %v11403_v62 = vld [vmem:[%s20060_s4 + $0xa68] sm:$0xff] }
 0x300   : > { %v16731_v33 = vpop.permute.xlu0 %6002  ;;  %v16733_v17 = vpop.permute.xlu1 %6007 }
 0x301   : > { %20409 = vst [vmem:[#allocation236_spill] sm:$0xff] %v16731_v33  ;;  %20410 = vst [vmem:[#allocation237_spill] sm:$0xff] %v16733_v17  ;;  %7192 = vperm.xlu0 %13368, %v11418_v63   ;;  %7197 = vperm.xlu1 %13369, %v11419_v55   ;;  %v11420_v17 = vld [vmem:[%s20060_s4 + $0xaf0] sm:$0xff]  ;;  %v11421_v63 = vld [vmem:[%s20060_s4 + $0xaf8] sm:$0xff] }
 0x304   : > { %v16741_v4 = vpop.permute.xlu0 %5922  ;;  %v16743_v24 = vpop.permute.xlu1 %5927 }
 0x305   : > { %20411 = vst [vmem:[#allocation238_spill] sm:$0xff] %v16741_v4  ;;  %20412 = vst [vmem:[#allocation239_spill] sm:$0xff] %v16743_v24  ;;  %7112 = vperm.xlu0 %13368, %v11402_v20   ;;  %7117 = vperm.xlu1 %13369, %v11403_v62   ;;  %v11404_v24 = vld [vmem:[%s20060_s4 + $0xa70] sm:$0xff]  ;;  %v11405_v20 = vld [vmem:[%s20060_s4 + $0xa78] sm:$0xff] }
 0x308   : > { %v16751_v55 = vpop.permute.xlu0 %6012  ;;  %v16753_v33 = vpop.permute.xlu1 %6017 }
 0x309   : > { %20413 = vst [vmem:[#allocation240_spill] sm:$0xff] %v16751_v55  ;;  %20414 = vst [vmem:[#allocation241_spill] sm:$0xff] %v16753_v33  ;;  %7202 = vperm.xlu0 %13368, %v11420_v17   ;;  %7207 = vperm.xlu1 %13369, %v11421_v63   ;;  %v11502_v33 = vld [vmem:[%s20060_s4 + $0xb80] sm:$0xff]  ;;  %v11503_v17 = vld [vmem:[%s20060_s4 + $0xb88] sm:$0xff] }
 0x30c   : > { %v16761_v62 = vpop.permute.xlu0 %5932  ;;  %v16763_v4 = vpop.permute.xlu1 %5937 }
 0x30d   : > { %20415 = vst [vmem:[#allocation242_spill] sm:$0xff] %v16761_v62  ;;  %20416 = vst [vmem:[#allocation243_spill] sm:$0xff] %v16763_v4  ;;  %7122 = vperm.xlu0 %13368, %v11404_v24   ;;  %7127 = vperm.xlu1 %13369, %v11405_v20   ;;  %v11486_v4 = vld [vmem:[%s20060_s4 + $0xb00] sm:$0xff]  ;;  %v11487_v24 = vld [vmem:[%s20060_s4 + $0xb08] sm:$0xff] }
 0x310   : > { %v16771_v63 = vpop.permute.xlu0 %6537  ;;  %v16773_v55 = vpop.permute.xlu1 %6542 }
 0x311   : > { %20417 = vst [vmem:[#allocation244_spill] sm:$0xff] %v16771_v63  ;;  %20418 = vst [vmem:[#allocation245_spill] sm:$0xff] %v16773_v55  ;;  %7759 = vperm.xlu0 %13368, %v11502_v33   ;;  %7764 = vperm.xlu1 %13369, %v11503_v17   ;;  %v11504_v55 = vld [vmem:[%s20060_s4 + $0xb90] sm:$0xff]  ;;  %v11505_v33 = vld [vmem:[%s20060_s4 + $0xb98] sm:$0xff] }
 0x314   : > { %v16781_v20 = vpop.permute.xlu0 %6457  ;;  %v16783_v62 = vpop.permute.xlu1 %6462 }
 0x315   : > { %20419 = vst [vmem:[#allocation246_spill] sm:$0xff] %v16781_v20  ;;  %20420 = vst [vmem:[#allocation247_spill] sm:$0xff] %v16783_v62  ;;  %7679 = vperm.xlu0 %13368, %v11486_v4   ;;  %7684 = vperm.xlu1 %13369, %v11487_v24   ;;  %v11488_v62 = vld [vmem:[%s20060_s4 + $0xb10] sm:$0xff]  ;;  %v11489_v4 = vld [vmem:[%s20060_s4 + $0xb18] sm:$0xff] }
 0x318   : > { %v16791_v17 = vpop.permute.xlu0 %6547  ;;  %v16793_v63 = vpop.permute.xlu1 %6552 }
 0x319   : > { %20421 = vst [vmem:[#allocation248_spill] sm:$0xff] %v16791_v17  ;;  %20422 = vst [vmem:[#allocation249_spill] sm:$0xff] %v16793_v63  ;;  %7769 = vperm.xlu0 %13368, %v11504_v55   ;;  %7774 = vperm.xlu1 %13369, %v11505_v33   ;;  %v11506_v63 = vld [vmem:[%s20060_s4 + $0xba0] sm:$0xff]  ;;  %v11507_v55 = vld [vmem:[%s20060_s4 + $0xba8] sm:$0xff] }
 0x31c   : > { %v16801_v24 = vpop.permute.xlu0 %6467  ;;  %v16803_v20 = vpop.permute.xlu1 %6472 }
 0x31d   : > { %20423 = vst [vmem:[#allocation250_spill] sm:$0xff] %v16801_v24  ;;  %20424 = vst [vmem:[#allocation251_spill] sm:$0xff] %v16803_v20  ;;  %7689 = vperm.xlu0 %13368, %v11488_v62   ;;  %7694 = vperm.xlu1 %13369, %v11489_v4   ;;  %v11490_v20 = vld [vmem:[%s20060_s4 + $0xb20] sm:$0xff]  ;;  %v11491_v62 = vld [vmem:[%s20060_s4 + $0xb28] sm:$0xff] }
 0x320   : > { %v16811_v33 = vpop.permute.xlu0 %6557  ;;  %v16813_v17 = vpop.permute.xlu1 %6562 }
 0x321   : > { %20425 = vst [vmem:[#allocation252_spill] sm:$0xff] %v16811_v33  ;;  %20426 = vst [vmem:[#allocation253_spill] sm:$0xff] %v16813_v17  ;;  %7779 = vperm.xlu0 %13368, %v11506_v63   ;;  %7784 = vperm.xlu1 %13369, %v11507_v55   ;;  %v11508_v17 = vld [vmem:[%s20060_s4 + $0xbb0] sm:$0xff]  ;;  %v11509_v63 = vld [vmem:[%s20060_s4 + $0xbb8] sm:$0xff] }
 0x324   : > { %v16821_v4 = vpop.permute.xlu0 %6477  ;;  %v16823_v24 = vpop.permute.xlu1 %6482 }
 0x325   : > { %20427 = vst [vmem:[#allocation254_spill] sm:$0xff] %v16821_v4  ;;  %20428 = vst [vmem:[#allocation255_spill] sm:$0xff] %v16823_v24  ;;  %7699 = vperm.xlu0 %13368, %v11490_v20   ;;  %7704 = vperm.xlu1 %13369, %v11491_v62   ;;  %v11492_v24 = vld [vmem:[%s20060_s4 + $0xb30] sm:$0xff]  ;;  %v11493_v20 = vld [vmem:[%s20060_s4 + $0xb38] sm:$0xff] }
 0x328   : > { %v16831_v55 = vpop.permute.xlu0 %6567  ;;  %v16833_v33 = vpop.permute.xlu1 %6572 }
 0x329   : > { %20429 = vst [vmem:[#allocation256_spill] sm:$0xff] %v16831_v55  ;;  %20430 = vst [vmem:[#allocation257_spill] sm:$0xff] %v16833_v33  ;;  %7789 = vperm.xlu0 %13368, %v11508_v17   ;;  %7794 = vperm.xlu1 %13369, %v11509_v63   ;;  %v11510_v33 = vld [vmem:[%s20060_s4 + $0xbc0] sm:$0xff]  ;;  %v11511_v17 = vld [vmem:[%s20060_s4 + $0xbc8] sm:$0xff] }
 0x32c   : > { %v16841_v62 = vpop.permute.xlu0 %6487  ;;  %v16843_v4 = vpop.permute.xlu1 %6492 }
 0x32d   : > { %20431 = vst [vmem:[#allocation258_spill] sm:$0xff] %v16841_v62  ;;  %20432 = vst [vmem:[#allocation259_spill] sm:$0xff] %v16843_v4  ;;  %7709 = vperm.xlu0 %13368, %v11492_v24   ;;  %7714 = vperm.xlu1 %13369, %v11493_v20   ;;  %v11494_v4 = vld [vmem:[%s20060_s4 + $0xb40] sm:$0xff]  ;;  %v11495_v24 = vld [vmem:[%s20060_s4 + $0xb48] sm:$0xff] }
 0x330   : > { %v16851_v63 = vpop.permute.xlu0 %6577  ;;  %v16853_v55 = vpop.permute.xlu1 %6582 }
 0x331   : > { %20433 = vst [vmem:[#allocation260_spill] sm:$0xff] %v16851_v63  ;;  %20434 = vst [vmem:[#allocation261_spill] sm:$0xff] %v16853_v55  ;;  %7799 = vperm.xlu0 %13368, %v11510_v33   ;;  %7804 = vperm.xlu1 %13369, %v11511_v17   ;;  %v11512_v55 = vld [vmem:[%s20060_s4 + $0xbd0] sm:$0xff]  ;;  %v11513_v33 = vld [vmem:[%s20060_s4 + $0xbd8] sm:$0xff] }
 0x334   : > { %v16861_v20 = vpop.permute.xlu0 %6497  ;;  %v16863_v62 = vpop.permute.xlu1 %6502 }
 0x335   : > { %20435 = vst [vmem:[#allocation262_spill] sm:$0xff] %v16861_v20  ;;  %20436 = vst [vmem:[#allocation263_spill] sm:$0xff] %v16863_v62  ;;  %7719 = vperm.xlu0 %13368, %v11494_v4   ;;  %7724 = vperm.xlu1 %13369, %v11495_v24   ;;  %v11496_v62 = vld [vmem:[%s20060_s4 + $0xb50] sm:$0xff]  ;;  %v11497_v4 = vld [vmem:[%s20060_s4 + $0xb58] sm:$0xff] }
 0x338   : > { %v16871_v17 = vpop.permute.xlu0 %6587  ;;  %v16873_v63 = vpop.permute.xlu1 %6592 }
 0x339   : > { %20437 = vst [vmem:[#allocation264_spill] sm:$0xff] %v16871_v17  ;;  %20438 = vst [vmem:[#allocation265_spill] sm:$0xff] %v16873_v63  ;;  %7809 = vperm.xlu0 %13368, %v11512_v55   ;;  %7814 = vperm.xlu1 %13369, %v11513_v33   ;;  %v13468_v17 = vld [vmem:[%s20059_s3 + $0x204] ss:$8 sps:$4 sm:$0xff]  }
 0x33a   : > { %v11514_v55 = vld [vmem:[%s20060_s4 + $0xbe0] sm:$0xff]  ;;  %v11515_v33 = vld [vmem:[%s20060_s4 + $0xbe8] sm:$0xff]  ;;  %2514 = vmatprep.mubr.bf16.mxu1 %v13468_v17  ;;  %v11516_v17 = vld [vmem:[%s20060_s4 + $0xbf0] sm:$0xff] }
 0x33c   : > { %v16881_v24 = vpop.permute.xlu0 %6507  ;;  %v16883_v20 = vpop.permute.xlu1 %6512 }
 0x33d   : > { %20439 = vst [vmem:[#allocation266_spill] sm:$0xff] %v16881_v24  ;;  %20440 = vst [vmem:[#allocation267_spill] sm:$0xff] %v16883_v20  ;;  %7729 = vperm.xlu0 %13368, %v11496_v62   ;;  %7734 = vperm.xlu1 %13369, %v11497_v4   ;;  %v11498_v62 = vld [vmem:[%s20060_s4 + $0xb60] sm:$0xff]  ;;  %v11499_v4 = vld [vmem:[%s20060_s4 + $0xb68] sm:$0xff] }
 0x340   : > { %v16894_v63 = vpop.permute.xlu0 %6597  ;;  %v16896_v24 = vpop.permute.xlu1 %6602 }
 0x341   : > { %20441 = vst [vmem:[#allocation268_spill] sm:$0xff] %v16894_v63  ;;  %20442 = vst [vmem:[#allocation269_spill] sm:$0xff] %v16896_v24  ;;  %7819 = vperm.xlu0 %13368, %v11514_v55   ;;  %7824 = vperm.xlu1 %13369, %v11515_v33   ;;  %v11517_v55 = vld [vmem:[%s20060_s4 + $0xbf8] sm:$0xff]  ;;  %v11500_v63 = vld [vmem:[%s20060_s4 + $0xb70] sm:$0xff] }
 0x344   : > { %v16904_v20 = vpop.permute.xlu0 %6517  ;;  %v16906_v15 = vpop.permute.xlu1 %6522 }
 0x345   : > { %20443 = vst [vmem:[#allocation270_spill] sm:$0xff] %v16904_v20  ;;  %20444 = vst [vmem:[#allocation271_spill] sm:$0xff] %v16906_v15  ;;  %7739 = vperm.xlu0 %13368, %v11498_v62   ;;  %7744 = vperm.xlu1 %13369, %v11499_v4   ;;  %v11501_v62 = vld [vmem:[%s20060_s4 + $0xb78] sm:$0xff] }
 0x348   : > { %v16914_v33 = vpop.permute.xlu0 %6607  ;;  %v16916_v24 = vpop.permute.xlu1 %6612 }
 0x349   : > { %20445 = vst [vmem:[#allocation272_spill] sm:$0xff] %v16914_v33  ;;  %20446 = vst [vmem:[#allocation273_spill] sm:$0xff] %v16916_v24  ;;  %7829 = vperm.xlu0 %13368, %v11516_v17   ;;  %7834 = vperm.xlu1 %13369, %v11517_v55   ;;  %v11582_v24 = vld [vmem:[%s20060_s4 + $0xc00] sm:$0xff]  ;;  %v11583_v17 = vld [vmem:[%s20060_s4 + $0xc08] sm:$0xff] }
 0x34c   : > { %v16924_v4 = vpop.permute.xlu0 %6527  ;;  %v16926_v15 = vpop.permute.xlu1 %6532 }
 0x34d   : > { %20447 = vst [vmem:[#allocation274_spill] sm:$0xff] %v16924_v4  ;;  %20448 = vst [vmem:[#allocation275_spill] sm:$0xff] %v16926_v15  ;;  %7749 = vperm.xlu0 %13368, %v11500_v63   ;;  %7754 = vperm.xlu1 %13369, %v11501_v62   ;;  %v11584_v15 = vld [vmem:[%s20060_s4 + $0xc10] sm:$0xff]  ;;  %v11585_v63 = vld [vmem:[%s20060_s4 + $0xc18] sm:$0xff] }
 0x350   : > { %v16934_v55 = vpop.permute.xlu0 %7132  ;;  %v16936_v33 = vpop.permute.xlu1 %7137 }
 0x351   : > { %20449 = vst [vmem:[#allocation276_spill] sm:$0xff] %v16934_v55  ;;  %20450 = vst [vmem:[#allocation277_spill] sm:$0xff] %v16936_v33  ;;  %8306 = vperm.xlu0 %13368, %v11582_v24   ;;  %8311 = vperm.xlu1 %13369, %v11583_v17   ;;  %v11586_v33 = vld [vmem:[%s20060_s4 + $0xc20] sm:$0xff]  ;;  %v11587_v24 = vld [vmem:[%s20060_s4 + $0xc28] sm:$0xff] }
 0x354   : > { %v16944_v62 = vpop.permute.xlu0 %7052  ;;  %v16946_v4 = vpop.permute.xlu1 %7057 }
 0x355   : > { %20451 = vst [vmem:[#allocation278_spill] sm:$0xff] %v16944_v62  ;;  %20452 = vst [vmem:[#allocation279_spill] sm:$0xff] %v16946_v4  ;;  %8316 = vperm.xlu0 %13368, %v11584_v15   ;;  %8321 = vperm.xlu1 %13369, %v11585_v63   ;;  %v11588_v4 = vld [vmem:[%s20060_s4 + $0xc30] sm:$0xff]  ;;  %v11589_v15 = vld [vmem:[%s20060_s4 + $0xc38] sm:$0xff] }
 0x356   : > { %v11590_v63 = vld [vmem:[%s20060_s4 + $0xc40] sm:$0xff] }
 0x358   : > { %v16954_v17 = vpop.permute.xlu0 %7142  ;;  %v16956_v55 = vpop.permute.xlu1 %7147 }
 0x359   : > { %20453 = vst [vmem:[#allocation280_spill] sm:$0xff] %v16954_v17  ;;  %20454 = vst [vmem:[#allocation281_spill] sm:$0xff] %v16956_v55  ;;  %8326 = vperm.xlu0 %13368, %v11586_v33   ;;  %8331 = vperm.xlu1 %13369, %v11587_v24   ;;  %v11591_v55 = vld [vmem:[%s20060_s4 + $0xc48] sm:$0xff]  ;;  %v11592_v17 = vld [vmem:[%s20060_s4 + $0xc50] sm:$0xff] }
 0x35c   : > { %v16970_v33 = vpop.permute.xlu0 %7062  ;;  %v16972_v24 = vpop.permute.xlu1 %7067 }
 0x35d   : > { %8336 = vperm.xlu0 %13368, %v11588_v4   ;;  %8341 = vperm.xlu1 %13369, %v11589_v15   ;;  %20455 = vst [vmem:[#allocation282_spill] sm:$0xff] %v16970_v33  ;;  %20456 = vst [vmem:[#allocation283_spill] sm:$0xff] %v16972_v24  ;;  %v11593_v4 = vld [vmem:[%s20060_s4 + $0xc58] sm:$0xff] }
 0x360   : > { %v16980_v15 = vpop.permute.xlu0 %7152  ;;  %v16982_v62 = vpop.permute.xlu1 %7157 }
 0x361   : > { %8346 = vperm.xlu0 %13368, %v11590_v63   ;;  %8351 = vperm.xlu1 %13369, %v11591_v55   ;;  %20457 = vst [vmem:[#allocation284_spill] sm:$0xff] %v16980_v15  ;;  %20458 = vst [vmem:[#allocation285_spill] sm:$0xff] %v16982_v62  ;;  %v11594_v55 = vld [vmem:[%s20060_s4 + $0xc60] sm:$0xff]  ;;  %v11595_v63 = vld [vmem:[%s20060_s4 + $0xc68] sm:$0xff] }
 0x362   : > { %v11596_v62 = vld [vmem:[%s20060_s4 + $0xc70] sm:$0xff] }
 0x365   : > { %8356 = vperm.xlu0 %13368, %v11592_v17   ;;  %8361 = vperm.xlu1 %13369, %v11593_v4  }
 0x366   : > { %v11940_v20 = vpop.f32.mrb[32].mxu0  ;;  %v11976_v33 = vpop.f32.mrb[64].mxu1 }
 0x367   : > { %v11941_v24 = vpop.f32.mrb[33].mxu0  ;;  %v11977_v61 = vpop.f32.mrb[65].mxu1 }
 0x368   : > { %v11942_v13 = vadd.f32 %v11941_v24, %v11940_v20  ;;  %v11978_v42 = vadd.f32 %v11977_v61, %v11976_v33  ;;  %v11943_v40 = vpop.f32.mrb[34].mxu0  ;;  %v11979_v15 = vpop.f32.mrb[66].mxu1 }
 0x369   : > { %8366 = vperm.xlu0 %13368, %v11594_v55   ;;  %8371 = vperm.xlu1 %13369, %v11595_v63   ;;  %v11944_v17 = vpop.f32.mrb[35].mxu0  ;;  %v11980_v4 = vpop.f32.mrb[67].mxu1 }
 0x36a   : > { %v1922_v46 = vadd.f32 %v11942_v13, %v15160_v16  ;;  %v1970_v60 = vadd.f32 %v11978_v42, %v15380_v5  ;;  %v11945_v20 = vadd.f32 %v11944_v17, %v11943_v40  ;;  %v11981_v61 = vadd.f32 %v11980_v4, %v11979_v15  ;;  %v16998_v33 = vpop.permute.xlu0 %7072  ;;  %v17000_v24 = vpop.permute.xlu1 %7077  ;;  %v11598_v16 = vld [vmem:[%s20060_s4 + $0xc80] sm:$0xff]  ;;  %v11599_v5 = vld [vmem:[%s20060_s4 + $0xc88] sm:$0xff] }
 0x36b   : > { %20459 = vst [vmem:[#allocation286_spill] sm:$0xff] %v16998_v33  ;;  %20460 = vst [vmem:[#allocation287_spill] sm:$0xff] %v17000_v24 }
 0x36c   : > { %v1925_v55 = vadd.f32 %v11945_v20, %v15165_v53  ;;  %v1973_v63 = vadd.f32 %v11981_v61, %v15382_v59  ;;  %v2048_v40 = vmax.f32 %v1922_v46, 0.0  ;;  %v2060_v42 = vmax.f32 %v1970_v60, 0.0  ;;  %v11600_v60 = vld [vmem:[%s20060_s4 + $0xc90] sm:$0xff]  ;;  %v11601_v46 = vld [vmem:[%s20060_s4 + $0xc98] sm:$0xff] }
 0x36d   : > { %8376 = vperm.xlu0 %13368, %v11596_v62   ;;  %8381 = vperm.xlu1 %13369, %v11597_v3  }
 0x36e   : > { %v11946_v50 = vpop.f32.mrb[36].mxu0  ;;  %v11982_v8 = vpop.f32.mrb[68].mxu1  ;;  %v2049_v13 = vmax.f32 %v1925_v55, 0.0  ;;  %v2061_v15 = vmax.f32 %v1973_v63, 0.0 }
 0x36f   : > { %v11947_v17 = vpop.f32.mrb[37].mxu0  ;;  %v11983_v53 = vpop.f32.mrb[69].mxu1 }
 0x370   : > { %v11948_v4 = vadd.f32 %v11947_v17, %v11946_v50  ;;  %v11984_v59 = vadd.f32 %v11983_v53, %v11982_v8  ;;  %v11949_v62 = vpop.f32.mrb[38].mxu0  ;;  %v11985_v3 = vpop.f32.mrb[70].mxu1  ;;  %v17010_v20 = vpack.c.bf16 %v2049_v13, %v2048_v40  ;;  %v17012_v61 = vpack.c.bf16 %v2061_v15, %v2060_v42 }
 0x371   : > { %8386 = vperm.xlu0 %13368, %v11598_v16   ;;  %8391 = vperm.xlu1 %13369, %v11599_v5   ;;  %v11950_v24 = vpop.f32.mrb[39].mxu0  ;;  %v11986_v33 = vpop.f32.mrb[71].mxu1 }
 0x372   : > { %v1930_v8 = vadd.f32 %v11948_v4, %v15202_v44  ;;  %v1978_v50 = vadd.f32 %v11984_v59, %v15406_v52  ;;  %v11951_v55 = vadd.f32 %v11950_v24, %v11949_v62  ;;  %v11987_v63 = vadd.f32 %v11986_v33, %v11985_v3  ;;  %v17022_v16 = vpop.permute.xlu0 %7162  ;;  %v17024_v5 = vpop.permute.xlu1 %7167  ;;  %v11602_v44 = vld [vmem:[%s20060_s4 + $0xca0] sm:$0xff]  ;;  %v11603_v52 = vld [vmem:[%s20060_s4 + $0xca8] sm:$0xff] }
 0x373   : > { %20461 = vst [vmem:[#allocation288_spill] sm:$0xff] %v17022_v16  ;;  %20462 = vst [vmem:[#allocation289_spill] sm:$0xff] %v17024_v5 }
 0x374   : > { %v1933_v40 = vadd.f32 %v11951_v55, %v15207_v29  ;;  %v1981_v42 = vadd.f32 %v11987_v63, %v15408_v41  ;;  %v2050_v33 = vmax.f32 %v1930_v8, 0.0  ;;  %v2062_v24 = vmax.f32 %v1978_v50, 0.0  ;;  %v11604_v8 = vld [vmem:[%s20060_s4 + $0xcb0] sm:$0xff]  ;;  %v11605_v50 = vld [vmem:[%s20060_s4 + $0xcb8] sm:$0xff] }
 0x375   : > { %8396 = vperm.xlu0 %13368, %v11600_v60   ;;  %8401 = vperm.xlu1 %13369, %v11601_v46  }
 0x376   : > { %v11952_v13 = vpop.f32.mrb[40].mxu0  ;;  %v11988_v15 = vpop.f32.mrb[72].mxu1  ;;  %v2051_v17 = vmax.f32 %v1933_v40, 0.0  ;;  %v2063_v53 = vmax.f32 %v1981_v42, 0.0  ;;  %v20463_v42 = vld [vmem:[#allocation28_spill] sm:$0xff] }
 0x377   : > { %v11953_v4 = vpop.f32.mrb[41].mxu0  ;;  %v11989_v29 = vpop.f32.mrb[73].mxu1 }
 0x378   : > { %v11954_v59 = vadd.f32 %v11953_v4, %v11952_v13  ;;  %v11990_v41 = vadd.f32 %v11989_v29, %v11988_v15  ;;  %v11955_v62 = vpop.f32.mrb[42].mxu0  ;;  %v11991_v3 = vpop.f32.mrb[74].mxu1  ;;  %v17034_v60 = vpack.c.bf16 %v2051_v17, %v2050_v33  ;;  %v17036_v46 = vpack.c.bf16 %v2063_v53, %v2062_v24  ;;  %v20466_v17 = vld [vmem:[#allocation30_spill] sm:$0xff] }
 0x379   : > { %8406 = vperm.xlu0 %13368, %v11602_v44   ;;  %8411 = vperm.xlu1 %13369, %v11603_v52   ;;  %v11956_v55 = vpop.f32.mrb[43].mxu0  ;;  %v11992_v63 = vpop.f32.mrb[75].mxu1 }
 0x37a   : > { %v1938_v40 = vadd.f32 %v11954_v59, %v15244_v56  ;;  %v1986_v13 = vadd.f32 %v11990_v41, %v20463_v42  ;;  %v11957_v15 = vadd.f32 %v11956_v55, %v11955_v62  ;;  %v11993_v44 = vadd.f32 %v11992_v63, %v11991_v3  ;;  %v17046_v52 = vpop.permute.xlu0 %7082  ;;  %v17048_v33 = vpop.permute.xlu1 %7087  ;;  %v11606_v56 = vld [vmem:[%s20060_s4 + $0xcc0] sm:$0xff]  ;;  %v11607_v59 = vld [vmem:[%s20060_s4 + $0xcc8] sm:$0xff] }
 0x37b   : > { %20464 = vst [vmem:[#allocation28_spill] sm:$0xff] %v17046_v52  ;;  %20465 = vst [vmem:[#allocation290_spill] sm:$0xff] %v17048_v33 }
 0x37c   : > { %v1941_v24 = vadd.f32 %v11957_v15, %v15249_v49  ;;  %v1989_v53 = vadd.f32 %v11993_v44, %v20466_v17  ;;  %v2052_v41 = vmax.f32 %v1938_v40, 0.0  ;;  %v2064_v63 = vmax.f32 %v1986_v13, 0.0  ;;  %v11608_v40 = vld [vmem:[%s20060_s4 + $0xcd0] sm:$0xff]  ;;  %v11609_v13 = vld [vmem:[%s20060_s4 + $0xcd8] sm:$0xff] }
 0x37d   : > { %8416 = vperm.xlu0 %13368, %v11604_v8   ;;  %8421 = vperm.xlu1 %13369, %v11605_v50  }
 0x37e   : > { %v11958_v4 = vpop.f32.mrb[44].mxu0  ;;  %v11994_v29 = vpop.f32.mrb[76].mxu1  ;;  %v2053_v62 = vmax.f32 %v1941_v24, 0.0  ;;  %v2065_v49 = vmax.f32 %v1989_v53, 0.0 }
 0x37f   : > { %v11959_v3 = vpop.f32.mrb[45].mxu0  ;;  %v11995_v55 = vpop.f32.mrb[77].mxu1 }
 0x380   : > { %v11960_v42 = vadd.f32 %v11959_v3, %v11958_v4  ;;  %v11996_v15 = vadd.f32 %v11995_v55, %v11994_v29  ;;  %v11961_v8 = vpop.f32.mrb[46].mxu0  ;;  %v11997_v50 = vpop.f32.mrb[78].mxu1  ;;  %v2121_v44 = vpack.c.bf16 %v2065_v49, %v2064_v63  ;;  %v17058_v17 = vpack.c.bf16 %v2053_v62, %v2052_v41 }
 0x381   : > { %8426 = vperm.xlu0 %13368, %v11606_v56   ;;  %8431 = vperm.xlu1 %13369, %v11607_v59   ;;  %v11962_v5 = vpop.f32.mrb[47].mxu0  ;;  %v11998_v16 = vpop.f32.mrb[79].mxu1 }
 0x382   : > { %v1946_v24 = vadd.f32 %v11960_v42, %v15286_v9  ;;  %v1994_v53 = vadd.f32 %v11996_v15, %v15181_v23  ;;  %v11963_v4 = vadd.f32 %v11962_v5, %v11961_v8  ;;  %v11999_v29 = vadd.f32 %v11998_v16, %v11997_v50  ;;  %12036 = vmatprep.subr.bf16.mxu1 %v2121_v44  ;;  %v17069_v56 = vpop.permute.xlu0 %7172  ;;  %v17071_v59 = vpop.permute.xlu1 %7177  ;;  %v11610_v23 = vld [vmem:[%s20060_s4 + $0xce0] sm:$0xff]  ;;  %v11611_v9 = vld [vmem:[%s20060_s4 + $0xce8] sm:$0xff] }
 0x383   : > { %12037 = vmatpush3.bf16.msra.mxu1 %v17010_v20  ;;  %20467 = vst [vmem:[#allocation30_spill] sm:$0xff] %v17069_v56  ;;  %20468 = vst [vmem:[#allocation291_spill] sm:$0xff] %v17071_v59 }
 0x384   : > { %v1949_v41 = vadd.f32 %v11963_v4, %v15291_v1  ;;  %v1997_v62 = vadd.f32 %v11999_v29, %v15186_v22  ;;  %v2054_v20 = vmax.f32 %v1946_v24, 0.0  ;;  %v2066_v49 = vmax.f32 %v1994_v53, 0.0  ;;  %v11612_v24 = vld [vmem:[%s20060_s4 + $0xcf0] sm:$0xff]  ;;  %v11613_v53 = vld [vmem:[%s20060_s4 + $0xcf8] sm:$0xff] }
 0x385   : > { %8436 = vperm.xlu0 %13368, %v11608_v40   ;;  %8441 = vperm.xlu1 %13369, %v11609_v13  }
 0x386   : > { %v11964_v3 = vpop.f32.mrb[48].mxu0  ;;  %v12000_v55 = vpop.f32.mrb[80].mxu1  ;;  %v2055_v16 = vmax.f32 %v1949_v41, 0.0  ;;  %v2067_v1 = vmax.f32 %v1997_v62, 0.0 }
 0x387   : > { %v11965_v5 = vpop.f32.mrb[49].mxu0  ;;  %v12001_v63 = vpop.f32.mrb[81].mxu1 }
 0x388   : > { %v11966_v42 = vadd.f32 %v11965_v5, %v11964_v3  ;;  %v12002_v22 = vadd.f32 %v12001_v63, %v12000_v55  ;;  %v11967_v15 = vpop.f32.mrb[50].mxu0  ;;  %v12003_v8 = vpop.f32.mrb[82].mxu1  ;;  %v2122_v50 = vpack.c.bf16 %v2067_v1, %v2066_v49  ;;  %v17081_v44 = vpack.c.bf16 %v2055_v16, %v2054_v20 }
 0x389   : > { %8446 = vperm.xlu0 %13368, %v11610_v23   ;;  %8451 = vperm.xlu1 %13369, %v11611_v9   ;;  %v11968_v40 = vpop.f32.mrb[51].mxu0  ;;  %v12004_v13 = vpop.f32.mrb[83].mxu1 }
 0x38a   : > { %v1954_v4 = vadd.f32 %v11966_v42, %v15325_v19  ;;  %v2002_v29 = vadd.f32 %v12002_v22, %v15223_v48  ;;  %v11969_v41 = vadd.f32 %v11968_v40, %v11967_v15  ;;  %v12005_v62 = vadd.f32 %v12004_v13, %v12003_v8  ;;  %12038 = vmatprep.subr.bf16.mxu1 %v2122_v50  ;;  %v17092_v3 = vpop.permute.xlu0 %7092  ;;  %v17094_v55 = vpop.permute.xlu1 %7097  ;;  %v8897_v48 = vld [vmem:[%s20062_s6] sm:$0xff]  ;;  %v8898_v19 = vld [vmem:[%s20062_s6 + $0x8] sm:$0xff] }
 0x38b   : > { %12039 = vmatpush3.bf16.msra.mxu1 %v17034_v60  ;;  %20469 = vst [vmem:[#allocation292_spill] sm:$0xff] %v17092_v3  ;;  %20470 = vst [vmem:[#allocation293_spill] sm:$0xff] %v17094_v55 }
 0x38c   : > { %v1957_v23 = vadd.f32 %v11969_v41, %v15327_v31  ;;  %v2005_v9 = vadd.f32 %v12005_v62, %v15228_v30  ;;  %v2056_v60 = vmax.f32 %v1954_v4, 0.0  ;;  %v2068_v1 = vmax.f32 %v2002_v29, 0.0 }
 0x38d   : > { %8456 = vperm.xlu0 %13368, %v11612_v24   ;;  %8461 = vperm.xlu1 %13369, %v11613_v53   ;;  %v8899_v24 = vld [vmem:[%s20062_s6 + $0x10] sm:$0xff]  ;;  %v8900_v53 = vld [vmem:[%s20062_s6 + $0x18] sm:$0xff] }
 0x38e   : > { %v11970_v20 = vpop.f32.mrb[52].mxu0  ;;  %v12006_v16 = vpop.f32.mrb[84].mxu1  ;;  %v2057_v5 = vmax.f32 %v1957_v23, 0.0  ;;  %v2069_v31 = vmax.f32 %v2005_v9, 0.0 }
 0x38f   : > { %v11971_v63 = vpop.f32.mrb[53].mxu0  ;;  %v12007_v49 = vpop.f32.mrb[85].mxu1 }
 0x390   : > { %v11972_v42 = vadd.f32 %v11971_v63, %v11970_v20  ;;  %v12008_v30 = vadd.f32 %v12007_v49, %v12006_v16  ;;  %v11973_v22 = vpop.f32.mrb[54].mxu0  ;;  %v12009_v15 = vpop.f32.mrb[86].mxu1  ;;  %v2123_v8 = vpack.c.bf16 %v2069_v31, %v2068_v1  ;;  %v2117_v50 = vpack.c.bf16 %v2057_v5, %v2056_v60 }
 0x391   : > { %8963 = vperm.xlu0 %13368, %v8897_v48   ;;  %8968 = vperm.xlu1 %13369, %v8898_v19   ;;  %v11974_v40 = vpop.f32.mrb[55].mxu0  ;;  %v12010_v13 = vpop.f32.mrb[87].mxu1 }
 0x392   : > { %v1962_v4 = vadd.f32 %v11972_v42, %v15354_v14  ;;  %v2010_v29 = vadd.f32 %v12008_v30, %v15265_v0  ;;  %v11975_v41 = vadd.f32 %v11974_v40, %v11973_v22  ;;  %v12011_v62 = vadd.f32 %v12010_v13, %v12009_v15  ;;  %12040 = vmatprep.subr.bf16.mxu1 %v2123_v8  ;;  %v17112_v23 = vpop.permute.xlu0 %7182  ;;  %v17115_v9 = vpop.permute.xlu1 %7187  ;;  %v8901_v0 = vld [vmem:[%s20062_s6 + $0x20] sm:$0xff]  ;;  %v8902_v14 = vld [vmem:[%s20062_s6 + $0x28] sm:$0xff]  ;;  %v8903_v30 = vld [vmem:[%s20062_s6 + $0x30] sm:$0xff] }
 0x393   : > { %20471 = vst [vmem:[#allocation294_spill] sm:$0xff] %v17112_v23  ;;  %12041 = vmatpush3.bf16.msra.mxu1 %v17058_v17  ;;  %20472 = vst [vmem:[#allocation295_spill] sm:$0xff] %v17115_v9  ;;  %v8904_v22 = vld [vmem:[%s20062_s6 + $0x38] sm:$0xff] }
 0x394   : > { %v1965_v20 = vadd.f32 %v11975_v41, %v15356_v51  ;;  %v2013_v16 = vadd.f32 %v12011_v62, %v15270_v57  ;;  %v2058_v19 = vmax.f32 %v1962_v4, 0.0  ;;  %v2070_v5 = vmax.f32 %v2010_v29, 0.0  ;;  %v8906_v4 = vld [vmem:[%s20062_s6 + $0x48] sm:$0xff]  ;;  %v20569_v23 = vld [vmem:[#allocation53_spill] sm:$0xff] }
 0x395   : > { %8973 = vperm.xlu0 %13368, %v8899_v24   ;;  %8978 = vperm.xlu1 %13369, %v8900_v53   ;;  %v8905_v53 = vld [vmem:[%s20062_s6 + $0x40] sm:$0xff] }
 0x396   : > { %v12012_v48 = vpop.f32.mrb[88].mxu1  ;;  %v2059_v60 = vmax.f32 %v1965_v20, 0.0  ;;  %v2071_v63 = vmax.f32 %v2013_v16, 0.0  ;;  %v17125_v31 = vpop.permute.xlu0 %7102 }
 0x397   : > { %v12013_v17 = vpop.f32.mrb[89].mxu1  ;;  %20473 = vst [vmem:[#allocation296_spill] sm:$0xff] %v17125_v31  ;;  %v17133_v15 = vpop.permute.xlu1 %7107 }
 0x398   : > { %v12014_v49 = vadd.f32 %v12013_v17, %v12012_v48  ;;  %v12015_v51 = vpop.f32.mrb[90].mxu1  ;;  %v2124_v57 = vpack.c.bf16 %v2071_v63, %v2070_v5  ;;  %v2118_v1 = vpack.c.bf16 %v2059_v60, %v2058_v19  ;;  %20474 = vst [vmem:[#allocation297_spill] sm:$0xff] %v17133_v15 }
 0x399   : > { %8983 = vperm.xlu0 %13368, %v8901_v0   ;;  %8988 = vperm.xlu1 %13369, %v8902_v14   ;;  %v12016_v42 = vpop.f32.mrb[91].mxu1  ;;  %v8907_v0 = vld [vmem:[%s20062_s6 + $0x50] sm:$0xff]  ;;  %v8908_v14 = vld [vmem:[%s20062_s6 + $0x58] sm:$0xff] }
 0x39a   : > { %v2018_v8 = vadd.f32 %v12014_v49, %v15307_v18  ;;  %v12017_v40 = vadd.f32 %v12016_v42, %v12015_v51  ;;  %12042 = vmatprep.subr.bf16.mxu1 %v2124_v57  ;;  %v17144_v62 = vpop.permute.xlu0 %7192  ;;  %v8909_v49 = vld [vmem:[%s20062_s6 + $0x60] sm:$0xff]  ;;  %v8910_v51 = vld [vmem:[%s20062_s6 + $0x68] sm:$0xff] }
 0x39b   : > { %12043 = vmatpush3.bf16.msra.mxu1 %v17081_v44  ;;  %20475 = vst [vmem:[#allocation298_spill] sm:$0xff] %v17144_v62  ;;  %v17146_v44 = vpop.permute.xlu1 %7197  ;;  %v20564_v62 = vld [vmem:[#allocation32_spill] sm:$0xff] }
 0x39c   : > { %v2021_v13 = vadd.f32 %v12017_v40, %v15312_v10  ;;  %v2072_v41 = vmax.f32 %v2018_v8, 0.0  ;;  %20476 = vst [vmem:[#allocation299_spill] sm:$0xff] %v17146_v44  ;;  %v8911_v40 = vld [vmem:[%s20062_s6 + $0x70] sm:$0xff]  ;;  %v17634_v9 = vadd.f32 %v20564_v62, %v20564_v62 }
 0x39d   : > { %8993 = vperm.xlu0 %13368, %v8903_v30   ;;  %8998 = vperm.xlu1 %13369, %v8904_v22  }
 0x39e   : > { %v12018_v24 = vpop.f32.mrb[92].mxu1  ;;  %v2073_v18 = vmax.f32 %v2021_v13, 0.0  ;;  %v17156_v5 = vpop.permute.xlu0 %7112  ;;  %v8912_v13 = vld [vmem:[%s20062_s6 + $0x78] sm:$0xff] }
 0x39f   : > { %v12019_v29 = vpop.f32.mrb[93].mxu1  ;;  %20477 = vst [vmem:[#allocation300_spill] sm:$0xff] %v17156_v5  ;;  %v17164_v57 = vpop.permute.xlu1 %7117 }
 0x3a0   : > { %v12020_v20 = vadd.f32 %v12019_v29, %v12018_v24  ;;  %v12021_v10 = vpop.f32.mrb[94].mxu1  ;;  %v2125_v16 = vpack.c.bf16 %v2073_v18, %v2072_v41  ;;  %20478 = vst [vmem:[#allocation301_spill] sm:$0xff] %v17164_v57 }
 0x3a1   : > { %9003 = vperm.xlu0 %13368, %v8905_v53   ;;  %9008 = vperm.xlu1 %13369, %v8906_v4   ;;  %v12022_v48 = vpop.f32.mrb[95].mxu1 }
 0x3a2   : > { %v2026_v19 = vadd.f32 %v12020_v20, %v15344_v6  ;;  %v12023_v60 = vadd.f32 %v12022_v48, %v12021_v10  ;;  %12044 = vmatprep.subr.bf16.mxu1 %v2125_v16  ;;  %v17173_v4 = vpop.permute.xlu0 %7202  ;;  %v8913_v20 = vld [vmem:[%s20062_s6 + $0x80] sm:$0xff] }
 0x3a3   : > { %12045 = vmatpush3.bf16.msra.mxu1 %v2117_v50  ;;  %20479 = vst [vmem:[#allocation302_spill] sm:$0xff] %v17173_v4  ;;  %v17175_v29 = vpop.permute.xlu1 %7207  ;;  %v20558_v4 = vld [vmem:[#allocation27_spill] sm:$0xff] }
 0x3a4   : > { %v2029_v17 = vadd.f32 %v12023_v60, %v15346_v39  ;;  %v2074_v42 = vmax.f32 %v2026_v19, 0.0  ;;  %20480 = vst [vmem:[#allocation303_spill] sm:$0xff] %v17175_v29  ;;  %v8915_v19 = vld [vmem:[%s20062_s6 + $0x90] sm:$0xff]  ;;  %v8916_v60 = vld [vmem:[%s20062_s6 + $0x98] sm:$0xff]  ;;  %v17616_v44 = vadd.f32 %v20558_v4, %v20558_v4 }
 0x3a5   : > { %9013 = vperm.xlu0 %13368, %v8907_v0   ;;  %9018 = vperm.xlu1 %13369, %v8908_v14  }
 0x3a6   : > { %v12024_v63 = vpop.f32.mrb[96].mxu1  ;;  %v2075_v50 = vmax.f32 %v2029_v17, 0.0  ;;  %v17190_v17 = vpop.permute.xlu0 %7122 }
 0x3a7   : > { %v12025_v6 = vpop.f32.mrb[97].mxu1  ;;  %20481 = vst [vmem:[#allocation304_spill] sm:$0xff] %v17190_v17 }
 0x3a8   : > { %v12026_v30 = vadd.f32 %v12025_v6, %v12024_v63  ;;  %v12027_v39 = vpop.f32.mrb[98].mxu1  ;;  %v2126_v22 = vpack.c.bf16 %v2075_v50, %v2074_v42  ;;  %v17192_v63 = vpop.permute.xlu1 %7127  ;;  %v20483_v6 = vld [vmem:[#allocation47_spill] sm:$0xff]  ;;  %v8917_v50 = vld [vmem:[%s20062_s6 + $0xa0] sm:$0xff] }
 0x3a9   : > { %9023 = vperm.xlu0 %13368, %v8909_v49   ;;  %9028 = vperm.xlu1 %13369, %v8910_v51   ;;  %v12028_v8 = vpop.f32.mrb[99].mxu1  ;;  %20482 = vst [vmem:[#allocation305_spill] sm:$0xff] %v17192_v63 }
 0x3aa   : > { %v2034_v24 = vadd.f32 %v12026_v30, %v15370_v32  ;;  %v12029_v53 = vadd.f32 %v12028_v8, %v12027_v39  ;;  %12046 = vmatprep.subr.bf16.mxu1 %v2126_v22  ;;  %v8914_v32 = vld [vmem:[%s20062_s6 + $0x88] sm:$0xff]  ;;  %v17203_v8 = vpop.permute.xlu0 %7759 }
 0x3ab   : > { %12047 = vmatpush3.bf16.msra.mxu1 %v2118_v1  ;;  %v8918_v30 = vld [vmem:[%s20062_s6 + $0xa8] sm:$0xff]  ;;  %20484 = vst [vmem:[#allocation47_spill] sm:$0xff] %v17203_v8 }
 0x3ac   : > { %v2037_v41 = vadd.f32 %v12029_v53, %v15372_v34  ;;  %v2076_v16 = vmax.f32 %v2034_v24, 0.0  ;;  %v13466_v24 = vld [vmem:[%s20059_s3 + $0x200] ss:$8 sps:$4 sm:$0xff]   ;;  %v13469_v53 = vld [vmem:[%s20059_s3 + $0x214] ss:$8 sps:$4 sm:$0xff]  }
 0x3ad   : > { %9033 = vperm.xlu0 %13368, %v8911_v40   ;;  %9038 = vperm.xlu1 %13369, %v8912_v13   ;;  %v8919_v40 = vld [vmem:[%s20062_s6 + $0xb0] sm:$0xff]  ;;  %v8920_v13 = vld [vmem:[%s20062_s6 + $0xb8] sm:$0xff] }
 0x3ae   : > { %v12030_v18 = vpop.f32.mrb[100].mxu1  ;;  %v2077_v1 = vmax.f32 %v2037_v41, 0.0  ;;  %v8921_v41 = vld [vmem:[%s20062_s6 + $0xc0] sm:$0xff] }
 0x3af   : > { %v12031_v10 = vpop.f32.mrb[101].mxu1 }
 0x3b0   : > { %v12032_v48 = vadd.f32 %v12031_v10, %v12030_v18  ;;  %v12033_v0 = vpop.f32.mrb[102].mxu1  ;;  %v2127_v14 = vpack.c.bf16 %v2077_v1, %v2076_v16  ;;  %v8922_v18 = vld [vmem:[%s20062_s6 + $0xc8] sm:$0xff]  ;;  %v8924_v10 = vld [vmem:[%s20062_s6 + $0xd8] sm:$0xff] }
 0x3b1   : > { %9043 = vperm.xlu0 %13368, %v8913_v20   ;;  %9048 = vperm.xlu1 %13369, %v8914_v32   ;;  %v12034_v34 = vpop.f32.mrb[103].mxu1  ;;  %v17226_v20 = vpop.permute.xlu0 %7679  ;;  %v13471_v16 = vld [vmem:[%s20059_s3 + $0x210] ss:$8 sps:$4 sm:$0xff]   ;;  %v13472_v1 = vld [vmem:[%s20059_s3 + $0x224] ss:$8 sps:$4 sm:$0xff]  }
 0x3b2   : > { %v2042_v49 = vadd.f32 %v12032_v48, %v15396_v58  ;;  %v12035_v51 = vadd.f32 %v12034_v34, %v12033_v0  ;;  %12048 = vmatprep.subr.bf16.mxu1 %v2127_v14  ;;  %v17205_v58 = vpop.permute.xlu1 %7764  ;;  %20486 = vst [vmem:[#allocation307_spill] sm:$0xff] %v17226_v20  ;;  %v8925_v14 = vld [vmem:[%s20062_s6 + $0xe0] sm:$0xff]  ;;  %v8926_v34 = vld [vmem:[%s20062_s6 + $0xe8] sm:$0xff]  ;;  %v20552_v20 = vld [vmem:[#allocation25_spill] sm:$0xff] }
 0x3b3   : > { %12049 = vmatpush3.bf16.msra.mxu1 %v17012_v61  ;;  %20485 = vst [vmem:[#allocation306_spill] sm:$0xff] %v17205_v58  ;;  %v17598_v29 = vadd.f32 %v20552_v20, %v20552_v20 }
 0x3b4   : > { %v2045_v42 = vadd.f32 %v12035_v51, %v20483_v6  ;;  %v2078_v39 = vmax.f32 %v2042_v49, 0.0  ;;  %v13474_v6 = vld [vmem:[%s20059_s3 + $0x220] ss:$8 sps:$4 sm:$0xff]  }
 0x3b5   : > { %9053 = vperm.xlu0 %13368, %v8915_v19   ;;  %9058 = vperm.xlu1 %13369, %v8916_v60   ;;  %v17242_v48 = vpop.permute.xlu0 %7769  ;;  %v8927_v19 = vld [vmem:[%s20062_s6 + $0xf0] sm:$0xff]  ;;  %v8928_v60 = vld [vmem:[%s20062_s6 + $0xf8] sm:$0xff] }
 0x3b6   : > { %v2079_v22 = vmax.f32 %v2045_v42, 0.0  ;;  %v17228_v32 = vpop.permute.xlu1 %7684  ;;  %20488 = vst [vmem:[#allocation309_spill] sm:$0xff] %v17242_v48  ;;  %v13475_v42 = vld [vmem:[%s20059_s3 + $0x234] ss:$8 sps:$4 sm:$0xff]   ;;  %v20515_v48 = vld [vmem:[#allocation51_spill] sm:$0xff] }
 0x3b7   : > { %20487 = vst [vmem:[#allocation308_spill] sm:$0xff] %v17228_v32 }
 0x3b8   : > { %v2128_v61 = vpack.c.bf16 %v2079_v22, %v2078_v39 }
 0x3b9   : > { %9063 = vperm.xlu0 %13368, %v8917_v50   ;;  %9068 = vperm.xlu1 %13369, %v8918_v30   ;;  %v17258_v49 = vpop.permute.xlu0 %7689  ;;  %v8929_v50 = vld [vmem:[%s20062_s6 + $0x100] sm:$0xff]  ;;  %v8930_v30 = vld [vmem:[%s20062_s6 + $0x108] sm:$0xff] }
 0x3ba   : > { %12050 = vmatprep.subr.bf16.mxu1 %v2128_v61  ;;  %v17244_v0 = vpop.permute.xlu1 %7774  ;;  %20490 = vst [vmem:[#allocation311_spill] sm:$0xff] %v17258_v49  ;;  %v8931_v61 = vld [vmem:[%s20062_s6 + $0x110] sm:$0xff]  ;;  %v20540_v49 = vld [vmem:[#allocation19_spill] sm:$0xff] }
 0x3bb   : > { %12051 = vmatpush3.bf16.msra.mxu1 %v17036_v46  ;;  %v8923_v46 = vld [vmem:[%s20062_s6 + $0xd0] sm:$0xff]  ;;  %20489 = vst [vmem:[#allocation310_spill] sm:$0xff] %v17244_v0 }
 0x3bd   : > { %9073 = vperm.xlu0 %13368, %v8919_v40   ;;  %9078 = vperm.xlu1 %13369, %v8920_v13   ;;  %v17274_v39 = vpop.permute.xlu0 %7779  ;;  %v8932_v40 = vld [vmem:[%s20062_s6 + $0x118] sm:$0xff] }
 0x3be   : > { %2515 = vmatmul.mubr.bf16.vlgmr.msra.gmra.mrb[104].mxu1 %v13466_v24  ;;  %v17260_v51 = vpop.permute.xlu1 %7694  ;;  %20492 = vst [vmem:[#allocation313_spill] sm:$0xff] %v17274_v39  ;;  %v13477_v13 = vld [vmem:[%s20059_s3 + $0x230] ss:$8 sps:$4 sm:$0xff]   ;;  %v13478_v24 = vld [vmem:[%s20059_s3 + $0x244] ss:$8 sps:$4 sm:$0xff]  }
 0x3bf   : > { %2522 = vmatprep.mubr.bf16.mxu1 %v13469_v53  ;;  %20491 = vst [vmem:[#allocation312_spill] sm:$0xff] %v17260_v51  ;;  %v8933_v53 = vld [vmem:[%s20062_s6 + $0x120] sm:$0xff] }
 0x3c1   : > { %9083 = vperm.xlu0 %13368, %v8921_v41   ;;  %9088 = vperm.xlu1 %13369, %v8922_v18   ;;  %v8934_v41 = vld [vmem:[%s20062_s6 + $0x128] sm:$0xff]  ;;  %v17296_v18 = vpop.permute.xlu0 %7699 }
 0x3c2   : > { %v17276_v22 = vpop.permute.xlu1 %7784  ;;  %20494 = vst [vmem:[#allocation315_spill] sm:$0xff] %v17296_v18 }
 0x3c3   : > { %20493 = vst [vmem:[#allocation314_spill] sm:$0xff] %v17276_v22 }
 0x3c5   : > { %9093 = vperm.xlu0 %13368, %v8923_v46   ;;  %9098 = vperm.xlu1 %13369, %v8924_v10   ;;  %v8935_v10 = vld [vmem:[%s20062_s6 + $0x130] sm:$0xff] }
 0x3c6   : > { %2523 = vmatmul.mubr.bf16.gmra.mrb[108].mxu1 %v13471_v16  ;;  %v17298_v46 = vpop.permute.xlu1 %7704  ;;  %v8936_v16 = vld [vmem:[%s20062_s6 + $0x138] sm:$0xff] }
 0x3c7   : > { %2530 = vmatprep.mubr.bf16.mxu1 %v13472_v1  ;;  %20495 = vst [vmem:[#allocation316_spill] sm:$0xff] %v17298_v46  ;;  %v13480_v1 = vld [vmem:[%s20059_s3 + $0x240] ss:$8 sps:$4 sm:$0xff]  }
 0x3c9   : > { %9103 = vperm.xlu0 %13368, %v8925_v14   ;;  %9108 = vperm.xlu1 %13369, %v8926_v34   ;;  %v13481_v14 = vld [vmem:[%s20059_s3 + $0x254] ss:$8 sps:$4 sm:$0xff]   ;;  %v17312_v34 = vpop.permute.xlu0 %7789 }
 0x3ca   : > { %20496 = vst [vmem:[#allocation317_spill] sm:$0xff] %v17312_v34  ;;  %v20514_v34 = vld [vmem:[#allocation50_spill] sm:$0xff] }
 0x3cd   : > { %9113 = vperm.xlu0 %13368, %v8927_v19   ;;  %9118 = vperm.xlu1 %13369, %v8928_v60   ;;  %v17314_v19 = vpop.permute.xlu1 %7794  ;;  %v8937_v60 = vld [vmem:[%s20062_s6 + $0x140] sm:$0xff] }
 0x3ce   : > { %2531 = vmatmul.mubr.bf16.gmra.mrb[112].mxu1 %v13474_v6  ;;  %20497 = vst [vmem:[#allocation318_spill] sm:$0xff] %v17314_v19  ;;  %v8938_v6 = vld [vmem:[%s20062_s6 + $0x148] sm:$0xff]  ;;  %v13499_v19 = vld [vmem:[%s20059_s3 + $0x2b4] ss:$8 sps:$4 sm:$0xff]  }
 0x3cf   : > { %2538 = vmatprep.mubr.bf16.mxu1 %v13475_v42  ;;  %v8939_v42 = vld [vmem:[%s20062_s6 + $0x150] sm:$0xff] }
 0x3d1   : > { %9123 = vperm.xlu0 %13368, %v8929_v50   ;;  %9128 = vperm.xlu1 %13369, %v8930_v30   ;;  %v8940_v50 = vld [vmem:[%s20062_s6 + $0x158] sm:$0xff]  ;;  %v17328_v30 = vpop.permute.xlu0 %7709 }
 0x3d2   : > { %20498 = vst [vmem:[#allocation319_spill] sm:$0xff] %v17328_v30  ;;  %v20528_v30 = vld [vmem:[#allocation13_spill] sm:$0xff] }
 0x3d3   : > { %v17526_v46 = vadd.f32 %v20528_v30, %v20528_v30 }
 0x3d5   : > { %9133 = vperm.xlu0 %13368, %v8931_v61   ;;  %9138 = vperm.xlu1 %13369, %v8932_v40   ;;  %v17330_v61 = vpop.permute.xlu1 %7714  ;;  %v13483_v40 = vld [vmem:[%s20059_s3 + $0x250] ss:$8 sps:$4 sm:$0xff]  }
 0x3d6   : > { %2539 = vmatmul.mubr.bf16.gmra.mrb[116].mxu1 %v13477_v13  ;;  %20499 = vst [vmem:[#allocation320_spill] sm:$0xff] %v17330_v61  ;;  %v13484_v13 = vld [vmem:[%s20059_s3 + $0x264] ss:$8 sps:$4 sm:$0xff]  }
 0x3d7   : > { %2546 = vmatprep.mubr.bf16.mxu1 %v13478_v24  ;;  %v8941_v24 = vld [vmem:[%s20062_s6 + $0x160] sm:$0xff]  ;;  %v20527_v61 = vld [vmem:[#allocation59_spill] sm:$0xff] }
 0x3d9   : > { %9143 = vperm.xlu0 %13368, %v8933_v53   ;;  %9148 = vperm.xlu1 %13369, %v8934_v41   ;;  %v8942_v53 = vld [vmem:[%s20062_s6 + $0x168] sm:$0xff]  ;;  %v17344_v41 = vpop.permute.xlu0 %7799 }
 0x3da   : > { %20500 = vst [vmem:[#allocation321_spill] sm:$0xff] %v17344_v41  ;;  %v13495_v41 = vld [vmem:[%s20059_s3 + $0x290] ss:$8 sps:$4 sm:$0xff]  }
 0x3dd   : > { %9153 = vperm.xlu0 %13368, %v8935_v10   ;;  %9158 = vperm.xlu1 %13369, %v8936_v16   ;;  %v17346_v10 = vpop.permute.xlu1 %7804  ;;  %v8943_v16 = vld [vmem:[%s20062_s6 + $0x170] sm:$0xff] }
 0x3de   : > { %2547 = vmatmul.mubr.bf16.gmra.mrb[120].mxu1 %v13480_v1  ;;  %20501 = vst [vmem:[#allocation322_spill] sm:$0xff] %v17346_v10  ;;  %v8944_v1 = vld [vmem:[%s20062_s6 + $0x178] sm:$0xff] }
 0x3df   : > { %2554 = vmatprep.mubr.bf16.mxu1 %v13481_v14  ;;  %v13486_v14 = vld [vmem:[%s20059_s3 + $0x260] ss:$8 sps:$4 sm:$0xff]  }
 0x3e1   : > { %9163 = vperm.xlu0 %13368, %v8937_v60   ;;  %9168 = vperm.xlu1 %13369, %v8938_v6   ;;  %v13487_v60 = vld [vmem:[%s20059_s3 + $0x274] ss:$8 sps:$4 sm:$0xff]   ;;  %v8945_v6 = vld [vmem:[%s20062_s6 + $0x180] sm:$0xff] }
 0x3e5   : > { %9173 = vperm.xlu0 %13368, %v8939_v42   ;;  %9178 = vperm.xlu1 %13369, %v8940_v50   ;;  %v8946_v42 = vld [vmem:[%s20062_s6 + $0x188] sm:$0xff]  ;;  %v17366_v50 = vpop.permute.xlu0 %7719 }
 0x3e6   : > { %2555 = vmatmul.mubr.bf16.gmra.mrb[124].mxu1 %v13483_v40  ;;  %20502 = vst [vmem:[#allocation323_spill] sm:$0xff] %v17366_v50  ;;  %v17368_v40 = vpop.permute.xlu1 %7724 }
 0x3e7   : > { %2562 = vmatprep.mubr.bf16.mxu1 %v13484_v13  ;;  %20503 = vst [vmem:[#allocation324_spill] sm:$0xff] %v17368_v40  ;;  %v8947_v13 = vld [vmem:[%s20062_s6 + $0x190] sm:$0xff]  ;;  %v20522_v40 = vld [vmem:[#allocation9_spill] sm:$0xff] }
 0x3e9   : > { %9183 = vperm.xlu0 %13368, %v8941_v24   ;;  %9188 = vperm.xlu1 %13369, %v8942_v53   ;;  %v8948_v24 = vld [vmem:[%s20062_s6 + $0x198] sm:$0xff] }
 0x3ea   : > { %v13489_v53 = vld [vmem:[%s20059_s3 + $0x270] ss:$8 sps:$4 sm:$0xff]  }
 0x3ed   : > { %9193 = vperm.xlu0 %13368, %v8943_v16   ;;  %9198 = vperm.xlu1 %13369, %v8944_v1   ;;  %v13490_v16 = vld [vmem:[%s20059_s3 + $0x284] ss:$8 sps:$4 sm:$0xff]   ;;  %v17382_v1 = vpop.permute.xlu0 %7809 }
 0x3ee   : > { %2563 = vmatmul.mubr.bf16.gmra.mrb[128].mxu1 %v13486_v14  ;;  %20504 = vst [vmem:[#allocation325_spill] sm:$0xff] %v17382_v1  ;;  %v17384_v14 = vpop.permute.xlu1 %7814  ;;  %v13492_v1 = vld [vmem:[%s20059_s3 + $0x280] ss:$8 sps:$4 sm:$0xff]  }
 0x3ef   : > { %2570 = vmatprep.mubr.bf16.mxu1 %v13487_v60  ;;  %20505 = vst [vmem:[#allocation326_spill] sm:$0xff] %v17384_v14  ;;  %v8949_v60 = vld [vmem:[%s20062_s6 + $0x1a0] sm:$0xff] }
 0x3f1   : > { %9203 = vperm.xlu0 %13368, %v8945_v6   ;;  %9208 = vperm.xlu1 %13369, %v8946_v42   ;;  %v8950_v6 = vld [vmem:[%s20062_s6 + $0x1a8] sm:$0xff]  ;;  %v8951_v42 = vld [vmem:[%s20062_s6 + $0x1b0] sm:$0xff] }
 0x3f2   : > { %v17400_v14 = vpop.permute.xlu1 %7734 }
 0x3f3   : > { %20507 = vst [vmem:[#allocation328_spill] sm:$0xff] %v17400_v14 }
 0x3f5   : > { %9213 = vperm.xlu0 %13368, %v8947_v13   ;;  %9218 = vperm.xlu1 %13369, %v8948_v24   ;;  %v8952_v13 = vld [vmem:[%s20062_s6 + $0x1b8] sm:$0xff]  ;;  %v17398_v24 = vpop.permute.xlu0 %7729 }
 0x3f6   : > { %2571 = vmatmul.mubr.bf16.gmra.mrb[132].mxu1 %v13489_v53  ;;  %20506 = vst [vmem:[#allocation327_spill] sm:$0xff] %v17398_v24  ;;  %v13493_v53 = vld [vmem:[%s20059_s3 + $0x294] ss:$8 sps:$4 sm:$0xff]   ;;  %v17416_v10 = vpop.permute.xlu1 %7824 }
 0x3f7   : > { %2578 = vmatprep.mubr.bf16.mxu1 %v13490_v16  ;;  %v8953_v16 = vld [vmem:[%s20062_s6 + $0x1c0] sm:$0xff]  ;;  %20509 = vst [vmem:[#allocation330_spill] sm:$0xff] %v17416_v10 }
 0x3f9   : > { %9223 = vperm.xlu0 %13368, %v8949_v60   ;;  %9228 = vperm.xlu1 %13369, %v8950_v6   ;;  %v8954_v60 = vld [vmem:[%s20062_s6 + $0x1c8] sm:$0xff]  ;;  %v17414_v6 = vpop.permute.xlu0 %7819 }
 0x3fa   : > { %20508 = vst [vmem:[#allocation329_spill] sm:$0xff] %v17414_v6  ;;  %v17438_v10 = vpop.permute.xlu1 %7744  ;;  %v13498_v6 = vld [vmem:[%s20059_s3 + $0x2a0] ss:$8 sps:$4 sm:$0xff]  }
 0x3fb   : > { %20511 = vst [vmem:[#allocation332_spill] sm:$0xff] %v17438_v10 }
 0x3fd   : > { %9233 = vperm.xlu0 %13368, %v8951_v42   ;;  %9238 = vperm.xlu1 %13369, %v8952_v13   ;;  %v8955_v42 = vld [vmem:[%s20062_s6 + $0x1d0] sm:$0xff]  ;;  %v8956_v13 = vld [vmem:[%s20062_s6 + $0x1d8] sm:$0xff] }
 0x3fe   : > { %2579 = vmatmul.mubr.bf16.gmra.mrb[136].mxu1 %v13492_v1  ;;  %v13496_v1 = vld [vmem:[%s20059_s3 + $0x2a4] ss:$8 sps:$4 sm:$0xff]  }
 0x3ff   : > { %2586 = vmatprep.mubr.bf16.mxu1 %v13493_v53  ;;  %v8957_v53 = vld [vmem:[%s20062_s6 + $0x1e0] sm:$0xff] }
 0x401   : > { %9243 = vperm.xlu0 %13368, %v8953_v16   ;;  %9248 = vperm.xlu1 %13369, %v8954_v60   ;;  %v8958_v16 = vld [vmem:[%s20062_s6 + $0x1e8] sm:$0xff]  ;;  %v17436_v60 = vpop.permute.xlu0 %7739 }
 0x402   : > { %20510 = vst [vmem:[#allocation331_spill] sm:$0xff] %v17436_v60 }
 0x405   : > { %9253 = vperm.xlu0 %13368, %v8955_v42   ;;  %9258 = vperm.xlu1 %13369, %v8956_v13   ;;  %v8959_v42 = vld [vmem:[%s20062_s6 + $0x1f0] sm:$0xff]  ;;  %v8960_v13 = vld [vmem:[%s20062_s6 + $0x1f8] sm:$0xff] }
 0x406   : > { %2587 = vmatmul.mubr.bf16.gmra.mrb[140].mxu1 %v13495_v41  ;;  %v17452_v41 = vpop.permute.xlu0 %7829 }
 0x407   : > { %2594 = vmatprep.mubr.bf16.mxu1 %v13496_v1  ;;  %20512 = vst [vmem:[#allocation333_spill] sm:$0xff] %v17452_v41  ;;  %v17454_v1 = vpop.permute.xlu1 %7834  ;;  %v13504_v41 = vld [vmem:[%s20059_s3 + $0x2c0] ss:$8 sps:$4 sm:$0xff]  }
 0x408   : > { %20513 = vst [vmem:[#allocation334_spill] sm:$0xff] %v17454_v1 }
 0x409   : > { %9263 = vperm.xlu0 %13368, %v8957_v53   ;;  %9268 = vperm.xlu1 %13369, %v8958_v16   ;;  %v13501_v53 = vld [vmem:[%s20059_s3 + $0x2b0] ss:$8 sps:$4 sm:$0xff]   ;;  %v13502_v16 = vld [vmem:[%s20059_s3 + $0x2c4] ss:$8 sps:$4 sm:$0xff]  }
 0x40d   : > { %9273 = vperm.xlu0 %13368, %v8959_v42   ;;  %9278 = vperm.xlu1 %13369, %v8960_v13   ;;  %v13505_v42 = vld [vmem:[%s20059_s3 + $0x2d4] ss:$8 sps:$4 sm:$0xff]   ;;  %v13510_v13 = vld [vmem:[%s20059_s3 + $0x2e0] ss:$8 sps:$4 sm:$0xff]  }
 0x40e   : > { %2595 = vmatmul.mubr.bf16.gmra.mrb[144].mxu1 %v13498_v6  ;;  %v13508_v6 = vld [vmem:[%s20059_s3 + $0x2e4] ss:$8 sps:$4 sm:$0xff]  }
 0x40f   : > { %2602 = vmatprep.mubr.bf16.mxu1 %v13499_v19  ;;  %v13507_v19 = vld [vmem:[%s20059_s3 + $0x2d0] ss:$8 sps:$4 sm:$0xff]  }
 0x416   : > { %2603 = vmatmul.mubr.bf16.gmra.mrb[148].mxu1 %v13501_v53  ;;  %v13511_v53 = vld [vmem:[%s20059_s3 + $0x2f4] ss:$8 sps:$4 sm:$0xff]  }
 0x417   : > { %2610 = vmatprep.mubr.bf16.mxu1 %v13502_v16 }
 0x41e   : > { %2611 = vmatmul.mubr.bf16.gmra.mrb[152].mxu1 %v13504_v41  ;;  %v13513_v41 = vld [vmem:[%s20059_s3 + $0x2f0] ss:$8 sps:$4 sm:$0xff]  }
 0x41f   : > { %2618 = vmatprep.mubr.bf16.mxu1 %v13505_v42 }
 0x426   : > { %2619 = vmatmul.mubr.bf16.gmra.mrb[156].mxu1 %v13507_v19 }
 0x427   : > { %2626 = vmatprep.mubr.bf16.mxu1 %v13508_v6 }
 0x42e   : > { %2627 = vmatmul.mubr.bf16.gmra.mrb[160].mxu1 %v13510_v13  ;;  %v13516_v13 = vld [vmem:[%s20059_s3 + $0x304] ss:$8 sps:$4 sm:$0xff]  }
 0x42f   : > { %2634 = vmatprep.mubr.bf16.mxu1 %v13511_v53  ;;  %v20516_v53 = vld [vmem:[#allocation8_spill] sm:$0xff]  ;;  %3141 = vmatprep.mubr.bf16.mxu0 %v13516_v13  ;;  %v17508_v13 = vadd.f32 %v20522_v40, %v20522_v40 }
 0x430   : > { %v17490_v8 = vadd.f32 %v20516_v53, %v20516_v53 }
 0x431   : > { %20523 = vst [vmem:[#allocation8_spill] sm:$0xff] %v17508_v13 }
 0x432   : > { %20517 = vst [vmem:[#allocation50_spill] sm:$0xff] %v17490_v8 }
 0x436   : > { %2635 = vmatmul.mubr.bf16.gmra.mrb[164].mxu1 %v13513_v41  ;;  %v20518_v41 = vld [vmem:[#allocation7_spill] sm:$0xff] }
 0x437   : > { %v17494_v10 = vadd.f32 %v20518_v41, %v20518_v41 }
 0x439   : > { %20519 = vst [vmem:[#allocation51_spill] sm:$0xff] %v17494_v10 }
 0x491   : > { %v12052_v16 = vpop.f32.mrb[104].mxu1 }
 0x492   : > { %v12053_v42 = vpop.f32.mrb[105].mxu1 }
 0x493   : > { %v12054_v1 = vadd.f32 %v12053_v42, %v12052_v16  ;;  %v12055_v19 = vpop.f32.mrb[106].mxu1 }
 0x494   : > { %v12056_v6 = vpop.f32.mrb[107].mxu1 }
 0x495   : > { %v2517_v22 = vadd.f32 %v12054_v1, %v20514_v34  ;;  %v12057_v39 = vadd.f32 %v12056_v6, %v12055_v19  ;;  %v20520_v19 = vld [vmem:[#allocation54_spill] sm:$0xff] }
 0x496   : > { %20529 = vst [vmem:[#allocation54_spill] sm:$0xff] %v17526_v46 }
 0x497   : > { %v2643_v0 = vmax.f32 %v2517_v22, 0.0  ;;  %v2520_v58 = vadd.f32 %v12057_v39, %v20515_v48 }
 0x499   : > { %v2644_v16 = vmax.f32 %v2520_v58, 0.0  ;;  %v12058_v42 = vpop.f32.mrb[108].mxu1  ;;  %v17497_v22 = vadd.f32 %v2643_v0, %v17490_v8  ;;  %v20521_v58 = vld [vmem:[#allocation55_spill] sm:$0xff]  ;;  %v20546_v8 = vld [vmem:[#allocation21_spill] sm:$0xff] }
 0x49a   : > { %v12059_v60 = vpop.f32.mrb[109].mxu1  ;;  %v20524_v0 = vld [vmem:[#allocation11_spill] sm:$0xff]  ;;  %v17580_v32 = vadd.f32 %v20546_v8, %v20546_v8 }
 0x49b   : > { %v17500_v48 = vadd.f32 %v2644_v16, %v17494_v10  ;;  %v12060_v39 = vadd.f32 %v12059_v60, %v12058_v42  ;;  %v12061_v34 = vpop.f32.mrb[110].mxu1  ;;  %v17512_v16 = vadd.f32 %v20524_v0, %v20524_v0  ;;  %v17562_v10 = vadd.f32 %v20540_v49, %v20540_v49 }
 0x49c   : > { %v12062_v1 = vpop.f32.mrb[111].mxu1  ;;  %20547 = vst [vmem:[#allocation13_spill] sm:$0xff] %v17580_v32 }
 0x49d   : > { %v2525_v6 = vadd.f32 %v12060_v39, %v20520_v19  ;;  %v12063_v53 = vadd.f32 %v12062_v1, %v12061_v34  ;;  %20525 = vst [vmem:[#allocation7_spill] sm:$0xff] %v17512_v16 }
 0x49f   : > { %v2645_v14 = vmax.f32 %v2525_v6, 0.0  ;;  %v2528_v24 = vadd.f32 %v12063_v53, %v20521_v58  ;;  %v20526_v53 = vld [vmem:[#allocation58_spill] sm:$0xff] }
 0x4a0   : > { %20541 = vst [vmem:[#allocation58_spill] sm:$0xff] %v17562_v10 }
 0x4a1   : > { %v2646_v60 = vmax.f32 %v2528_v24, 0.0  ;;  %v12064_v42 = vpop.f32.mrb[112].mxu1  ;;  %v17515_v39 = vadd.f32 %v2645_v14, %v17512_v16  ;;  %v20530_v14 = vld [vmem:[#allocation14_spill] sm:$0xff]  ;;  %v20534_v16 = vld [vmem:[#allocation15_spill] sm:$0xff] }
 0x4a2   : > { %v12065_v50 = vpop.f32.mrb[113].mxu1  ;;  %v17544_v51 = vadd.f32 %v20534_v16, %v20534_v16  ;;  %20559 = vst [vmem:[#allocation15_spill] sm:$0xff] %v17616_v44 }
 0x4a3   : > { %v17518_v34 = vadd.f32 %v2646_v60, %v17508_v13  ;;  %v12066_v1 = vadd.f32 %v12065_v50, %v12064_v42  ;;  %v12067_v19 = vpop.f32.mrb[114].mxu1  ;;  %v17530_v60 = vadd.f32 %v20530_v14, %v20530_v14  ;;  %v20533_v13 = vld [vmem:[#allocation63_spill] sm:$0xff] }
 0x4a4   : > { %v12068_v6 = vpop.f32.mrb[115].mxu1  ;;  %20535 = vst [vmem:[#allocation9_spill] sm:$0xff] %v17544_v51 }
 0x4a5   : > { %v2533_v58 = vadd.f32 %v12066_v1, %v20526_v53  ;;  %v12069_v40 = vadd.f32 %v12068_v6, %v12067_v19  ;;  %20531 = vst [vmem:[#allocation55_spill] sm:$0xff] %v17530_v60 }
 0x4a7   : > { %v2647_v0 = vmax.f32 %v2533_v58, 0.0  ;;  %v2536_v24 = vadd.f32 %v12069_v40, %v20527_v61  ;;  %v20532_v58 = vld [vmem:[#allocation62_spill] sm:$0xff] }
 0x4a8   : > { %20553 = vst [vmem:[#allocation62_spill] sm:$0xff] %v17598_v29 }
 0x4a9   : > { %v2648_v50 = vmax.f32 %v2536_v24, 0.0  ;;  %v12070_v42 = vpop.f32.mrb[116].mxu1  ;;  %v17533_v1 = vadd.f32 %v2647_v0, %v17530_v60  ;;  %v20536_v0 = vld [vmem:[#allocation17_spill] sm:$0xff]  ;;  %v20539_v60 = vld [vmem:[#allocation67_spill] sm:$0xff] }
 0x4aa   : > { %v12071_v18 = vpop.f32.mrb[117].mxu1 }
 0x4ab   : > { %v17536_v19 = vadd.f32 %v2648_v50, %v17526_v46  ;;  %v12072_v6 = vadd.f32 %v12071_v18, %v12070_v42  ;;  %v12073_v53 = vpop.f32.mrb[118].mxu1  ;;  %v17548_v50 = vadd.f32 %v20536_v0, %v20536_v0 }
 0x4ac   : > { %v12074_v61 = vpop.f32.mrb[119].mxu1 }
 0x4ad   : > { %v2541_v40 = vadd.f32 %v12072_v6, %v20532_v58  ;;  %v12075_v30 = vadd.f32 %v12074_v61, %v12073_v53  ;;  %20537 = vst [vmem:[#allocation11_spill] sm:$0xff] %v17548_v50 }
 0x4af   : > { %v2649_v14 = vmax.f32 %v2541_v40, 0.0  ;;  %v2544_v24 = vadd.f32 %v12075_v30, %v20533_v13  ;;  %v20538_v40 = vld [vmem:[#allocation66_spill] sm:$0xff] }
 0x4b0   : > { %20565 = vst [vmem:[#allocation66_spill] sm:$0xff] %v17634_v9 }
 0x4b1   : > { %v2650_v18 = vmax.f32 %v2544_v24, 0.0  ;;  %v12076_v42 = vpop.f32.mrb[120].mxu1  ;;  %v17551_v6 = vadd.f32 %v2649_v14, %v17548_v50  ;;  %v20542_v14 = vld [vmem:[#allocation20_spill] sm:$0xff]  ;;  %v20545_v50 = vld [vmem:[#allocation71_spill] sm:$0xff] }
 0x4b2   : > { %v12077_v46 = vpop.f32.mrb[121].mxu1 }
 0x4b3   : > { %v17554_v53 = vadd.f32 %v2650_v18, %v17544_v51  ;;  %v12078_v61 = vadd.f32 %v12077_v46, %v12076_v42  ;;  %v12079_v58 = vpop.f32.mrb[122].mxu1  ;;  %v17566_v18 = vadd.f32 %v20542_v14, %v20542_v14 }
 0x4b4   : > { %v12080_v13 = vpop.f32.mrb[123].mxu1 }
 0x4b5   : > { %v2549_v30 = vadd.f32 %v12078_v61, %v20538_v40  ;;  %v12081_v16 = vadd.f32 %v12080_v13, %v12079_v58  ;;  %20543 = vst [vmem:[#allocation59_spill] sm:$0xff] %v17566_v18 }
 0x4b7   : > { %v2651_v0 = vmax.f32 %v2549_v30, 0.0  ;;  %v2552_v24 = vadd.f32 %v12081_v16, %v20539_v60  ;;  %v20544_v30 = vld [vmem:[#allocation70_spill] sm:$0xff] }
 0x4b9   : > { %v2652_v46 = vmax.f32 %v2552_v24, 0.0  ;;  %v12082_v42 = vpop.f32.mrb[124].mxu1  ;;  %v17569_v61 = vadd.f32 %v2651_v0, %v17566_v18  ;;  %v20548_v0 = vld [vmem:[#allocation23_spill] sm:$0xff] }
 0x4ba   : > { %v12083_v51 = vpop.f32.mrb[125].mxu1  ;;  %v20551_v18 = vld [vmem:[#allocation75_spill] sm:$0xff] }
 0x4bb   : > { %v17572_v58 = vadd.f32 %v2652_v46, %v17562_v10  ;;  %v12084_v13 = vadd.f32 %v12083_v51, %v12082_v42  ;;  %v12085_v40 = vpop.f32.mrb[126].mxu1  ;;  %v17584_v46 = vadd.f32 %v20548_v0, %v20548_v0 }
 0x4bc   : > { %v12086_v60 = vpop.f32.mrb[127].mxu1 }
 0x4bd   : > { %v2557_v16 = vadd.f32 %v12084_v13, %v20544_v30  ;;  %v12087_v49 = vadd.f32 %v12086_v60, %v12085_v40  ;;  %20549 = vst [vmem:[#allocation14_spill] sm:$0xff] %v17584_v46 }
 0x4bf   : > { %v2653_v14 = vmax.f32 %v2557_v16, 0.0  ;;  %v2560_v24 = vadd.f32 %v12087_v49, %v20545_v50  ;;  %v20550_v16 = vld [vmem:[#allocation74_spill] sm:$0xff] }
 0x4c1   : > { %v2654_v51 = vmax.f32 %v2560_v24, 0.0  ;;  %v12088_v42 = vpop.f32.mrb[128].mxu1  ;;  %v17587_v13 = vadd.f32 %v2653_v14, %v17584_v46  ;;  %v20554_v14 = vld [vmem:[#allocation26_spill] sm:$0xff]  ;;  %v20557_v46 = vld [vmem:[#allocation79_spill] sm:$0xff] }
 0x4c2   : > { %v12089_v10 = vpop.f32.mrb[129].mxu1 }
 0x4c3   : > { %v17590_v40 = vadd.f32 %v2654_v51, %v17580_v32  ;;  %v12090_v60 = vadd.f32 %v12089_v10, %v12088_v42  ;;  %v12091_v30 = vpop.f32.mrb[130].mxu1  ;;  %v17602_v51 = vadd.f32 %v20554_v14, %v20554_v14 }
 0x4c4   : > { %v12092_v50 = vpop.f32.mrb[131].mxu1 }
 0x4c5   : > { %v2565_v49 = vadd.f32 %v12090_v60, %v20550_v16  ;;  %v12093_v8 = vadd.f32 %v12092_v50, %v12091_v30  ;;  %20555 = vst [vmem:[#allocation63_spill] sm:$0xff] %v17602_v51 }
 0x4c7   : > { %v2655_v0 = vmax.f32 %v2565_v49, 0.0  ;;  %v2568_v24 = vadd.f32 %v12093_v8, %v20551_v18  ;;  %v20556_v49 = vld [vmem:[#allocation78_spill] sm:$0xff] }
 0x4c9   : > { %v2656_v10 = vmax.f32 %v2568_v24, 0.0  ;;  %v12094_v42 = vpop.f32.mrb[132].mxu1  ;;  %v17605_v60 = vadd.f32 %v2655_v0, %v17602_v51  ;;  %v20560_v0 = vld [vmem:[#allocation29_spill] sm:$0xff] }
 0x4ca   : > { %v12095_v32 = vpop.f32.mrb[133].mxu1  ;;  %v20563_v51 = vld [vmem:[#allocation49_spill] sm:$0xff] }
 0x4cb   : > { %v17608_v30 = vadd.f32 %v2656_v10, %v17598_v29  ;;  %v12096_v50 = vadd.f32 %v12095_v32, %v12094_v42  ;;  %v12097_v16 = vpop.f32.mrb[134].mxu1  ;;  %v17620_v10 = vadd.f32 %v20560_v0, %v20560_v0 }
 0x4cc   : > { %v12098_v18 = vpop.f32.mrb[135].mxu1 }
 0x4cd   : > { %v2573_v8 = vadd.f32 %v12096_v50, %v20556_v49  ;;  %v12099_v20 = vadd.f32 %v12098_v18, %v12097_v16  ;;  %20561 = vst [vmem:[#allocation17_spill] sm:$0xff] %v17620_v10 }
 0x4cf   : > { %v2657_v14 = vmax.f32 %v2573_v8, 0.0  ;;  %v2576_v24 = vadd.f32 %v12099_v20, %v20557_v46  ;;  %v20562_v8 = vld [vmem:[#allocation48_spill] sm:$0xff] }
 0x4d1   : > { %v2658_v32 = vmax.f32 %v2576_v24, 0.0  ;;  %v12100_v42 = vpop.f32.mrb[136].mxu1  ;;  %v17623_v50 = vadd.f32 %v2657_v14, %v17620_v10  ;;  %v20566_v14 = vld [vmem:[#allocation31_spill] sm:$0xff] }
 0x4d2   : > { %v12101_v29 = vpop.f32.mrb[137].mxu1 }
 0x4d3   : > { %v17626_v16 = vadd.f32 %v2658_v32, %v17616_v44  ;;  %v12102_v18 = vadd.f32 %v12101_v29, %v12100_v42  ;;  %v12103_v49 = vpop.f32.mrb[138].mxu1  ;;  %v17638_v32 = vadd.f32 %v20566_v14, %v20566_v14  ;;  %v20571_v14 = vld [vmem:[#allocation33_spill] sm:$0xff] }
 0x4d4   : > { %v12104_v46 = vpop.f32.mrb[139].mxu1 }
 0x4d5   : > { %v2581_v20 = vadd.f32 %v12102_v18, %v20562_v8  ;;  %v12105_v4 = vadd.f32 %v12104_v46, %v12103_v49  ;;  %20567 = vst [vmem:[#allocation67_spill] sm:$0xff] %v17638_v32 }
 0x4d7   : > { %v2659_v0 = vmax.f32 %v2581_v20, 0.0  ;;  %v2584_v24 = vadd.f32 %v12105_v4, %v20563_v51  ;;  %v20568_v20 = vld [vmem:[#allocation52_spill] sm:$0xff] }
 0x4d9   : > { %v2660_v29 = vmax.f32 %v2584_v24, 0.0  ;;  %v12106_v42 = vpop.f32.mrb[140].mxu1  ;;  %v2691_v49 = vadd.f32 %v2659_v0, %v17634_v9  ;;  %v20570_v24 = vpack.c.bf16 %v17500_v48, %v17497_v22  ;;  %v20573_v0 = vld [vmem:[#allocation34_spill] sm:$0xff]  ;;  %v20575_v22 = vld [vmem:[#allocation56_spill] sm:$0xff] }
 0x4da   : > { %v12107_v44 = vpop.f32.mrb[141].mxu1 }
 0x4db   : > { %v12108_v10 = vadd.f32 %v12107_v44, %v12106_v42  ;;  %v12109_v18 = vpop.f32.mrb[142].mxu1  ;;  %v2692_v46 = vadd.f32 %v2660_v29, %v17638_v32  ;;  %v17649_v44 = vadd.f32 %v20571_v14, %v20571_v14  ;;  %v17653_v29 = vadd.f32 %v20573_v0, %v20573_v0  ;;  %v20578_v0 = vld [vmem:[#allocation35_spill] sm:$0xff] }
 0x4dc   : > { %v12110_v8 = vpop.f32.mrb[143].mxu1 }
 0x4dd   : > { %v2589_v51 = vadd.f32 %v12108_v10, %v20568_v20  ;;  %v12111_v4 = vadd.f32 %v12110_v8, %v12109_v18  ;;  %v2748_v41 = vpack.c.bf16 %v2692_v46, %v2691_v49  ;;  %20572 = vst [vmem:[#allocation19_spill] sm:$0xff] %v17649_v44  ;;  %20574 = vst [vmem:[#allocation20_spill] sm:$0xff] %v17653_v29 }
 0x4df   : > { %v2661_v62 = vmax.f32 %v2589_v51, 0.0  ;;  %v2592_v59 = vadd.f32 %v12111_v4, %v20569_v23  ;;  %12148 = vmatprep.subr.bf16.mxu0 %v2748_v41 }
 0x4e0   : > { %12149 = vmatpush3.bf16.msra.mxu0 %v20570_v24  ;;  %v20576_v24 = vld [vmem:[#allocation57_spill] sm:$0xff] }
 0x4e1   : > { %v2662_v42 = vmax.f32 %v2592_v59, 0.0  ;;  %v12112_v10 = vpop.f32.mrb[144].mxu1  ;;  %v2693_v23 = vadd.f32 %v2661_v62, %v17653_v29  ;;  %v20577_v59 = vpack.c.bf16 %v17518_v34, %v17515_v39  ;;  %v20580_v62 = vld [vmem:[#allocation36_spill] sm:$0xff]  ;;  %v20635_v29 = vld [vmem:[#allocation81_spill] sm:$0xff] }
 0x4e2   : > { %v12113_v18 = vpop.f32.mrb[145].mxu1  ;;  %v20582_v39 = vld [vmem:[#allocation60_spill] sm:$0xff] }
 0x4e3   : > { %v12114_v49 = vadd.f32 %v12113_v18, %v12112_v10  ;;  %v12115_v46 = vpop.f32.mrb[146].mxu1  ;;  %v2694_v41 = vadd.f32 %v2662_v42, %v17649_v44  ;;  %v17664_v10 = vadd.f32 %v20578_v0, %v20578_v0  ;;  %v17668_v42 = vadd.f32 %v20580_v62, %v20580_v62  ;;  %v20585_v62 = vld [vmem:[#allocation37_spill] sm:$0xff] }
 0x4e4   : > { %v12116_v8 = vpop.f32.mrb[147].mxu1 }
 0x4e5   : > { %v2597_v48 = vadd.f32 %v12114_v49, %v20575_v22  ;;  %v12117_v20 = vadd.f32 %v12116_v8, %v12115_v46  ;;  %v2749_v51 = vpack.c.bf16 %v2694_v41, %v2693_v23  ;;  %20579 = vst [vmem:[#allocation70_spill] sm:$0xff] %v17664_v10  ;;  %20581 = vst [vmem:[#allocation71_spill] sm:$0xff] %v17668_v42 }
 0x4e7   : > { %v2663_v4 = vmax.f32 %v2597_v48, 0.0  ;;  %v2600_v14 = vadd.f32 %v12117_v20, %v20576_v24  ;;  %12150 = vmatprep.subr.bf16.mxu0 %v2749_v51 }
 0x4e8   : > { %12151 = vmatpush3.bf16.msra.mxu0 %v20577_v59  ;;  %v20583_v59 = vld [vmem:[#allocation61_spill] sm:$0xff] }
 0x4e9   : > { %v2664_v18 = vmax.f32 %v2600_v14, 0.0  ;;  %v12118_v49 = vpop.f32.mrb[148].mxu1  ;;  %v2695_v8 = vadd.f32 %v2663_v4, %v17668_v42  ;;  %v20584_v14 = vpack.c.bf16 %v17536_v19, %v17533_v1  ;;  %v20587_v4 = vld [vmem:[#allocation38_spill] sm:$0xff]  ;;  %v20589_v1 = vld [vmem:[#allocation64_spill] sm:$0xff]  ;;  %v20633_v42 = vld [vmem:[#allocation111_spill] sm:$0xff] }
 0x4ea   : > { %v12119_v46 = vpop.f32.mrb[149].mxu1 }
 0x4eb   : > { %v12120_v23 = vadd.f32 %v12119_v46, %v12118_v49  ;;  %v12121_v41 = vpop.f32.mrb[150].mxu1  ;;  %v2696_v22 = vadd.f32 %v2664_v18, %v17664_v10  ;;  %v17679_v49 = vadd.f32 %v20585_v62, %v20585_v62  ;;  %v17683_v18 = vadd.f32 %v20587_v4, %v20587_v4  ;;  %v20592_v4 = vld [vmem:[#allocation39_spill] sm:$0xff] }
 0x4ec   : > { %v12122_v48 = vpop.f32.mrb[151].mxu1 }
 0x4ed   : > { %v2605_v34 = vadd.f32 %v12120_v23, %v20582_v39  ;;  %v12123_v20 = vadd.f32 %v12122_v48, %v12121_v41  ;;  %v2750_v51 = vpack.c.bf16 %v2696_v22, %v2695_v8  ;;  %20586 = vst [vmem:[#allocation21_spill] sm:$0xff] %v17679_v49  ;;  %20588 = vst [vmem:[#allocation23_spill] sm:$0xff] %v17683_v18 }
 0x4ef   : > { %v2665_v24 = vmax.f32 %v2605_v34, 0.0  ;;  %v2608_v0 = vadd.f32 %v12123_v20, %v20583_v59  ;;  %12152 = vmatprep.subr.bf16.mxu0 %v2750_v51 }
 0x4f0   : > { %12153 = vmatpush3.bf16.msra.mxu0 %v20584_v14  ;;  %v20590_v14 = vld [vmem:[#allocation65_spill] sm:$0xff] }
 0x4f1   : > { %v2666_v46 = vmax.f32 %v2608_v0, 0.0  ;;  %v12124_v23 = vpop.f32.mrb[152].mxu1  ;;  %v2697_v48 = vadd.f32 %v2665_v24, %v17683_v18  ;;  %v20591_v0 = vpack.c.bf16 %v17554_v53, %v17551_v6  ;;  %v20594_v24 = vld [vmem:[#allocation40_spill] sm:$0xff]  ;;  %v20631_v18 = vld [vmem:[#allocation107_spill] sm:$0xff] }
 0x4f2   : > { %v12125_v41 = vpop.f32.mrb[153].mxu1  ;;  %v20596_v6 = vld [vmem:[#allocation68_spill] sm:$0xff] }
 0x4f3   : > { %v12126_v8 = vadd.f32 %v12125_v41, %v12124_v23  ;;  %v12127_v22 = vpop.f32.mrb[154].mxu1  ;;  %v2698_v39 = vadd.f32 %v2666_v46, %v17679_v49  ;;  %v17694_v23 = vadd.f32 %v20592_v4, %v20592_v4  ;;  %v17698_v46 = vadd.f32 %v20594_v24, %v20594_v24  ;;  %v20599_v24 = vld [vmem:[#allocation41_spill] sm:$0xff] }
 0x4f4   : > { %v12128_v34 = vpop.f32.mrb[155].mxu1 }
 0x4f5   : > { %v2613_v19 = vadd.f32 %v12126_v8, %v20589_v1  ;;  %v12129_v20 = vadd.f32 %v12128_v34, %v12127_v22  ;;  %v2751_v51 = vpack.c.bf16 %v2698_v39, %v2697_v48  ;;  %20593 = vst [vmem:[#allocation74_spill] sm:$0xff] %v17694_v23  ;;  %20595 = vst [vmem:[#allocation75_spill] sm:$0xff] %v17698_v46 }
 0x4f7   : > { %v2667_v59 = vmax.f32 %v2613_v19, 0.0  ;;  %v2616_v62 = vadd.f32 %v12129_v20, %v20590_v14  ;;  %12154 = vmatprep.subr.bf16.mxu0 %v2751_v51 }
 0x4f8   : > { %12155 = vmatpush3.bf16.msra.mxu0 %v20591_v0  ;;  %v20597_v0 = vld [vmem:[#allocation69_spill] sm:$0xff] }
 0x4f9   : > { %v2668_v41 = vmax.f32 %v2616_v62, 0.0  ;;  %v12130_v8 = vpop.f32.mrb[156].mxu1  ;;  %v2699_v34 = vadd.f32 %v2667_v59, %v17698_v46  ;;  %v20598_v62 = vpack.c.bf16 %v17572_v58, %v17569_v61  ;;  %v20601_v59 = vld [vmem:[#allocation42_spill] sm:$0xff]  ;;  %v20603_v61 = vld [vmem:[#allocation72_spill] sm:$0xff]  ;;  %v20629_v46 = vld [vmem:[#allocation103_spill] sm:$0xff] }
 0x4fa   : > { %v12131_v22 = vpop.f32.mrb[157].mxu1 }
 0x4fb   : > { %v12132_v48 = vadd.f32 %v12131_v22, %v12130_v8  ;;  %v12133_v39 = vpop.f32.mrb[158].mxu1  ;;  %v2700_v1 = vadd.f32 %v2668_v41, %v17694_v23  ;;  %v17709_v8 = vadd.f32 %v20599_v24, %v20599_v24  ;;  %v17713_v41 = vadd.f32 %v20601_v59, %v20601_v59  ;;  %v20606_v59 = vld [vmem:[#allocation43_spill] sm:$0xff] }
 0x4fc   : > { %v12134_v19 = vpop.f32.mrb[159].mxu1 }
 0x4fd   : > { %v2621_v53 = vadd.f32 %v12132_v48, %v20596_v6  ;;  %v12135_v20 = vadd.f32 %v12134_v19, %v12133_v39  ;;  %v2752_v51 = vpack.c.bf16 %v2700_v1, %v2699_v34  ;;  %20600 = vst [vmem:[#allocation25_spill] sm:$0xff] %v17709_v8  ;;  %20602 = vst [vmem:[#allocation26_spill] sm:$0xff] %v17713_v41 }
 0x4ff   : > { %v2669_v14 = vmax.f32 %v2621_v53, 0.0  ;;  %v2624_v4 = vadd.f32 %v12135_v20, %v20597_v0  ;;  %12156 = vmatprep.subr.bf16.mxu0 %v2752_v51 }
 0x500   : > { %12157 = vmatpush3.bf16.msra.mxu0 %v20598_v62  ;;  %v20604_v62 = vld [vmem:[#allocation73_spill] sm:$0xff] }
 0x501   : > { %v2670_v22 = vmax.f32 %v2624_v4, 0.0  ;;  %v12136_v48 = vpop.f32.mrb[160].mxu1  ;;  %v2701_v19 = vadd.f32 %v2669_v14, %v17713_v41  ;;  %v20605_v4 = vpack.c.bf16 %v17590_v40, %v17587_v13  ;;  %v20608_v14 = vld [vmem:[#allocation44_spill] sm:$0xff]  ;;  %v20627_v41 = vld [vmem:[#allocation99_spill] sm:$0xff] }
 0x502   : > { %v12137_v39 = vpop.f32.mrb[161].mxu1  ;;  %v20610_v13 = vld [vmem:[#allocation76_spill] sm:$0xff] }
 0x503   : > { %v12138_v34 = vadd.f32 %v12137_v39, %v12136_v48  ;;  %v12139_v1 = vpop.f32.mrb[162].mxu1  ;;  %v2702_v6 = vadd.f32 %v2670_v22, %v17709_v8  ;;  %v17724_v48 = vadd.f32 %v20606_v59, %v20606_v59  ;;  %v17728_v22 = vadd.f32 %v20608_v14, %v20608_v14  ;;  %v20613_v14 = vld [vmem:[#allocation45_spill] sm:$0xff] }
 0x504   : > { %v12140_v53 = vpop.f32.mrb[163].mxu1 }
 0x505   : > { %v2629_v58 = vadd.f32 %v12138_v34, %v20603_v61  ;;  %v12141_v20 = vadd.f32 %v12140_v53, %v12139_v1  ;;  %v2753_v51 = vpack.c.bf16 %v2702_v6, %v2701_v19  ;;  %20607 = vst [vmem:[#allocation78_spill] sm:$0xff] %v17724_v48  ;;  %20609 = vst [vmem:[#allocation79_spill] sm:$0xff] %v17728_v22 }
 0x507   : > { %v2671_v0 = vmax.f32 %v2629_v58, 0.0  ;;  %v2632_v24 = vadd.f32 %v12141_v20, %v20604_v62  ;;  %12158 = vmatprep.subr.bf16.mxu0 %v2753_v51 }
 0x508   : > { %12159 = vmatpush3.bf16.msra.mxu0 %v20605_v4  ;;  %v20611_v4 = vld [vmem:[#allocation77_spill] sm:$0xff] }
 0x509   : > { %v2672_v39 = vmax.f32 %v2632_v24, 0.0  ;;  %v12142_v34 = vpop.f32.mrb[164].mxu1  ;;  %v2703_v53 = vadd.f32 %v2671_v0, %v17728_v22  ;;  %v20612_v24 = vpack.c.bf16 %v17608_v30, %v17605_v60  ;;  %v20615_v0 = vld [vmem:[#allocation46_spill] sm:$0xff]  ;;  %v20617_v30 = vpack.c.bf16 %v17626_v16, %v17623_v50  ;;  %v13523_v16 = vld [vmem:[%s20059_s3 + $0x334] ss:$8 sps:$4 sm:$0xff]   ;;  %v20625_v22 = vld [vmem:[#allocation95_spill] sm:$0xff] }
 0x50a   : > { %v12143_v1 = vpop.f32.mrb[165].mxu1  ;;  %v13514_v60 = vld [vmem:[%s20059_s3 + $0x300] ss:$8 sps:$4 sm:$0xff]  }
 0x50b   : > { %v12144_v19 = vadd.f32 %v12143_v1, %v12142_v34  ;;  %v12145_v6 = vpop.f32.mrb[166].mxu1  ;;  %v2704_v61 = vadd.f32 %v2672_v39, %v17724_v48  ;;  %v17739_v34 = vadd.f32 %v20613_v14, %v20613_v14  ;;  %v17743_v39 = vadd.f32 %v20615_v0, %v20615_v0  ;;  %v13522_v50 = vld [vmem:[%s20059_s3 + $0x320] ss:$8 sps:$4 sm:$0xff]   ;;  %v13535_v14 = vld [vmem:[%s20059_s3 + $0x374] ss:$8 sps:$4 sm:$0xff]  }
 0x50c   : > { %v12146_v58 = vpop.f32.mrb[167].mxu1  ;;  %v13537_v0 = vld [vmem:[%s20059_s3 + $0x370] ss:$8 sps:$4 sm:$0xff]  }
 0x50d   : > { %v2637_v40 = vadd.f32 %v12144_v19, %v20610_v13  ;;  %v12147_v20 = vadd.f32 %v12146_v58, %v12145_v6  ;;  %v2754_v51 = vpack.c.bf16 %v2704_v61, %v2703_v53  ;;  %20614 = vst [vmem:[#allocation27_spill] sm:$0xff] %v17739_v34  ;;  %20616 = vst [vmem:[#allocation29_spill] sm:$0xff] %v17743_v39  ;;  %v13517_v61 = vld [vmem:[%s20059_s3 + $0x314] ss:$8 sps:$4 sm:$0xff]   ;;  %v13519_v58 = vld [vmem:[%s20059_s3 + $0x310] ss:$8 sps:$4 sm:$0xff]  }
 0x50e   : > { %v13520_v13 = vld [vmem:[%s20059_s3 + $0x324] ss:$8 sps:$4 sm:$0xff]  }
 0x50f   : > { %v2673_v62 = vmax.f32 %v2637_v40, 0.0  ;;  %v2640_v59 = vadd.f32 %v12147_v20, %v20611_v4  ;;  %12160 = vmatprep.subr.bf16.mxu0 %v2754_v51  ;;  %v13525_v40 = vld [vmem:[%s20059_s3 + $0x330] ss:$8 sps:$4 sm:$0xff]   ;;  %v13526_v20 = vld [vmem:[%s20059_s3 + $0x344] ss:$8 sps:$4 sm:$0xff]  }
 0x510   : > { %12161 = vmatpush3.bf16.msra.mxu0 %v20612_v24  ;;  %v13528_v51 = vld [vmem:[%s20059_s3 + $0x340] ss:$8 sps:$4 sm:$0xff]   ;;  %v13531_v4 = vld [vmem:[%s20059_s3 + $0x350] ss:$8 sps:$4 sm:$0xff]  }
 0x511   : > { %v2674_v1 = vmax.f32 %v2640_v59, 0.0  ;;  %v2705_v19 = vadd.f32 %v2673_v62, %v17743_v39  ;;  %v13529_v62 = vld [vmem:[%s20059_s3 + $0x354] ss:$8 sps:$4 sm:$0xff]   ;;  %v13532_v59 = vld [vmem:[%s20059_s3 + $0x364] ss:$8 sps:$4 sm:$0xff]  }
 0x512   : > { %v13534_v24 = vld [vmem:[%s20059_s3 + $0x360] ss:$8 sps:$4 sm:$0xff]  }
 0x513   : > { %v2706_v6 = vadd.f32 %v2674_v1, %v17739_v34  ;;  %v13538_v1 = vld [vmem:[%s20059_s3 + $0x384] ss:$8 sps:$4 sm:$0xff]  }
 0x514   : > { %v20623_v39 = vld [vmem:[#allocation91_spill] sm:$0xff] }
 0x515   : > { %v2755_v53 = vpack.c.bf16 %v2706_v6, %v2705_v19  ;;  %v13540_v19 = vld [vmem:[%s20059_s3 + $0x380] ss:$8 sps:$4 sm:$0xff]   ;;  %v13541_v6 = vld [vmem:[%s20059_s3 + $0x394] ss:$8 sps:$4 sm:$0xff]  }
 0x517   : > { %12162 = vmatprep.subr.bf16.mxu0 %v2755_v53  ;;  %v13543_v53 = vld [vmem:[%s20059_s3 + $0x390] ss:$8 sps:$4 sm:$0xff]  }
 0x518   : > { %12163 = vmatpush3.bf16.msra.mxu0 %v20617_v30  ;;  %v13546_v30 = vld [vmem:[%s20059_s3 + $0x3a0] ss:$8 sps:$4 sm:$0xff]  }
 0x51b   : > { %3142 = vmatmul.mubr.bf16.vlgmr.msra.gmra.mrb[56].mxu0 %v13514_v60  ;;  %v13544_v60 = vld [vmem:[%s20059_s3 + $0x3a4] ss:$8 sps:$4 sm:$0xff]  }
 0x51c   : > { %3149 = vmatprep.mubr.bf16.mxu0 %v13517_v61  ;;  %v13547_v61 = vld [vmem:[%s20059_s3 + $0x3b4] ss:$8 sps:$4 sm:$0xff]  }
 0x523   : > { %3150 = vmatmul.mubr.bf16.gmra.mrb[60].mxu0 %v13519_v58  ;;  %v13549_v58 = vld [vmem:[%s20059_s3 + $0x3b0] ss:$8 sps:$4 sm:$0xff]  }
 0x524   : > { %3157 = vmatprep.mubr.bf16.mxu0 %v13520_v13  ;;  %v13550_v13 = vld [vmem:[%s20059_s3 + $0x3c4] ss:$8 sps:$4 sm:$0xff]  }
 0x52b   : > { %3158 = vmatmul.mubr.bf16.gmra.mrb[64].mxu0 %v13522_v50  ;;  %v13552_v50 = vld [vmem:[%s20059_s3 + $0x3c0] ss:$8 sps:$4 sm:$0xff]  }
 0x52c   : > { %3165 = vmatprep.mubr.bf16.mxu0 %v13523_v16  ;;  %v13553_v16 = vld [vmem:[%s20059_s3 + $0x3d4] ss:$8 sps:$4 sm:$0xff]  }
 0x533   : > { %3166 = vmatmul.mubr.bf16.gmra.mrb[68].mxu0 %v13525_v40  ;;  %v13555_v40 = vld [vmem:[%s20059_s3 + $0x3d0] ss:$8 sps:$4 sm:$0xff]  }
 0x534   : > { %3173 = vmatprep.mubr.bf16.mxu0 %v13526_v20  ;;  %v13556_v20 = vld [vmem:[%s20059_s3 + $0x3e4] ss:$8 sps:$4 sm:$0xff]  }
 0x53b   : > { %3174 = vmatmul.mubr.bf16.gmra.mrb[72].mxu0 %v13528_v51  ;;  %v13558_v51 = vld [vmem:[%s20059_s3 + $0x3e0] ss:$8 sps:$4 sm:$0xff]  }
 0x53c   : > { %3181 = vmatprep.mubr.bf16.mxu0 %v13529_v62  ;;  %v13559_v62 = vld [vmem:[%s20059_s3 + $0x3f4] ss:$8 sps:$4 sm:$0xff]  }
 0x543   : > { %3182 = vmatmul.mubr.bf16.gmra.mrb[76].mxu0 %v13531_v4  ;;  %v13561_v4 = vld [vmem:[%s20059_s3 + $0x3f0] ss:$8 sps:$4 sm:$0xff]  }
 0x544   : > { %3189 = vmatprep.mubr.bf16.mxu0 %v13532_v59 }
 0x54b   : > { %3190 = vmatmul.mubr.bf16.gmra.mrb[80].mxu0 %v13534_v24 }
 0x54c   : > { %3197 = vmatprep.mubr.bf16.mxu0 %v13535_v14 }
 0x553   : > { %3198 = vmatmul.mubr.bf16.gmra.mrb[84].mxu0 %v13537_v0 }
 0x554   : > { %3205 = vmatprep.mubr.bf16.mxu0 %v13538_v1 }
 0x55b   : > { %3206 = vmatmul.mubr.bf16.gmra.mrb[88].mxu0 %v13540_v19  ;;  %v20618_v19 = vld [vmem:[#allocation82_spill] sm:$0xff] }
 0x55c   : > { %3213 = vmatprep.mubr.bf16.mxu0 %v13541_v6 }
 0x563   : > { %3214 = vmatmul.mubr.bf16.gmra.mrb[92].mxu0 %v13543_v53 }
 0x564   : > { %3221 = vmatprep.mubr.bf16.mxu0 %v13544_v60  ;;  %v13564_v60 = vld [vmem:[%s20059_s3 + $0x404] ss:$8 sps:$4 sm:$0xff]  }
 0x565   : > { %3768 = vmatprep.mubr.bf16.mxu1 %v13564_v60 }
 0x56b   : > { %3222 = vmatmul.mubr.bf16.gmra.mrb[96].mxu0 %v13546_v30  ;;  %v20619_v30 = vld [vmem:[#allocation83_spill] sm:$0xff] }
 0x56c   : > { %3229 = vmatprep.mubr.bf16.mxu0 %v13547_v61 }
 0x573   : > { %3230 = vmatmul.mubr.bf16.gmra.mrb[100].mxu0 %v13549_v58 }
 0x574   : > { %3237 = vmatprep.mubr.bf16.mxu0 %v13550_v13 }
 0x57b   : > { %3238 = vmatmul.mubr.bf16.gmra.mrb[104].mxu0 %v13552_v50 }
 0x57c   : > { %3245 = vmatprep.mubr.bf16.mxu0 %v13553_v16 }
 0x583   : > { %3246 = vmatmul.mubr.bf16.gmra.mrb[108].mxu0 %v13555_v40 }
 0x584   : > { %3253 = vmatprep.mubr.bf16.mxu0 %v13556_v20 }
 0x58b   : > { %3254 = vmatmul.mubr.bf16.gmra.mrb[112].mxu0 %v13558_v51 }
 0x58c   : > { %3261 = vmatprep.mubr.bf16.mxu0 %v13559_v62 }
 0x593   : > { %3262 = vmatmul.mubr.bf16.gmra.mrb[116].mxu0 %v13561_v4  ;;  %v20620_v4 = vld [vmem:[#allocation86_spill] sm:$0xff] }
 0x5ee   : > { %v12164_v59 = vpop.f32.mrb[56].mxu0 }
 0x5ef   : > { %v12165_v24 = vpop.f32.mrb[57].mxu0 }
 0x5f0   : > { %v12166_v14 = vadd.f32 %v12165_v24, %v12164_v59  ;;  %v12167_v0 = vpop.f32.mrb[58].mxu0 }
 0x5f1   : > { %v12168_v1 = vpop.f32.mrb[59].mxu0 }
 0x5f2   : > { %v3144_v6 = vadd.f32 %v12166_v14, %v20618_v19  ;;  %v12169_v53 = vadd.f32 %v12168_v1, %v12167_v0  ;;  %v20621_v14 = vld [vmem:[#allocation87_spill] sm:$0xff] }
 0x5f4   : > { %v3147_v61 = vadd.f32 %v12169_v53, %v20619_v30  ;;  %v17848_v58 = vmax.f32 %v3144_v6, 0.0 }
 0x5f6   : > { %v17850_v13 = vmax.f32 %v3147_v61, 0.0  ;;  %v12170_v50 = vpop.f32.mrb[60].mxu0 }
 0x5f7   : > { %v12171_v16 = vpop.f32.mrb[61].mxu0 }
 0x5f8   : > { %v12172_v40 = vadd.f32 %v12171_v16, %v12170_v50  ;;  %v12173_v20 = vpop.f32.mrb[62].mxu0  ;;  %v20622_v16 = vld [vmem:[#allocation90_spill] sm:$0xff] }
 0x5f9   : > { %v12174_v62 = vpop.f32.mrb[63].mxu0 }
 0x5fa   : > { %v3152_v59 = vadd.f32 %v12172_v40, %v20620_v4  ;;  %v12175_v24 = vadd.f32 %v12174_v62, %v12173_v20 }
 0x5fc   : > { %v3155_v0 = vadd.f32 %v12175_v24, %v20621_v14  ;;  %v17856_v1 = vmax.f32 %v3152_v59, 0.0 }
 0x5fe   : > { %v17858_v19 = vmax.f32 %v3155_v0, 0.0  ;;  %v12176_v6 = vpop.f32.mrb[64].mxu0 }
 0x5ff   : > { %v12177_v53 = vpop.f32.mrb[65].mxu0 }
 0x600   : > { %v12178_v60 = vadd.f32 %v12177_v53, %v12176_v6  ;;  %v12179_v30 = vpop.f32.mrb[66].mxu0  ;;  %v20624_v53 = vld [vmem:[#allocation94_spill] sm:$0xff] }
 0x601   : > { %v12180_v50 = vpop.f32.mrb[67].mxu0 }
 0x602   : > { %v3160_v51 = vadd.f32 %v12178_v60, %v20622_v16  ;;  %v12181_v34 = vadd.f32 %v12180_v50, %v12179_v30 }
 0x604   : > { %v3163_v40 = vadd.f32 %v12181_v34, %v20623_v39  ;;  %v17864_v20 = vmax.f32 %v3160_v51, 0.0 }
 0x606   : > { %v17866_v62 = vmax.f32 %v3163_v40, 0.0  ;;  %v12182_v4 = vpop.f32.mrb[68].mxu0 }
 0x607   : > { %v12183_v59 = vpop.f32.mrb[69].mxu0 }
 0x608   : > { %v12184_v24 = vadd.f32 %v12183_v59, %v12182_v4  ;;  %v12185_v14 = vpop.f32.mrb[70].mxu0  ;;  %v20626_v59 = vld [vmem:[#allocation98_spill] sm:$0xff] }
 0x609   : > { %v12186_v6 = vpop.f32.mrb[71].mxu0 }
 0x60a   : > { %v3168_v61 = vadd.f32 %v12184_v24, %v20624_v53  ;;  %v12187_v48 = vadd.f32 %v12186_v6, %v12185_v14 }
 0x60c   : > { %v3171_v60 = vadd.f32 %v12187_v48, %v20625_v22  ;;  %v17872_v30 = vmax.f32 %v3168_v61, 0.0 }
 0x60e   : > { %v17874_v34 = vmax.f32 %v3171_v60, 0.0  ;;  %v12188_v39 = vpop.f32.mrb[72].mxu0 }
 0x60f   : > { %v12189_v51 = vpop.f32.mrb[73].mxu0 }
 0x610   : > { %v12190_v50 = vadd.f32 %v12189_v51, %v12188_v39  ;;  %v12191_v16 = vpop.f32.mrb[74].mxu0  ;;  %v20628_v51 = vld [vmem:[#allocation102_spill] sm:$0xff] }
 0x611   : > { %v12192_v4 = vpop.f32.mrb[75].mxu0 }
 0x612   : > { %v3176_v0 = vadd.f32 %v12190_v50, %v20626_v59  ;;  %v12193_v8 = vadd.f32 %v12192_v4, %v12191_v16 }
 0x614   : > { %v3179_v24 = vadd.f32 %v12193_v8, %v20627_v41  ;;  %v17880_v14 = vmax.f32 %v3176_v0, 0.0 }
 0x616   : > { %v17882_v48 = vmax.f32 %v3179_v24, 0.0  ;;  %v12194_v22 = vpop.f32.mrb[76].mxu0 }
 0x617   : > { %v12195_v61 = vpop.f32.mrb[77].mxu0 }
 0x618   : > { %v12196_v6 = vadd.f32 %v12195_v61, %v12194_v22  ;;  %v12197_v53 = vpop.f32.mrb[78].mxu0  ;;  %v20630_v61 = vld [vmem:[#allocation106_spill] sm:$0xff] }
 0x619   : > { %v12198_v39 = vpop.f32.mrb[79].mxu0 }
 0x61a   : > { %v3184_v40 = vadd.f32 %v12196_v6, %v20628_v51  ;;  %v12199_v23 = vadd.f32 %v12198_v39, %v12197_v53 }
 0x61c   : > { %v3187_v50 = vadd.f32 %v12199_v23, %v20629_v46  ;;  %v17888_v16 = vmax.f32 %v3184_v40, 0.0 }
 0x61e   : > { %v17890_v8 = vmax.f32 %v3187_v50, 0.0  ;;  %v12200_v41 = vpop.f32.mrb[80].mxu0 }
 0x61f   : > { %v12201_v0 = vpop.f32.mrb[81].mxu0 }
 0x620   : > { %v12202_v4 = vadd.f32 %v12201_v0, %v12200_v41  ;;  %v12203_v59 = vpop.f32.mrb[82].mxu0  ;;  %v20632_v0 = vld [vmem:[#allocation110_spill] sm:$0xff] }
 0x621   : > { %v12204_v22 = vpop.f32.mrb[83].mxu0 }
 0x622   : > { %v3192_v60 = vadd.f32 %v12202_v4, %v20630_v61  ;;  %v12205_v49 = vadd.f32 %v12204_v22, %v12203_v59 }
 0x624   : > { %v3195_v6 = vadd.f32 %v12205_v49, %v20631_v18  ;;  %v17896_v53 = vmax.f32 %v3192_v60, 0.0 }
 0x626   : > { %v17898_v23 = vmax.f32 %v3195_v6, 0.0  ;;  %v12206_v46 = vpop.f32.mrb[84].mxu0 }
 0x627   : > { %v12207_v40 = vpop.f32.mrb[85].mxu0 }
 0x628   : > { %v12208_v39 = vadd.f32 %v12207_v40, %v12206_v46  ;;  %v12209_v51 = vpop.f32.mrb[86].mxu0  ;;  %v20634_v40 = vld [vmem:[#allocation80_spill] sm:$0xff] }
 0x629   : > { %v12210_v41 = vpop.f32.mrb[87].mxu0 }
 0x62a   : > { %v3200_v24 = vadd.f32 %v12208_v39, %v20632_v0  ;;  %v12211_v10 = vadd.f32 %v12210_v41, %v12209_v51 }
 0x62c   : > { %v3203_v4 = vadd.f32 %v12211_v10, %v20633_v42  ;;  %v17904_v59 = vmax.f32 %v3200_v24, 0.0 }
 0x62e   : > { %v17906_v49 = vmax.f32 %v3203_v4, 0.0  ;;  %v12212_v18 = vpop.f32.mrb[88].mxu0 }
 0x62f   : > { %v12213_v60 = vpop.f32.mrb[89].mxu0 }
 0x630   : > { %v12214_v22 = vadd.f32 %v12213_v60, %v12212_v18  ;;  %v12215_v61 = vpop.f32.mrb[90].mxu0  ;;  %v20637_v60 = vld [vmem:[#allocation84_spill] sm:$0xff] }
 0x631   : > { %v12216_v46 = vpop.f32.mrb[91].mxu0 }
 0x632   : > { %v3208_v50 = vadd.f32 %v12214_v22, %v20634_v40  ;;  %v12217_v44 = vadd.f32 %v12216_v46, %v12215_v61  ;;  %v20638_v22 = vpack.c.bf16 %v17850_v13, %v17848_v58 }
 0x634   : > { %v3211_v39 = vadd.f32 %v12217_v44, %v20635_v29  ;;  %v17912_v41 = vmax.f32 %v3208_v50, 0.0  ;;  %v20639_v44 = vld [vmem:[#allocation85_spill] sm:$0xff] }
 0x636   : > { %v12218_v51 = vpop.f32.mrb[92].mxu0  ;;  %v17914_v10 = vmax.f32 %v3211_v39, 0.0 }
 0x637   : > { %v12219_v42 = vpop.f32.mrb[93].mxu0 }
 0x638   : > { %20636 = vst [vmem:[#allocation48_spill] sm:$0xff] %v17914_v10  ;;  %v12220_v24 = vadd.f32 %v12219_v42, %v12218_v51  ;;  %v12221_v0 = vpop.f32.mrb[94].mxu0  ;;  %v3375_v4 = vpack.c.bf16 %v17914_v10, %v17912_v41 }
 0x639   : > { %v12222_v18 = vpop.f32.mrb[95].mxu0 }
 0x63a   : > { %v3216_v6 = vadd.f32 %v12220_v24, %v20637_v60  ;;  %v12223_v32 = vadd.f32 %v12222_v18, %v12221_v0  ;;  %12260 = vmatprep.subr.bf16.mxu1 %v3375_v4  ;;  %v20642_v0 = vld [vmem:[#allocation88_spill] sm:$0xff]  ;;  %v20643_v60 = vpack.c.bf16 %v17858_v19, %v17856_v1 }
 0x63b   : > { %12261 = vmatpush3.bf16.msra.mxu1 %v20638_v22 }
 0x63c   : > { %v3219_v29 = vadd.f32 %v12223_v32, %v20639_v44  ;;  %v17923_v61 = vmax.f32 %v3216_v6, 0.0  ;;  %v20644_v32 = vld [vmem:[#allocation89_spill] sm:$0xff] }
 0x63e   : > { %v12224_v50 = vpop.f32.mrb[96].mxu0  ;;  %20640 = vst [vmem:[#allocation49_spill] sm:$0xff] %v17923_v61  ;;  %v17925_v46 = vmax.f32 %v3219_v29, 0.0 }
 0x63f   : > { %v12225_v40 = vpop.f32.mrb[97].mxu0 }
 0x640   : > { %20641 = vst [vmem:[#allocation32_spill] sm:$0xff] %v17925_v46  ;;  %v12226_v39 = vadd.f32 %v12225_v40, %v12224_v50  ;;  %v12227_v51 = vpop.f32.mrb[98].mxu0  ;;  %v3376_v42 = vpack.c.bf16 %v17925_v46, %v17923_v61 }
 0x641   : > { %v12228_v24 = vpop.f32.mrb[99].mxu0 }
 0x642   : > { %v3224_v4 = vadd.f32 %v12226_v39, %v20642_v0  ;;  %v12229_v18 = vadd.f32 %v12228_v24, %v12227_v51  ;;  %12262 = vmatprep.subr.bf16.mxu1 %v3376_v42  ;;  %v20647_v51 = vld [vmem:[#allocation92_spill] sm:$0xff]  ;;  %v20648_v0 = vpack.c.bf16 %v17866_v62, %v17864_v20 }
 0x643   : > { %12263 = vmatpush3.bf16.msra.mxu1 %v20643_v60 }
 0x644   : > { %v3227_v6 = vadd.f32 %v12229_v18, %v20644_v32  ;;  %v17934_v44 = vmax.f32 %v3224_v4, 0.0  ;;  %v20649_v18 = vld [vmem:[#allocation93_spill] sm:$0xff] }
 0x646   : > { %v12230_v22 = vpop.f32.mrb[100].mxu0  ;;  %20645 = vst [vmem:[#allocation31_spill] sm:$0xff] %v17934_v44  ;;  %v17936_v29 = vmax.f32 %v3227_v6, 0.0 }
 0x647   : > { %v12231_v50 = vpop.f32.mrb[101].mxu0 }
 0x648   : > { %20646 = vst [vmem:[#allocation52_spill] sm:$0xff] %v17936_v29  ;;  %v12232_v40 = vadd.f32 %v12231_v50, %v12230_v22  ;;  %v12233_v9 = vpop.f32.mrb[102].mxu0  ;;  %v3377_v56 = vpack.c.bf16 %v17936_v29, %v17934_v44 }
 0x649   : > { %v12234_v39 = vpop.f32.mrb[103].mxu0 }
 0x64a   : > { %v3232_v42 = vadd.f32 %v12232_v40, %v20647_v51  ;;  %v12235_v24 = vadd.f32 %v12234_v39, %v12233_v9  ;;  %12264 = vmatprep.subr.bf16.mxu1 %v3377_v56  ;;  %v20652_v9 = vld [vmem:[#allocation96_spill] sm:$0xff]  ;;  %v20653_v51 = vpack.c.bf16 %v17874_v34, %v17872_v30 }
 0x64b   : > { %12265 = vmatpush3.bf16.msra.mxu1 %v20648_v0 }
 0x64c   : > { %v3235_v4 = vadd.f32 %v12235_v24, %v20649_v18  ;;  %v17945_v32 = vmax.f32 %v3232_v42, 0.0  ;;  %v20654_v24 = vld [vmem:[#allocation97_spill] sm:$0xff] }
 0x64e   : > { %v12236_v60 = vpop.f32.mrb[104].mxu0  ;;  %20650 = vst [vmem:[#allocation53_spill] sm:$0xff] %v17945_v32  ;;  %v17947_v6 = vmax.f32 %v3235_v4, 0.0 }
 0x64f   : > { %v12237_v22 = vpop.f32.mrb[105].mxu0 }
 0x650   : > { %20651 = vst [vmem:[#allocation33_spill] sm:$0xff] %v17947_v6  ;;  %v12238_v50 = vadd.f32 %v12237_v22, %v12236_v60  ;;  %v12239_v63 = vpop.f32.mrb[106].mxu0  ;;  %v3378_v17 = vpack.c.bf16 %v17947_v6, %v17945_v32 }
 0x651   : > { %v12240_v40 = vpop.f32.mrb[107].mxu0 }
 0x652   : > { %v3240_v56 = vadd.f32 %v12238_v50, %v20652_v9  ;;  %v12241_v39 = vadd.f32 %v12240_v40, %v12239_v63  ;;  %12266 = vmatprep.subr.bf16.mxu1 %v3378_v17  ;;  %v20657_v63 = vld [vmem:[#allocation100_spill] sm:$0xff]  ;;  %v20658_v9 = vpack.c.bf16 %v17882_v48, %v17880_v14 }
 0x653   : > { %12267 = vmatpush3.bf16.msra.mxu1 %v20653_v51 }
 0x654   : > { %v3243_v42 = vadd.f32 %v12241_v39, %v20654_v24  ;;  %v17956_v18 = vmax.f32 %v3240_v56, 0.0  ;;  %v20659_v39 = vld [vmem:[#allocation101_spill] sm:$0xff] }
 0x656   : > { %v12242_v0 = vpop.f32.mrb[108].mxu0  ;;  %20655 = vst [vmem:[#allocation34_spill] sm:$0xff] %v17956_v18  ;;  %v17958_v4 = vmax.f32 %v3243_v42, 0.0 }
 0x657   : > { %v12243_v60 = vpop.f32.mrb[109].mxu0 }
 0x658   : > { %20656 = vst [vmem:[#allocation56_spill] sm:$0xff] %v17958_v4  ;;  %v12244_v22 = vadd.f32 %v12243_v60, %v12242_v0  ;;  %v12245_v57 = vpop.f32.mrb[110].mxu0  ;;  %v3379_v5 = vpack.c.bf16 %v17958_v4, %v17956_v18 }
 0x659   : > { %v12246_v50 = vpop.f32.mrb[111].mxu0 }
 0x65a   : > { %v3248_v17 = vadd.f32 %v12244_v22, %v20657_v63  ;;  %v12247_v40 = vadd.f32 %v12246_v50, %v12245_v57  ;;  %12268 = vmatprep.subr.bf16.mxu1 %v3379_v5  ;;  %v20662_v57 = vld [vmem:[#allocation104_spill] sm:$0xff]  ;;  %v20663_v63 = vpack.c.bf16 %v17890_v8, %v17888_v16 }
 0x65b   : > { %12269 = vmatpush3.bf16.msra.mxu1 %v20658_v9 }
 0x65c   : > { %v3251_v56 = vadd.f32 %v12247_v40, %v20659_v39  ;;  %v17967_v24 = vmax.f32 %v3248_v17, 0.0  ;;  %v20664_v40 = vld [vmem:[#allocation105_spill] sm:$0xff] }
 0x65e   : > { %v12248_v51 = vpop.f32.mrb[112].mxu0  ;;  %20660 = vst [vmem:[#allocation57_spill] sm:$0xff] %v17967_v24  ;;  %v17969_v42 = vmax.f32 %v3251_v56, 0.0 }
 0x65f   : > { %v12249_v0 = vpop.f32.mrb[113].mxu0 }
 0x660   : > { %20661 = vst [vmem:[#allocation35_spill] sm:$0xff] %v17969_v42  ;;  %v12250_v60 = vadd.f32 %v12249_v0, %v12248_v51  ;;  %v12251_v15 = vpop.f32.mrb[114].mxu0  ;;  %v3380_v31 = vpack.c.bf16 %v17969_v42, %v17967_v24 }
 0x661   : > { %v12252_v22 = vpop.f32.mrb[115].mxu0 }
 0x662   : > { %v3256_v5 = vadd.f32 %v12250_v60, %v20662_v57  ;;  %v12253_v50 = vadd.f32 %v12252_v22, %v12251_v15  ;;  %12270 = vmatprep.subr.bf16.mxu1 %v3380_v31  ;;  %v20667_v15 = vld [vmem:[#allocation108_spill] sm:$0xff]  ;;  %v20668_v57 = vpack.c.bf16 %v17898_v23, %v17896_v53 }
 0x663   : > { %12271 = vmatpush3.bf16.msra.mxu1 %v20663_v63 }
 0x664   : > { %v3259_v17 = vadd.f32 %v12253_v50, %v20664_v40  ;;  %v17978_v39 = vmax.f32 %v3256_v5, 0.0  ;;  %v20669_v50 = vld [vmem:[#allocation109_spill] sm:$0xff] }
 0x666   : > { %v12254_v9 = vpop.f32.mrb[116].mxu0  ;;  %20665 = vst [vmem:[#allocation36_spill] sm:$0xff] %v17978_v39  ;;  %v17980_v56 = vmax.f32 %v3259_v17, 0.0 }
 0x667   : > { %v12255_v51 = vpop.f32.mrb[117].mxu0 }
 0x668   : > { %20666 = vst [vmem:[#allocation60_spill] sm:$0xff] %v17980_v56  ;;  %v12256_v0 = vadd.f32 %v12255_v51, %v12254_v9  ;;  %v12257_v55 = vpop.f32.mrb[118].mxu0  ;;  %v3381_v3 = vpack.c.bf16 %v17980_v56, %v17978_v39  ;;  %v13562_v9 = vld [vmem:[%s20059_s3 + $0x400] ss:$8 sps:$4 sm:$0xff]   ;;  %v13567_v51 = vld [vmem:[%s20059_s3 + $0x410] ss:$8 sps:$4 sm:$0xff]  }
 0x669   : > { %v12258_v60 = vpop.f32.mrb[119].mxu0 }
 0x66a   : > { %v3264_v31 = vadd.f32 %v12256_v0, %v20667_v15  ;;  %v12259_v22 = vadd.f32 %v12258_v60, %v12257_v55  ;;  %12272 = vmatprep.subr.bf16.mxu1 %v3381_v3  ;;  %v20672_v3 = vpack.c.bf16 %v17906_v49, %v17904_v59  ;;  %v13565_v55 = vld [vmem:[%s20059_s3 + $0x414] ss:$8 sps:$4 sm:$0xff]   ;;  %v13568_v0 = vld [vmem:[%s20059_s3 + $0x424] ss:$8 sps:$4 sm:$0xff]   ;;  %v13570_v60 = vld [vmem:[%s20059_s3 + $0x420] ss:$8 sps:$4 sm:$0xff]  }
 0x66b   : > { %12273 = vmatpush3.bf16.msra.mxu1 %v20668_v57  ;;  %v13571_v15 = vld [vmem:[%s20059_s3 + $0x434] ss:$8 sps:$4 sm:$0xff]   ;;  %v13576_v57 = vld [vmem:[%s20059_s3 + $0x440] ss:$8 sps:$4 sm:$0xff]  }
 0x66c   : > { %v3267_v5 = vadd.f32 %v12259_v22, %v20669_v50  ;;  %v17989_v63 = vmax.f32 %v3264_v31, 0.0  ;;  %v13573_v31 = vld [vmem:[%s20059_s3 + $0x430] ss:$8 sps:$4 sm:$0xff]   ;;  %v13574_v22 = vld [vmem:[%s20059_s3 + $0x444] ss:$8 sps:$4 sm:$0xff]  }
 0x66d   : > { %v13577_v50 = vld [vmem:[%s20059_s3 + $0x454] ss:$8 sps:$4 sm:$0xff]  }
 0x66e   : > { %20670 = vst [vmem:[#allocation61_spill] sm:$0xff] %v17989_v63  ;;  %v17991_v40 = vmax.f32 %v3267_v5, 0.0  ;;  %v13579_v5 = vld [vmem:[%s20059_s3 + $0x450] ss:$8 sps:$4 sm:$0xff]  }
 0x670   : > { %20671 = vst [vmem:[#allocation37_spill] sm:$0xff] %v17991_v40  ;;  %v3382_v17 = vpack.c.bf16 %v17991_v40, %v17989_v63 }
 0x672   : > { %12274 = vmatprep.subr.bf16.mxu1 %v3382_v17  ;;  %v13580_v17 = vld [vmem:[%s20059_s3 + $0x464] ss:$8 sps:$4 sm:$0xff]  }
 0x673   : > { %12275 = vmatpush3.bf16.msra.mxu1 %v20672_v3  ;;  %v13583_v3 = vld [vmem:[%s20059_s3 + $0x474] ss:$8 sps:$4 sm:$0xff]  }
 0x676   : > { %3769 = vmatmul.mubr.bf16.vlgmr.msra.gmra.mrb[168].mxu1 %v13562_v9  ;;  %v13582_v9 = vld [vmem:[%s20059_s3 + $0x460] ss:$8 sps:$4 sm:$0xff]  }
 0x677   : > { %3776 = vmatprep.mubr.bf16.mxu1 %v13565_v55  ;;  %v13585_v55 = vld [vmem:[%s20059_s3 + $0x470] ss:$8 sps:$4 sm:$0xff]  }
 0x67e   : > { %3777 = vmatmul.mubr.bf16.gmra.mrb[172].mxu1 %v13567_v51  ;;  %v13586_v51 = vld [vmem:[%s20059_s3 + $0x484] ss:$8 sps:$4 sm:$0xff]  }
 0x67f   : > { %3784 = vmatprep.mubr.bf16.mxu1 %v13568_v0  ;;  %v13588_v0 = vld [vmem:[%s20059_s3 + $0x480] ss:$8 sps:$4 sm:$0xff]  }
 0x686   : > { %3785 = vmatmul.mubr.bf16.gmra.mrb[176].mxu1 %v13570_v60  ;;  %v13589_v60 = vld [vmem:[%s20059_s3 + $0x494] ss:$8 sps:$4 sm:$0xff]  }
 0x687   : > { %3792 = vmatprep.mubr.bf16.mxu1 %v13571_v15  ;;  %v13591_v15 = vld [vmem:[%s20059_s3 + $0x490] ss:$8 sps:$4 sm:$0xff]  }
 0x68e   : > { %3793 = vmatmul.mubr.bf16.gmra.mrb[180].mxu1 %v13573_v31  ;;  %v13592_v31 = vld [vmem:[%s20059_s3 + $0x4a4] ss:$8 sps:$4 sm:$0xff]  }
 0x68f   : > { %3800 = vmatprep.mubr.bf16.mxu1 %v13574_v22  ;;  %v13594_v22 = vld [vmem:[%s20059_s3 + $0x4a0] ss:$8 sps:$4 sm:$0xff]  }
 0x696   : > { %3801 = vmatmul.mubr.bf16.gmra.mrb[184].mxu1 %v13576_v57  ;;  %v13595_v57 = vld [vmem:[%s20059_s3 + $0x4b4] ss:$8 sps:$4 sm:$0xff]  }
 0x697   : > { %3808 = vmatprep.mubr.bf16.mxu1 %v13577_v50  ;;  %v13597_v50 = vld [vmem:[%s20059_s3 + $0x4b0] ss:$8 sps:$4 sm:$0xff]  }
 0x69e   : > { %3809 = vmatmul.mubr.bf16.gmra.mrb[188].mxu1 %v13579_v5  ;;  %v13598_v5 = vld [vmem:[%s20059_s3 + $0x4c4] ss:$8 sps:$4 sm:$0xff]  }
 0x69f   : > { %3816 = vmatprep.mubr.bf16.mxu1 %v13580_v17  ;;  %v13600_v17 = vld [vmem:[%s20059_s3 + $0x4c0] ss:$8 sps:$4 sm:$0xff]  }
 0x6a6   : > { %3817 = vmatmul.mubr.bf16.gmra.mrb[192].mxu1 %v13582_v9  ;;  %v13601_v9 = vld [vmem:[%s20059_s3 + $0x4d4] ss:$8 sps:$4 sm:$0xff]  }
 0x6a7   : > { %3824 = vmatprep.mubr.bf16.mxu1 %v13583_v3  ;;  %v13603_v3 = vld [vmem:[%s20059_s3 + $0x4d0] ss:$8 sps:$4 sm:$0xff]  }
 0x6ae   : > { %3825 = vmatmul.mubr.bf16.gmra.mrb[196].mxu1 %v13585_v55  ;;  %v13604_v55 = vld [vmem:[%s20059_s3 + $0x4e4] ss:$8 sps:$4 sm:$0xff]  }
 0x6af   : > { %3832 = vmatprep.mubr.bf16.mxu1 %v13586_v51  ;;  %v13606_v51 = vld [vmem:[%s20059_s3 + $0x4e0] ss:$8 sps:$4 sm:$0xff]  }
 0x6b6   : > { %3833 = vmatmul.mubr.bf16.gmra.mrb[200].mxu1 %v13588_v0  ;;  %v13607_v0 = vld [vmem:[%s20059_s3 + $0x4f4] ss:$8 sps:$4 sm:$0xff]  }
 0x6b7   : > { %3840 = vmatprep.mubr.bf16.mxu1 %v13589_v60  ;;  %v13609_v60 = vld [vmem:[%s20059_s3 + $0x4f0] ss:$8 sps:$4 sm:$0xff]  }
 0x6be   : > { %3841 = vmatmul.mubr.bf16.gmra.mrb[204].mxu1 %v13591_v15 }
 0x6bf   : > { %3848 = vmatprep.mubr.bf16.mxu1 %v13592_v31 }
 0x6c6   : > { %3849 = vmatmul.mubr.bf16.gmra.mrb[208].mxu1 %v13594_v22 }
 0x6c7   : > { %3856 = vmatprep.mubr.bf16.mxu1 %v13595_v57 }
 0x6ce   : > { %3857 = vmatmul.mubr.bf16.gmra.mrb[212].mxu1 %v13597_v50 }
 0x6cf   : > { %3864 = vmatprep.mubr.bf16.mxu1 %v13598_v5  ;;  %v20673_v5 = vld [vmem:[#allocation114_spill] sm:$0xff] }
 0x6d6   : > { %3865 = vmatmul.mubr.bf16.gmra.mrb[216].mxu1 %v13600_v17 }
 0x6d7   : > { %3872 = vmatprep.mubr.bf16.mxu1 %v13601_v9 }
 0x6de   : > { %3873 = vmatmul.mubr.bf16.gmra.mrb[220].mxu1 %v13603_v3  ;;  %v13612_v3 = vld [vmem:[%s20059_s3 + $0x504] ss:$8 sps:$4 sm:$0xff]  }
 0x6df   : > { %3880 = vmatprep.mubr.bf16.mxu1 %v13604_v55  ;;  %v20674_v55 = vld [vmem:[#allocation115_spill] sm:$0xff]  ;;  %4363 = vmatprep.mubr.bf16.mxu0 %v13612_v3 }
 0x6e6   : > { %3881 = vmatmul.mubr.bf16.gmra.mrb[224].mxu1 %v13606_v51 }
 0x6e7   : > { %3888 = vmatprep.mubr.bf16.mxu1 %v13607_v0 }
 0x6ee   : > { %3889 = vmatmul.mubr.bf16.gmra.mrb[228].mxu1 %v13609_v60 }
 0x749   : > { %v12276_v15 = vpop.f32.mrb[168].mxu1 }
 0x74a   : > { %v12277_v31 = vpop.f32.mrb[169].mxu1 }
 0x74b   : > { %v12278_v22 = vadd.f32 %v12277_v31, %v12276_v15  ;;  %v12279_v57 = vpop.f32.mrb[170].mxu1  ;;  %v20675_v31 = vld [vmem:[#allocation118_spill] sm:$0xff] }
 0x74c   : > { %v12280_v50 = vpop.f32.mrb[171].mxu1 }
 0x74d   : > { %v3771_v17 = vadd.f32 %v12278_v22, %v20673_v5  ;;  %v12281_v9 = vadd.f32 %v12280_v50, %v12279_v57  ;;  %v20676_v57 = vld [vmem:[#allocation119_spill] sm:$0xff] }
 0x74f   : > { %v3774_v51 = vadd.f32 %v12281_v9, %v20674_v55  ;;  %v3897_v0 = vmax.f32 %v3771_v17, 0.0 }
 0x751   : > { %v3898_v33 = vmax.f32 %v3774_v51, 0.0  ;;  %v12282_v52 = vpop.f32.mrb[172].mxu1  ;;  %v20677_v51 = vld [vmem:[#allocation122_spill] sm:$0xff] }
 0x752   : > { %v12283_v40 = vpop.f32.mrb[173].mxu1 }
 0x753   : > { %v12284_v60 = vadd.f32 %v12283_v40, %v12282_v52  ;;  %v12285_v63 = vpop.f32.mrb[174].mxu1  ;;  %v18096_v56 = vpack.c.bf16 %v3898_v33, %v3897_v0  ;;  %v20678_v33 = vld [vmem:[#allocation123_spill] sm:$0xff] }
 0x754   : > { %v12286_v15 = vpop.f32.mrb[175].mxu1 }
 0x755   : > { %v3779_v39 = vadd.f32 %v12284_v60, %v20675_v31  ;;  %v12287_v22 = vadd.f32 %v12286_v15, %v12285_v63 }
 0x757   : > { %v3782_v50 = vadd.f32 %v12287_v22, %v20676_v57  ;;  %v3899_v5 = vmax.f32 %v3779_v39, 0.0  ;;  %v20679_v57 = vld [vmem:[#allocation126_spill] sm:$0xff] }
 0x759   : > { %v3900_v42 = vmax.f32 %v3782_v50, 0.0  ;;  %v12288_v24 = vpop.f32.mrb[176].mxu1 }
 0x75a   : > { %v12289_v4 = vpop.f32.mrb[177].mxu1 }
 0x75b   : > { %v12290_v9 = vadd.f32 %v12289_v4, %v12288_v24  ;;  %v12291_v3 = vpop.f32.mrb[178].mxu1  ;;  %v18100_v17 = vpack.c.bf16 %v3900_v42, %v3899_v5  ;;  %v20680_v42 = vld [vmem:[#allocation127_spill] sm:$0xff] }
 0x75c   : > { %v12292_v55 = vpop.f32.mrb[179].mxu1 }
 0x75d   : > { %v3787_v52 = vadd.f32 %v12290_v9, %v20677_v51  ;;  %v12293_v40 = vadd.f32 %v12292_v55, %v12291_v3 }
 0x75f   : > { %v3790_v0 = vadd.f32 %v12293_v40, %v20678_v33  ;;  %v3901_v18 = vmax.f32 %v3787_v52, 0.0  ;;  %v20681_v33 = vld [vmem:[#allocation130_spill] sm:$0xff] }
 0x761   : > { %v3902_v6 = vmax.f32 %v3790_v0, 0.0  ;;  %v12294_v60 = vpop.f32.mrb[180].mxu1 }
 0x762   : > { %v12295_v63 = vpop.f32.mrb[181].mxu1 }
 0x763   : > { %v12296_v15 = vadd.f32 %v12295_v63, %v12294_v60  ;;  %v12297_v31 = vpop.f32.mrb[182].mxu1  ;;  %v18104_v39 = vpack.c.bf16 %v3902_v6, %v3901_v18  ;;  %v20682_v6 = vld [vmem:[#allocation131_spill] sm:$0xff] }
 0x764   : > { %v12298_v22 = vpop.f32.mrb[183].mxu1 }
 0x765   : > { %v3795_v4 = vadd.f32 %v12296_v15, %v20679_v57  ;;  %v12299_v24 = vadd.f32 %v12298_v22, %v12297_v31 }
 0x767   : > { %v3798_v50 = vadd.f32 %v12299_v24, %v20680_v42  ;;  %v3903_v5 = vmax.f32 %v3795_v4, 0.0  ;;  %v20683_v42 = vld [vmem:[#allocation134_spill] sm:$0xff] }
 0x769   : > { %v3904_v32 = vmax.f32 %v3798_v50, 0.0  ;;  %v12300_v9 = vpop.f32.mrb[184].mxu1 }
 0x76a   : > { %v12301_v3 = vpop.f32.mrb[185].mxu1 }
 0x76b   : > { %v12302_v55 = vadd.f32 %v12301_v3, %v12300_v9  ;;  %v12303_v51 = vpop.f32.mrb[186].mxu1  ;;  %v18108_v52 = vpack.c.bf16 %v3904_v32, %v3903_v5  ;;  %v20684_v32 = vld [vmem:[#allocation135_spill] sm:$0xff] }
 0x76c   : > { %v12304_v40 = vpop.f32.mrb[187].mxu1 }
 0x76d   : > { %v3803_v0 = vadd.f32 %v12302_v55, %v20681_v33  ;;  %v12305_v60 = vadd.f32 %v12304_v40, %v12303_v51 }
 0x76f   : > { %v3806_v18 = vadd.f32 %v12305_v60, %v20682_v6  ;;  %v3905_v63 = vmax.f32 %v3803_v0, 0.0  ;;  %v20685_v6 = vld [vmem:[#allocation138_spill] sm:$0xff] }
 0x771   : > { %v3906_v29 = vmax.f32 %v3806_v18, 0.0  ;;  %v12306_v15 = vpop.f32.mrb[188].mxu1 }
 0x772   : > { %v12307_v31 = vpop.f32.mrb[189].mxu1 }
 0x773   : > { %v12308_v22 = vadd.f32 %v12307_v31, %v12306_v15  ;;  %v12309_v57 = vpop.f32.mrb[190].mxu1  ;;  %v18112_v4 = vpack.c.bf16 %v3906_v29, %v3905_v63  ;;  %v20686_v29 = vld [vmem:[#allocation139_spill] sm:$0xff] }
 0x774   : > { %v12310_v24 = vpop.f32.mrb[191].mxu1 }
 0x775   : > { %v3811_v50 = vadd.f32 %v12308_v22, %v20683_v42  ;;  %v12311_v9 = vadd.f32 %v12310_v24, %v12309_v57 }
 0x777   : > { %v3814_v5 = vadd.f32 %v12311_v9, %v20684_v32  ;;  %v3907_v3 = vmax.f32 %v3811_v50, 0.0  ;;  %v20687_v32 = vld [vmem:[#allocation142_spill] sm:$0xff] }
 0x779   : > { %v3908_v44 = vmax.f32 %v3814_v5, 0.0  ;;  %v12312_v55 = vpop.f32.mrb[192].mxu1 }
 0x77a   : > { %v12313_v51 = vpop.f32.mrb[193].mxu1 }
 0x77b   : > { %v12314_v40 = vadd.f32 %v12313_v51, %v12312_v55  ;;  %v12315_v33 = vpop.f32.mrb[194].mxu1  ;;  %v18116_v0 = vpack.c.bf16 %v3908_v44, %v3907_v3  ;;  %v20688_v44 = vld [vmem:[#allocation143_spill] sm:$0xff] }
 0x77c   : > { %v12316_v60 = vpop.f32.mrb[195].mxu1 }
 0x77d   : > { %v3819_v18 = vadd.f32 %v12314_v40, %v20685_v6  ;;  %v12317_v15 = vadd.f32 %v12316_v60, %v12315_v33 }
 0x77f   : > { %v3822_v63 = vadd.f32 %v12317_v15, %v20686_v29  ;;  %v3909_v31 = vmax.f32 %v3819_v18, 0.0  ;;  %v20689_v29 = vld [vmem:[#allocation112_spill] sm:$0xff] }
 0x781   : > { %v3910_v46 = vmax.f32 %v3822_v63, 0.0  ;;  %v12318_v22 = vpop.f32.mrb[196].mxu1 }
 0x782   : > { %v12319_v57 = vpop.f32.mrb[197].mxu1 }
 0x783   : > { %v12320_v24 = vadd.f32 %v12319_v57, %v12318_v22  ;;  %v12321_v42 = vpop.f32.mrb[198].mxu1  ;;  %v18120_v50 = vpack.c.bf16 %v3910_v46, %v3909_v31  ;;  %v20690_v46 = vld [vmem:[#allocation113_spill] sm:$0xff] }
 0x784   : > { %v12322_v9 = vpop.f32.mrb[199].mxu1 }
 0x785   : > { %v3827_v5 = vadd.f32 %v12320_v24, %v20687_v32  ;;  %v12323_v55 = vadd.f32 %v12322_v9, %v12321_v42 }
 0x787   : > { %v3830_v3 = vadd.f32 %v12323_v55, %v20688_v44  ;;  %v3911_v51 = vmax.f32 %v3827_v5, 0.0  ;;  %v20691_v44 = vld [vmem:[#allocation116_spill] sm:$0xff] }
 0x789   : > { %v3912_v61 = vmax.f32 %v3830_v3, 0.0  ;;  %v12324_v40 = vpop.f32.mrb[200].mxu1 }
 0x78a   : > { %v12325_v33 = vpop.f32.mrb[201].mxu1 }
 0x78b   : > { %v12326_v60 = vadd.f32 %v12325_v33, %v12324_v40  ;;  %v12327_v6 = vpop.f32.mrb[202].mxu1  ;;  %v18124_v18 = vpack.c.bf16 %v3912_v61, %v3911_v51  ;;  %v20692_v61 = vld [vmem:[#allocation117_spill] sm:$0xff] }
 0x78c   : > { %v12328_v15 = vpop.f32.mrb[203].mxu1 }
 0x78d   : > { %v3835_v63 = vadd.f32 %v12326_v60, %v20689_v29  ;;  %v12329_v22 = vadd.f32 %v12328_v15, %v12327_v6 }
 0x78f   : > { %v3838_v31 = vadd.f32 %v12329_v22, %v20690_v46  ;;  %v3913_v10 = vmax.f32 %v3835_v63, 0.0 }
 0x791   : > { %v12330_v57 = vpop.f32.mrb[204].mxu1  ;;  %v3914_v24 = vmax.f32 %v3838_v31, 0.0  ;;  %v20693_v31 = vld [vmem:[#allocation120_spill] sm:$0xff] }
 0x792   : > { %v12331_v42 = vpop.f32.mrb[205].mxu1 }
 0x793   : > { %v12332_v9 = vadd.f32 %v12331_v42, %v12330_v57  ;;  %v12333_v32 = vpop.f32.mrb[206].mxu1  ;;  %v3970_v5 = vpack.c.bf16 %v3914_v24, %v3913_v10  ;;  %v20694_v24 = vld [vmem:[#allocation121_spill] sm:$0xff] }
 0x794   : > { %v12334_v55 = vpop.f32.mrb[207].mxu1 }
 0x795   : > { %v3843_v3 = vadd.f32 %v12332_v9, %v20691_v44  ;;  %v12335_v40 = vadd.f32 %v12334_v55, %v12333_v32  ;;  %12372 = vmatprep.subr.bf16.mxu0 %v3970_v5 }
 0x796   : > { %12373 = vmatpush3.bf16.msra.mxu0 %v18096_v56 }
 0x797   : > { %v3846_v51 = vadd.f32 %v12335_v40, %v20692_v61  ;;  %v3915_v60 = vmax.f32 %v3843_v3, 0.0  ;;  %v20695_v61 = vld [vmem:[#allocation124_spill] sm:$0xff] }
 0x799   : > { %v12336_v33 = vpop.f32.mrb[208].mxu1  ;;  %v3916_v6 = vmax.f32 %v3846_v51, 0.0 }
 0x79a   : > { %v12337_v15 = vpop.f32.mrb[209].mxu1 }
 0x79b   : > { %v12338_v29 = vadd.f32 %v12337_v15, %v12336_v33  ;;  %v12339_v63 = vpop.f32.mrb[210].mxu1  ;;  %v3971_v22 = vpack.c.bf16 %v3916_v6, %v3915_v60  ;;  %v20696_v60 = vld [vmem:[#allocation125_spill] sm:$0xff] }
 0x79c   : > { %v12340_v46 = vpop.f32.mrb[211].mxu1 }
 0x79d   : > { %v3851_v57 = vadd.f32 %v12338_v29, %v20693_v31  ;;  %v12341_v10 = vadd.f32 %v12340_v46, %v12339_v63  ;;  %12374 = vmatprep.subr.bf16.mxu0 %v3971_v22 }
 0x79e   : > { %12375 = vmatpush3.bf16.msra.mxu0 %v18100_v17 }
 0x79f   : > { %v3854_v42 = vadd.f32 %v12341_v10, %v20694_v24  ;;  %v3917_v56 = vmax.f32 %v3851_v57, 0.0  ;;  %v20697_v10 = vld [vmem:[#allocation128_spill] sm:$0xff] }
 0x7a1   : > { %v12342_v9 = vpop.f32.mrb[212].mxu1  ;;  %v3918_v32 = vmax.f32 %v3854_v42, 0.0 }
 0x7a2   : > { %v12343_v5 = vpop.f32.mrb[213].mxu1 }
 0x7a3   : > { %v12344_v55 = vadd.f32 %v12343_v5, %v12342_v9  ;;  %v12345_v44 = vpop.f32.mrb[214].mxu1  ;;  %v3972_v3 = vpack.c.bf16 %v3918_v32, %v3917_v56  ;;  %v20698_v9 = vld [vmem:[#allocation129_spill] sm:$0xff] }
 0x7a4   : > { %v12346_v40 = vpop.f32.mrb[215].mxu1 }
 0x7a5   : > { %v3859_v51 = vadd.f32 %v12344_v55, %v20695_v61  ;;  %v12347_v33 = vadd.f32 %v12346_v40, %v12345_v44  ;;  %12376 = vmatprep.subr.bf16.mxu0 %v3972_v3 }
 0x7a6   : > { %12377 = vmatpush3.bf16.msra.mxu0 %v18104_v39 }
 0x7a7   : > { %v3862_v6 = vadd.f32 %v12347_v33, %v20696_v60  ;;  %v3919_v17 = vmax.f32 %v3859_v51, 0.0  ;;  %v20699_v51 = vld [vmem:[#allocation132_spill] sm:$0xff] }
 0x7a9   : > { %v12348_v15 = vpop.f32.mrb[216].mxu1  ;;  %v3920_v29 = vmax.f32 %v3862_v6, 0.0  ;;  %v20700_v6 = vld [vmem:[#allocation133_spill] sm:$0xff] }
 0x7aa   : > { %v12349_v63 = vpop.f32.mrb[217].mxu1 }
 0x7ab   : > { %v12350_v22 = vadd.f32 %v12349_v63, %v12348_v15  ;;  %v12351_v46 = vpop.f32.mrb[218].mxu1  ;;  %v3973_v31 = vpack.c.bf16 %v3920_v29, %v3919_v17 }
 0x7ac   : > { %v12352_v57 = vpop.f32.mrb[219].mxu1 }
 0x7ad   : > { %v3867_v24 = vadd.f32 %v12350_v22, %v20697_v10  ;;  %v12353_v42 = vadd.f32 %v12352_v57, %v12351_v46  ;;  %12378 = vmatprep.subr.bf16.mxu0 %v3973_v31  ;;  %v20701_v10 = vld [vmem:[#allocation136_spill] sm:$0xff] }
 0x7ae   : > { %12379 = vmatpush3.bf16.msra.mxu0 %v18108_v52 }
 0x7af   : > { %v3870_v56 = vadd.f32 %v12353_v42, %v20698_v9  ;;  %v3921_v39 = vmax.f32 %v3867_v24, 0.0  ;;  %v20702_v9 = vld [vmem:[#allocation137_spill] sm:$0xff] }
 0x7b1   : > { %v12354_v32 = vpop.f32.mrb[220].mxu1  ;;  %v3922_v5 = vmax.f32 %v3870_v56, 0.0 }
 0x7b2   : > { %v12355_v55 = vpop.f32.mrb[221].mxu1 }
 0x7b3   : > { %v12356_v44 = vadd.f32 %v12355_v55, %v12354_v32  ;;  %v12357_v3 = vpop.f32.mrb[222].mxu1  ;;  %v3974_v40 = vpack.c.bf16 %v3922_v5, %v3921_v39 }
 0x7b4   : > { %v12358_v61 = vpop.f32.mrb[223].mxu1 }
 0x7b5   : > { %v3875_v33 = vadd.f32 %v12356_v44, %v20699_v51  ;;  %v12359_v60 = vadd.f32 %v12358_v61, %v12357_v3  ;;  %12380 = vmatprep.subr.bf16.mxu0 %v3974_v40  ;;  %v20703_v61 = vld [vmem:[#allocation140_spill] sm:$0xff] }
 0x7b6   : > { %12381 = vmatpush3.bf16.msra.mxu0 %v18112_v4 }
 0x7b7   : > { %v3878_v15 = vadd.f32 %v12359_v60, %v20700_v6  ;;  %v3923_v52 = vmax.f32 %v3875_v33, 0.0  ;;  %v20704_v60 = vld [vmem:[#allocation141_spill] sm:$0xff] }
 0x7b9   : > { %v12360_v17 = vpop.f32.mrb[224].mxu1  ;;  %v3924_v29 = vmax.f32 %v3878_v15, 0.0 }
 0x7ba   : > { %v12361_v63 = vpop.f32.mrb[225].mxu1 }
 0x7bb   : > { %v12362_v22 = vadd.f32 %v12361_v63, %v12360_v17  ;;  %v12363_v46 = vpop.f32.mrb[226].mxu1  ;;  %v3975_v31 = vpack.c.bf16 %v3924_v29, %v3923_v52  ;;  %v13610_v52 = vld [vmem:[%s20059_s3 + $0x500] ss:$8 sps:$4 sm:$0xff]   ;;  %v13613_v29 = vld [vmem:[%s20059_s3 + $0x514] ss:$8 sps:$4 sm:$0xff]  }
 0x7bc   : > { %v12364_v57 = vpop.f32.mrb[227].mxu1  ;;  %v13616_v63 = vld [vmem:[%s20059_s3 + $0x524] ss:$8 sps:$4 sm:$0xff]  }
 0x7bd   : > { %v3883_v24 = vadd.f32 %v12362_v22, %v20701_v10  ;;  %v12365_v42 = vadd.f32 %v12364_v57, %v12363_v46  ;;  %12382 = vmatprep.subr.bf16.mxu0 %v3975_v31  ;;  %v13619_v22 = vld [vmem:[%s20059_s3 + $0x534] ss:$8 sps:$4 sm:$0xff]   ;;  %v13621_v46 = vld [vmem:[%s20059_s3 + $0x530] ss:$8 sps:$4 sm:$0xff]   ;;  %v13622_v31 = vld [vmem:[%s20059_s3 + $0x544] ss:$8 sps:$4 sm:$0xff]  }
 0x7be   : > { %12383 = vmatpush3.bf16.msra.mxu0 %v18116_v0  ;;  %v13624_v57 = vld [vmem:[%s20059_s3 + $0x540] ss:$8 sps:$4 sm:$0xff]   ;;  %v13625_v10 = vld [vmem:[%s20059_s3 + $0x554] ss:$8 sps:$4 sm:$0xff]  }
 0x7bf   : > { %v3886_v56 = vadd.f32 %v12365_v42, %v20702_v9  ;;  %v3925_v4 = vmax.f32 %v3883_v24, 0.0  ;;  %v13627_v24 = vld [vmem:[%s20059_s3 + $0x550] ss:$8 sps:$4 sm:$0xff]   ;;  %v13628_v42 = vld [vmem:[%s20059_s3 + $0x564] ss:$8 sps:$4 sm:$0xff]  }
 0x7c0   : > { %v13630_v9 = vld [vmem:[%s20059_s3 + $0x560] ss:$8 sps:$4 sm:$0xff]  }
 0x7c1   : > { %v12366_v32 = vpop.f32.mrb[228].mxu1  ;;  %v3926_v39 = vmax.f32 %v3886_v56, 0.0  ;;  %v13631_v56 = vld [vmem:[%s20059_s3 + $0x574] ss:$8 sps:$4 sm:$0xff]  }
 0x7c2   : > { %v12367_v5 = vpop.f32.mrb[229].mxu1 }
 0x7c3   : > { %v12368_v55 = vadd.f32 %v12367_v5, %v12366_v32  ;;  %v12369_v44 = vpop.f32.mrb[230].mxu1  ;;  %v3976_v3 = vpack.c.bf16 %v3926_v39, %v3925_v4  ;;  %v13633_v32 = vld [vmem:[%s20059_s3 + $0x570] ss:$8 sps:$4 sm:$0xff]   ;;  %v13634_v4 = vld [vmem:[%s20059_s3 + $0x584] ss:$8 sps:$4 sm:$0xff]  }
 0x7c4   : > { %v12370_v40 = vpop.f32.mrb[231].mxu1  ;;  %v13636_v39 = vld [vmem:[%s20059_s3 + $0x580] ss:$8 sps:$4 sm:$0xff]   ;;  %v13637_v5 = vld [vmem:[%s20059_s3 + $0x594] ss:$8 sps:$4 sm:$0xff]  }
 0x7c5   : > { %v3891_v51 = vadd.f32 %v12368_v55, %v20703_v61  ;;  %v12371_v33 = vadd.f32 %v12370_v40, %v12369_v44  ;;  %12384 = vmatprep.subr.bf16.mxu0 %v3976_v3  ;;  %v13639_v55 = vld [vmem:[%s20059_s3 + $0x590] ss:$8 sps:$4 sm:$0xff]   ;;  %v13640_v44 = vld [vmem:[%s20059_s3 + $0x5a4] ss:$8 sps:$4 sm:$0xff]   ;;  %v13642_v3 = vld [vmem:[%s20059_s3 + $0x5a0] ss:$8 sps:$4 sm:$0xff]  }
 0x7c6   : > { %12385 = vmatpush3.bf16.msra.mxu0 %v18120_v50  ;;  %v13615_v50 = vld [vmem:[%s20059_s3 + $0x510] ss:$8 sps:$4 sm:$0xff]   ;;  %v13643_v40 = vld [vmem:[%s20059_s3 + $0x5b4] ss:$8 sps:$4 sm:$0xff]  }
 0x7c7   : > { %v3894_v6 = vadd.f32 %v12371_v33, %v20704_v60  ;;  %v3927_v15 = vmax.f32 %v3891_v51, 0.0  ;;  %v13645_v61 = vld [vmem:[%s20059_s3 + $0x5b0] ss:$8 sps:$4 sm:$0xff]   ;;  %v13646_v51 = vld [vmem:[%s20059_s3 + $0x5c4] ss:$8 sps:$4 sm:$0xff]  }
 0x7c8   : > { %v13648_v33 = vld [vmem:[%s20059_s3 + $0x5c0] ss:$8 sps:$4 sm:$0xff]   ;;  %v13649_v60 = vld [vmem:[%s20059_s3 + $0x5d4] ss:$8 sps:$4 sm:$0xff]  }
 0x7c9   : > { %v3928_v0 = vmax.f32 %v3894_v6, 0.0  ;;  %v13651_v6 = vld [vmem:[%s20059_s3 + $0x5d0] ss:$8 sps:$4 sm:$0xff]  }
 0x7cb   : > { %v3977_v17 = vpack.c.bf16 %v3928_v0, %v3927_v15  ;;  %v13652_v15 = vld [vmem:[%s20059_s3 + $0x5e4] ss:$8 sps:$4 sm:$0xff]   ;;  %v13654_v0 = vld [vmem:[%s20059_s3 + $0x5e0] ss:$8 sps:$4 sm:$0xff]  }
 0x7cd   : > { %12386 = vmatprep.subr.bf16.mxu0 %v3977_v17  ;;  %v13655_v17 = vld [vmem:[%s20059_s3 + $0x5f4] ss:$8 sps:$4 sm:$0xff]  }
 0x7ce   : > { %12387 = vmatpush3.bf16.msra.mxu0 %v18124_v18  ;;  %v13618_v18 = vld [vmem:[%s20059_s3 + $0x520] ss:$8 sps:$4 sm:$0xff]  }
 0x7d1   : > { %4364 = vmatmul.mubr.bf16.vlgmr.msra.gmra.mrb[120].mxu0 %v13610_v52  ;;  %v13657_v52 = vld [vmem:[%s20059_s3 + $0x5f0] ss:$8 sps:$4 sm:$0xff]  }
 0x7d2   : > { %4371 = vmatprep.mubr.bf16.mxu0 %v13613_v29 }
 0x7d9   : > { %4372 = vmatmul.mubr.bf16.gmra.mrb[124].mxu0 %v13615_v50 }
 0x7da   : > { %4379 = vmatprep.mubr.bf16.mxu0 %v13616_v63 }
 0x7e1   : > { %4380 = vmatmul.mubr.bf16.gmra.mrb[128].mxu0 %v13618_v18 }
 0x7e2   : > { %4387 = vmatprep.mubr.bf16.mxu0 %v13619_v22 }
 0x7e9   : > { %4388 = vmatmul.mubr.bf16.gmra.mrb[132].mxu0 %v13621_v46  ;;  %v20705_v46 = vld [vmem:[#allocation146_spill] sm:$0xff] }
 0x7ea   : > { %4395 = vmatprep.mubr.bf16.mxu0 %v13622_v31 }
 0x7f1   : > { %4396 = vmatmul.mubr.bf16.gmra.mrb[136].mxu0 %v13624_v57 }
 0x7f2   : > { %4403 = vmatprep.mubr.bf16.mxu0 %v13625_v10  ;;  %v13660_v10 = vld [vmem:[%s20059_s3 + $0x604] ss:$8 sps:$4 sm:$0xff]  }
 0x7f3   : > { %4958 = vmatprep.mubr.bf16.mxu1 %v13660_v10 }
 0x7f9   : > { %4404 = vmatmul.mubr.bf16.gmra.mrb[140].mxu0 %v13627_v24  ;;  %v20706_v24 = vld [vmem:[#allocation147_spill] sm:$0xff] }
 0x7fa   : > { %4411 = vmatprep.mubr.bf16.mxu0 %v13628_v42 }
 0x801   : > { %4412 = vmatmul.mubr.bf16.gmra.mrb[144].mxu0 %v13630_v9 }
 0x802   : > { %4419 = vmatprep.mubr.bf16.mxu0 %v13631_v56 }
 0x809   : > { %4420 = vmatmul.mubr.bf16.gmra.mrb[148].mxu0 %v13633_v32 }
 0x80a   : > { %4427 = vmatprep.mubr.bf16.mxu0 %v13634_v4 }
 0x811   : > { %4428 = vmatmul.mubr.bf16.gmra.mrb[152].mxu0 %v13636_v39 }
 0x812   : > { %4435 = vmatprep.mubr.bf16.mxu0 %v13637_v5 }
 0x819   : > { %4436 = vmatmul.mubr.bf16.gmra.mrb[156].mxu0 %v13639_v55 }
 0x81a   : > { %4443 = vmatprep.mubr.bf16.mxu0 %v13640_v44 }
 0x821   : > { %4444 = vmatmul.mubr.bf16.gmra.mrb[160].mxu0 %v13642_v3 }
 0x822   : > { %4451 = vmatprep.mubr.bf16.mxu0 %v13643_v40 }
 0x829   : > { %4452 = vmatmul.mubr.bf16.gmra.mrb[164].mxu0 %v13645_v61 }
 0x82a   : > { %4459 = vmatprep.mubr.bf16.mxu0 %v13646_v51 }
 0x831   : > { %4460 = vmatmul.mubr.bf16.gmra.mrb[168].mxu0 %v13648_v33 }
 0x832   : > { %4467 = vmatprep.mubr.bf16.mxu0 %v13649_v60 }
 0x839   : > { %4468 = vmatmul.mubr.bf16.gmra.mrb[172].mxu0 %v13651_v6 }
 0x83a   : > { %4475 = vmatprep.mubr.bf16.mxu0 %v13652_v15 }
 0x841   : > { %4476 = vmatmul.mubr.bf16.gmra.mrb[176].mxu0 %v13654_v0 }
 0x842   : > { %4483 = vmatprep.mubr.bf16.mxu0 %v13655_v17 }
 0x849   : > { %4484 = vmatmul.mubr.bf16.gmra.mrb[180].mxu0 %v13657_v52 }
 0x8a4   : > { %v12388_v29 = vpop.f32.mrb[120].mxu0 }
 0x8a5   : > { %v12389_v50 = vpop.f32.mrb[121].mxu0 }
 0x8a6   : > { %v12390_v63 = vadd.f32 %v12389_v50, %v12388_v29  ;;  %v12391_v18 = vpop.f32.mrb[122].mxu0 }
 0x8a7   : > { %v12392_v22 = vpop.f32.mrb[123].mxu0 }
 0x8a8   : > { %v4366_v31 = vadd.f32 %v12390_v63, %v20705_v46  ;;  %v12393_v57 = vadd.f32 %v12392_v22, %v12391_v18  ;;  %v20707_v63 = vld [vmem:[#allocation152_spill] sm:$0xff] }
 0x8aa   : > { %v4369_v42 = vadd.f32 %v12393_v57, %v20706_v24  ;;  %v4492_v9 = vmax.f32 %v4366_v31, 0.0 }
 0x8ac   : > { %v4493_v56 = vmax.f32 %v4369_v42, 0.0  ;;  %v12394_v32 = vpop.f32.mrb[124].mxu0 }
 0x8ad   : > { %v12395_v4 = vpop.f32.mrb[125].mxu0 }
 0x8ae   : > { %v12396_v39 = vadd.f32 %v12395_v4, %v12394_v32  ;;  %v12397_v5 = vpop.f32.mrb[126].mxu0  ;;  %v18248_v55 = vpack.c.bf16 %v4493_v56, %v4492_v9  ;;  %v20708_v56 = vld [vmem:[#allocation155_spill] sm:$0xff] }
 0x8af   : > { %v12398_v44 = vpop.f32.mrb[127].mxu0 }
 0x8b0   : > { %v4374_v3 = vadd.f32 %v12396_v39, %v16013_v27  ;;  %v12399_v40 = vadd.f32 %v12398_v44, %v12397_v5 }
 0x8b2   : > { %v4377_v61 = vadd.f32 %v12399_v40, %v16015_v25  ;;  %v4494_v51 = vmax.f32 %v4374_v3, 0.0 }
 0x8b4   : > { %v4495_v33 = vmax.f32 %v4377_v61, 0.0  ;;  %v12400_v60 = vpop.f32.mrb[128].mxu0 }
 0x8b5   : > { %v12401_v6 = vpop.f32.mrb[129].mxu0 }
 0x8b6   : > { %v12402_v15 = vadd.f32 %v12401_v6, %v12400_v60  ;;  %v12403_v0 = vpop.f32.mrb[130].mxu0  ;;  %v18252_v17 = vpack.c.bf16 %v4495_v33, %v4494_v51  ;;  %v20709_v60 = vld [vmem:[#allocation158_spill] sm:$0xff] }
 0x8b7   : > { %v12404_v52 = vpop.f32.mrb[131].mxu0 }
 0x8b8   : > { %v4382_v29 = vadd.f32 %v12402_v15, %v16037_v28  ;;  %v12405_v50 = vadd.f32 %v12404_v52, %v12403_v0 }
 0x8ba   : > { %v4385_v18 = vadd.f32 %v12405_v50, %v20707_v63  ;;  %v4496_v22 = vmax.f32 %v4382_v29, 0.0 }
 0x8bc   : > { %v4497_v46 = vmax.f32 %v4385_v18, 0.0  ;;  %v12406_v27 = vpop.f32.mrb[132].mxu0 }
 0x8bd   : > { %v12407_v31 = vpop.f32.mrb[133].mxu0 }
 0x8be   : > { %v12408_v57 = vadd.f32 %v12407_v31, %v12406_v27  ;;  %v12409_v25 = vpop.f32.mrb[134].mxu0  ;;  %v18256_v10 = vpack.c.bf16 %v4497_v46, %v4496_v22  ;;  %v20710_v27 = vld [vmem:[#allocation161_spill] sm:$0xff] }
 0x8bf   : > { %v12410_v24 = vpop.f32.mrb[135].mxu0 }
 0x8c0   : > { %v4390_v42 = vadd.f32 %v12408_v57, %v16061_v26  ;;  %v12411_v9 = vadd.f32 %v12410_v24, %v12409_v25 }
 0x8c2   : > { %v4393_v32 = vadd.f32 %v12411_v9, %v20708_v56  ;;  %v4498_v4 = vmax.f32 %v4390_v42, 0.0 }
 0x8c4   : > { %v4499_v39 = vmax.f32 %v4393_v32, 0.0  ;;  %v12412_v28 = vpop.f32.mrb[136].mxu0 }
 0x8c5   : > { %v12413_v5 = vpop.f32.mrb[137].mxu0 }
 0x8c6   : > { %v12414_v44 = vadd.f32 %v12413_v5, %v12412_v28  ;;  %v12415_v3 = vpop.f32.mrb[138].mxu0  ;;  %v18260_v40 = vpack.c.bf16 %v4499_v39, %v4498_v4  ;;  %v20711_v28 = vld [vmem:[#allocation164_spill] sm:$0xff] }
 0x8c7   : > { %v12416_v61 = vpop.f32.mrb[139].mxu0 }
 0x8c8   : > { %v4398_v51 = vadd.f32 %v12414_v44, %v16085_v35  ;;  %v12417_v33 = vadd.f32 %v12416_v61, %v12415_v3 }
 0x8ca   : > { %v4401_v6 = vadd.f32 %v12417_v33, %v20709_v60  ;;  %v4500_v15 = vmax.f32 %v4398_v51, 0.0 }
 0x8cc   : > { %v4501_v0 = vmax.f32 %v4401_v6, 0.0  ;;  %v12418_v26 = vpop.f32.mrb[140].mxu0 }
 0x8cd   : > { %v12419_v52 = vpop.f32.mrb[141].mxu0 }
 0x8ce   : > { %v12420_v29 = vadd.f32 %v12419_v52, %v12418_v26  ;;  %v12421_v50 = vpop.f32.mrb[142].mxu0  ;;  %v18264_v63 = vpack.c.bf16 %v4501_v0, %v4500_v15  ;;  %v20712_v26 = vld [vmem:[#allocation167_spill] sm:$0xff] }
 0x8cf   : > { %v12422_v18 = vpop.f32.mrb[143].mxu0 }
 0x8d0   : > { %v4406_v22 = vadd.f32 %v12420_v29, %v16109_v7  ;;  %v12423_v46 = vadd.f32 %v12422_v18, %v12421_v50 }
 0x8d2   : > { %v4409_v31 = vadd.f32 %v12423_v46, %v20710_v27  ;;  %v4502_v57 = vmax.f32 %v4406_v22, 0.0 }
 0x8d4   : > { %v4503_v25 = vmax.f32 %v4409_v31, 0.0  ;;  %v12424_v35 = vpop.f32.mrb[144].mxu0 }
 0x8d5   : > { %v12425_v24 = vpop.f32.mrb[145].mxu0 }
 0x8d6   : > { %v12426_v42 = vadd.f32 %v12425_v24, %v12424_v35  ;;  %v12427_v9 = vpop.f32.mrb[146].mxu0  ;;  %v18268_v56 = vpack.c.bf16 %v4503_v25, %v4502_v57  ;;  %v20713_v57 = vld [vmem:[#allocation144_spill] sm:$0xff]  ;;  %v20714_v24 = vld [vmem:[#allocation145_spill] sm:$0xff] }
 0x8d7   : > { %v12428_v32 = vpop.f32.mrb[147].mxu0 }
 0x8d8   : > { %v4414_v4 = vadd.f32 %v12426_v42, %v16133_v21  ;;  %v12429_v39 = vadd.f32 %v12428_v32, %v12427_v9 }
 0x8da   : > { %v4417_v5 = vadd.f32 %v12429_v39, %v20711_v28  ;;  %v4504_v44 = vmax.f32 %v4414_v4, 0.0 }
 0x8dc   : > { %v4505_v3 = vmax.f32 %v4417_v5, 0.0  ;;  %v12430_v7 = vpop.f32.mrb[148].mxu0 }
 0x8dd   : > { %v12431_v61 = vpop.f32.mrb[149].mxu0 }
 0x8de   : > { %v12432_v51 = vadd.f32 %v12431_v61, %v12430_v7  ;;  %v12433_v33 = vpop.f32.mrb[150].mxu0  ;;  %v18272_v60 = vpack.c.bf16 %v4505_v3, %v4504_v44  ;;  %v20715_v3 = vld [vmem:[#allocation148_spill] sm:$0xff] }
 0x8df   : > { %v12434_v6 = vpop.f32.mrb[151].mxu0 }
 0x8e0   : > { %v4422_v15 = vadd.f32 %v12432_v51, %v16157_v37  ;;  %v12435_v0 = vadd.f32 %v12434_v6, %v12433_v33  ;;  %v20716_v51 = vld [vmem:[#allocation149_spill] sm:$0xff] }
 0x8e2   : > { %v4425_v52 = vadd.f32 %v12435_v0, %v20712_v26  ;;  %v4506_v29 = vmax.f32 %v4422_v15, 0.0 }
 0x8e4   : > { %v4507_v50 = vmax.f32 %v4425_v52, 0.0  ;;  %v12436_v21 = vpop.f32.mrb[152].mxu0 }
 0x8e5   : > { %v12437_v18 = vpop.f32.mrb[153].mxu0 }
 0x8e6   : > { %v12438_v22 = vadd.f32 %v12437_v18, %v12436_v21  ;;  %v12439_v46 = vpop.f32.mrb[154].mxu0  ;;  %v18276_v27 = vpack.c.bf16 %v4507_v50, %v4506_v29  ;;  %v20717_v18 = vld [vmem:[#allocation150_spill] sm:$0xff] }
 0x8e7   : > { %v12440_v31 = vpop.f32.mrb[155].mxu0 }
 0x8e8   : > { %v4430_v25 = vadd.f32 %v12438_v22, %v20713_v57  ;;  %v12441_v35 = vadd.f32 %v12440_v31, %v12439_v46  ;;  %v20718_v31 = vld [vmem:[#allocation151_spill] sm:$0xff] }
 0x8ea   : > { %v4433_v42 = vadd.f32 %v12441_v35, %v20714_v24  ;;  %v4508_v32 = vmax.f32 %v4430_v25, 0.0 }
 0x8ec   : > { %v12442_v9 = vpop.f32.mrb[156].mxu0  ;;  %v4509_v37 = vmax.f32 %v4433_v42, 0.0 }
 0x8ed   : > { %v12443_v4 = vpop.f32.mrb[157].mxu0 }
 0x8ee   : > { %v12444_v39 = vadd.f32 %v12443_v4, %v12442_v9  ;;  %v12445_v28 = vpop.f32.mrb[158].mxu0  ;;  %v4565_v5 = vpack.c.bf16 %v4509_v37, %v4508_v32  ;;  %v20719_v4 = vld [vmem:[#allocation153_spill] sm:$0xff] }
 0x8ef   : > { %v12446_v44 = vpop.f32.mrb[159].mxu0 }
 0x8f0   : > { %v4438_v7 = vadd.f32 %v12444_v39, %v20715_v3  ;;  %v12447_v61 = vadd.f32 %v12446_v44, %v12445_v28  ;;  %12484 = vmatprep.subr.bf16.mxu1 %v4565_v5  ;;  %v20720_v5 = vld [vmem:[#allocation154_spill] sm:$0xff] }
 0x8f1   : > { %12485 = vmatpush3.bf16.msra.mxu1 %v18248_v55 }
 0x8f2   : > { %v4441_v33 = vadd.f32 %v12447_v61, %v20716_v51  ;;  %v4510_v15 = vmax.f32 %v4438_v7, 0.0 }
 0x8f4   : > { %v12448_v6 = vpop.f32.mrb[160].mxu0  ;;  %v4511_v0 = vmax.f32 %v4441_v33, 0.0 }
 0x8f5   : > { %v12449_v26 = vpop.f32.mrb[161].mxu0 }
 0x8f6   : > { %v12450_v52 = vadd.f32 %v12449_v26, %v12448_v6  ;;  %v12451_v29 = vpop.f32.mrb[162].mxu0  ;;  %v4566_v50 = vpack.c.bf16 %v4511_v0, %v4510_v15  ;;  %v20721_v0 = vld [vmem:[#allocation156_spill] sm:$0xff] }
 0x8f7   : > { %v12452_v21 = vpop.f32.mrb[163].mxu0 }
 0x8f8   : > { %v4446_v22 = vadd.f32 %v12450_v52, %v20717_v18  ;;  %v12453_v46 = vadd.f32 %v12452_v21, %v12451_v29  ;;  %12486 = vmatprep.subr.bf16.mxu1 %v4566_v50  ;;  %v20722_v29 = vld [vmem:[#allocation157_spill] sm:$0xff] }
 0x8f9   : > { %12487 = vmatpush3.bf16.msra.mxu1 %v18252_v17 }
 0x8fa   : > { %v4449_v57 = vadd.f32 %v12453_v46, %v20718_v31  ;;  %v4512_v55 = vmax.f32 %v4446_v22, 0.0 }
 0x8fc   : > { %v12454_v25 = vpop.f32.mrb[164].mxu0  ;;  %v4513_v35 = vmax.f32 %v4449_v57, 0.0 }
 0x8fd   : > { %v12455_v24 = vpop.f32.mrb[165].mxu0 }
 0x8fe   : > { %v12456_v42 = vadd.f32 %v12455_v24, %v12454_v25  ;;  %v12457_v9 = vpop.f32.mrb[166].mxu0  ;;  %v4567_v32 = vpack.c.bf16 %v4513_v35, %v4512_v55  ;;  %v20723_v55 = vld [vmem:[#allocation159_spill] sm:$0xff] }
 0x8ff   : > { %v12458_v37 = vpop.f32.mrb[167].mxu0 }
 0x900   : > { %v4454_v39 = vadd.f32 %v12456_v42, %v20719_v4  ;;  %v12459_v28 = vadd.f32 %v12458_v37, %v12457_v9  ;;  %12488 = vmatprep.subr.bf16.mxu1 %v4567_v32  ;;  %v20724_v42 = vld [vmem:[#allocation160_spill] sm:$0xff] }
 0x901   : > { %12489 = vmatpush3.bf16.msra.mxu1 %v18256_v10 }
 0x902   : > { %v4457_v44 = vadd.f32 %v12459_v28, %v20720_v5  ;;  %v4514_v17 = vmax.f32 %v4454_v39, 0.0 }
 0x904   : > { %v12460_v3 = vpop.f32.mrb[168].mxu0  ;;  %v4515_v7 = vmax.f32 %v4457_v44, 0.0 }
 0x905   : > { %v12461_v61 = vpop.f32.mrb[169].mxu0 }
 0x906   : > { %v12462_v51 = vadd.f32 %v12461_v61, %v12460_v3  ;;  %v12463_v33 = vpop.f32.mrb[170].mxu0  ;;  %v4568_v6 = vpack.c.bf16 %v4515_v7, %v4514_v17  ;;  %v20725_v3 = vld [vmem:[#allocation162_spill] sm:$0xff]  ;;  %v20726_v61 = vld [vmem:[#allocation163_spill] sm:$0xff] }
 0x907   : > { %v12464_v15 = vpop.f32.mrb[171].mxu0 }
 0x908   : > { %v4462_v26 = vadd.f32 %v12462_v51, %v20721_v0  ;;  %v12465_v52 = vadd.f32 %v12464_v15, %v12463_v33  ;;  %12490 = vmatprep.subr.bf16.mxu1 %v4568_v6 }
 0x909   : > { %12491 = vmatpush3.bf16.msra.mxu1 %v18260_v40 }
 0x90a   : > { %v4465_v50 = vadd.f32 %v12465_v52, %v20722_v29  ;;  %v4516_v10 = vmax.f32 %v4462_v26, 0.0 }
 0x90c   : > { %v12466_v21 = vpop.f32.mrb[172].mxu0  ;;  %v4517_v18 = vmax.f32 %v4465_v50, 0.0  ;;  %v20727_v50 = vld [vmem:[#allocation165_spill] sm:$0xff] }
 0x90d   : > { %v12467_v22 = vpop.f32.mrb[173].mxu0 }
 0x90e   : > { %v12468_v46 = vadd.f32 %v12467_v22, %v12466_v21  ;;  %v12469_v31 = vpop.f32.mrb[174].mxu0  ;;  %v4569_v57 = vpack.c.bf16 %v4517_v18, %v4516_v10  ;;  %v20728_v18 = vld [vmem:[#allocation166_spill] sm:$0xff] }
 0x90f   : > { %v12470_v25 = vpop.f32.mrb[175].mxu0 }
 0x910   : > { %v4470_v35 = vadd.f32 %v12468_v46, %v20723_v55  ;;  %v12471_v24 = vadd.f32 %v12470_v25, %v12469_v31  ;;  %12492 = vmatprep.subr.bf16.mxu1 %v4569_v57  ;;  %v13658_v57 = vld [vmem:[%s20059_s3 + $0x600] ss:$8 sps:$4 sm:$0xff]   ;;  %v13661_v25 = vld [vmem:[%s20059_s3 + $0x614] ss:$8 sps:$4 sm:$0xff]   ;;  %v13664_v55 = vld [vmem:[%s20059_s3 + $0x624] ss:$8 sps:$4 sm:$0xff]  }
 0x911   : > { %12493 = vmatpush3.bf16.msra.mxu1 %v18264_v63 }
 0x912   : > { %v4473_v9 = vadd.f32 %v12471_v24, %v20724_v42  ;;  %v4518_v40 = vmax.f32 %v4470_v35, 0.0  ;;  %v13667_v35 = vld [vmem:[%s20059_s3 + $0x634] ss:$8 sps:$4 sm:$0xff]   ;;  %v13669_v24 = vld [vmem:[%s20059_s3 + $0x630] ss:$8 sps:$4 sm:$0xff]  }
 0x913   : > { %v13670_v42 = vld [vmem:[%s20059_s3 + $0x644] ss:$8 sps:$4 sm:$0xff]  }
 0x914   : > { %v12472_v32 = vpop.f32.mrb[176].mxu0  ;;  %v4519_v37 = vmax.f32 %v4473_v9, 0.0  ;;  %v13672_v9 = vld [vmem:[%s20059_s3 + $0x640] ss:$8 sps:$4 sm:$0xff]  }
 0x915   : > { %v12473_v4 = vpop.f32.mrb[177].mxu0 }
 0x916   : > { %v12474_v39 = vadd.f32 %v12473_v4, %v12472_v32  ;;  %v12475_v28 = vpop.f32.mrb[178].mxu0  ;;  %v4570_v5 = vpack.c.bf16 %v4519_v37, %v4518_v40  ;;  %v13673_v32 = vld [vmem:[%s20059_s3 + $0x654] ss:$8 sps:$4 sm:$0xff]   ;;  %v13675_v40 = vld [vmem:[%s20059_s3 + $0x650] ss:$8 sps:$4 sm:$0xff]  }
 0x917   : > { %v12476_v44 = vpop.f32.mrb[179].mxu0  ;;  %v13678_v37 = vld [vmem:[%s20059_s3 + $0x664] ss:$8 sps:$4 sm:$0xff]   ;;  %v13676_v4 = vld [vmem:[%s20059_s3 + $0x660] ss:$8 sps:$4 sm:$0xff]  }
 0x918   : > { %v4478_v17 = vadd.f32 %v12474_v39, %v20725_v3  ;;  %v12477_v7 = vadd.f32 %v12476_v44, %v12475_v28  ;;  %12494 = vmatprep.subr.bf16.mxu1 %v4570_v5  ;;  %v13681_v39 = vld [vmem:[%s20059_s3 + $0x674] ss:$8 sps:$4 sm:$0xff]   ;;  %v13679_v28 = vld [vmem:[%s20059_s3 + $0x670] ss:$8 sps:$4 sm:$0xff]   ;;  %v13684_v5 = vld [vmem:[%s20059_s3 + $0x684] ss:$8 sps:$4 sm:$0xff]  }
 0x919   : > { %12495 = vmatpush3.bf16.msra.mxu1 %v18268_v56  ;;  %v13682_v44 = vld [vmem:[%s20059_s3 + $0x680] ss:$8 sps:$4 sm:$0xff]   ;;  %v13687_v3 = vld [vmem:[%s20059_s3 + $0x694] ss:$8 sps:$4 sm:$0xff]  }
 0x91a   : > { %v4481_v51 = vadd.f32 %v12477_v7, %v20726_v61  ;;  %v4520_v63 = vmax.f32 %v4478_v17, 0.0  ;;  %v13685_v17 = vld [vmem:[%s20059_s3 + $0x690] ss:$8 sps:$4 sm:$0xff]   ;;  %v13690_v7 = vld [vmem:[%s20059_s3 + $0x6a4] ss:$8 sps:$4 sm:$0xff]  }
 0x91b   : > { %v13688_v61 = vld [vmem:[%s20059_s3 + $0x6a0] ss:$8 sps:$4 sm:$0xff]  }
 0x91c   : > { %v12478_v33 = vpop.f32.mrb[180].mxu0  ;;  %v4521_v6 = vmax.f32 %v4481_v51, 0.0  ;;  %v13693_v51 = vld [vmem:[%s20059_s3 + $0x6b4] ss:$8 sps:$4 sm:$0xff]  }
 0x91d   : > { %v12479_v15 = vpop.f32.mrb[181].mxu0 }
 0x91e   : > { %v12480_v0 = vadd.f32 %v12479_v15, %v12478_v33  ;;  %v12481_v26 = vpop.f32.mrb[182].mxu0  ;;  %v4571_v52 = vpack.c.bf16 %v4521_v6, %v4520_v63  ;;  %v13691_v33 = vld [vmem:[%s20059_s3 + $0x6b0] ss:$8 sps:$4 sm:$0xff]   ;;  %v13696_v63 = vld [vmem:[%s20059_s3 + $0x6c4] ss:$8 sps:$4 sm:$0xff]  }
 0x91f   : > { %v12482_v29 = vpop.f32.mrb[183].mxu0  ;;  %v13694_v6 = vld [vmem:[%s20059_s3 + $0x6c0] ss:$8 sps:$4 sm:$0xff]   ;;  %v13699_v15 = vld [vmem:[%s20059_s3 + $0x6d4] ss:$8 sps:$4 sm:$0xff]  }
 0x920   : > { %v4486_v21 = vadd.f32 %v12480_v0, %v20727_v50  ;;  %v12483_v10 = vadd.f32 %v12482_v29, %v12481_v26  ;;  %12496 = vmatprep.subr.bf16.mxu1 %v4571_v52  ;;  %v13697_v0 = vld [vmem:[%s20059_s3 + $0x6d0] ss:$8 sps:$4 sm:$0xff]   ;;  %v13702_v26 = vld [vmem:[%s20059_s3 + $0x6e4] ss:$8 sps:$4 sm:$0xff]   ;;  %v13700_v52 = vld [vmem:[%s20059_s3 + $0x6e0] ss:$8 sps:$4 sm:$0xff]  }
 0x921   : > { %12497 = vmatpush3.bf16.msra.mxu1 %v18272_v60  ;;  %v13663_v60 = vld [vmem:[%s20059_s3 + $0x610] ss:$8 sps:$4 sm:$0xff]   ;;  %v13705_v29 = vld [vmem:[%s20059_s3 + $0x6f4] ss:$8 sps:$4 sm:$0xff]  }
 0x922   : > { %v4489_v22 = vadd.f32 %v12483_v10, %v20728_v18  ;;  %v4522_v46 = vmax.f32 %v4486_v21, 0.0  ;;  %v13703_v50 = vld [vmem:[%s20059_s3 + $0x6f0] ss:$8 sps:$4 sm:$0xff]  }
 0x924   : > { %v4523_v56 = vmax.f32 %v4489_v22, 0.0 }
 0x926   : > { %v4572_v31 = vpack.c.bf16 %v4523_v56, %v4522_v46 }
 0x928   : > { %12498 = vmatprep.subr.bf16.mxu1 %v4572_v31 }
 0x929   : > { %12499 = vmatpush3.bf16.msra.mxu1 %v18276_v27  ;;  %v13666_v27 = vld [vmem:[%s20059_s3 + $0x620] ss:$8 sps:$4 sm:$0xff]  }
 0x92c   : > { %4959 = vmatmul.mubr.bf16.vlgmr.msra.gmra.mrb[232].mxu1 %v13658_v57  ;;  %v3302_v57 = vadd.f32 %v17848_v58, %v17848_v58 }
 0x92d   : > { %4966 = vmatprep.mubr.bf16.mxu1 %v13661_v25 }
 0x934   : > { %4967 = vmatmul.mubr.bf16.gmra.mrb[236].mxu1 %v13663_v60  ;;  %v20729_v60 = vld [vmem:[#allocation170_spill] sm:$0xff] }
 0x935   : > { %4974 = vmatprep.mubr.bf16.mxu1 %v13664_v55 }
 0x93c   : > { %4975 = vmatmul.mubr.bf16.gmra.mrb[240].mxu1 %v13666_v27  ;;  %v13708_v27 = vld [vmem:[%s20059_s3 + $0x704] ss:$8 sps:$4 sm:$0xff]  }
 0x93d   : > { %4982 = vmatprep.mubr.bf16.mxu1 %v13667_v35  ;;  %5585 = vmatprep.mubr.bf16.mxu0 %v13708_v27 }
 0x944   : > { %4983 = vmatmul.mubr.bf16.gmra.mrb[244].mxu1 %v13669_v24  ;;  %v3303_v24 = vadd.f32 %v17850_v13, %v17850_v13 }
 0x945   : > { %4990 = vmatprep.mubr.bf16.mxu1 %v13670_v42 }
 0x94c   : > { %4991 = vmatmul.mubr.bf16.gmra.mrb[248].mxu1 %v13672_v9 }
 0x94d   : > { %4998 = vmatprep.mubr.bf16.mxu1 %v13673_v32 }
 0x954   : > { %4999 = vmatmul.mubr.bf16.gmra.mrb[252].mxu1 %v13675_v40 }
 0x955   : > { %5006 = vmatprep.mubr.bf16.mxu1 %v13678_v37 }
 0x95c   : > { %5007 = vmatmul.mubr.bf16.gmra.mrb[0].mxu1 %v13676_v4 }
 0x95d   : > { %5014 = vmatprep.mubr.bf16.mxu1 %v13681_v39 }
 0x964   : > { %5015 = vmatmul.mubr.bf16.gmra.mrb[4].mxu1 %v13679_v28 }
 0x965   : > { %5022 = vmatprep.mubr.bf16.mxu1 %v13684_v5  ;;  %v3304_v5 = vadd.f32 %v17856_v1, %v17856_v1 }
 0x96c   : > { %5023 = vmatmul.mubr.bf16.gmra.mrb[8].mxu1 %v13682_v44 }
 0x96d   : > { %5030 = vmatprep.mubr.bf16.mxu1 %v13687_v3 }
 0x974   : > { %5031 = vmatmul.mubr.bf16.gmra.mrb[12].mxu1 %v13685_v17  ;;  %v3305_v17 = vadd.f32 %v17858_v19, %v17858_v19 }
 0x975   : > { %5038 = vmatprep.mubr.bf16.mxu1 %v13690_v7 }
 0x97c   : > { %5039 = vmatmul.mubr.bf16.gmra.mrb[16].mxu1 %v13688_v61 }
 0x97d   : > { %5046 = vmatprep.mubr.bf16.mxu1 %v13693_v51 }
 0x984   : > { %5047 = vmatmul.mubr.bf16.gmra.mrb[20].mxu1 %v13691_v33 }
 0x985   : > { %5054 = vmatprep.mubr.bf16.mxu1 %v13696_v63 }
 0x98c   : > { %5055 = vmatmul.mubr.bf16.gmra.mrb[24].mxu1 %v13694_v6 }
 0x98d   : > { %5062 = vmatprep.mubr.bf16.mxu1 %v13699_v15 }
 0x994   : > { %5063 = vmatmul.mubr.bf16.gmra.mrb[28].mxu1 %v13697_v0 }
 0x995   : > { %5070 = vmatprep.mubr.bf16.mxu1 %v13702_v26 }
 0x99c   : > { %5071 = vmatmul.mubr.bf16.gmra.mrb[32].mxu1 %v13700_v52 }
 0x99d   : > { %5078 = vmatprep.mubr.bf16.mxu1 %v13705_v29  ;;  %v3307_v29 = vadd.f32 %v17866_v62, %v17866_v62 }
 0x9a4   : > { %5079 = vmatmul.mubr.bf16.gmra.mrb[36].mxu1 %v13703_v50 }
 0x9ff   : > { %v12500_v21 = vpop.f32.mrb[232].mxu1 }
 0xa00   : > { %v12501_v10 = vpop.f32.mrb[233].mxu1 }
 0xa01   : > { %v12502_v18 = vadd.f32 %v12501_v10, %v12500_v21  ;;  %v12503_v22 = vpop.f32.mrb[234].mxu1 }
 0xa02   : > { %v12504_v46 = vpop.f32.mrb[235].mxu1 }
 0xa03   : > { %v4961_v56 = vadd.f32 %v12502_v18, %v16181_v36  ;;  %v12505_v31 = vadd.f32 %v12504_v46, %v12503_v22 }
 0xa05   : > { %v5087_v25 = vmax.f32 %v4961_v56, 0.0  ;;  %v4964_v55 = vadd.f32 %v12505_v31, %v20729_v60 }
 0xa07   : > { %v18402_v35 = vadd.f32 %v5087_v25, %v3302_v57  ;;  %v5088_v42 = vmax.f32 %v4964_v55, 0.0  ;;  %v12506_v9 = vpop.f32.mrb[236].mxu1  ;;  %v20730_v25 = vld [vmem:[#allocation4_spill] sm:$0xff]  ;;  %v3309_v55 = vadd.f32 %v17874_v34, %v17874_v34 }
 0xa08   : > { %v12507_v32 = vpop.f32.mrb[237].mxu1 }
 0xa09   : > { %v18406_v36 = vadd.f32 %v5088_v42, %v3303_v24  ;;  %v12508_v40 = vadd.f32 %v12507_v32, %v12506_v9  ;;  %v12509_v58 = vpop.f32.mrb[238].mxu1 }
 0xa0a   : > { %v12510_v37 = vpop.f32.mrb[239].mxu1 }
 0xa0b   : > { %v5184_v4 = vpack.c.bf16 %v18406_v36, %v18402_v35  ;;  %v4969_v39 = vadd.f32 %v12508_v40, %v16205_v12  ;;  %v12511_v28 = vadd.f32 %v12510_v37, %v12509_v58  ;;  %v20745_v36 = vld [vmem:[#allocation174_spill] sm:$0xff] }
 0xa0d   : > { %v5089_v44 = vmax.f32 %v4969_v39, 0.0  ;;  %v4972_v13 = vadd.f32 %v12511_v28, %v16207_v47  ;;  %v3306_v47 = vadd.f32 %v17864_v20, %v17864_v20  ;;  %v3310_v39 = vadd.f32 %v17880_v14, %v17880_v14 }
 0xa0f   : > { %v18414_v3 = vadd.f32 %v5089_v44, %v3304_v5  ;;  %v5090_v7 = vmax.f32 %v4972_v13, 0.0  ;;  %v12512_v61 = vpop.f32.mrb[240].mxu1  ;;  %v20731_v5 = vld [vmem:[#allocation6_spill] sm:$0xff]  ;;  %v3311_v13 = vadd.f32 %v17882_v48, %v17882_v48 }
 0xa10   : > { %v12513_v51 = vpop.f32.mrb[241].mxu1 }
 0xa11   : > { %v18418_v33 = vadd.f32 %v5090_v7, %v3305_v17  ;;  %v12514_v63 = vadd.f32 %v12513_v51, %v12512_v61  ;;  %v12515_v6 = vpop.f32.mrb[242].mxu1 }
 0xa12   : > { %v12516_v12 = vpop.f32.mrb[243].mxu1 }
 0xa13   : > { %v5185_v15 = vpack.c.bf16 %v18418_v33, %v18414_v3  ;;  %v4977_v1 = vadd.f32 %v12514_v63, %v16229_v11  ;;  %v12517_v0 = vadd.f32 %v12516_v12, %v12515_v6  ;;  %v20749_v33 = vld [vmem:[#allocation3_spill] sm:$0xff] }
 0xa15   : > { %v5091_v26 = vmax.f32 %v4977_v1, 0.0  ;;  %v4980_v19 = vadd.f32 %v12517_v0, %v16231_v2  ;;  %v3308_v2 = vadd.f32 %v17872_v30, %v17872_v30  ;;  %v3312_v0 = vadd.f32 %v17888_v16, %v17888_v16 }
 0xa17   : > { %v18426_v52 = vadd.f32 %v5091_v26, %v3306_v47  ;;  %v5092_v50 = vmax.f32 %v4980_v19, 0.0  ;;  %v12518_v21 = vpop.f32.mrb[244].mxu1  ;;  %v20732_v26 = vld [vmem:[#allocation12_spill] sm:$0xff] }
 0xa18   : > { %v12519_v10 = vpop.f32.mrb[245].mxu1 }
 0xa19   : > { %v18430_v18 = vadd.f32 %v5092_v50, %v3307_v29  ;;  %v12520_v22 = vadd.f32 %v12519_v10, %v12518_v21  ;;  %v12521_v46 = vpop.f32.mrb[246].mxu1  ;;  %v3313_v29 = vadd.f32 %v17890_v8, %v17890_v8 }
 0xa1a   : > { %v12522_v11 = vpop.f32.mrb[247].mxu1 }
 0xa1b   : > { %v5186_v56 = vpack.c.bf16 %v18430_v18, %v18426_v52  ;;  %v4985_v20 = vadd.f32 %v12520_v22, %v16253_v43  ;;  %v12523_v31 = vadd.f32 %v12522_v11, %v12521_v46  ;;  %v20753_v18 = vld [vmem:[#allocation175_spill] sm:$0xff] }
 0xa1d   : > { %v5093_v57 = vmax.f32 %v4985_v20, 0.0  ;;  %v4988_v62 = vadd.f32 %v12523_v31, %v20730_v25  ;;  %v20733_v25 = vld [vmem:[#allocation18_spill] sm:$0xff] }
 0xa1f   : > { %v18438_v60 = vadd.f32 %v5093_v57, %v3308_v2  ;;  %v5094_v27 = vmax.f32 %v4988_v62, 0.0  ;;  %v12524_v24 = vpop.f32.mrb[248].mxu1  ;;  %v3314_v2 = vadd.f32 %v17896_v53, %v17896_v53  ;;  %v20734_v53 = vld [vmem:[#allocation24_spill] sm:$0xff] }
 0xa20   : > { %v12525_v42 = vpop.f32.mrb[249].mxu1 }
 0xa21   : > { %v18442_v9 = vadd.f32 %v5094_v27, %v3309_v55  ;;  %v12526_v32 = vadd.f32 %v12525_v42, %v12524_v24  ;;  %v12527_v40 = vpop.f32.mrb[250].mxu1  ;;  %v3315_v55 = vadd.f32 %v17898_v23, %v17898_v23 }
 0xa22   : > { %v12528_v43 = vpop.f32.mrb[251].mxu1 }
 0xa23   : > { %v5187_v58 = vpack.c.bf16 %v18442_v9, %v18438_v60  ;;  %v4993_v30 = vadd.f32 %v12526_v32, %v16277_v45  ;;  %v12529_v37 = vadd.f32 %v12528_v43, %v12527_v40  ;;  %v20757_v9 = vld [vmem:[#allocation176_spill] sm:$0xff] }
 0xa25   : > { %v5095_v28 = vmax.f32 %v4993_v30, 0.0  ;;  %v4996_v34 = vadd.f32 %v12529_v37, %v20731_v5 }
 0xa27   : > { %v18450_v44 = vadd.f32 %v5095_v28, %v3310_v39  ;;  %v5096_v17 = vmax.f32 %v4996_v34, 0.0  ;;  %v12530_v7 = vpop.f32.mrb[252].mxu1  ;;  %v3316_v28 = vadd.f32 %v17904_v59, %v17904_v59  ;;  %v20735_v34 = vld [vmem:[#allocation179_spill] sm:$0xff]  ;;  %v20736_v59 = vld [vmem:[#allocation168_spill] sm:$0xff] }
 0xa28   : > { %v12531_v61 = vpop.f32.mrb[253].mxu1 }
 0xa29   : > { %v18454_v51 = vadd.f32 %v5096_v17, %v3311_v13  ;;  %v12532_v63 = vadd.f32 %v12531_v61, %v12530_v7  ;;  %v12533_v6 = vpop.f32.mrb[254].mxu1  ;;  %v3317_v17 = vadd.f32 %v17906_v49, %v17906_v49 }
 0xa2a   : > { %v12534_v45 = vpop.f32.mrb[255].mxu1 }
 0xa2b   : > { %v5188_v12 = vpack.c.bf16 %v18454_v51, %v18450_v44  ;;  %v5001_v14 = vadd.f32 %v12532_v63, %v16301_v54  ;;  %v12535_v1 = vadd.f32 %v12534_v45, %v12533_v6  ;;  %v20761_v51 = vld [vmem:[#allocation177_spill] sm:$0xff] }
 0xa2d   : > { %v5097_v47 = vmax.f32 %v5001_v14, 0.0  ;;  %v5004_v48 = vadd.f32 %v12535_v1, %v20732_v26 }
 0xa2f   : > { %v18462_v19 = vadd.f32 %v5097_v47, %v3312_v0  ;;  %v5098_v50 = vmax.f32 %v5004_v48, 0.0  ;;  %v12536_v21 = vpop.f32.mrb[0].mxu1  ;;  %v3318_v48 = vadd.f32 %v17912_v41, %v17912_v41 }
 0xa30   : > { %v12537_v10 = vpop.f32.mrb[1].mxu1 }
 0xa31   : > { %v18466_v22 = vadd.f32 %v5098_v50, %v3313_v29  ;;  %v12538_v46 = vadd.f32 %v12537_v10, %v12536_v21  ;;  %v12539_v11 = vpop.f32.mrb[2].mxu1  ;;  %v20737_v50 = vld [vmem:[#allocation169_spill] sm:$0xff]  ;;  %v20738_v10 = vld [vmem:[#allocation48_spill] sm:$0xff] }
 0xa32   : > { %v12540_v54 = vpop.f32.mrb[3].mxu1 }
 0xa33   : > { %v5189_v20 = vpack.c.bf16 %v18466_v22, %v18462_v19  ;;  %v5009_v16 = vadd.f32 %v12538_v46, %v16325_v38  ;;  %v12541_v31 = vadd.f32 %v12540_v54, %v12539_v11  ;;  %v3319_v46 = vadd.f32 %v20738_v10, %v20738_v10  ;;  %v20765_v22 = vld [vmem:[#allocation178_spill] sm:$0xff] }
 0xa35   : > { %v5099_v57 = vmax.f32 %v5009_v16, 0.0  ;;  %v5012_v8 = vadd.f32 %v12541_v31, %v20733_v25 }
 0xa37   : > { %v18474_v62 = vadd.f32 %v5099_v57, %v3314_v2  ;;  %v5100_v27 = vmax.f32 %v5012_v8, 0.0  ;;  %v12542_v24 = vpop.f32.mrb[4].mxu1  ;;  %v20739_v8 = vld [vmem:[#allocation171_spill] sm:$0xff] }
 0xa38   : > { %v12543_v42 = vpop.f32.mrb[5].mxu1 }
 0xa39   : > { %v18478_v32 = vadd.f32 %v5100_v27, %v3315_v55  ;;  %v12544_v40 = vadd.f32 %v12543_v42, %v12542_v24  ;;  %v12545_v43 = vpop.f32.mrb[6].mxu1  ;;  %v20740_v42 = vld [vmem:[#allocation49_spill] sm:$0xff] }
 0xa3a   : > { %v12546_v38 = vpop.f32.mrb[7].mxu1  ;;  %v3320_v41 = vadd.f32 %v20740_v42, %v20740_v42 }
 0xa3b   : > { %v5190_v30 = vpack.c.bf16 %v18478_v32, %v18474_v62  ;;  %v5017_v37 = vadd.f32 %v12544_v40, %v20734_v53  ;;  %v12547_v39 = vadd.f32 %v12546_v38, %v12545_v43  ;;  %v20741_v43 = vld [vmem:[#allocation172_spill] sm:$0xff] }
 0xa3c   : > { %v13709_v62 = vld [vmem:[%s20059_s3 + $0x714] ss:$8 sps:$4 sm:$0xff]   ;;  %v13711_v32 = vld [vmem:[%s20059_s3 + $0x710] ss:$8 sps:$4 sm:$0xff]  }
 0xa3d   : > { %v5101_v5 = vmax.f32 %v5017_v37, 0.0  ;;  %v5020_v23 = vadd.f32 %v12547_v39, %v20735_v34  ;;  %v20742_v37 = vld [vmem:[#allocation32_spill] sm:$0xff] }
 0xa3e   : > { %v3321_v39 = vadd.f32 %v20742_v37, %v20742_v37 }
 0xa3f   : > { %v18486_v13 = vadd.f32 %v5101_v5, %v3316_v28  ;;  %v5102_v7 = vmax.f32 %v5020_v23, 0.0  ;;  %v12548_v61 = vpop.f32.mrb[8].mxu1 }
 0xa40   : > { %v12549_v63 = vpop.f32.mrb[9].mxu1 }
 0xa41   : > { %v18490_v6 = vadd.f32 %v5102_v7, %v3317_v17  ;;  %v12550_v45 = vadd.f32 %v12549_v63, %v12548_v61  ;;  %v12551_v14 = vpop.f32.mrb[10].mxu1  ;;  %v20743_v63 = vld [vmem:[#allocation173_spill] sm:$0xff] }
 0xa42   : > { %v12552_v1 = vpop.f32.mrb[11].mxu1 }
 0xa43   : > { %v5191_v0 = vpack.c.bf16 %v18490_v6, %v18486_v13  ;;  %v5025_v47 = vadd.f32 %v12550_v45, %v20736_v59  ;;  %v12553_v26 = vadd.f32 %v12552_v1, %v12551_v14  ;;  %v20744_v59 = vld [vmem:[#allocation31_spill] sm:$0xff]  ;;  %v13715_v6 = vld [vmem:[%s20059_s3 + $0x734] ss:$8 sps:$4 sm:$0xff]  }
 0xa44   : > { %v13714_v13 = vld [vmem:[%s20059_s3 + $0x720] ss:$8 sps:$4 sm:$0xff]  }
 0xa45   : > { %v5103_v29 = vmax.f32 %v5025_v47, 0.0  ;;  %v5028_v49 = vadd.f32 %v12553_v26, %v20737_v50  ;;  %v3322_v47 = vadd.f32 %v20744_v59, %v20744_v59 }
 0xa47   : > { %v5135_v21 = vadd.f32 %v5103_v29, %v3318_v48  ;;  %v5104_v11 = vmax.f32 %v5028_v49, 0.0  ;;  %v12554_v54 = vpop.f32.mrb[12].mxu1  ;;  %v20746_v48 = vld [vmem:[#allocation52_spill] sm:$0xff] }
 0xa48   : > { %v12555_v16 = vpop.f32.mrb[13].mxu1  ;;  %v3323_v29 = vadd.f32 %v20746_v48, %v20746_v48 }
 0xa49   : > { %v5136_v31 = vadd.f32 %v5104_v11, %v3319_v46  ;;  %v12556_v2 = vadd.f32 %v12555_v16, %v12554_v54  ;;  %v12557_v57 = vpop.f32.mrb[14].mxu1  ;;  %v20747_v16 = vld [vmem:[#allocation2_spill] sm:$0xff] }
 0xa4a   : > { %v12558_v25 = vpop.f32.mrb[15].mxu1 }
 0xa4b   : > { %v5033_v55 = vadd.f32 %v12556_v2, %v20739_v8  ;;  %v12559_v27 = vadd.f32 %v12558_v25, %v12557_v57  ;;  %v5192_v24 = vpack.c.bf16 %v5136_v31, %v5135_v21  ;;  %v20748_v25 = vld [vmem:[#allocation53_spill] sm:$0xff] }
 0xa4c   : > { %v3324_v8 = vadd.f32 %v20748_v25, %v20748_v25 }
 0xa4d   : > { %v5105_v40 = vmax.f32 %v5033_v55, 0.0  ;;  %v5036_v38 = vadd.f32 %v12559_v27, %v20741_v43  ;;  %12596 = vmatprep.subr.bf16.mxu0 %v5192_v24  ;;  %v20750_v27 = vld [vmem:[#allocation33_spill] sm:$0xff] }
 0xa4e   : > { %12597 = vmatpush3.bf16.msra.mxu0 %v5184_v4  ;;  %v3325_v24 = vadd.f32 %v20750_v27, %v20750_v27 }
 0xa4f   : > { %v5137_v53 = vadd.f32 %v5105_v40, %v3320_v41  ;;  %v5106_v28 = vmax.f32 %v5036_v38, 0.0  ;;  %v12560_v5 = vpop.f32.mrb[16].mxu1 }
 0xa50   : > { %v12561_v34 = vpop.f32.mrb[17].mxu1 }
 0xa51   : > { %v5138_v23 = vadd.f32 %v5106_v28, %v3321_v39  ;;  %v12562_v17 = vadd.f32 %v12561_v34, %v12560_v5  ;;  %v12563_v7 = vpop.f32.mrb[18].mxu1  ;;  %v20751_v39 = vld [vmem:[#allocation5_spill] sm:$0xff] }
 0xa52   : > { %v12564_v61 = vpop.f32.mrb[19].mxu1 }
 0xa53   : > { %v5041_v45 = vadd.f32 %v12562_v17, %v20743_v63  ;;  %v12565_v14 = vadd.f32 %v12564_v61, %v12563_v7  ;;  %v5193_v1 = vpack.c.bf16 %v5138_v23, %v5137_v53  ;;  %v20752_v23 = vld [vmem:[#allocation34_spill] sm:$0xff]  ;;  %v20754_v61 = vld [vmem:[#allocation56_spill] sm:$0xff] }
 0xa54   : > { %v3326_v17 = vadd.f32 %v20752_v23, %v20752_v23  ;;  %v3327_v63 = vadd.f32 %v20754_v61, %v20754_v61 }
 0xa55   : > { %v5107_v35 = vmax.f32 %v5041_v45, 0.0  ;;  %v5044_v4 = vadd.f32 %v12565_v14, %v20745_v36  ;;  %12598 = vmatprep.subr.bf16.mxu0 %v5193_v1 }
 0xa56   : > { %12599 = vmatpush3.bf16.msra.mxu0 %v5185_v15 }
 0xa57   : > { %v5139_v26 = vadd.f32 %v5107_v35, %v3322_v47  ;;  %v5108_v50 = vmax.f32 %v5044_v4, 0.0  ;;  %v12566_v49 = vpop.f32.mrb[20].mxu1  ;;  %v20755_v4 = vld [vmem:[#allocation10_spill] sm:$0xff] }
 0xa58   : > { %v12567_v21 = vpop.f32.mrb[21].mxu1 }
 0xa59   : > { %v5140_v10 = vadd.f32 %v5108_v50, %v3323_v29  ;;  %v12568_v46 = vadd.f32 %v12567_v21, %v12566_v49  ;;  %v12569_v11 = vpop.f32.mrb[22].mxu1  ;;  %v20756_v50 = vld [vmem:[#allocation57_spill] sm:$0xff] }
 0xa5a   : > { %v12570_v54 = vpop.f32.mrb[23].mxu1  ;;  %v3328_v49 = vadd.f32 %v20756_v50, %v20756_v50  ;;  %v13730_v50 = vld [vmem:[%s20059_s3 + $0x784] ss:$8 sps:$4 sm:$0xff]  }
 0xa5b   : > { %v5049_v31 = vadd.f32 %v12568_v46, %v20747_v16  ;;  %v12571_v2 = vadd.f32 %v12570_v54, %v12569_v11  ;;  %v5194_v57 = vpack.c.bf16 %v5140_v10, %v5139_v26  ;;  %v20758_v10 = vld [vmem:[#allocation35_spill] sm:$0xff] }
 0xa5c   : > { %v3329_v46 = vadd.f32 %v20758_v10, %v20758_v10  ;;  %v13739_v10 = vld [vmem:[%s20059_s3 + $0x7b4] ss:$8 sps:$4 sm:$0xff]  }
 0xa5d   : > { %v5109_v3 = vmax.f32 %v5049_v31, 0.0  ;;  %v5052_v15 = vadd.f32 %v12571_v2, %v20749_v33  ;;  %12600 = vmatprep.subr.bf16.mxu0 %v5194_v57 }
 0xa5e   : > { %12601 = vmatpush3.bf16.msra.mxu0 %v5186_v56 }
 0xa5f   : > { %v5141_v55 = vadd.f32 %v5109_v3, %v3324_v8  ;;  %v5110_v42 = vmax.f32 %v5052_v15, 0.0  ;;  %v12572_v41 = vpop.f32.mrb[24].mxu1  ;;  %v20759_v8 = vld [vmem:[#allocation16_spill] sm:$0xff] }
 0xa60   : > { %v12573_v40 = vpop.f32.mrb[25].mxu1 }
 0xa61   : > { %v5142_v43 = vadd.f32 %v5110_v42, %v3325_v24  ;;  %v12574_v38 = vadd.f32 %v12573_v40, %v12572_v41  ;;  %v12575_v53 = vpop.f32.mrb[26].mxu1  ;;  %v20762_v42 = vld [vmem:[#allocation60_spill] sm:$0xff] }
 0xa62   : > { %v12576_v37 = vpop.f32.mrb[27].mxu1  ;;  %v3331_v41 = vadd.f32 %v20762_v42, %v20762_v42  ;;  %v20768_v42 = vld [vmem:[#allocation183_spill] sm:$0xff] }
 0xa63   : > { %v5057_v28 = vadd.f32 %v12574_v38, %v20751_v39  ;;  %v12577_v5 = vadd.f32 %v12576_v37, %v12575_v53  ;;  %v5195_v34 = vpack.c.bf16 %v5142_v43, %v5141_v55  ;;  %v20760_v55 = vld [vmem:[#allocation36_spill] sm:$0xff] }
 0xa64   : > { %v3330_v27 = vadd.f32 %v20760_v55, %v20760_v55 }
 0xa65   : > { %v5111_v52 = vmax.f32 %v5057_v28, 0.0  ;;  %v5060_v56 = vadd.f32 %v12577_v5, %v20753_v18  ;;  %12602 = vmatprep.subr.bf16.mxu0 %v5195_v34  ;;  %v20763_v5 = vld [vmem:[#allocation22_spill] sm:$0xff] }
 0xa66   : > { %12603 = vmatpush3.bf16.msra.mxu0 %v5187_v58 }
 0xa67   : > { %v5143_v7 = vadd.f32 %v5111_v52, %v3326_v17  ;;  %v5112_v45 = vmax.f32 %v5060_v56, 0.0  ;;  %v12578_v14 = vpop.f32.mrb[28].mxu1  ;;  %v20764_v52 = vld [vmem:[#allocation61_spill] sm:$0xff] }
 0xa68   : > { %v12579_v1 = vpop.f32.mrb[29].mxu1  ;;  %v3332_v18 = vadd.f32 %v20764_v52, %v20764_v52  ;;  %v20770_v52 = vld [vmem:[#allocation187_spill] sm:$0xff] }
 0xa69   : > { %v5144_v59 = vadd.f32 %v5112_v45, %v3327_v63  ;;  %v12580_v47 = vadd.f32 %v12579_v1, %v12578_v14  ;;  %v12581_v35 = vpop.f32.mrb[30].mxu1  ;;  %v13706_v1 = vld [vmem:[%s20059_s3 + $0x700] ss:$8 sps:$4 sm:$0xff]  }
 0xa6a   : > { %v12582_v36 = vpop.f32.mrb[31].mxu1 }
 0xa6b   : > { %v5065_v26 = vadd.f32 %v12580_v47, %v20755_v4  ;;  %v12583_v48 = vadd.f32 %v12582_v36, %v12581_v35  ;;  %v5196_v29 = vpack.c.bf16 %v5144_v59, %v5143_v7  ;;  %v20766_v7 = vld [vmem:[#allocation37_spill] sm:$0xff]  ;;  %v13718_v59 = vld [vmem:[%s20059_s3 + $0x744] ss:$8 sps:$4 sm:$0xff]   ;;  %v13720_v47 = vld [vmem:[%s20059_s3 + $0x740] ss:$8 sps:$4 sm:$0xff]  }
 0xa6c   : > { %v3333_v61 = vadd.f32 %v20766_v7, %v20766_v7  ;;  %v13721_v35 = vld [vmem:[%s20059_s3 + $0x754] ss:$8 sps:$4 sm:$0xff]   ;;  %v13723_v36 = vld [vmem:[%s20059_s3 + $0x750] ss:$8 sps:$4 sm:$0xff]   ;;  %v13724_v4 = vld [vmem:[%s20059_s3 + $0x764] ss:$8 sps:$4 sm:$0xff]  }
 0xa6d   : > { %v5113_v60 = vmax.f32 %v5065_v26, 0.0  ;;  %v5068_v58 = vadd.f32 %v12583_v48, %v20757_v9  ;;  %12604 = vmatprep.subr.bf16.mxu0 %v5196_v29  ;;  %v13726_v26 = vld [vmem:[%s20059_s3 + $0x760] ss:$8 sps:$4 sm:$0xff]   ;;  %v13727_v48 = vld [vmem:[%s20059_s3 + $0x774] ss:$8 sps:$4 sm:$0xff]  }
 0xa6e   : > { %12605 = vmatpush3.bf16.msra.mxu0 %v5188_v12  ;;  %v13729_v29 = vld [vmem:[%s20059_s3 + $0x770] ss:$8 sps:$4 sm:$0xff]  }
 0xa6f   : > { %v5145_v21 = vadd.f32 %v5113_v60, %v3328_v49  ;;  %v5114_v11 = vmax.f32 %v5068_v58, 0.0  ;;  %v12584_v54 = vpop.f32.mrb[32].mxu1  ;;  %v13732_v49 = vld [vmem:[%s20059_s3 + $0x780] ss:$8 sps:$4 sm:$0xff]   ;;  %v13733_v60 = vld [vmem:[%s20059_s3 + $0x794] ss:$8 sps:$4 sm:$0xff]  }
 0xa70   : > { %v12585_v16 = vpop.f32.mrb[33].mxu1  ;;  %v13735_v9 = vld [vmem:[%s20059_s3 + $0x790] ss:$8 sps:$4 sm:$0xff]   ;;  %v13736_v58 = vld [vmem:[%s20059_s3 + $0x7a4] ss:$8 sps:$4 sm:$0xff]  }
 0xa71   : > { %v5146_v31 = vadd.f32 %v5114_v11, %v3329_v46  ;;  %v12586_v2 = vadd.f32 %v12585_v16, %v12584_v54  ;;  %v12587_v57 = vpop.f32.mrb[34].mxu1  ;;  %v13741_v46 = vld [vmem:[%s20059_s3 + $0x7b0] ss:$8 sps:$4 sm:$0xff]   ;;  %v13742_v11 = vld [vmem:[%s20059_s3 + $0x7c4] ss:$8 sps:$4 sm:$0xff]  }
 0xa72   : > { %v12588_v25 = vpop.f32.mrb[35].mxu1  ;;  %v13744_v54 = vld [vmem:[%s20059_s3 + $0x7c0] ss:$8 sps:$4 sm:$0xff]   ;;  %v13745_v16 = vld [vmem:[%s20059_s3 + $0x7d4] ss:$8 sps:$4 sm:$0xff]  }
 0xa73   : > { %v5073_v3 = vadd.f32 %v12586_v2, %v20759_v8  ;;  %v12589_v33 = vadd.f32 %v12588_v25, %v12587_v57  ;;  %v5197_v15 = vpack.c.bf16 %v5146_v31, %v5145_v21  ;;  %v13738_v21 = vld [vmem:[%s20059_s3 + $0x7a0] ss:$8 sps:$4 sm:$0xff]   ;;  %v13747_v31 = vld [vmem:[%s20059_s3 + $0x7d0] ss:$8 sps:$4 sm:$0xff]   ;;  %v13748_v2 = vld [vmem:[%s20059_s3 + $0x7e4] ss:$8 sps:$4 sm:$0xff]  }
 0xa74   : > { %v13750_v57 = vld [vmem:[%s20059_s3 + $0x7e0] ss:$8 sps:$4 sm:$0xff]   ;;  %v13751_v25 = vld [vmem:[%s20059_s3 + $0x7f4] ss:$8 sps:$4 sm:$0xff]   ;;  %v13753_v8 = vld [vmem:[%s20059_s3 + $0x7f0] ss:$8 sps:$4 sm:$0xff]  }
 0xa75   : > { %v5115_v44 = vmax.f32 %v5073_v3, 0.0  ;;  %v5076_v12 = vadd.f32 %v12589_v33, %v20761_v51  ;;  %12606 = vmatprep.subr.bf16.mxu0 %v5197_v15 }
 0xa76   : > { %12607 = vmatpush3.bf16.msra.mxu0 %v5189_v20 }
 0xa77   : > { %v5147_v24 = vadd.f32 %v5115_v44, %v3330_v27  ;;  %v5116_v40 = vmax.f32 %v5076_v12, 0.0  ;;  %v12590_v43 = vpop.f32.mrb[36].mxu1  ;;  %v20767_v44 = vld [vmem:[#allocation182_spill] sm:$0xff] }
 0xa78   : > { %v12591_v38 = vpop.f32.mrb[37].mxu1 }
 0xa79   : > { %v5148_v53 = vadd.f32 %v5116_v40, %v3331_v41  ;;  %v12592_v37 = vadd.f32 %v12591_v38, %v12590_v43  ;;  %v12593_v39 = vpop.f32.mrb[38].mxu1 }
 0xa7a   : > { %v12594_v28 = vpop.f32.mrb[39].mxu1 }
 0xa7b   : > { %v5081_v34 = vadd.f32 %v12592_v37, %v20763_v5  ;;  %v12595_v23 = vadd.f32 %v12594_v28, %v12593_v39  ;;  %v5198_v17 = vpack.c.bf16 %v5148_v53, %v5147_v24  ;;  %v13756_v24 = vld [vmem:[%s20059_s3 + $0x804] ss:$8 sps:$4 sm:$0xff]  }
 0xa7c   : > { %6212 = vmatprep.mubr.bf16.mxu1 %v13756_v24 }
 0xa7d   : > { %v5117_v19 = vmax.f32 %v5081_v34, 0.0  ;;  %v5084_v20 = vadd.f32 %v12595_v23, %v20765_v22  ;;  %12608 = vmatprep.subr.bf16.mxu0 %v5198_v17  ;;  %v20769_v34 = vld [vmem:[#allocation186_spill] sm:$0xff] }
 0xa7e   : > { %12609 = vmatpush3.bf16.msra.mxu0 %v5190_v30  ;;  %v13712_v30 = vld [vmem:[%s20059_s3 + $0x724] ss:$8 sps:$4 sm:$0xff]  }
 0xa7f   : > { %v5149_v56 = vadd.f32 %v5117_v19, %v3332_v18  ;;  %v5118_v63 = vmax.f32 %v5084_v20, 0.0 }
 0xa81   : > { %v5150_v45 = vadd.f32 %v5118_v63, %v3333_v61 }
 0xa83   : > { %v5199_v14 = vpack.c.bf16 %v5150_v45, %v5149_v56 }
 0xa85   : > { %12610 = vmatprep.subr.bf16.mxu0 %v5199_v14  ;;  %v20771_v14 = vld [vmem:[#allocation190_spill] sm:$0xff] }
 0xa86   : > { %12611 = vmatpush3.bf16.msra.mxu0 %v5191_v0  ;;  %v13717_v0 = vld [vmem:[%s20059_s3 + $0x730] ss:$8 sps:$4 sm:$0xff]  }
 0xa89   : > { %5586 = vmatmul.mubr.bf16.vlgmr.msra.gmra.mrb[184].mxu0 %v13706_v1 }
 0xa8a   : > { %5593 = vmatprep.mubr.bf16.mxu0 %v13709_v62 }
 0xa91   : > { %5594 = vmatmul.mubr.bf16.gmra.mrb[188].mxu0 %v13711_v32  ;;  %v20772_v32 = vld [vmem:[#allocation191_spill] sm:$0xff] }
 0xa92   : > { %5601 = vmatprep.mubr.bf16.mxu0 %v13712_v30 }
 0xa99   : > { %5602 = vmatmul.mubr.bf16.gmra.mrb[192].mxu0 %v13714_v13 }
 0xa9a   : > { %5609 = vmatprep.mubr.bf16.mxu0 %v13715_v6 }
 0xaa1   : > { %5610 = vmatmul.mubr.bf16.gmra.mrb[196].mxu0 %v13717_v0 }
 0xaa2   : > { %5617 = vmatprep.mubr.bf16.mxu0 %v13718_v59 }
 0xaa9   : > { %5618 = vmatmul.mubr.bf16.gmra.mrb[200].mxu0 %v13720_v47 }
 0xaaa   : > { %5625 = vmatprep.mubr.bf16.mxu0 %v13721_v35 }
 0xab1   : > { %5626 = vmatmul.mubr.bf16.gmra.mrb[204].mxu0 %v13723_v36 }
 0xab2   : > { %5633 = vmatprep.mubr.bf16.mxu0 %v13724_v4 }
 0xab9   : > { %5634 = vmatmul.mubr.bf16.gmra.mrb[208].mxu0 %v13726_v26  ;;  %v20773_v26 = vld [vmem:[#allocation194_spill] sm:$0xff] }
 0xaba   : > { %5641 = vmatprep.mubr.bf16.mxu0 %v13727_v48 }
 0xac1   : > { %5642 = vmatmul.mubr.bf16.gmra.mrb[212].mxu0 %v13729_v29 }
 0xac2   : > { %5649 = vmatprep.mubr.bf16.mxu0 %v13730_v50  ;;  %v20774_v50 = vld [vmem:[#allocation195_spill] sm:$0xff] }
 0xac9   : > { %5650 = vmatmul.mubr.bf16.gmra.mrb[216].mxu0 %v13732_v49 }
 0xaca   : > { %5657 = vmatprep.mubr.bf16.mxu0 %v13733_v60 }
 0xad1   : > { %5658 = vmatmul.mubr.bf16.gmra.mrb[220].mxu0 %v13735_v9 }
 0xad2   : > { %5665 = vmatprep.mubr.bf16.mxu0 %v13736_v58 }
 0xad9   : > { %5666 = vmatmul.mubr.bf16.gmra.mrb[224].mxu0 %v13738_v21 }
 0xada   : > { %5673 = vmatprep.mubr.bf16.mxu0 %v13739_v10 }
 0xae1   : > { %5674 = vmatmul.mubr.bf16.gmra.mrb[228].mxu0 %v13741_v46 }
 0xae2   : > { %5681 = vmatprep.mubr.bf16.mxu0 %v13742_v11 }
 0xae9   : > { %5682 = vmatmul.mubr.bf16.gmra.mrb[232].mxu0 %v13744_v54 }
 0xaea   : > { %5689 = vmatprep.mubr.bf16.mxu0 %v13745_v16  ;;  %v20775_v16 = vld [vmem:[#allocation198_spill] sm:$0xff] }
 0xaf1   : > { %5690 = vmatmul.mubr.bf16.gmra.mrb[236].mxu0 %v13747_v31 }
 0xaf2   : > { %5697 = vmatprep.mubr.bf16.mxu0 %v13748_v2 }
 0xaf9   : > { %5698 = vmatmul.mubr.bf16.gmra.mrb[240].mxu0 %v13750_v57  ;;  %v20776_v57 = vld [vmem:[#allocation199_spill] sm:$0xff] }
 0xafa   : > { %5705 = vmatprep.mubr.bf16.mxu0 %v13751_v25 }
 0xb01   : > { %5706 = vmatmul.mubr.bf16.gmra.mrb[244].mxu0 %v13753_v8 }
 0xb5c   : > { %v12612_v3 = vpop.f32.mrb[184].mxu0 }
 0xb5d   : > { %v12613_v33 = vpop.f32.mrb[185].mxu0 }
 0xb5e   : > { %v12614_v15 = vadd.f32 %v12613_v33, %v12612_v3  ;;  %v12615_v55 = vpop.f32.mrb[186].mxu0 }
 0xb5f   : > { %v12616_v27 = vpop.f32.mrb[187].mxu0 }
 0xb60   : > { %v5588_v51 = vadd.f32 %v12614_v15, %v20767_v44  ;;  %v12617_v12 = vadd.f32 %v12616_v27, %v12615_v55 }
 0xb62   : > { %v5591_v41 = vadd.f32 %v12617_v12, %v20768_v42  ;;  %v18664_v40 = vmax.f32 %v5588_v51, 0.0  ;;  %v20777_v12 = vld [vmem:[#allocation202_spill] sm:$0xff] }
 0xb64   : > { %v18666_v43 = vmax.f32 %v5591_v41, 0.0  ;;  %v12618_v38 = vpop.f32.mrb[188].mxu0  ;;  %v20778_v41 = vld [vmem:[#allocation203_spill] sm:$0xff] }
 0xb65   : > { %v12619_v53 = vpop.f32.mrb[189].mxu0 }
 0xb66   : > { %v12620_v37 = vadd.f32 %v12619_v53, %v12618_v38  ;;  %v12621_v39 = vpop.f32.mrb[190].mxu0  ;;  %v5811_v28 = vpack.c.bf16 %v18666_v43, %v18664_v40 }
 0xb67   : > { %v12622_v5 = vpop.f32.mrb[191].mxu0 }
 0xb68   : > { %v5596_v23 = vadd.f32 %v12620_v37, %v20769_v34  ;;  %v12623_v17 = vadd.f32 %v12622_v5, %v12621_v39 }
 0xb6a   : > { %v5599_v18 = vadd.f32 %v12623_v17, %v20770_v52  ;;  %v18672_v19 = vmax.f32 %v5596_v23, 0.0 }
 0xb6c   : > { %v18674_v22 = vmax.f32 %v5599_v18, 0.0  ;;  %v12624_v20 = vpop.f32.mrb[192].mxu0  ;;  %v20779_v18 = vld [vmem:[#allocation206_spill] sm:$0xff] }
 0xb6d   : > { %v12625_v56 = vpop.f32.mrb[193].mxu0 }
 0xb6e   : > { %v12626_v7 = vadd.f32 %v12625_v56, %v12624_v20  ;;  %v12627_v61 = vpop.f32.mrb[194].mxu0  ;;  %v5812_v63 = vpack.c.bf16 %v18674_v22, %v18672_v19 }
 0xb6f   : > { %v12628_v45 = vpop.f32.mrb[195].mxu0 }
 0xb70   : > { %v5604_v1 = vadd.f32 %v12626_v7, %v20771_v14  ;;  %v12629_v62 = vadd.f32 %v12628_v45, %v12627_v61  ;;  %v20780_v7 = vld [vmem:[#allocation207_spill] sm:$0xff] }
 0xb72   : > { %v5607_v30 = vadd.f32 %v12629_v62, %v20772_v32  ;;  %v18680_v13 = vmax.f32 %v5604_v1, 0.0 }
 0xb74   : > { %v18682_v6 = vmax.f32 %v5607_v30, 0.0  ;;  %v12630_v0 = vpop.f32.mrb[196].mxu0 }
 0xb75   : > { %v12631_v59 = vpop.f32.mrb[197].mxu0 }
 0xb76   : > { %v12632_v47 = vadd.f32 %v12631_v59, %v12630_v0  ;;  %v12633_v35 = vpop.f32.mrb[198].mxu0  ;;  %v5813_v36 = vpack.c.bf16 %v18682_v6, %v18680_v13 }
 0xb77   : > { %v12634_v4 = vpop.f32.mrb[199].mxu0 }
 0xb78   : > { %v5612_v48 = vadd.f32 %v12632_v47, %v20773_v26  ;;  %v12635_v29 = vadd.f32 %v12634_v4, %v12633_v35  ;;  %v20781_v47 = vld [vmem:[#allocation210_spill] sm:$0xff]  ;;  %v20782_v26 = vld [vmem:[#allocation211_spill] sm:$0xff] }
 0xb7a   : > { %v5615_v49 = vadd.f32 %v12635_v29, %v20774_v50  ;;  %v18688_v60 = vmax.f32 %v5612_v48, 0.0 }
 0xb7c   : > { %v18690_v9 = vmax.f32 %v5615_v49, 0.0  ;;  %v12636_v58 = vpop.f32.mrb[200].mxu0 }
 0xb7d   : > { %v12637_v21 = vpop.f32.mrb[201].mxu0 }
 0xb7e   : > { %v12638_v10 = vadd.f32 %v12637_v21, %v12636_v58  ;;  %v12639_v46 = vpop.f32.mrb[202].mxu0  ;;  %v5814_v11 = vpack.c.bf16 %v18690_v9, %v18688_v60 }
 0xb7f   : > { %v12640_v54 = vpop.f32.mrb[203].mxu0 }
 0xb80   : > { %v5620_v31 = vadd.f32 %v12638_v10, %v20775_v16  ;;  %v12641_v2 = vadd.f32 %v12640_v54, %v12639_v46  ;;  %v20783_v16 = vld [vmem:[#allocation180_spill] sm:$0xff] }
 0xb82   : > { %v5623_v25 = vadd.f32 %v12641_v2, %v20776_v57  ;;  %v18696_v8 = vmax.f32 %v5620_v31, 0.0  ;;  %v20784_v57 = vld [vmem:[#allocation181_spill] sm:$0xff] }
 0xb84   : > { %v18698_v3 = vmax.f32 %v5623_v25, 0.0  ;;  %v12642_v33 = vpop.f32.mrb[204].mxu0 }
 0xb85   : > { %v12643_v15 = vpop.f32.mrb[205].mxu0 }
 0xb86   : > { %v12644_v55 = vadd.f32 %v12643_v15, %v12642_v33  ;;  %v12645_v27 = vpop.f32.mrb[206].mxu0  ;;  %v5815_v44 = vpack.c.bf16 %v18698_v3, %v18696_v8 }
 0xb87   : > { %v12646_v51 = vpop.f32.mrb[207].mxu0 }
 0xb88   : > { %v5628_v24 = vadd.f32 %v12644_v55, %v20777_v12  ;;  %v12647_v42 = vadd.f32 %v12646_v51, %v12645_v27 }
 0xb8a   : > { %v5631_v38 = vadd.f32 %v12647_v42, %v20778_v41  ;;  %v18704_v53 = vmax.f32 %v5628_v24, 0.0  ;;  %v20785_v41 = vld [vmem:[#allocation184_spill] sm:$0xff] }
 0xb8c   : > { %v18706_v37 = vmax.f32 %v5631_v38, 0.0  ;;  %v12648_v39 = vpop.f32.mrb[208].mxu0 }
 0xb8d   : > { %v12649_v5 = vpop.f32.mrb[209].mxu0 }
 0xb8e   : > { %v12650_v34 = vadd.f32 %v12649_v5, %v12648_v39  ;;  %v12651_v23 = vpop.f32.mrb[210].mxu0  ;;  %v5816_v17 = vpack.c.bf16 %v18706_v37, %v18704_v53  ;;  %v20786_v5 = vld [vmem:[#allocation185_spill] sm:$0xff] }
 0xb8f   : > { %v12652_v52 = vpop.f32.mrb[211].mxu0 }
 0xb90   : > { %v5636_v20 = vadd.f32 %v12650_v34, %v20779_v18  ;;  %v12653_v56 = vadd.f32 %v12652_v52, %v12651_v23 }
 0xb92   : > { %v5639_v61 = vadd.f32 %v12653_v56, %v20780_v7  ;;  %v18712_v45 = vmax.f32 %v5636_v20, 0.0 }
 0xb94   : > { %v18714_v14 = vmax.f32 %v5639_v61, 0.0  ;;  %v12654_v1 = vpop.f32.mrb[212].mxu0 }
 0xb95   : > { %v12655_v62 = vpop.f32.mrb[213].mxu0 }
 0xb96   : > { %v12656_v32 = vadd.f32 %v12655_v62, %v12654_v1  ;;  %v12657_v30 = vpop.f32.mrb[214].mxu0  ;;  %v5817_v0 = vpack.c.bf16 %v18714_v14, %v18712_v45  ;;  %v20787_v62 = vld [vmem:[#allocation188_spill] sm:$0xff] }
 0xb97   : > { %v12658_v59 = vpop.f32.mrb[215].mxu0 }
 0xb98   : > { %v5644_v35 = vadd.f32 %v12656_v32, %v20781_v47  ;;  %v12659_v4 = vadd.f32 %v12658_v59, %v12657_v30 }
 0xb9a   : > { %v5647_v48 = vadd.f32 %v12659_v4, %v20782_v26  ;;  %v18720_v29 = vmax.f32 %v5644_v35, 0.0 }
 0xb9c   : > { %v18722_v50 = vmax.f32 %v5647_v48, 0.0  ;;  %v12660_v49 = vpop.f32.mrb[216].mxu0 }
 0xb9d   : > { %v12661_v58 = vpop.f32.mrb[217].mxu0 }
 0xb9e   : > { %v12662_v21 = vadd.f32 %v12661_v58, %v12660_v49  ;;  %v12663_v10 = vpop.f32.mrb[218].mxu0  ;;  %v5818_v46 = vpack.c.bf16 %v18722_v50, %v18720_v29 }
 0xb9f   : > { %v12664_v54 = vpop.f32.mrb[219].mxu0 }
 0xba0   : > { %v5652_v31 = vadd.f32 %v12662_v21, %v20783_v16  ;;  %v12665_v2 = vadd.f32 %v12664_v54, %v12663_v10  ;;  %v20789_v10 = vld [vmem:[#allocation192_spill] sm:$0xff] }
 0xba2   : > { %v5655_v25 = vadd.f32 %v12665_v2, %v20784_v57  ;;  %v18728_v15 = vmax.f32 %v5652_v31, 0.0 }
 0xba4   : > { %v12666_v33 = vpop.f32.mrb[220].mxu0  ;;  %v18730_v55 = vmax.f32 %v5655_v25, 0.0 }
 0xba5   : > { %v12667_v27 = vpop.f32.mrb[221].mxu0 }
 0xba6   : > { %v12668_v51 = vadd.f32 %v12667_v27, %v12666_v33  ;;  %v12669_v12 = vpop.f32.mrb[222].mxu0  ;;  %v5819_v24 = vpack.c.bf16 %v18730_v55, %v18728_v15 }
 0xba7   : > { %v12670_v42 = vpop.f32.mrb[223].mxu0 }
 0xba8   : > { %v5660_v38 = vadd.f32 %v12668_v51, %v20785_v41  ;;  %v12671_v39 = vadd.f32 %v12670_v42, %v12669_v12  ;;  %12708 = vmatprep.subr.bf16.mxu1 %v5819_v24  ;;  %v20791_v42 = vld [vmem:[#allocation196_spill] sm:$0xff] }
 0xba9   : > { %12709 = vmatpush3.bf16.msra.mxu1 %v5811_v28  ;;  %v20788_v28 = vld [vmem:[#allocation189_spill] sm:$0xff] }
 0xbaa   : > { %v5663_v34 = vadd.f32 %v12671_v39, %v20786_v5  ;;  %v18739_v52 = vmax.f32 %v5660_v38, 0.0 }
 0xbac   : > { %v12672_v23 = vpop.f32.mrb[224].mxu0  ;;  %v18741_v18 = vmax.f32 %v5663_v34, 0.0 }
 0xbad   : > { %v12673_v20 = vpop.f32.mrb[225].mxu0 }
 0xbae   : > { %v12674_v56 = vadd.f32 %v12673_v20, %v12672_v23  ;;  %v12675_v7 = vpop.f32.mrb[226].mxu0  ;;  %v5820_v61 = vpack.c.bf16 %v18741_v18, %v18739_v52 }
 0xbaf   : > { %v12676_v1 = vpop.f32.mrb[227].mxu0 }
 0xbb0   : > { %v5668_v32 = vadd.f32 %v12674_v56, %v20787_v62  ;;  %v12677_v30 = vadd.f32 %v12676_v1, %v12675_v7  ;;  %12710 = vmatprep.subr.bf16.mxu1 %v5820_v61  ;;  %v20793_v62 = vld [vmem:[#allocation200_spill] sm:$0xff] }
 0xbb1   : > { %12711 = vmatpush3.bf16.msra.mxu1 %v5812_v63  ;;  %v20790_v63 = vld [vmem:[#allocation193_spill] sm:$0xff] }
 0xbb2   : > { %v5671_v59 = vadd.f32 %v12677_v30, %v20788_v28  ;;  %v18750_v35 = vmax.f32 %v5668_v32, 0.0 }
 0xbb4   : > { %v12678_v47 = vpop.f32.mrb[228].mxu0  ;;  %v18752_v4 = vmax.f32 %v5671_v59, 0.0 }
 0xbb5   : > { %v12679_v26 = vpop.f32.mrb[229].mxu0 }
 0xbb6   : > { %v12680_v48 = vadd.f32 %v12679_v26, %v12678_v47  ;;  %v12681_v49 = vpop.f32.mrb[230].mxu0  ;;  %v5821_v58 = vpack.c.bf16 %v18752_v4, %v18750_v35 }
 0xbb7   : > { %v12682_v21 = vpop.f32.mrb[231].mxu0 }
 0xbb8   : > { %v5676_v54 = vadd.f32 %v12680_v48, %v20789_v10  ;;  %v12683_v16 = vadd.f32 %v12682_v21, %v12681_v49  ;;  %12712 = vmatprep.subr.bf16.mxu1 %v5821_v58 }
 0xbb9   : > { %12713 = vmatpush3.bf16.msra.mxu1 %v5813_v36  ;;  %v20792_v36 = vld [vmem:[#allocation197_spill] sm:$0xff] }
 0xbba   : > { %v5679_v31 = vadd.f32 %v12683_v16, %v20790_v63  ;;  %v18761_v57 = vmax.f32 %v5676_v54, 0.0  ;;  %v20795_v54 = vld [vmem:[#allocation204_spill] sm:$0xff] }
 0xbbc   : > { %v12684_v2 = vpop.f32.mrb[232].mxu0  ;;  %v18763_v25 = vmax.f32 %v5679_v31, 0.0 }
 0xbbd   : > { %v12685_v33 = vpop.f32.mrb[233].mxu0 }
 0xbbe   : > { %v12686_v27 = vadd.f32 %v12685_v33, %v12684_v2  ;;  %v12687_v51 = vpop.f32.mrb[234].mxu0  ;;  %v5822_v12 = vpack.c.bf16 %v18763_v25, %v18761_v57 }
 0xbbf   : > { %v12688_v24 = vpop.f32.mrb[235].mxu0 }
 0xbc0   : > { %v5684_v41 = vadd.f32 %v12686_v27, %v20791_v42  ;;  %v12689_v38 = vadd.f32 %v12688_v24, %v12687_v51  ;;  %12714 = vmatprep.subr.bf16.mxu1 %v5822_v12 }
 0xbc1   : > { %12715 = vmatpush3.bf16.msra.mxu1 %v5814_v11  ;;  %v20794_v11 = vld [vmem:[#allocation201_spill] sm:$0xff] }
 0xbc2   : > { %v5687_v39 = vadd.f32 %v12689_v38, %v20792_v36  ;;  %v18772_v34 = vmax.f32 %v5684_v41, 0.0  ;;  %v20797_v38 = vld [vmem:[#allocation208_spill] sm:$0xff] }
 0xbc4   : > { %v12690_v5 = vpop.f32.mrb[236].mxu0  ;;  %v18774_v23 = vmax.f32 %v5687_v39, 0.0 }
 0xbc5   : > { %v12691_v20 = vpop.f32.mrb[237].mxu0 }
 0xbc6   : > { %v12692_v56 = vadd.f32 %v12691_v20, %v12690_v5  ;;  %v12693_v7 = vpop.f32.mrb[238].mxu0  ;;  %v5823_v61 = vpack.c.bf16 %v18774_v23, %v18772_v34 }
 0xbc7   : > { %v12694_v1 = vpop.f32.mrb[239].mxu0 }
 0xbc8   : > { %v5692_v32 = vadd.f32 %v12692_v56, %v20793_v62  ;;  %v12695_v30 = vadd.f32 %v12694_v1, %v12693_v7  ;;  %12716 = vmatprep.subr.bf16.mxu1 %v5823_v61  ;;  %v13754_v61 = vld [vmem:[%s20059_s3 + $0x800] ss:$8 sps:$4 sm:$0xff]   ;;  %v13757_v1 = vld [vmem:[%s20059_s3 + $0x810] ss:$8 sps:$4 sm:$0xff]   ;;  %v13762_v62 = vld [vmem:[%s20059_s3 + $0x824] ss:$8 sps:$4 sm:$0xff]  }
 0xbc9   : > { %12717 = vmatpush3.bf16.msra.mxu1 %v5815_v44  ;;  %v20796_v44 = vld [vmem:[#allocation205_spill] sm:$0xff] }
 0xbca   : > { %v5695_v28 = vadd.f32 %v12695_v30, %v20794_v11  ;;  %v18783_v47 = vmax.f32 %v5692_v32, 0.0  ;;  %v13765_v32 = vld [vmem:[%s20059_s3 + $0x834] ss:$8 sps:$4 sm:$0xff]   ;;  %v13763_v30 = vld [vmem:[%s20059_s3 + $0x830] ss:$8 sps:$4 sm:$0xff]  }
 0xbcb   : > { %v13768_v11 = vld [vmem:[%s20059_s3 + $0x844] ss:$8 sps:$4 sm:$0xff]  }
 0xbcc   : > { %v12696_v59 = vpop.f32.mrb[240].mxu0  ;;  %v18785_v26 = vmax.f32 %v5695_v28, 0.0  ;;  %v13766_v28 = vld [vmem:[%s20059_s3 + $0x840] ss:$8 sps:$4 sm:$0xff]  }
 0xbcd   : > { %v12697_v48 = vpop.f32.mrb[241].mxu0 }
 0xbce   : > { %v12698_v49 = vadd.f32 %v12697_v48, %v12696_v59  ;;  %v12699_v58 = vpop.f32.mrb[242].mxu0  ;;  %v5824_v21 = vpack.c.bf16 %v18785_v26, %v18783_v47  ;;  %v13771_v59 = vld [vmem:[%s20059_s3 + $0x854] ss:$8 sps:$4 sm:$0xff]   ;;  %v13769_v48 = vld [vmem:[%s20059_s3 + $0x850] ss:$8 sps:$4 sm:$0xff]  }
 0xbcf   : > { %v12700_v10 = vpop.f32.mrb[243].mxu0 }
 0xbd0   : > { %v5700_v16 = vadd.f32 %v12698_v49, %v20795_v54  ;;  %v12701_v63 = vadd.f32 %v12700_v10, %v12699_v58  ;;  %12718 = vmatprep.subr.bf16.mxu1 %v5824_v21  ;;  %v13774_v49 = vld [vmem:[%s20059_s3 + $0x864] ss:$8 sps:$4 sm:$0xff]   ;;  %v13772_v58 = vld [vmem:[%s20059_s3 + $0x860] ss:$8 sps:$4 sm:$0xff]   ;;  %v13777_v21 = vld [vmem:[%s20059_s3 + $0x874] ss:$8 sps:$4 sm:$0xff]  }
 0xbd1   : > { %12719 = vmatpush3.bf16.msra.mxu1 %v5816_v17  ;;  %v20798_v17 = vld [vmem:[#allocation209_spill] sm:$0xff]  ;;  %v13780_v54 = vld [vmem:[%s20059_s3 + $0x884] ss:$8 sps:$4 sm:$0xff]  }
 0xbd2   : > { %v5703_v31 = vadd.f32 %v12701_v63, %v20796_v44  ;;  %v18794_v33 = vmax.f32 %v5700_v16, 0.0  ;;  %v13775_v10 = vld [vmem:[%s20059_s3 + $0x870] ss:$8 sps:$4 sm:$0xff]   ;;  %v13778_v16 = vld [vmem:[%s20059_s3 + $0x880] ss:$8 sps:$4 sm:$0xff]  }
 0xbd3   : > { %v13783_v63 = vld [vmem:[%s20059_s3 + $0x894] ss:$8 sps:$4 sm:$0xff]   ;;  %v13781_v44 = vld [vmem:[%s20059_s3 + $0x890] ss:$8 sps:$4 sm:$0xff]  }
 0xbd4   : > { %v12702_v2 = vpop.f32.mrb[244].mxu0  ;;  %v18796_v27 = vmax.f32 %v5703_v31, 0.0  ;;  %v13786_v31 = vld [vmem:[%s20059_s3 + $0x8a4] ss:$8 sps:$4 sm:$0xff]  }
 0xbd5   : > { %v12703_v51 = vpop.f32.mrb[245].mxu0 }
 0xbd6   : > { %v12704_v12 = vadd.f32 %v12703_v51, %v12702_v2  ;;  %v12705_v24 = vpop.f32.mrb[246].mxu0  ;;  %v5825_v42 = vpack.c.bf16 %v18796_v27, %v18794_v33  ;;  %v13784_v2 = vld [vmem:[%s20059_s3 + $0x8a0] ss:$8 sps:$4 sm:$0xff]   ;;  %v13789_v51 = vld [vmem:[%s20059_s3 + $0x8b4] ss:$8 sps:$4 sm:$0xff]  }
 0xbd7   : > { %v12706_v41 = vpop.f32.mrb[247].mxu0 }
 0xbd8   : > { %v5708_v36 = vadd.f32 %v12704_v12, %v20797_v38  ;;  %v12707_v39 = vadd.f32 %v12706_v41, %v12705_v24  ;;  %12720 = vmatprep.subr.bf16.mxu1 %v5825_v42  ;;  %v13787_v12 = vld [vmem:[%s20059_s3 + $0x8b0] ss:$8 sps:$4 sm:$0xff]   ;;  %v13792_v24 = vld [vmem:[%s20059_s3 + $0x8c4] ss:$8 sps:$4 sm:$0xff]   ;;  %v13790_v42 = vld [vmem:[%s20059_s3 + $0x8c0] ss:$8 sps:$4 sm:$0xff]  }
 0xbd9   : > { %12721 = vmatpush3.bf16.msra.mxu1 %v5817_v0  ;;  %v13759_v0 = vld [vmem:[%s20059_s3 + $0x814] ss:$8 sps:$4 sm:$0xff]   ;;  %v13793_v38 = vld [vmem:[%s20059_s3 + $0x8d0] ss:$8 sps:$4 sm:$0xff]  }
 0xbda   : > { %v5711_v5 = vadd.f32 %v12707_v39, %v20798_v17  ;;  %v18805_v20 = vmax.f32 %v5708_v36, 0.0  ;;  %v13795_v41 = vld [vmem:[%s20059_s3 + $0x8d4] ss:$8 sps:$4 sm:$0xff]   ;;  %v13798_v36 = vld [vmem:[%s20059_s3 + $0x8e4] ss:$8 sps:$4 sm:$0xff]  }
 0xbdb   : > { %v13796_v39 = vld [vmem:[%s20059_s3 + $0x8e0] ss:$8 sps:$4 sm:$0xff]   ;;  %v13801_v17 = vld [vmem:[%s20059_s3 + $0x8f4] ss:$8 sps:$4 sm:$0xff]  }
 0xbdc   : > { %v18807_v56 = vmax.f32 %v5711_v5, 0.0  ;;  %v13799_v5 = vld [vmem:[%s20059_s3 + $0x8f0] ss:$8 sps:$4 sm:$0xff]  }
 0xbde   : > { %v5826_v7 = vpack.c.bf16 %v18807_v56, %v18805_v20 }
 0xbe0   : > { %12722 = vmatprep.subr.bf16.mxu1 %v5826_v7 }
 0xbe1   : > { %12723 = vmatpush3.bf16.msra.mxu1 %v5818_v46  ;;  %v13760_v46 = vld [vmem:[%s20059_s3 + $0x820] ss:$8 sps:$4 sm:$0xff]  }
 0xbe4   : > { %6213 = vmatmul.mubr.bf16.vlgmr.msra.gmra.mrb[40].mxu1 %v13754_v61 }
 0xbe5   : > { %6220 = vmatprep.mubr.bf16.mxu1 %v13759_v0 }
 0xbec   : > { %6221 = vmatmul.mubr.bf16.gmra.mrb[44].mxu1 %v13757_v1 }
 0xbed   : > { %6228 = vmatprep.mubr.bf16.mxu1 %v13762_v62 }
 0xbf4   : > { %6229 = vmatmul.mubr.bf16.gmra.mrb[48].mxu1 %v13760_v46  ;;  %v20799_v46 = vld [vmem:[#allocation214_spill] sm:$0xff] }
 0xbf5   : > { %6236 = vmatprep.mubr.bf16.mxu1 %v13765_v32 }
 0xbfc   : > { %6237 = vmatmul.mubr.bf16.gmra.mrb[52].mxu1 %v13763_v30 }
 0xbfd   : > { %6244 = vmatprep.mubr.bf16.mxu1 %v13768_v11  ;;  %v13804_v11 = vld [vmem:[%s20059_s3 + $0x904] ss:$8 sps:$4 sm:$0xff]  }
 0xbfe   : > { %6807 = vmatprep.mubr.bf16.mxu0 %v13804_v11 }
 0xc04   : > { %6245 = vmatmul.mubr.bf16.gmra.mrb[56].mxu1 %v13766_v28  ;;  %v20800_v28 = vld [vmem:[#allocation215_spill] sm:$0xff] }
 0xc05   : > { %6252 = vmatprep.mubr.bf16.mxu1 %v13771_v59 }
 0xc0c   : > { %6253 = vmatmul.mubr.bf16.gmra.mrb[60].mxu1 %v13769_v48 }
 0xc0d   : > { %6260 = vmatprep.mubr.bf16.mxu1 %v13774_v49 }
 0xc14   : > { %6261 = vmatmul.mubr.bf16.gmra.mrb[64].mxu1 %v13772_v58 }
 0xc15   : > { %6268 = vmatprep.mubr.bf16.mxu1 %v13777_v21 }
 0xc1c   : > { %6269 = vmatmul.mubr.bf16.gmra.mrb[68].mxu1 %v13775_v10 }
 0xc1d   : > { %6276 = vmatprep.mubr.bf16.mxu1 %v13780_v54 }
 0xc24   : > { %6277 = vmatmul.mubr.bf16.gmra.mrb[72].mxu1 %v13778_v16 }
 0xc25   : > { %6284 = vmatprep.mubr.bf16.mxu1 %v13783_v63 }
 0xc2c   : > { %6285 = vmatmul.mubr.bf16.gmra.mrb[76].mxu1 %v13781_v44  ;;  %v20801_v44 = vld [vmem:[#allocation218_spill] sm:$0xff] }
 0xc2d   : > { %6292 = vmatprep.mubr.bf16.mxu1 %v13786_v31 }
 0xc34   : > { %6293 = vmatmul.mubr.bf16.gmra.mrb[80].mxu1 %v13784_v2 }
 0xc35   : > { %6300 = vmatprep.mubr.bf16.mxu1 %v13789_v51  ;;  %v20802_v51 = vld [vmem:[#allocation219_spill] sm:$0xff] }
 0xc3c   : > { %6301 = vmatmul.mubr.bf16.gmra.mrb[84].mxu1 %v13787_v12 }
 0xc3d   : > { %6308 = vmatprep.mubr.bf16.mxu1 %v13792_v24 }
 0xc44   : > { %6309 = vmatmul.mubr.bf16.gmra.mrb[88].mxu1 %v13790_v42 }
 0xc45   : > { %6316 = vmatprep.mubr.bf16.mxu1 %v13795_v41 }
 0xc4c   : > { %6317 = vmatmul.mubr.bf16.gmra.mrb[92].mxu1 %v13793_v38 }
 0xc4d   : > { %6324 = vmatprep.mubr.bf16.mxu1 %v13798_v36 }
 0xc54   : > { %6325 = vmatmul.mubr.bf16.gmra.mrb[96].mxu1 %v13796_v39 }
 0xc55   : > { %6332 = vmatprep.mubr.bf16.mxu1 %v13801_v17 }
 0xc5c   : > { %6333 = vmatmul.mubr.bf16.gmra.mrb[100].mxu1 %v13799_v5 }
 0xcb7   : > { %v12724_v7 = vpop.f32.mrb[40].mxu1 }
 0xcb8   : > { %v12725_v61 = vpop.f32.mrb[41].mxu1 }
 0xcb9   : > { %v12726_v0 = vadd.f32 %v12725_v61, %v12724_v7  ;;  %v12727_v1 = vpop.f32.mrb[42].mxu1  ;;  %v20803_v7 = vld [vmem:[#allocation222_spill] sm:$0xff] }
 0xcba   : > { %v12728_v62 = vpop.f32.mrb[43].mxu1 }
 0xcbb   : > { %v6215_v32 = vadd.f32 %v12726_v0, %v20799_v46  ;;  %v12729_v30 = vadd.f32 %v12728_v62, %v12727_v1  ;;  %v20804_v1 = vld [vmem:[#allocation223_spill] sm:$0xff] }
 0xcbd   : > { %v6218_v59 = vadd.f32 %v12729_v30, %v20800_v28  ;;  %v6341_v48 = vmax.f32 %v6215_v32, 0.0 }
 0xcbf   : > { %v6342_v49 = vmax.f32 %v6218_v59, 0.0  ;;  %v12730_v58 = vpop.f32.mrb[44].mxu1 }
 0xcc0   : > { %v12731_v21 = vpop.f32.mrb[45].mxu1 }
 0xcc1   : > { %v18912_v10 = vpack.c.bf16 %v6342_v49, %v6341_v48  ;;  %v12732_v54 = vadd.f32 %v12731_v21, %v12730_v58  ;;  %v12733_v16 = vpop.f32.mrb[46].mxu1  ;;  %v20805_v58 = vld [vmem:[#allocation226_spill] sm:$0xff] }
 0xcc2   : > { %v12734_v63 = vpop.f32.mrb[47].mxu1 }
 0xcc3   : > { %v6223_v31 = vadd.f32 %v12732_v54, %v20801_v44  ;;  %v12735_v2 = vadd.f32 %v12734_v63, %v12733_v16  ;;  %v20806_v16 = vld [vmem:[#allocation227_spill] sm:$0xff] }
 0xcc5   : > { %v6226_v12 = vadd.f32 %v12735_v2, %v20802_v51  ;;  %v6343_v24 = vmax.f32 %v6223_v31, 0.0 }
 0xcc7   : > { %v6344_v42 = vmax.f32 %v6226_v12, 0.0  ;;  %v12736_v41 = vpop.f32.mrb[48].mxu1 }
 0xcc8   : > { %v12737_v38 = vpop.f32.mrb[49].mxu1 }
 0xcc9   : > { %v18916_v36 = vpack.c.bf16 %v6344_v42, %v6343_v24  ;;  %v12738_v39 = vadd.f32 %v12737_v38, %v12736_v41  ;;  %v12739_v17 = vpop.f32.mrb[50].mxu1  ;;  %v20807_v38 = vld [vmem:[#allocation230_spill] sm:$0xff] }
 0xcca   : > { %v12740_v5 = vpop.f32.mrb[51].mxu1 }
 0xccb   : > { %v6231_v61 = vadd.f32 %v12738_v39, %v20803_v7  ;;  %v12741_v0 = vadd.f32 %v12740_v5, %v12739_v17  ;;  %v20808_v5 = vld [vmem:[#allocation231_spill] sm:$0xff] }
 0xccd   : > { %v6234_v62 = vadd.f32 %v12741_v0, %v20804_v1  ;;  %v6345_v46 = vmax.f32 %v6231_v61, 0.0 }
 0xccf   : > { %v6346_v32 = vmax.f32 %v6234_v62, 0.0  ;;  %v12742_v30 = vpop.f32.mrb[52].mxu1 }
 0xcd0   : > { %v12743_v11 = vpop.f32.mrb[53].mxu1 }
 0xcd1   : > { %v18920_v28 = vpack.c.bf16 %v6346_v32, %v6345_v46  ;;  %v12744_v59 = vadd.f32 %v12743_v11, %v12742_v30  ;;  %v12745_v48 = vpop.f32.mrb[54].mxu1 }
 0xcd2   : > { %v12746_v49 = vpop.f32.mrb[55].mxu1 }
 0xcd3   : > { %v6239_v21 = vadd.f32 %v12744_v59, %v20805_v58  ;;  %v12747_v54 = vadd.f32 %v12746_v49, %v12745_v48  ;;  %v20809_v59 = vld [vmem:[#allocation234_spill] sm:$0xff]  ;;  %v20810_v58 = vld [vmem:[#allocation235_spill] sm:$0xff] }
 0xcd5   : > { %v6242_v63 = vadd.f32 %v12747_v54, %v20806_v16  ;;  %v6347_v44 = vmax.f32 %v6239_v21, 0.0 }
 0xcd7   : > { %v6348_v31 = vmax.f32 %v6242_v63, 0.0  ;;  %v12748_v2 = vpop.f32.mrb[56].mxu1 }
 0xcd8   : > { %v12749_v51 = vpop.f32.mrb[57].mxu1 }
 0xcd9   : > { %v18924_v12 = vpack.c.bf16 %v6348_v31, %v6347_v44  ;;  %v12750_v24 = vadd.f32 %v12749_v51, %v12748_v2  ;;  %v12751_v42 = vpop.f32.mrb[58].mxu1 }
 0xcda   : > { %v12752_v41 = vpop.f32.mrb[59].mxu1 }
 0xcdb   : > { %v6247_v39 = vadd.f32 %v12750_v24, %v20807_v38  ;;  %v12753_v17 = vadd.f32 %v12752_v41, %v12751_v42  ;;  %v20811_v42 = vld [vmem:[#allocation238_spill] sm:$0xff] }
 0xcdd   : > { %v6250_v7 = vadd.f32 %v12753_v17, %v20808_v5  ;;  %v6349_v61 = vmax.f32 %v6247_v39, 0.0  ;;  %v20812_v39 = vld [vmem:[#allocation239_spill] sm:$0xff] }
 0xcdf   : > { %v6350_v0 = vmax.f32 %v6250_v7, 0.0  ;;  %v12754_v1 = vpop.f32.mrb[60].mxu1 }
 0xce0   : > { %v12755_v62 = vpop.f32.mrb[61].mxu1 }
 0xce1   : > { %v18928_v46 = vpack.c.bf16 %v6350_v0, %v6349_v61  ;;  %v12756_v32 = vadd.f32 %v12755_v62, %v12754_v1  ;;  %v12757_v30 = vpop.f32.mrb[62].mxu1 }
 0xce2   : > { %v12758_v11 = vpop.f32.mrb[63].mxu1 }
 0xce3   : > { %v6255_v48 = vadd.f32 %v12756_v32, %v20809_v59  ;;  %v12759_v49 = vadd.f32 %v12758_v11, %v12757_v30  ;;  %v20813_v11 = vld [vmem:[#allocation242_spill] sm:$0xff] }
 0xce5   : > { %v6258_v21 = vadd.f32 %v12759_v49, %v20810_v58  ;;  %v6351_v54 = vmax.f32 %v6255_v48, 0.0  ;;  %v20814_v49 = vld [vmem:[#allocation243_spill] sm:$0xff] }
 0xce7   : > { %v6352_v16 = vmax.f32 %v6258_v21, 0.0  ;;  %v12760_v63 = vpop.f32.mrb[64].mxu1 }
 0xce8   : > { %v12761_v44 = vpop.f32.mrb[65].mxu1 }
 0xce9   : > { %v18932_v31 = vpack.c.bf16 %v6352_v16, %v6351_v54  ;;  %v12762_v2 = vadd.f32 %v12761_v44, %v12760_v63  ;;  %v12763_v51 = vpop.f32.mrb[66].mxu1 }
 0xcea   : > { %v12764_v24 = vpop.f32.mrb[67].mxu1 }
 0xceb   : > { %v6263_v41 = vadd.f32 %v12762_v2, %v20811_v42  ;;  %v12765_v38 = vadd.f32 %v12764_v24, %v12763_v51  ;;  %v20815_v42 = vld [vmem:[#allocation212_spill] sm:$0xff] }
 0xced   : > { %v6266_v17 = vadd.f32 %v12765_v38, %v20812_v39  ;;  %v6353_v5 = vmax.f32 %v6263_v41, 0.0  ;;  %v20816_v39 = vld [vmem:[#allocation213_spill] sm:$0xff] }
 0xcef   : > { %v6354_v7 = vmax.f32 %v6266_v17, 0.0  ;;  %v12766_v61 = vpop.f32.mrb[68].mxu1 }
 0xcf0   : > { %v12767_v0 = vpop.f32.mrb[69].mxu1 }
 0xcf1   : > { %v18936_v1 = vpack.c.bf16 %v6354_v7, %v6353_v5  ;;  %v12768_v62 = vadd.f32 %v12767_v0, %v12766_v61  ;;  %v12769_v32 = vpop.f32.mrb[70].mxu1 }
 0xcf2   : > { %v12770_v30 = vpop.f32.mrb[71].mxu1 }
 0xcf3   : > { %v6271_v59 = vadd.f32 %v12768_v62, %v20813_v11  ;;  %v12771_v48 = vadd.f32 %v12770_v30, %v12769_v32 }
 0xcf5   : > { %v6274_v58 = vadd.f32 %v12771_v48, %v20814_v49  ;;  %v6355_v21 = vmax.f32 %v6271_v59, 0.0  ;;  %v20817_v59 = vld [vmem:[#allocation216_spill] sm:$0xff] }
 0xcf7   : > { %v6356_v54 = vmax.f32 %v6274_v58, 0.0  ;;  %v12772_v16 = vpop.f32.mrb[72].mxu1  ;;  %v20818_v58 = vld [vmem:[#allocation217_spill] sm:$0xff] }
 0xcf8   : > { %v12773_v63 = vpop.f32.mrb[73].mxu1 }
 0xcf9   : > { %v18940_v44 = vpack.c.bf16 %v6356_v54, %v6355_v21  ;;  %v12774_v2 = vadd.f32 %v12773_v63, %v12772_v16  ;;  %v12775_v51 = vpop.f32.mrb[74].mxu1 }
 0xcfa   : > { %v12776_v24 = vpop.f32.mrb[75].mxu1 }
 0xcfb   : > { %v6279_v41 = vadd.f32 %v12774_v2, %v20815_v42  ;;  %v12777_v38 = vadd.f32 %v12776_v24, %v12775_v51 }
 0xcfd   : > { %v6282_v17 = vadd.f32 %v12777_v38, %v20816_v39  ;;  %v6357_v5 = vmax.f32 %v6279_v41, 0.0  ;;  %v20819_v38 = vld [vmem:[#allocation220_spill] sm:$0xff] }
 0xcff   : > { %v6358_v7 = vmax.f32 %v6282_v17, 0.0  ;;  %v12778_v61 = vpop.f32.mrb[76].mxu1 }
 0xd00   : > { %v12779_v0 = vpop.f32.mrb[77].mxu1 }
 0xd01   : > { %v12780_v62 = vadd.f32 %v12779_v0, %v12778_v61  ;;  %v12781_v32 = vpop.f32.mrb[78].mxu1  ;;  %v6414_v30 = vpack.c.bf16 %v6358_v7, %v6357_v5  ;;  %v20820_v5 = vld [vmem:[#allocation221_spill] sm:$0xff] }
 0xd02   : > { %v12782_v11 = vpop.f32.mrb[79].mxu1 }
 0xd03   : > { %v6287_v48 = vadd.f32 %v12780_v62, %v20817_v59  ;;  %v12783_v49 = vadd.f32 %v12782_v11, %v12781_v32  ;;  %12820 = vmatprep.subr.bf16.mxu0 %v6414_v30 }
 0xd04   : > { %12821 = vmatpush3.bf16.msra.mxu0 %v18912_v10 }
 0xd05   : > { %v6290_v21 = vadd.f32 %v12783_v49, %v20818_v58  ;;  %v6359_v54 = vmax.f32 %v6287_v48, 0.0  ;;  %v20821_v48 = vld [vmem:[#allocation224_spill] sm:$0xff] }
 0xd07   : > { %v6360_v16 = vmax.f32 %v6290_v21, 0.0  ;;  %v12784_v63 = vpop.f32.mrb[80].mxu1  ;;  %v20822_v21 = vld [vmem:[#allocation225_spill] sm:$0xff] }
 0xd08   : > { %v12785_v2 = vpop.f32.mrb[81].mxu1 }
 0xd09   : > { %v12786_v51 = vadd.f32 %v12785_v2, %v12784_v63  ;;  %v12787_v24 = vpop.f32.mrb[82].mxu1  ;;  %v6415_v42 = vpack.c.bf16 %v6360_v16, %v6359_v54 }
 0xd0a   : > { %v12788_v41 = vpop.f32.mrb[83].mxu1 }
 0xd0b   : > { %v6295_v39 = vadd.f32 %v12786_v51, %v20819_v38  ;;  %v12789_v17 = vadd.f32 %v12788_v41, %v12787_v24  ;;  %12822 = vmatprep.subr.bf16.mxu0 %v6415_v42  ;;  %v20823_v38 = vld [vmem:[#allocation228_spill] sm:$0xff] }
 0xd0c   : > { %12823 = vmatpush3.bf16.msra.mxu0 %v18916_v36 }
 0xd0d   : > { %v6298_v7 = vadd.f32 %v12789_v17, %v20820_v5  ;;  %v6361_v61 = vmax.f32 %v6295_v39, 0.0  ;;  %v20824_v5 = vld [vmem:[#allocation229_spill] sm:$0xff] }
 0xd0f   : > { %v6362_v10 = vmax.f32 %v6298_v7, 0.0  ;;  %v12790_v0 = vpop.f32.mrb[84].mxu1 }
 0xd10   : > { %v12791_v62 = vpop.f32.mrb[85].mxu1 }
 0xd11   : > { %v12792_v32 = vadd.f32 %v12791_v62, %v12790_v0  ;;  %v12793_v30 = vpop.f32.mrb[86].mxu1  ;;  %v6416_v11 = vpack.c.bf16 %v6362_v10, %v6361_v61 }
 0xd12   : > { %v12794_v59 = vpop.f32.mrb[87].mxu1 }
 0xd13   : > { %v6303_v49 = vadd.f32 %v12792_v32, %v20821_v48  ;;  %v12795_v58 = vadd.f32 %v12794_v59, %v12793_v30  ;;  %12824 = vmatprep.subr.bf16.mxu0 %v6416_v11  ;;  %v20825_v59 = vld [vmem:[#allocation232_spill] sm:$0xff] }
 0xd14   : > { %12825 = vmatpush3.bf16.msra.mxu0 %v18920_v28 }
 0xd15   : > { %v6306_v54 = vadd.f32 %v12795_v58, %v20822_v21  ;;  %v6363_v16 = vmax.f32 %v6303_v49, 0.0  ;;  %v20826_v58 = vld [vmem:[#allocation233_spill] sm:$0xff] }
 0xd17   : > { %v6364_v36 = vmax.f32 %v6306_v54, 0.0  ;;  %v12796_v63 = vpop.f32.mrb[88].mxu1 }
 0xd18   : > { %v12797_v2 = vpop.f32.mrb[89].mxu1 }
 0xd19   : > { %v12798_v51 = vadd.f32 %v12797_v2, %v12796_v63  ;;  %v12799_v24 = vpop.f32.mrb[90].mxu1  ;;  %v6417_v42 = vpack.c.bf16 %v6364_v36, %v6363_v16 }
 0xd1a   : > { %v12800_v41 = vpop.f32.mrb[91].mxu1 }
 0xd1b   : > { %v6311_v39 = vadd.f32 %v12798_v51, %v20823_v38  ;;  %v12801_v17 = vadd.f32 %v12800_v41, %v12799_v24  ;;  %12826 = vmatprep.subr.bf16.mxu0 %v6417_v42  ;;  %v20827_v42 = vld [vmem:[#allocation236_spill] sm:$0xff] }
 0xd1c   : > { %12827 = vmatpush3.bf16.msra.mxu0 %v18924_v12 }
 0xd1d   : > { %v6314_v7 = vadd.f32 %v12801_v17, %v20824_v5  ;;  %v6365_v61 = vmax.f32 %v6311_v39, 0.0  ;;  %v20828_v39 = vld [vmem:[#allocation237_spill] sm:$0xff] }
 0xd1f   : > { %v6366_v28 = vmax.f32 %v6314_v7, 0.0  ;;  %v12802_v10 = vpop.f32.mrb[92].mxu1 }
 0xd20   : > { %v12803_v0 = vpop.f32.mrb[93].mxu1 }
 0xd21   : > { %v12804_v62 = vadd.f32 %v12803_v0, %v12802_v10  ;;  %v12805_v32 = vpop.f32.mrb[94].mxu1  ;;  %v6418_v30 = vpack.c.bf16 %v6366_v28, %v6365_v61 }
 0xd22   : > { %v12806_v11 = vpop.f32.mrb[95].mxu1 }
 0xd23   : > { %v6319_v48 = vadd.f32 %v12804_v62, %v20825_v59  ;;  %v12807_v49 = vadd.f32 %v12806_v11, %v12805_v32  ;;  %12828 = vmatprep.subr.bf16.mxu0 %v6418_v30  ;;  %v20829_v32 = vld [vmem:[#allocation240_spill] sm:$0xff]  ;;  %v20830_v59 = vld [vmem:[#allocation241_spill] sm:$0xff] }
 0xd24   : > { %12829 = vmatpush3.bf16.msra.mxu0 %v18928_v46 }
 0xd25   : > { %v6322_v21 = vadd.f32 %v12807_v49, %v20826_v58  ;;  %v6367_v54 = vmax.f32 %v6319_v48, 0.0 }
 0xd27   : > { %v6368_v12 = vmax.f32 %v6322_v21, 0.0  ;;  %v12808_v16 = vpop.f32.mrb[96].mxu1  ;;  %v13802_v21 = vld [vmem:[%s20059_s3 + $0x900] ss:$8 sps:$4 sm:$0xff]  }
 0xd28   : > { %v12809_v36 = vpop.f32.mrb[97].mxu1 }
 0xd29   : > { %v12810_v63 = vadd.f32 %v12809_v36, %v12808_v16  ;;  %v12811_v2 = vpop.f32.mrb[98].mxu1  ;;  %v6419_v51 = vpack.c.bf16 %v6368_v12, %v6367_v54  ;;  %v13805_v54 = vld [vmem:[%s20059_s3 + $0x914] ss:$8 sps:$4 sm:$0xff]   ;;  %v13810_v12 = vld [vmem:[%s20059_s3 + $0x924] ss:$8 sps:$4 sm:$0xff]  }
 0xd2a   : > { %v12812_v24 = vpop.f32.mrb[99].mxu1  ;;  %v13813_v16 = vld [vmem:[%s20059_s3 + $0x934] ss:$8 sps:$4 sm:$0xff]   ;;  %v13811_v36 = vld [vmem:[%s20059_s3 + $0x930] ss:$8 sps:$4 sm:$0xff]  }
 0xd2b   : > { %v6327_v41 = vadd.f32 %v12810_v63, %v20827_v42  ;;  %v12813_v38 = vadd.f32 %v12812_v24, %v12811_v2  ;;  %12830 = vmatprep.subr.bf16.mxu0 %v6419_v51  ;;  %v13816_v63 = vld [vmem:[%s20059_s3 + $0x944] ss:$8 sps:$4 sm:$0xff]   ;;  %v13814_v2 = vld [vmem:[%s20059_s3 + $0x940] ss:$8 sps:$4 sm:$0xff]   ;;  %v13819_v51 = vld [vmem:[%s20059_s3 + $0x954] ss:$8 sps:$4 sm:$0xff]  }
 0xd2c   : > { %12831 = vmatpush3.bf16.msra.mxu0 %v18932_v31  ;;  %v13817_v24 = vld [vmem:[%s20059_s3 + $0x950] ss:$8 sps:$4 sm:$0xff]   ;;  %v13822_v42 = vld [vmem:[%s20059_s3 + $0x964] ss:$8 sps:$4 sm:$0xff]  }
 0xd2d   : > { %v6330_v17 = vadd.f32 %v12813_v38, %v20828_v39  ;;  %v6369_v5 = vmax.f32 %v6327_v41, 0.0  ;;  %v13820_v41 = vld [vmem:[%s20059_s3 + $0x960] ss:$8 sps:$4 sm:$0xff]   ;;  %v13825_v38 = vld [vmem:[%s20059_s3 + $0x974] ss:$8 sps:$4 sm:$0xff]  }
 0xd2e   : > { %v13823_v39 = vld [vmem:[%s20059_s3 + $0x970] ss:$8 sps:$4 sm:$0xff]  }
 0xd2f   : > { %v6370_v46 = vmax.f32 %v6330_v17, 0.0  ;;  %v12814_v7 = vpop.f32.mrb[100].mxu1  ;;  %v13828_v17 = vld [vmem:[%s20059_s3 + $0x984] ss:$8 sps:$4 sm:$0xff]  }
 0xd30   : > { %v12815_v61 = vpop.f32.mrb[101].mxu1 }
 0xd31   : > { %v12816_v28 = vadd.f32 %v12815_v61, %v12814_v7  ;;  %v12817_v10 = vpop.f32.mrb[102].mxu1  ;;  %v6420_v0 = vpack.c.bf16 %v6370_v46, %v6369_v5  ;;  %v13826_v5 = vld [vmem:[%s20059_s3 + $0x980] ss:$8 sps:$4 sm:$0xff]   ;;  %v13831_v46 = vld [vmem:[%s20059_s3 + $0x994] ss:$8 sps:$4 sm:$0xff]  }
 0xd32   : > { %v12818_v62 = vpop.f32.mrb[103].mxu1  ;;  %v13829_v7 = vld [vmem:[%s20059_s3 + $0x990] ss:$8 sps:$4 sm:$0xff]   ;;  %v13834_v61 = vld [vmem:[%s20059_s3 + $0x9a4] ss:$8 sps:$4 sm:$0xff]  }
 0xd33   : > { %v6335_v30 = vadd.f32 %v12816_v28, %v20829_v32  ;;  %v12819_v11 = vadd.f32 %v12818_v62, %v12817_v10  ;;  %12832 = vmatprep.subr.bf16.mxu0 %v6420_v0  ;;  %v13832_v28 = vld [vmem:[%s20059_s3 + $0x9a0] ss:$8 sps:$4 sm:$0xff]   ;;  %v13837_v10 = vld [vmem:[%s20059_s3 + $0x9b4] ss:$8 sps:$4 sm:$0xff]   ;;  %v13835_v0 = vld [vmem:[%s20059_s3 + $0x9b0] ss:$8 sps:$4 sm:$0xff]  }
 0xd34   : > { %12833 = vmatpush3.bf16.msra.mxu0 %v18936_v1  ;;  %v13807_v1 = vld [vmem:[%s20059_s3 + $0x910] ss:$8 sps:$4 sm:$0xff]   ;;  %v13840_v62 = vld [vmem:[%s20059_s3 + $0x9c4] ss:$8 sps:$4 sm:$0xff]   ;;  %v13838_v32 = vld [vmem:[%s20059_s3 + $0x9c0] ss:$8 sps:$4 sm:$0xff]  }
 0xd35   : > { %v6338_v48 = vadd.f32 %v12819_v11, %v20830_v59  ;;  %v6371_v49 = vmax.f32 %v6335_v30, 0.0  ;;  %v13843_v30 = vld [vmem:[%s20059_s3 + $0x9d4] ss:$8 sps:$4 sm:$0xff]   ;;  %v13841_v11 = vld [vmem:[%s20059_s3 + $0x9d0] ss:$8 sps:$4 sm:$0xff]  }
 0xd36   : > { %v13846_v59 = vld [vmem:[%s20059_s3 + $0x9e4] ss:$8 sps:$4 sm:$0xff]  }
 0xd37   : > { %v6372_v31 = vmax.f32 %v6338_v48, 0.0  ;;  %v13844_v48 = vld [vmem:[%s20059_s3 + $0x9e0] ss:$8 sps:$4 sm:$0xff]  }
 0xd39   : > { %v6421_v58 = vpack.c.bf16 %v6372_v31, %v6371_v49  ;;  %v13849_v49 = vld [vmem:[%s20059_s3 + $0x9f4] ss:$8 sps:$4 sm:$0xff]   ;;  %v13847_v31 = vld [vmem:[%s20059_s3 + $0x9f0] ss:$8 sps:$4 sm:$0xff]  }
 0xd3b   : > { %12834 = vmatprep.subr.bf16.mxu0 %v6421_v58 }
 0xd3c   : > { %12835 = vmatpush3.bf16.msra.mxu0 %v18940_v44  ;;  %v13808_v44 = vld [vmem:[%s20059_s3 + $0x920] ss:$8 sps:$4 sm:$0xff]  }
 0xd3f   : > { %6808 = vmatmul.mubr.bf16.vlgmr.msra.gmra.mrb[248].mxu0 %v13802_v21 }
 0xd40   : > { %6815 = vmatprep.mubr.bf16.mxu0 %v13805_v54 }
 0xd47   : > { %6816 = vmatmul.mubr.bf16.gmra.mrb[252].mxu0 %v13807_v1 }
 0xd48   : > { %6823 = vmatprep.mubr.bf16.mxu0 %v13810_v12 }
 0xd4f   : > { %6824 = vmatmul.mubr.bf16.gmra.mrb[0].mxu0 %v13808_v44  ;;  %v20831_v44 = vld [vmem:[#allocation246_spill] sm:$0xff] }
 0xd50   : > { %6831 = vmatprep.mubr.bf16.mxu0 %v13813_v16 }
 0xd57   : > { %6832 = vmatmul.mubr.bf16.gmra.mrb[4].mxu0 %v13811_v36 }
 0xd58   : > { %6839 = vmatprep.mubr.bf16.mxu0 %v13816_v63  ;;  %v13852_v63 = vld [vmem:[%s20059_s3 + $0xa04] ss:$8 sps:$4 sm:$0xff]  }
 0xd59   : > { %7402 = vmatprep.mubr.bf16.mxu1 %v13852_v63 }
 0xd5f   : > { %6840 = vmatmul.mubr.bf16.gmra.mrb[8].mxu0 %v13814_v2  ;;  %v20832_v2 = vld [vmem:[#allocation247_spill] sm:$0xff] }
 0xd60   : > { %6847 = vmatprep.mubr.bf16.mxu0 %v13819_v51 }
 0xd67   : > { %6848 = vmatmul.mubr.bf16.gmra.mrb[12].mxu0 %v13817_v24 }
 0xd68   : > { %6855 = vmatprep.mubr.bf16.mxu0 %v13822_v42 }
 0xd6f   : > { %6856 = vmatmul.mubr.bf16.gmra.mrb[16].mxu0 %v13820_v41 }
 0xd70   : > { %6863 = vmatprep.mubr.bf16.mxu0 %v13825_v38 }
 0xd77   : > { %6864 = vmatmul.mubr.bf16.gmra.mrb[20].mxu0 %v13823_v39 }
 0xd78   : > { %6871 = vmatprep.mubr.bf16.mxu0 %v13828_v17 }
 0xd7f   : > { %6872 = vmatmul.mubr.bf16.gmra.mrb[24].mxu0 %v13826_v5 }
 0xd80   : > { %6879 = vmatprep.mubr.bf16.mxu0 %v13831_v46 }
 0xd87   : > { %6880 = vmatmul.mubr.bf16.gmra.mrb[28].mxu0 %v13829_v7  ;;  %v20833_v7 = vld [vmem:[#allocation250_spill] sm:$0xff] }
 0xd88   : > { %6887 = vmatprep.mubr.bf16.mxu0 %v13834_v61 }
 0xd8f   : > { %6888 = vmatmul.mubr.bf16.gmra.mrb[32].mxu0 %v13832_v28 }
 0xd90   : > { %6895 = vmatprep.mubr.bf16.mxu0 %v13837_v10  ;;  %v20834_v10 = vld [vmem:[#allocation251_spill] sm:$0xff] }
 0xd97   : > { %6896 = vmatmul.mubr.bf16.gmra.mrb[36].mxu0 %v13835_v0 }
 0xd98   : > { %6903 = vmatprep.mubr.bf16.mxu0 %v13840_v62 }
 0xd9f   : > { %6904 = vmatmul.mubr.bf16.gmra.mrb[40].mxu0 %v13838_v32 }
 0xda0   : > { %6911 = vmatprep.mubr.bf16.mxu0 %v13843_v30 }
 0xda7   : > { %6912 = vmatmul.mubr.bf16.gmra.mrb[44].mxu0 %v13841_v11 }
 0xda8   : > { %6919 = vmatprep.mubr.bf16.mxu0 %v13846_v59 }
 0xdaf   : > { %6920 = vmatmul.mubr.bf16.gmra.mrb[48].mxu0 %v13844_v48 }
 0xdb0   : > { %6927 = vmatprep.mubr.bf16.mxu0 %v13849_v49 }
 0xdb7   : > { %6928 = vmatmul.mubr.bf16.gmra.mrb[52].mxu0 %v13847_v31 }
 0xe12   : > { %v12836_v58 = vpop.f32.mrb[248].mxu0 }
 0xe13   : > { %v12837_v21 = vpop.f32.mrb[249].mxu0 }
 0xe14   : > { %v12838_v54 = vadd.f32 %v12837_v21, %v12836_v58  ;;  %v12839_v1 = vpop.f32.mrb[250].mxu0  ;;  %v20835_v58 = vld [vmem:[#allocation254_spill] sm:$0xff] }
 0xe15   : > { %v12840_v12 = vpop.f32.mrb[251].mxu0 }
 0xe16   : > { %v6810_v16 = vadd.f32 %v12838_v54, %v20831_v44  ;;  %v12841_v36 = vadd.f32 %v12840_v12, %v12839_v1  ;;  %v20836_v1 = vld [vmem:[#allocation255_spill] sm:$0xff] }
 0xe18   : > { %v6813_v51 = vadd.f32 %v12841_v36, %v20832_v2  ;;  %v6936_v24 = vmax.f32 %v6810_v16, 0.0 }
 0xe1a   : > { %v6937_v42 = vmax.f32 %v6813_v51, 0.0  ;;  %v12842_v41 = vpop.f32.mrb[252].mxu0 }
 0xe1b   : > { %v12843_v38 = vpop.f32.mrb[253].mxu0 }
 0xe1c   : > { %v19064_v39 = vpack.c.bf16 %v6937_v42, %v6936_v24  ;;  %v12844_v17 = vadd.f32 %v12843_v38, %v12842_v41  ;;  %v12845_v5 = vpop.f32.mrb[254].mxu0  ;;  %v20837_v41 = vld [vmem:[#allocation258_spill] sm:$0xff] }
 0xe1d   : > { %v12846_v46 = vpop.f32.mrb[255].mxu0 }
 0xe1e   : > { %v6818_v61 = vadd.f32 %v12844_v17, %v20833_v7  ;;  %v12847_v28 = vadd.f32 %v12846_v46, %v12845_v5  ;;  %v20838_v5 = vld [vmem:[#allocation259_spill] sm:$0xff] }
 0xe20   : > { %v6821_v0 = vadd.f32 %v12847_v28, %v20834_v10  ;;  %v6938_v62 = vmax.f32 %v6818_v61, 0.0 }
 0xe22   : > { %v6939_v32 = vmax.f32 %v6821_v0, 0.0  ;;  %v12848_v30 = vpop.f32.mrb[0].mxu0 }
 0xe23   : > { %v12849_v11 = vpop.f32.mrb[1].mxu0 }
 0xe24   : > { %v19068_v59 = vpack.c.bf16 %v6939_v32, %v6938_v62  ;;  %v12850_v48 = vadd.f32 %v12849_v11, %v12848_v30  ;;  %v12851_v49 = vpop.f32.mrb[2].mxu0  ;;  %v20839_v11 = vld [vmem:[#allocation262_spill] sm:$0xff] }
 0xe25   : > { %v12852_v31 = vpop.f32.mrb[3].mxu0 }
 0xe26   : > { %v6826_v21 = vadd.f32 %v12850_v48, %v20835_v58  ;;  %v12853_v54 = vadd.f32 %v12852_v31, %v12851_v49  ;;  %v20840_v31 = vld [vmem:[#allocation263_spill] sm:$0xff] }
 0xe28   : > { %v6829_v12 = vadd.f32 %v12853_v54, %v20836_v1  ;;  %v6940_v44 = vmax.f32 %v6826_v21, 0.0 }
 0xe2a   : > { %v6941_v16 = vmax.f32 %v6829_v12, 0.0  ;;  %v12854_v36 = vpop.f32.mrb[4].mxu0 }
 0xe2b   : > { %v12855_v63 = vpop.f32.mrb[5].mxu0 }
 0xe2c   : > { %v19072_v2 = vpack.c.bf16 %v6941_v16, %v6940_v44  ;;  %v12856_v51 = vadd.f32 %v12855_v63, %v12854_v36  ;;  %v12857_v24 = vpop.f32.mrb[6].mxu0 }
 0xe2d   : > { %v12858_v42 = vpop.f32.mrb[7].mxu0 }
 0xe2e   : > { %v6834_v38 = vadd.f32 %v12856_v51, %v20837_v41  ;;  %v12859_v17 = vadd.f32 %v12858_v42, %v12857_v24  ;;  %v20841_v51 = vld [vmem:[#allocation266_spill] sm:$0xff]  ;;  %v20842_v41 = vld [vmem:[#allocation267_spill] sm:$0xff] }
 0xe30   : > { %v6837_v46 = vadd.f32 %v12859_v17, %v20838_v5  ;;  %v6942_v7 = vmax.f32 %v6834_v38, 0.0 }
 0xe32   : > { %v6943_v61 = vmax.f32 %v6837_v46, 0.0  ;;  %v12860_v28 = vpop.f32.mrb[8].mxu0 }
 0xe33   : > { %v12861_v10 = vpop.f32.mrb[9].mxu0 }
 0xe34   : > { %v19076_v0 = vpack.c.bf16 %v6943_v61, %v6942_v7  ;;  %v12862_v62 = vadd.f32 %v12861_v10, %v12860_v28  ;;  %v12863_v32 = vpop.f32.mrb[10].mxu0 }
 0xe35   : > { %v12864_v30 = vpop.f32.mrb[11].mxu0 }
 0xe36   : > { %v6842_v48 = vadd.f32 %v12862_v62, %v20839_v11  ;;  %v12865_v49 = vadd.f32 %v12864_v30, %v12863_v32  ;;  %v20843_v32 = vld [vmem:[#allocation270_spill] sm:$0xff] }
 0xe38   : > { %v6845_v58 = vadd.f32 %v12865_v49, %v20840_v31  ;;  %v6944_v21 = vmax.f32 %v6842_v48, 0.0  ;;  %v20844_v48 = vld [vmem:[#allocation271_spill] sm:$0xff] }
 0xe3a   : > { %v6945_v54 = vmax.f32 %v6845_v58, 0.0  ;;  %v12866_v1 = vpop.f32.mrb[12].mxu0 }
 0xe3b   : > { %v12867_v12 = vpop.f32.mrb[13].mxu0 }
 0xe3c   : > { %v19080_v44 = vpack.c.bf16 %v6945_v54, %v6944_v21  ;;  %v12868_v16 = vadd.f32 %v12867_v12, %v12866_v1  ;;  %v12869_v36 = vpop.f32.mrb[14].mxu0 }
 0xe3d   : > { %v12870_v63 = vpop.f32.mrb[15].mxu0 }
 0xe3e   : > { %v6850_v24 = vadd.f32 %v12868_v16, %v20841_v51  ;;  %v12871_v42 = vadd.f32 %v12870_v63, %v12869_v36  ;;  %v20845_v63 = vld [vmem:[#allocation274_spill] sm:$0xff] }
 0xe40   : > { %v6853_v38 = vadd.f32 %v12871_v42, %v20842_v41  ;;  %v6946_v17 = vmax.f32 %v6850_v24, 0.0  ;;  %v20846_v42 = vld [vmem:[#allocation275_spill] sm:$0xff] }
 0xe42   : > { %v6947_v5 = vmax.f32 %v6853_v38, 0.0  ;;  %v12872_v46 = vpop.f32.mrb[16].mxu0 }
 0xe43   : > { %v12873_v7 = vpop.f32.mrb[17].mxu0 }
 0xe44   : > { %v19084_v61 = vpack.c.bf16 %v6947_v5, %v6946_v17  ;;  %v12874_v28 = vadd.f32 %v12873_v7, %v12872_v46  ;;  %v12875_v10 = vpop.f32.mrb[18].mxu0 }
 0xe45   : > { %v12876_v62 = vpop.f32.mrb[19].mxu0 }
 0xe46   : > { %v6858_v30 = vadd.f32 %v12874_v28, %v20843_v32  ;;  %v12877_v11 = vadd.f32 %v12876_v62, %v12875_v10  ;;  %v20847_v32 = vld [vmem:[#allocation244_spill] sm:$0xff] }
 0xe48   : > { %v6861_v49 = vadd.f32 %v12877_v11, %v20844_v48  ;;  %v6948_v31 = vmax.f32 %v6858_v30, 0.0  ;;  %v20848_v48 = vld [vmem:[#allocation245_spill] sm:$0xff] }
 0xe4a   : > { %v6949_v58 = vmax.f32 %v6861_v49, 0.0  ;;  %v12878_v21 = vpop.f32.mrb[20].mxu0 }
 0xe4b   : > { %v12879_v54 = vpop.f32.mrb[21].mxu0 }
 0xe4c   : > { %v19088_v1 = vpack.c.bf16 %v6949_v58, %v6948_v31  ;;  %v12880_v12 = vadd.f32 %v12879_v54, %v12878_v21  ;;  %v12881_v16 = vpop.f32.mrb[22].mxu0 }
 0xe4d   : > { %v12882_v36 = vpop.f32.mrb[23].mxu0 }
 0xe4e   : > { %v6866_v51 = vadd.f32 %v12880_v12, %v20845_v63  ;;  %v12883_v24 = vadd.f32 %v12882_v36, %v12881_v16 }
 0xe50   : > { %v6869_v41 = vadd.f32 %v12883_v24, %v20846_v42  ;;  %v6950_v38 = vmax.f32 %v6866_v51, 0.0  ;;  %v20849_v51 = vld [vmem:[#allocation248_spill] sm:$0xff] }
 0xe52   : > { %v6951_v17 = vmax.f32 %v6869_v41, 0.0  ;;  %v12884_v5 = vpop.f32.mrb[24].mxu0  ;;  %v20850_v41 = vld [vmem:[#allocation249_spill] sm:$0xff] }
 0xe53   : > { %v12885_v46 = vpop.f32.mrb[25].mxu0 }
 0xe54   : > { %v19092_v7 = vpack.c.bf16 %v6951_v17, %v6950_v38  ;;  %v12886_v28 = vadd.f32 %v12885_v46, %v12884_v5  ;;  %v12887_v10 = vpop.f32.mrb[26].mxu0 }
 0xe55   : > { %v12888_v62 = vpop.f32.mrb[27].mxu0 }
 0xe56   : > { %v6874_v30 = vadd.f32 %v12886_v28, %v20847_v32  ;;  %v12889_v11 = vadd.f32 %v12888_v62, %v12887_v10 }
 0xe58   : > { %v6877_v49 = vadd.f32 %v12889_v11, %v20848_v48  ;;  %v6952_v31 = vmax.f32 %v6874_v30, 0.0  ;;  %v20851_v11 = vld [vmem:[#allocation252_spill] sm:$0xff] }
 0xe5a   : > { %v6953_v58 = vmax.f32 %v6877_v49, 0.0  ;;  %v12890_v21 = vpop.f32.mrb[28].mxu0 }
 0xe5b   : > { %v12891_v54 = vpop.f32.mrb[29].mxu0 }
 0xe5c   : > { %v12892_v12 = vadd.f32 %v12891_v54, %v12890_v21  ;;  %v12893_v16 = vpop.f32.mrb[30].mxu0  ;;  %v7009_v36 = vpack.c.bf16 %v6953_v58, %v6952_v31  ;;  %v20852_v31 = vld [vmem:[#allocation253_spill] sm:$0xff] }
 0xe5d   : > { %v12894_v63 = vpop.f32.mrb[31].mxu0 }
 0xe5e   : > { %v6882_v24 = vadd.f32 %v12892_v12, %v20849_v51  ;;  %v12895_v42 = vadd.f32 %v12894_v63, %v12893_v16  ;;  %12932 = vmatprep.subr.bf16.mxu1 %v7009_v36 }
 0xe5f   : > { %12933 = vmatpush3.bf16.msra.mxu1 %v19064_v39 }
 0xe60   : > { %v6885_v38 = vadd.f32 %v12895_v42, %v20850_v41  ;;  %v6954_v17 = vmax.f32 %v6882_v24, 0.0  ;;  %v20853_v24 = vld [vmem:[#allocation256_spill] sm:$0xff] }
 0xe62   : > { %v6955_v5 = vmax.f32 %v6885_v38, 0.0  ;;  %v12896_v46 = vpop.f32.mrb[32].mxu0  ;;  %v20854_v38 = vld [vmem:[#allocation257_spill] sm:$0xff] }
 0xe63   : > { %v12897_v28 = vpop.f32.mrb[33].mxu0 }
 0xe64   : > { %v12898_v10 = vadd.f32 %v12897_v28, %v12896_v46  ;;  %v12899_v62 = vpop.f32.mrb[34].mxu0  ;;  %v7010_v32 = vpack.c.bf16 %v6955_v5, %v6954_v17 }
 0xe65   : > { %v12900_v30 = vpop.f32.mrb[35].mxu0 }
 0xe66   : > { %v6890_v48 = vadd.f32 %v12898_v10, %v20851_v11  ;;  %v12901_v49 = vadd.f32 %v12900_v30, %v12899_v62  ;;  %12934 = vmatprep.subr.bf16.mxu1 %v7010_v32  ;;  %v20855_v11 = vld [vmem:[#allocation260_spill] sm:$0xff] }
 0xe67   : > { %12935 = vmatpush3.bf16.msra.mxu1 %v19068_v59 }
 0xe68   : > { %v6893_v58 = vadd.f32 %v12901_v49, %v20852_v31  ;;  %v6956_v21 = vmax.f32 %v6890_v48, 0.0  ;;  %v20856_v31 = vld [vmem:[#allocation261_spill] sm:$0xff] }
 0xe6a   : > { %v6957_v39 = vmax.f32 %v6893_v58, 0.0  ;;  %v12902_v54 = vpop.f32.mrb[36].mxu0 }
 0xe6b   : > { %v12903_v12 = vpop.f32.mrb[37].mxu0 }
 0xe6c   : > { %v12904_v16 = vadd.f32 %v12903_v12, %v12902_v54  ;;  %v12905_v36 = vpop.f32.mrb[38].mxu0  ;;  %v7011_v63 = vpack.c.bf16 %v6957_v39, %v6956_v21 }
 0xe6d   : > { %v12906_v51 = vpop.f32.mrb[39].mxu0 }
 0xe6e   : > { %v6898_v42 = vadd.f32 %v12904_v16, %v20853_v24  ;;  %v12907_v41 = vadd.f32 %v12906_v51, %v12905_v36  ;;  %12936 = vmatprep.subr.bf16.mxu1 %v7011_v63  ;;  %v20857_v51 = vld [vmem:[#allocation264_spill] sm:$0xff] }
 0xe6f   : > { %12937 = vmatpush3.bf16.msra.mxu1 %v19072_v2 }
 0xe70   : > { %v6901_v17 = vadd.f32 %v12907_v41, %v20854_v38  ;;  %v6958_v5 = vmax.f32 %v6898_v42, 0.0  ;;  %v20858_v41 = vld [vmem:[#allocation265_spill] sm:$0xff] }
 0xe72   : > { %v6959_v59 = vmax.f32 %v6901_v17, 0.0  ;;  %v12908_v46 = vpop.f32.mrb[40].mxu0 }
 0xe73   : > { %v12909_v28 = vpop.f32.mrb[41].mxu0 }
 0xe74   : > { %v12910_v10 = vadd.f32 %v12909_v28, %v12908_v46  ;;  %v12911_v62 = vpop.f32.mrb[42].mxu0  ;;  %v7012_v32 = vpack.c.bf16 %v6959_v59, %v6958_v5 }
 0xe75   : > { %v12912_v30 = vpop.f32.mrb[43].mxu0 }
 0xe76   : > { %v6906_v48 = vadd.f32 %v12910_v10, %v20855_v11  ;;  %v12913_v49 = vadd.f32 %v12912_v30, %v12911_v62  ;;  %12938 = vmatprep.subr.bf16.mxu1 %v7012_v32  ;;  %v20859_v32 = vld [vmem:[#allocation268_spill] sm:$0xff] }
 0xe77   : > { %12939 = vmatpush3.bf16.msra.mxu1 %v19076_v0 }
 0xe78   : > { %v6909_v58 = vadd.f32 %v12913_v49, %v20856_v31  ;;  %v6960_v21 = vmax.f32 %v6906_v48, 0.0  ;;  %v20860_v48 = vld [vmem:[#allocation269_spill] sm:$0xff] }
 0xe7a   : > { %v6961_v2 = vmax.f32 %v6909_v58, 0.0  ;;  %v12914_v39 = vpop.f32.mrb[44].mxu0 }
 0xe7b   : > { %v12915_v54 = vpop.f32.mrb[45].mxu0 }
 0xe7c   : > { %v12916_v12 = vadd.f32 %v12915_v54, %v12914_v39  ;;  %v12917_v16 = vpop.f32.mrb[46].mxu0  ;;  %v7013_v36 = vpack.c.bf16 %v6961_v2, %v6960_v21 }
 0xe7d   : > { %v12918_v63 = vpop.f32.mrb[47].mxu0 }
 0xe7e   : > { %v6914_v24 = vadd.f32 %v12916_v12, %v20857_v51  ;;  %v12919_v42 = vadd.f32 %v12918_v63, %v12917_v16  ;;  %12940 = vmatprep.subr.bf16.mxu1 %v7013_v36  ;;  %v20861_v16 = vld [vmem:[#allocation272_spill] sm:$0xff]  ;;  %v20862_v51 = vld [vmem:[#allocation273_spill] sm:$0xff] }
 0xe7f   : > { %12941 = vmatpush3.bf16.msra.mxu1 %v19080_v44 }
 0xe80   : > { %v6917_v38 = vadd.f32 %v12919_v42, %v20858_v41  ;;  %v6962_v17 = vmax.f32 %v6914_v24, 0.0 }
 0xe82   : > { %v6963_v0 = vmax.f32 %v6917_v38, 0.0  ;;  %v12920_v5 = vpop.f32.mrb[48].mxu0  ;;  %v13850_v38 = vld [vmem:[%s20059_s3 + $0xa00] ss:$8 sps:$4 sm:$0xff]  }
 0xe83   : > { %v12921_v59 = vpop.f32.mrb[49].mxu0 }
 0xe84   : > { %v12922_v46 = vadd.f32 %v12921_v59, %v12920_v5  ;;  %v12923_v28 = vpop.f32.mrb[50].mxu0  ;;  %v7014_v10 = vpack.c.bf16 %v6963_v0, %v6962_v17  ;;  %v13855_v17 = vld [vmem:[%s20059_s3 + $0xa14] ss:$8 sps:$4 sm:$0xff]   ;;  %v13858_v0 = vld [vmem:[%s20059_s3 + $0xa24] ss:$8 sps:$4 sm:$0xff]  }
 0xe85   : > { %v12924_v62 = vpop.f32.mrb[51].mxu0  ;;  %v13861_v5 = vld [vmem:[%s20059_s3 + $0xa34] ss:$8 sps:$4 sm:$0xff]   ;;  %v13859_v59 = vld [vmem:[%s20059_s3 + $0xa30] ss:$8 sps:$4 sm:$0xff]  }
 0xe86   : > { %v6922_v30 = vadd.f32 %v12922_v46, %v20859_v32  ;;  %v12925_v11 = vadd.f32 %v12924_v62, %v12923_v28  ;;  %12942 = vmatprep.subr.bf16.mxu1 %v7014_v10  ;;  %v13864_v46 = vld [vmem:[%s20059_s3 + $0xa44] ss:$8 sps:$4 sm:$0xff]   ;;  %v13862_v28 = vld [vmem:[%s20059_s3 + $0xa40] ss:$8 sps:$4 sm:$0xff]   ;;  %v13867_v10 = vld [vmem:[%s20059_s3 + $0xa54] ss:$8 sps:$4 sm:$0xff]  }
 0xe87   : > { %12943 = vmatpush3.bf16.msra.mxu1 %v19084_v61  ;;  %v13865_v62 = vld [vmem:[%s20059_s3 + $0xa50] ss:$8 sps:$4 sm:$0xff]   ;;  %v13870_v32 = vld [vmem:[%s20059_s3 + $0xa64] ss:$8 sps:$4 sm:$0xff]  }
 0xe88   : > { %v6925_v49 = vadd.f32 %v12925_v11, %v20860_v48  ;;  %v6964_v31 = vmax.f32 %v6922_v30, 0.0  ;;  %v13868_v30 = vld [vmem:[%s20059_s3 + $0xa60] ss:$8 sps:$4 sm:$0xff]   ;;  %v13873_v11 = vld [vmem:[%s20059_s3 + $0xa74] ss:$8 sps:$4 sm:$0xff]  }
 0xe89   : > { %v13871_v48 = vld [vmem:[%s20059_s3 + $0xa70] ss:$8 sps:$4 sm:$0xff]  }
 0xe8a   : > { %v6965_v44 = vmax.f32 %v6925_v49, 0.0  ;;  %v12926_v58 = vpop.f32.mrb[52].mxu0  ;;  %v13876_v49 = vld [vmem:[%s20059_s3 + $0xa84] ss:$8 sps:$4 sm:$0xff]  }
 0xe8b   : > { %v12927_v21 = vpop.f32.mrb[53].mxu0 }
 0xe8c   : > { %v12928_v2 = vadd.f32 %v12927_v21, %v12926_v58  ;;  %v12929_v39 = vpop.f32.mrb[54].mxu0  ;;  %v7015_v54 = vpack.c.bf16 %v6965_v44, %v6964_v31  ;;  %v13874_v31 = vld [vmem:[%s20059_s3 + $0xa80] ss:$8 sps:$4 sm:$0xff]   ;;  %v13879_v44 = vld [vmem:[%s20059_s3 + $0xa94] ss:$8 sps:$4 sm:$0xff]  }
 0xe8d   : > { %v12930_v12 = vpop.f32.mrb[55].mxu0  ;;  %v13877_v58 = vld [vmem:[%s20059_s3 + $0xa90] ss:$8 sps:$4 sm:$0xff]   ;;  %v13882_v21 = vld [vmem:[%s20059_s3 + $0xaa4] ss:$8 sps:$4 sm:$0xff]  }
 0xe8e   : > { %v6930_v36 = vadd.f32 %v12928_v2, %v20861_v16  ;;  %v12931_v63 = vadd.f32 %v12930_v12, %v12929_v39  ;;  %12944 = vmatprep.subr.bf16.mxu1 %v7015_v54  ;;  %v13880_v2 = vld [vmem:[%s20059_s3 + $0xaa0] ss:$8 sps:$4 sm:$0xff]   ;;  %v13885_v39 = vld [vmem:[%s20059_s3 + $0xab4] ss:$8 sps:$4 sm:$0xff]   ;;  %v13883_v54 = vld [vmem:[%s20059_s3 + $0xab0] ss:$8 sps:$4 sm:$0xff]  }
 0xe8f   : > { %12945 = vmatpush3.bf16.msra.mxu1 %v19088_v1  ;;  %v13853_v1 = vld [vmem:[%s20059_s3 + $0xa10] ss:$8 sps:$4 sm:$0xff]   ;;  %v13888_v12 = vld [vmem:[%s20059_s3 + $0xac4] ss:$8 sps:$4 sm:$0xff]   ;;  %v13886_v16 = vld [vmem:[%s20059_s3 + $0xac0] ss:$8 sps:$4 sm:$0xff]  }
 0xe90   : > { %v6933_v24 = vadd.f32 %v12931_v63, %v20862_v51  ;;  %v6966_v42 = vmax.f32 %v6930_v36, 0.0  ;;  %v13891_v36 = vld [vmem:[%s20059_s3 + $0xad4] ss:$8 sps:$4 sm:$0xff]   ;;  %v13889_v63 = vld [vmem:[%s20059_s3 + $0xad0] ss:$8 sps:$4 sm:$0xff]  }
 0xe91   : > { %v13894_v51 = vld [vmem:[%s20059_s3 + $0xae4] ss:$8 sps:$4 sm:$0xff]  }
 0xe92   : > { %v6967_v61 = vmax.f32 %v6933_v24, 0.0  ;;  %v13892_v24 = vld [vmem:[%s20059_s3 + $0xae0] ss:$8 sps:$4 sm:$0xff]  }
 0xe94   : > { %v7016_v41 = vpack.c.bf16 %v6967_v61, %v6966_v42  ;;  %v13897_v42 = vld [vmem:[%s20059_s3 + $0xaf4] ss:$8 sps:$4 sm:$0xff]   ;;  %v13895_v61 = vld [vmem:[%s20059_s3 + $0xaf0] ss:$8 sps:$4 sm:$0xff]  }
 0xe96   : > { %12946 = vmatprep.subr.bf16.mxu1 %v7016_v41 }
 0xe97   : > { %12947 = vmatpush3.bf16.msra.mxu1 %v19092_v7  ;;  %v13856_v7 = vld [vmem:[%s20059_s3 + $0xa20] ss:$8 sps:$4 sm:$0xff]  }
 0xe9a   : > { %7403 = vmatmul.mubr.bf16.vlgmr.msra.gmra.mrb[104].mxu1 %v13850_v38 }
 0xe9b   : > { %7410 = vmatprep.mubr.bf16.mxu1 %v13855_v17 }
 0xea2   : > { %7411 = vmatmul.mubr.bf16.gmra.mrb[108].mxu1 %v13853_v1 }
 0xea3   : > { %7418 = vmatprep.mubr.bf16.mxu1 %v13858_v0 }
 0xeaa   : > { %7419 = vmatmul.mubr.bf16.gmra.mrb[112].mxu1 %v13856_v7  ;;  %v20863_v7 = vld [vmem:[#allocation278_spill] sm:$0xff] }
 0xeab   : > { %7426 = vmatprep.mubr.bf16.mxu1 %v13861_v5 }
 0xeb2   : > { %7427 = vmatmul.mubr.bf16.gmra.mrb[116].mxu1 %v13859_v59 }
 0xeb3   : > { %7434 = vmatprep.mubr.bf16.mxu1 %v13864_v46  ;;  %v5746_v46 = vadd.f32 %v18664_v40, %v18664_v40 }
 0xeba   : > { %7435 = vmatmul.mubr.bf16.gmra.mrb[120].mxu1 %v13862_v28 }
 0xebb   : > { %7442 = vmatprep.mubr.bf16.mxu1 %v13867_v10  ;;  %v20864_v10 = vld [vmem:[#allocation279_spill] sm:$0xff] }
 0xec2   : > { %7443 = vmatmul.mubr.bf16.gmra.mrb[124].mxu1 %v13865_v62 }
 0xec3   : > { %7450 = vmatprep.mubr.bf16.mxu1 %v13870_v32  ;;  %v13900_v32 = vld [vmem:[%s20059_s3 + $0xb04] ss:$8 sps:$4 sm:$0xff]  }
 0xec4   : > { %8029 = vmatprep.mubr.bf16.mxu0 %v13900_v32  ;;  %v5751_v32 = vadd.f32 %v18682_v6, %v18682_v6 }
 0xeca   : > { %7451 = vmatmul.mubr.bf16.gmra.mrb[128].mxu1 %v13868_v30 }
 0xecb   : > { %7458 = vmatprep.mubr.bf16.mxu1 %v13873_v11  ;;  %v5747_v11 = vadd.f32 %v18666_v43, %v18666_v43  ;;  %v20866_v43 = vld [vmem:[#allocation283_spill] sm:$0xff] }
 0xed2   : > { %7459 = vmatmul.mubr.bf16.gmra.mrb[132].mxu1 %v13871_v48 }
 0xed3   : > { %7466 = vmatprep.mubr.bf16.mxu1 %v13876_v49 }
 0xeda   : > { %7467 = vmatmul.mubr.bf16.gmra.mrb[136].mxu1 %v13874_v31 }
 0xedb   : > { %7474 = vmatprep.mubr.bf16.mxu1 %v13879_v44 }
 0xee2   : > { %7475 = vmatmul.mubr.bf16.gmra.mrb[140].mxu1 %v13877_v58 }
 0xee3   : > { %7482 = vmatprep.mubr.bf16.mxu1 %v13882_v21 }
 0xeea   : > { %7483 = vmatmul.mubr.bf16.gmra.mrb[144].mxu1 %v13880_v2 }
 0xeeb   : > { %7490 = vmatprep.mubr.bf16.mxu1 %v13885_v39  ;;  %v20865_v39 = vld [vmem:[#allocation282_spill] sm:$0xff] }
 0xef2   : > { %7491 = vmatmul.mubr.bf16.gmra.mrb[148].mxu1 %v13883_v54 }
 0xef3   : > { %7498 = vmatprep.mubr.bf16.mxu1 %v13888_v12 }
 0xefa   : > { %7499 = vmatmul.mubr.bf16.gmra.mrb[152].mxu1 %v13886_v16  ;;  %v5748_v16 = vadd.f32 %v18672_v19, %v18672_v19  ;;  %v20867_v19 = vld [vmem:[#allocation286_spill] sm:$0xff] }
 0xefb   : > { %7506 = vmatprep.mubr.bf16.mxu1 %v13891_v36 }
 0xf02   : > { %7507 = vmatmul.mubr.bf16.gmra.mrb[156].mxu1 %v13889_v63 }
 0xf03   : > { %7514 = vmatprep.mubr.bf16.mxu1 %v13894_v51 }
 0xf0a   : > { %7515 = vmatmul.mubr.bf16.gmra.mrb[160].mxu1 %v13892_v24  ;;  %v5749_v24 = vadd.f32 %v18674_v22, %v18674_v22 }
 0xf0b   : > { %7522 = vmatprep.mubr.bf16.mxu1 %v13897_v42 }
 0xf12   : > { %7523 = vmatmul.mubr.bf16.gmra.mrb[164].mxu1 %v13895_v61 }
 0xf6d   : > { %v12948_v41 = vpop.f32.mrb[104].mxu1 }
 0xf6e   : > { %v12949_v38 = vpop.f32.mrb[105].mxu1 }
 0xf6f   : > { %v12950_v17 = vadd.f32 %v12949_v38, %v12948_v41  ;;  %v12951_v1 = vpop.f32.mrb[106].mxu1 }
 0xf70   : > { %v12952_v0 = vpop.f32.mrb[107].mxu1 }
 0xf71   : > { %v7405_v5 = vadd.f32 %v12950_v17, %v20863_v7  ;;  %v12953_v59 = vadd.f32 %v12952_v0, %v12951_v1 }
 0xf73   : > { %v7531_v28 = vmax.f32 %v7405_v5, 0.0  ;;  %v7408_v62 = vadd.f32 %v12953_v59, %v20864_v10  ;;  %v20868_v10 = vld [vmem:[#allocation287_spill] sm:$0xff] }
 0xf75   : > { %v19218_v30 = vadd.f32 %v7531_v28, %v5746_v46  ;;  %v7532_v48 = vmax.f32 %v7408_v62, 0.0  ;;  %v12954_v49 = vpop.f32.mrb[108].mxu1  ;;  %v5750_v46 = vadd.f32 %v18680_v13, %v18680_v13  ;;  %v20869_v13 = vld [vmem:[#allocation28_spill] sm:$0xff] }
 0xf76   : > { %v12955_v31 = vpop.f32.mrb[109].mxu1 }
 0xf77   : > { %v19222_v44 = vadd.f32 %v7532_v48, %v5747_v11  ;;  %v12956_v58 = vadd.f32 %v12955_v31, %v12954_v49  ;;  %v12957_v40 = vpop.f32.mrb[110].mxu1 }
 0xf78   : > { %v12958_v21 = vpop.f32.mrb[111].mxu1 }
 0xf79   : > { %v7628_v2 = vpack.c.bf16 %v19222_v44, %v19218_v30  ;;  %v7413_v54 = vadd.f32 %v12956_v58, %v20865_v39  ;;  %v12959_v12 = vadd.f32 %v12958_v21, %v12957_v40  ;;  %v20884_v44 = vld [vmem:[#allocation285_spill] sm:$0xff] }
 0xf7b   : > { %v7533_v36 = vmax.f32 %v7413_v54, 0.0  ;;  %v7416_v63 = vadd.f32 %v12959_v12, %v20866_v43  ;;  %v20870_v43 = vld [vmem:[#allocation290_spill] sm:$0xff] }
 0xf7d   : > { %v19230_v51 = vadd.f32 %v7533_v36, %v5748_v16  ;;  %v7534_v42 = vmax.f32 %v7416_v63, 0.0  ;;  %v12960_v61 = vpop.f32.mrb[112].mxu1  ;;  %v5752_v16 = vadd.f32 %v18688_v60, %v18688_v60  ;;  %v20871_v60 = vld [vmem:[#allocation292_spill] sm:$0xff] }
 0xf7e   : > { %v12961_v41 = vpop.f32.mrb[113].mxu1 }
 0xf7f   : > { %v19234_v38 = vadd.f32 %v7534_v42, %v5749_v24  ;;  %v12962_v17 = vadd.f32 %v12961_v41, %v12960_v61  ;;  %v12963_v1 = vpop.f32.mrb[114].mxu1  ;;  %v5753_v24 = vadd.f32 %v18690_v9, %v18690_v9 }
 0xf80   : > { %v12964_v0 = vpop.f32.mrb[115].mxu1 }
 0xf81   : > { %v7629_v7 = vpack.c.bf16 %v19234_v38, %v19230_v51  ;;  %v7421_v5 = vadd.f32 %v12962_v17, %v20867_v19  ;;  %v12965_v59 = vadd.f32 %v12964_v0, %v12963_v1  ;;  %v20886_v38 = vld [vmem:[#allocation289_spill] sm:$0xff] }
 0xf83   : > { %v7535_v28 = vmax.f32 %v7421_v5, 0.0  ;;  %v7424_v22 = vadd.f32 %v12965_v59, %v20868_v10 }
 0xf85   : > { %v19242_v62 = vadd.f32 %v7535_v28, %v5750_v46  ;;  %v7536_v11 = vmax.f32 %v7424_v22, 0.0  ;;  %v12966_v48 = vpop.f32.mrb[116].mxu1  ;;  %v5754_v28 = vadd.f32 %v18696_v8, %v18696_v8  ;;  %v20872_v22 = vld [vmem:[#allocation293_spill] sm:$0xff]  ;;  %v20873_v8 = vld [vmem:[#allocation296_spill] sm:$0xff] }
 0xf86   : > { %v12967_v49 = vpop.f32.mrb[117].mxu1 }
 0xf87   : > { %v19246_v31 = vadd.f32 %v7536_v11, %v5751_v32  ;;  %v12968_v58 = vadd.f32 %v12967_v49, %v12966_v48  ;;  %v12969_v40 = vpop.f32.mrb[118].mxu1  ;;  %v5755_v11 = vadd.f32 %v18698_v3, %v18698_v3 }
 0xf88   : > { %v12970_v21 = vpop.f32.mrb[119].mxu1 }
 0xf89   : > { %v7630_v39 = vpack.c.bf16 %v19246_v31, %v19242_v62  ;;  %v7429_v54 = vadd.f32 %v12968_v58, %v20869_v13  ;;  %v12971_v12 = vadd.f32 %v12970_v21, %v12969_v40  ;;  %v20888_v31 = vld [vmem:[#allocation291_spill] sm:$0xff] }
 0xf8b   : > { %v7537_v36 = vmax.f32 %v7429_v54, 0.0  ;;  %v7432_v6 = vadd.f32 %v12971_v12, %v20870_v43  ;;  %v5756_v43 = vadd.f32 %v18704_v53, %v18704_v53  ;;  %v20875_v53 = vld [vmem:[#allocation300_spill] sm:$0xff] }
 0xf8d   : > { %v19254_v63 = vadd.f32 %v7537_v36, %v5752_v16  ;;  %v7538_v42 = vmax.f32 %v7432_v6, 0.0  ;;  %v12972_v61 = vpop.f32.mrb[120].mxu1 }
 0xf8e   : > { %v12973_v41 = vpop.f32.mrb[121].mxu1 }
 0xf8f   : > { %v19258_v17 = vadd.f32 %v7538_v42, %v5753_v24  ;;  %v12974_v1 = vadd.f32 %v12973_v41, %v12972_v61  ;;  %v12975_v0 = vpop.f32.mrb[122].mxu1  ;;  %v20874_v24 = vld [vmem:[#allocation297_spill] sm:$0xff]  ;;  %v5757_v61 = vadd.f32 %v18706_v37, %v18706_v37 }
 0xf90   : > { %v12976_v19 = vpop.f32.mrb[123].mxu1 }
 0xf91   : > { %v7631_v5 = vpack.c.bf16 %v19258_v17, %v19254_v63  ;;  %v7437_v59 = vadd.f32 %v12974_v1, %v20871_v60  ;;  %v12977_v46 = vadd.f32 %v12976_v19, %v12975_v0  ;;  %v20890_v17 = vld [vmem:[#allocation295_spill] sm:$0xff] }
 0xf93   : > { %v7539_v10 = vmax.f32 %v7437_v59, 0.0  ;;  %v7440_v9 = vadd.f32 %v12977_v46, %v20872_v22 }
 0xf95   : > { %v19266_v32 = vadd.f32 %v7539_v10, %v5754_v28  ;;  %v7540_v48 = vmax.f32 %v7440_v9, 0.0  ;;  %v12978_v49 = vpop.f32.mrb[124].mxu1  ;;  %v5758_v9 = vadd.f32 %v18712_v45, %v18712_v45  ;;  %v20877_v45 = vld [vmem:[#allocation304_spill] sm:$0xff] }
 0xf96   : > { %v12979_v58 = vpop.f32.mrb[125].mxu1 }
 0xf97   : > { %v19270_v40 = vadd.f32 %v7540_v48, %v5755_v11  ;;  %v12980_v21 = vadd.f32 %v12979_v58, %v12978_v49  ;;  %v12981_v13 = vpop.f32.mrb[126].mxu1  ;;  %v20876_v48 = vld [vmem:[#allocation301_spill] sm:$0xff]  ;;  %v5759_v58 = vadd.f32 %v18714_v14, %v18714_v14 }
 0xf98   : > { %v12982_v54 = vpop.f32.mrb[127].mxu1 }
 0xf99   : > { %v7632_v12 = vpack.c.bf16 %v19270_v40, %v19266_v32  ;;  %v7445_v16 = vadd.f32 %v12980_v21, %v20873_v8  ;;  %v12983_v36 = vadd.f32 %v12982_v54, %v12981_v13  ;;  %v20892_v40 = vld [vmem:[#allocation299_spill] sm:$0xff] }
 0xf9b   : > { %v7541_v6 = vmax.f32 %v7445_v16, 0.0  ;;  %v7448_v3 = vadd.f32 %v12983_v36, %v20874_v24 }
 0xf9d   : > { %v19278_v42 = vadd.f32 %v7541_v6, %v5756_v43  ;;  %v7542_v41 = vmax.f32 %v7448_v3, 0.0  ;;  %v12984_v1 = vpop.f32.mrb[128].mxu1 }
 0xf9e   : > { %v12985_v0 = vpop.f32.mrb[129].mxu1 }
 0xf9f   : > { %v19282_v19 = vadd.f32 %v7542_v41, %v5757_v61  ;;  %v12986_v60 = vadd.f32 %v12985_v0, %v12984_v1  ;;  %v12987_v59 = vpop.f32.mrb[130].mxu1  ;;  %v5760_v61 = vadd.f32 %v18720_v29, %v18720_v29  ;;  %v20878_v1 = vld [vmem:[#allocation305_spill] sm:$0xff]  ;;  %v20879_v29 = vld [vmem:[#allocation276_spill] sm:$0xff] }
 0xfa0   : > { %v12988_v46 = vpop.f32.mrb[131].mxu1 }
 0xfa1   : > { %v7633_v28 = vpack.c.bf16 %v19282_v19, %v19278_v42  ;;  %v7453_v10 = vadd.f32 %v12986_v60, %v20875_v53  ;;  %v12989_v22 = vadd.f32 %v12988_v46, %v12987_v59  ;;  %v5761_v60 = vadd.f32 %v18722_v50, %v18722_v50  ;;  %v20894_v19 = vld [vmem:[#allocation303_spill] sm:$0xff] }
 0xfa3   : > { %v7543_v11 = vmax.f32 %v7453_v10, 0.0  ;;  %v7456_v37 = vadd.f32 %v12989_v22, %v20876_v48 }
 0xfa5   : > { %v19290_v49 = vadd.f32 %v7543_v11, %v5758_v9  ;;  %v7544_v21 = vmax.f32 %v7456_v37, 0.0  ;;  %v12990_v13 = vpop.f32.mrb[132].mxu1 }
 0xfa6   : > { %v12991_v54 = vpop.f32.mrb[133].mxu1 }
 0xfa7   : > { %v19294_v8 = vadd.f32 %v7544_v21, %v5759_v58  ;;  %v12992_v16 = vadd.f32 %v12991_v54, %v12990_v13  ;;  %v12993_v36 = vpop.f32.mrb[134].mxu1  ;;  %v5762_v21 = vadd.f32 %v18728_v15, %v18728_v15  ;;  %v20880_v54 = vld [vmem:[#allocation277_spill] sm:$0xff]  ;;  %v5764_v15 = vadd.f32 %v18739_v52, %v18739_v52  ;;  %v20883_v52 = vld [vmem:[#allocation284_spill] sm:$0xff] }
 0xfa8   : > { %v12994_v43 = vpop.f32.mrb[135].mxu1 }
 0xfa9   : > { %v7634_v6 = vpack.c.bf16 %v19294_v8, %v19290_v49  ;;  %v7461_v24 = vadd.f32 %v12992_v16, %v20877_v45  ;;  %v12995_v3 = vadd.f32 %v12994_v43, %v12993_v36  ;;  %v5763_v36 = vadd.f32 %v18730_v55, %v18730_v55  ;;  %v13903_v49 = vld [vmem:[%s20059_s3 + $0xb14] ss:$8 sps:$4 sm:$0xff]  }
 0xfaa   : > { %v20895_v8 = vmov 0  }
 0xfab   : > { %v7545_v41 = vmax.f32 %v7461_v24, 0.0  ;;  %v7464_v14 = vadd.f32 %v12995_v3, %v20878_v1 }
 0xfad   : > { %v19302_v0 = vadd.f32 %v7545_v41, %v5760_v61  ;;  %v7546_v59 = vmax.f32 %v7464_v14, 0.0  ;;  %v12996_v46 = vpop.f32.mrb[136].mxu1  ;;  %v20881_v14 = vld [vmem:[#allocation280_spill] sm:$0xff] }
 0xfae   : > { %v12997_v53 = vpop.f32.mrb[137].mxu1 }
 0xfaf   : > { %v19306_v10 = vadd.f32 %v7546_v59, %v5761_v60  ;;  %v12998_v22 = vadd.f32 %v12997_v53, %v12996_v46  ;;  %v12999_v9 = vpop.f32.mrb[138].mxu1 }
 0xfb0   : > { %v13000_v11 = vpop.f32.mrb[139].mxu1 }
 0xfb1   : > { %v7635_v48 = vpack.c.bf16 %v19306_v10, %v19302_v0  ;;  %v7469_v37 = vadd.f32 %v12998_v22, %v20879_v29  ;;  %v13001_v58 = vadd.f32 %v13000_v11, %v12999_v9  ;;  %v20882_v22 = vld [vmem:[#allocation281_spill] sm:$0xff]  ;;  %v5765_v11 = vadd.f32 %v18741_v18, %v18741_v18  ;;  %v13904_v0 = vld [vmem:[%s20059_s3 + $0xb20] ss:$8 sps:$4 sm:$0xff]  }
 0xfb2   : > { %v13909_v10 = vld [vmem:[%s20059_s3 + $0xb34] ss:$8 sps:$4 sm:$0xff]  }
 0xfb3   : > { %v7547_v13 = vmax.f32 %v7469_v37, 0.0  ;;  %v7472_v50 = vadd.f32 %v13001_v58, %v20880_v54 }
 0xfb5   : > { %v7579_v16 = vadd.f32 %v7547_v13, %v5762_v21  ;;  %v7548_v43 = vmax.f32 %v7472_v50, 0.0  ;;  %v13002_v45 = vpop.f32.mrb[140].mxu1 }
 0xfb6   : > { %v13003_v24 = vpop.f32.mrb[141].mxu1 }
 0xfb7   : > { %v7580_v3 = vadd.f32 %v7548_v43, %v5763_v36  ;;  %v13004_v61 = vadd.f32 %v13003_v24, %v13002_v45  ;;  %v13005_v41 = vpop.f32.mrb[142].mxu1  ;;  %v5766_v45 = vadd.f32 %v18750_v35, %v18750_v35  ;;  %v5767_v24 = vadd.f32 %v18752_v4, %v18752_v4  ;;  %v20885_v35 = vld [vmem:[#allocation288_spill] sm:$0xff] }
 0xfb8   : > { %v13006_v1 = vpop.f32.mrb[143].mxu1 }
 0xfb9   : > { %v7477_v60 = vadd.f32 %v13004_v61, %v20881_v14  ;;  %v13007_v59 = vadd.f32 %v13006_v1, %v13005_v41  ;;  %v7636_v46 = vpack.c.bf16 %v7580_v3, %v7579_v16 }
 0xfbb   : > { %v7549_v53 = vmax.f32 %v7477_v60, 0.0  ;;  %v7480_v9 = vadd.f32 %v13007_v59, %v20882_v22  ;;  %13044 = vmatprep.subr.bf16.mxu0 %v7636_v46  ;;  %v5768_v22 = vadd.f32 %v18761_v57, %v18761_v57  ;;  %v20887_v57 = vld [vmem:[#allocation30_spill] sm:$0xff] }
 0xfbc   : > { %13045 = vmatpush3.bf16.msra.mxu0 %v7628_v2 }
 0xfbd   : > { %v7581_v55 = vadd.f32 %v7549_v53, %v5764_v15  ;;  %v7550_v29 = vmax.f32 %v7480_v9, 0.0  ;;  %v13008_v37 = vpop.f32.mrb[144].mxu1  ;;  %v5769_v9 = vadd.f32 %v18763_v25, %v18763_v25 }
 0xfbe   : > { %v13009_v58 = vpop.f32.mrb[145].mxu1 }
 0xfbf   : > { %v7582_v21 = vadd.f32 %v7550_v29, %v5765_v11  ;;  %v13010_v13 = vadd.f32 %v13009_v58, %v13008_v37  ;;  %v13011_v54 = vpop.f32.mrb[146].mxu1 }
 0xfc0   : > { %v13012_v50 = vpop.f32.mrb[147].mxu1 }
 0xfc1   : > { %v7485_v16 = vadd.f32 %v13010_v13, %v20883_v52  ;;  %v13013_v36 = vadd.f32 %v13012_v50, %v13011_v54  ;;  %v7637_v43 = vpack.c.bf16 %v7582_v21, %v7581_v55 }
 0xfc3   : > { %v7551_v30 = vmax.f32 %v7485_v16, 0.0  ;;  %v7488_v2 = vadd.f32 %v13013_v36, %v20884_v44  ;;  %13046 = vmatprep.subr.bf16.mxu0 %v7637_v43  ;;  %v5770_v16 = vadd.f32 %v18772_v34, %v18772_v34  ;;  %v5771_v36 = vadd.f32 %v18774_v23, %v18774_v23  ;;  %v20889_v34 = vld [vmem:[#allocation294_spill] sm:$0xff] }
 0xfc4   : > { %13047 = vmatpush3.bf16.msra.mxu0 %v7629_v7 }
 0xfc5   : > { %v7583_v18 = vadd.f32 %v7551_v30, %v5766_v45  ;;  %v7552_v3 = vmax.f32 %v7488_v2, 0.0  ;;  %v13014_v61 = vpop.f32.mrb[148].mxu1 }
 0xfc6   : > { %v13015_v41 = vpop.f32.mrb[149].mxu1 }
 0xfc7   : > { %v7584_v1 = vadd.f32 %v7552_v3, %v5767_v24  ;;  %v13016_v14 = vadd.f32 %v13015_v41, %v13014_v61  ;;  %v13017_v60 = vpop.f32.mrb[150].mxu1 }
 0xfc8   : > { %v13018_v59 = vpop.f32.mrb[151].mxu1 }
 0xfc9   : > { %v7493_v46 = vadd.f32 %v13016_v14, %v20885_v35  ;;  %v13019_v15 = vadd.f32 %v13018_v59, %v13017_v60  ;;  %v7638_v53 = vpack.c.bf16 %v7584_v1, %v7583_v18  ;;  %v5772_v1 = vadd.f32 %v18783_v47, %v18783_v47  ;;  %v20891_v47 = vld [vmem:[#allocation298_spill] sm:$0xff] }
 0xfca   : > { %v5773_v14 = vadd.f32 %v18785_v26, %v18785_v26 }
 0xfcb   : > { %v7553_v51 = vmax.f32 %v7493_v46, 0.0  ;;  %v7496_v7 = vadd.f32 %v13019_v15, %v20886_v38  ;;  %13048 = vmatprep.subr.bf16.mxu0 %v7638_v53 }
 0xfcc   : > { %13049 = vmatpush3.bf16.msra.mxu0 %v7630_v39 }
 0xfcd   : > { %v7585_v4 = vadd.f32 %v7553_v51, %v5768_v22  ;;  %v7554_v55 = vmax.f32 %v7496_v7, 0.0  ;;  %v13020_v11 = vpop.f32.mrb[152].mxu1 }
 0xfce   : > { %v13021_v29 = vpop.f32.mrb[153].mxu1 }
 0xfcf   : > { %v7586_v37 = vadd.f32 %v7554_v55, %v5769_v9  ;;  %v13022_v58 = vadd.f32 %v13021_v29, %v13020_v11  ;;  %v13023_v21 = vpop.f32.mrb[154].mxu1  ;;  %v5775_v9 = vadd.f32 %v18796_v27, %v18796_v27 }
 0xfd0   : > { %v13024_v13 = vpop.f32.mrb[155].mxu1 }
 0xfd1   : > { %v7501_v54 = vadd.f32 %v13022_v58, %v20887_v57  ;;  %v13025_v50 = vadd.f32 %v13024_v13, %v13023_v21  ;;  %v7639_v52 = vpack.c.bf16 %v7586_v37, %v7585_v4  ;;  %v5774_v4 = vadd.f32 %v18794_v33, %v18794_v33  ;;  %v20893_v33 = vld [vmem:[#allocation302_spill] sm:$0xff] }
 0xfd3   : > { %v7555_v62 = vmax.f32 %v7501_v54, 0.0  ;;  %v7504_v39 = vadd.f32 %v13025_v50, %v20888_v31  ;;  %13050 = vmatprep.subr.bf16.mxu0 %v7639_v52  ;;  %v5776_v52 = vadd.f32 %v18805_v20, %v18805_v20  ;;  %v13898_v20 = vld [vmem:[%s20059_s3 + $0xb00] ss:$8 sps:$4 sm:$0xff]  }
 0xfd4   : > { %13051 = vmatpush3.bf16.msra.mxu0 %v7631_v5 }
 0xfd5   : > { %v7587_v25 = vadd.f32 %v7555_v62, %v5770_v16  ;;  %v7556_v43 = vmax.f32 %v7504_v39, 0.0  ;;  %v13026_v45 = vpop.f32.mrb[156].mxu1  ;;  %v5777_v16 = vadd.f32 %v18807_v56, %v18807_v56  ;;  %v13901_v56 = vld [vmem:[%s20059_s3 + $0xb10] ss:$8 sps:$4 sm:$0xff]  }
 0xfd6   : > { %v13027_v30 = vpop.f32.mrb[157].mxu1 }
 0xfd7   : > { %v7588_v44 = vadd.f32 %v7556_v43, %v5771_v36  ;;  %v13028_v2 = vadd.f32 %v13027_v30, %v13026_v45  ;;  %v13029_v18 = vpop.f32.mrb[158].mxu1  ;;  %v13910_v36 = vld [vmem:[%s20059_s3 + $0xb40] ss:$8 sps:$4 sm:$0xff]   ;;  %v13915_v43 = vld [vmem:[%s20059_s3 + $0xb54] ss:$8 sps:$4 sm:$0xff]  }
 0xfd8   : > { %v13030_v24 = vpop.f32.mrb[159].mxu1  ;;  %v13913_v45 = vld [vmem:[%s20059_s3 + $0xb50] ss:$8 sps:$4 sm:$0xff]   ;;  %v13918_v30 = vld [vmem:[%s20059_s3 + $0xb64] ss:$8 sps:$4 sm:$0xff]  }
 0xfd9   : > { %v7509_v3 = vadd.f32 %v13028_v2, %v20889_v34  ;;  %v13031_v61 = vadd.f32 %v13030_v24, %v13029_v18  ;;  %v7640_v41 = vpack.c.bf16 %v7588_v44, %v7587_v25  ;;  %v13912_v25 = vld [vmem:[%s20059_s3 + $0xb44] ss:$8 sps:$4 sm:$0xff]   ;;  %v13916_v44 = vld [vmem:[%s20059_s3 + $0xb60] ss:$8 sps:$4 sm:$0xff]   ;;  %v13921_v2 = vld [vmem:[%s20059_s3 + $0xb74] ss:$8 sps:$4 sm:$0xff]  }
 0xfda   : > { %v13919_v18 = vld [vmem:[%s20059_s3 + $0xb70] ss:$8 sps:$4 sm:$0xff]   ;;  %v13924_v24 = vld [vmem:[%s20059_s3 + $0xb84] ss:$8 sps:$4 sm:$0xff]   ;;  %v13922_v34 = vld [vmem:[%s20059_s3 + $0xb80] ss:$8 sps:$4 sm:$0xff]  }
 0xfdb   : > { %v7557_v63 = vmax.f32 %v7509_v3, 0.0  ;;  %v7512_v5 = vadd.f32 %v13031_v61, %v20890_v17  ;;  %13052 = vmatprep.subr.bf16.mxu0 %v7640_v41  ;;  %v13927_v3 = vld [vmem:[%s20059_s3 + $0xb94] ss:$8 sps:$4 sm:$0xff]   ;;  %v13925_v61 = vld [vmem:[%s20059_s3 + $0xb90] ss:$8 sps:$4 sm:$0xff]  }
 0xfdc   : > { %13053 = vmatpush3.bf16.msra.mxu0 %v7632_v12  ;;  %v13930_v41 = vld [vmem:[%s20059_s3 + $0xba4] ss:$8 sps:$4 sm:$0xff]   ;;  %v13931_v17 = vld [vmem:[%s20059_s3 + $0xbb0] ss:$8 sps:$4 sm:$0xff]  }
 0xfdd   : > { %v7589_v23 = vadd.f32 %v7557_v63, %v5772_v1  ;;  %v7558_v60 = vmax.f32 %v7512_v5, 0.0  ;;  %v13032_v59 = vpop.f32.mrb[160].mxu1  ;;  %v13928_v1 = vld [vmem:[%s20059_s3 + $0xba0] ss:$8 sps:$4 sm:$0xff]   ;;  %v13933_v63 = vld [vmem:[%s20059_s3 + $0xbb4] ss:$8 sps:$4 sm:$0xff]  }
 0xfde   : > { %v13033_v35 = vpop.f32.mrb[161].mxu1  ;;  %v13936_v5 = vld [vmem:[%s20059_s3 + $0xbc4] ss:$8 sps:$4 sm:$0xff]  }
 0xfdf   : > { %v7590_v46 = vadd.f32 %v7558_v60, %v5773_v14  ;;  %v13034_v15 = vadd.f32 %v13033_v35, %v13032_v59  ;;  %v13035_v53 = vpop.f32.mrb[162].mxu1  ;;  %v13939_v14 = vld [vmem:[%s20059_s3 + $0xbd4] ss:$8 sps:$4 sm:$0xff]   ;;  %v13937_v60 = vld [vmem:[%s20059_s3 + $0xbd0] ss:$8 sps:$4 sm:$0xff]  }
 0xfe0   : > { %v13036_v22 = vpop.f32.mrb[163].mxu1  ;;  %v13942_v59 = vld [vmem:[%s20059_s3 + $0xbe4] ss:$8 sps:$4 sm:$0xff]   ;;  %v13940_v35 = vld [vmem:[%s20059_s3 + $0xbe0] ss:$8 sps:$4 sm:$0xff]  }
 0xfe1   : > { %v7517_v51 = vadd.f32 %v13034_v15, %v20891_v47  ;;  %v13037_v38 = vadd.f32 %v13036_v22, %v13035_v53  ;;  %v7641_v7 = vpack.c.bf16 %v7590_v46, %v7589_v23  ;;  %v13934_v23 = vld [vmem:[%s20059_s3 + $0xbc0] ss:$8 sps:$4 sm:$0xff]   ;;  %v13945_v46 = vld [vmem:[%s20059_s3 + $0xbf4] ss:$8 sps:$4 sm:$0xff]   ;;  %v13943_v15 = vld [vmem:[%s20059_s3 + $0xbf0] ss:$8 sps:$4 sm:$0xff]  }
 0xfe3   : > { %v7559_v32 = vmax.f32 %v7517_v51, 0.0  ;;  %v7520_v12 = vadd.f32 %v13037_v38, %v20892_v40  ;;  %13054 = vmatprep.subr.bf16.mxu0 %v7641_v7  ;;  %v20896_v7 = vld [vmem:[#allocation307_spill] sm:$0xff] }
 0xfe4   : > { %13055 = vmatpush3.bf16.msra.mxu0 %v7633_v28 }
 0xfe5   : > { %v7591_v26 = vadd.f32 %v7559_v32, %v5774_v4  ;;  %v7560_v55 = vmax.f32 %v7520_v12, 0.0  ;;  %v13038_v11 = vpop.f32.mrb[164].mxu1  ;;  %v20897_v12 = vld [vmem:[#allocation308_spill] sm:$0xff] }
 0xfe6   : > { %v13039_v29 = vpop.f32.mrb[165].mxu1 }
 0xfe7   : > { %v7592_v37 = vadd.f32 %v7560_v55, %v5775_v9  ;;  %v13040_v58 = vadd.f32 %v13039_v29, %v13038_v11  ;;  %v13041_v21 = vpop.f32.mrb[166].mxu1  ;;  %v13948_v9 = vld [vmem:[%s20059_s3 + $0xc04] ss:$8 sps:$4 sm:$0xff]  }
 0xfe8   : > { %v13042_v13 = vpop.f32.mrb[167].mxu1  ;;  %8656 = vmatprep.mubr.bf16.mxu1 %v13948_v9  ;;  %v20912_v9 = vld [vmem:[#allocation323_spill] sm:$0xff] }
 0xfe9   : > { %v7525_v57 = vadd.f32 %v13040_v58, %v20893_v33  ;;  %v13043_v54 = vadd.f32 %v13042_v13, %v13041_v21  ;;  %v7642_v50 = vpack.c.bf16 %v7592_v37, %v7591_v26  ;;  %v20898_v37 = vld [vmem:[#allocation50_spill] sm:$0xff]  ;;  %v20899_v21 = vld [vmem:[#allocation51_spill] sm:$0xff] }
 0xfeb   : > { %v7561_v42 = vmax.f32 %v7525_v57, 0.0  ;;  %v7528_v28 = vadd.f32 %v13043_v54, %v20894_v19  ;;  %13056 = vmatprep.subr.bf16.mxu0 %v7642_v50 }
 0xfec   : > { %13057 = vmatpush3.bf16.msra.mxu0 %v7634_v6  ;;  %v13906_v6 = vld [vmem:[%s20059_s3 + $0xb24] ss:$8 sps:$4 sm:$0xff]  }
 0xfed   : > { %v7593_v27 = vadd.f32 %v7561_v42, %v5776_v52  ;;  %v7562_v62 = vmax.f32 %v7528_v28, 0.0  ;;  %v20900_v52 = vld [vmem:[#allocation311_spill] sm:$0xff] }
 0xfef   : > { %v7594_v31 = vadd.f32 %v7562_v62, %v5777_v16 }
 0xff1   : > { %v7643_v39 = vpack.c.bf16 %v7594_v31, %v7593_v27  ;;  %v20901_v27 = vld [vmem:[#allocation312_spill] sm:$0xff] }
 0xff3   : > { %13058 = vmatprep.subr.bf16.mxu0 %v7643_v39 }
 0xff4   : > { %13059 = vmatpush3.bf16.msra.mxu0 %v7635_v48  ;;  %v13907_v48 = vld [vmem:[%s20059_s3 + $0xb30] ss:$8 sps:$4 sm:$0xff]  }
 0xff5   : > { %9601 = vmatprep.subr.bf16.mxu0 %v20895_v8 }
 0xff7   : > { %8030 = vmatmul.mubr.bf16.vlgmr.msra.gmra.mrb[56].mxu0 %v13898_v20  ;;  %v20902_v20 = vld [vmem:[#allocation7_spill] sm:$0xff] }
 0xff8   : > { %8037 = vmatprep.mubr.bf16.mxu0 %v13903_v49 }
 0xfff   : > { %8038 = vmatmul.mubr.bf16.gmra.mrb[60].mxu0 %v13901_v56  ;;  %v20903_v56 = vld [vmem:[#allocation8_spill] sm:$0xff] }
0x1000   : > { %8045 = vmatprep.mubr.bf16.mxu0 %v13906_v6 }
0x1007   : > { %8046 = vmatmul.mubr.bf16.gmra.mrb[64].mxu0 %v13904_v0 }
0x1008   : > { %8053 = vmatprep.mubr.bf16.mxu0 %v13909_v10 }
0x100f   : > { %8054 = vmatmul.mubr.bf16.gmra.mrb[68].mxu0 %v13907_v48 }
0x1010   : > { %8061 = vmatprep.mubr.bf16.mxu0 %v13912_v25 }
0x1017   : > { %8062 = vmatmul.mubr.bf16.gmra.mrb[72].mxu0 %v13910_v36  ;;  %v20904_v36 = vld [vmem:[#allocation315_spill] sm:$0xff] }
0x1018   : > { %8069 = vmatprep.mubr.bf16.mxu0 %v13915_v43 }
0x101f   : > { %8070 = vmatmul.mubr.bf16.gmra.mrb[76].mxu0 %v13913_v45 }
0x1020   : > { %8077 = vmatprep.mubr.bf16.mxu0 %v13918_v30 }
0x1027   : > { %8078 = vmatmul.mubr.bf16.gmra.mrb[80].mxu0 %v13916_v44  ;;  %v20905_v44 = vld [vmem:[#allocation316_spill] sm:$0xff] }
0x1028   : > { %8085 = vmatprep.mubr.bf16.mxu0 %v13921_v2 }
0x102f   : > { %8086 = vmatmul.mubr.bf16.gmra.mrb[84].mxu0 %v13919_v18 }
0x1030   : > { %8093 = vmatprep.mubr.bf16.mxu0 %v13924_v24 }
0x1037   : > { %8094 = vmatmul.mubr.bf16.gmra.mrb[88].mxu0 %v13922_v34 }
0x1038   : > { %8101 = vmatprep.mubr.bf16.mxu0 %v13927_v3  ;;  %v20906_v3 = vld [vmem:[#allocation55_spill] sm:$0xff] }
0x103f   : > { %8102 = vmatmul.mubr.bf16.gmra.mrb[92].mxu0 %v13925_v61 }
0x1040   : > { %8109 = vmatprep.mubr.bf16.mxu0 %v13930_v41  ;;  %v20907_v41 = vld [vmem:[#allocation54_spill] sm:$0xff] }
0x1047   : > { %8110 = vmatmul.mubr.bf16.gmra.mrb[96].mxu0 %v13928_v1 }
0x1048   : > { %8117 = vmatprep.mubr.bf16.mxu0 %v13933_v63 }
0x104f   : > { %8118 = vmatmul.mubr.bf16.gmra.mrb[100].mxu0 %v13931_v17 }
0x1050   : > { %8125 = vmatprep.mubr.bf16.mxu0 %v13936_v5 }
0x1057   : > { %8126 = vmatmul.mubr.bf16.gmra.mrb[104].mxu0 %v13934_v23 }
0x1058   : > { %8133 = vmatprep.mubr.bf16.mxu0 %v13939_v14  ;;  %v20908_v14 = vld [vmem:[#allocation319_spill] sm:$0xff] }
0x105f   : > { %8134 = vmatmul.mubr.bf16.gmra.mrb[108].mxu0 %v13937_v60 }
0x1060   : > { %8141 = vmatprep.mubr.bf16.mxu0 %v13942_v59 }
0x1067   : > { %8142 = vmatmul.mubr.bf16.gmra.mrb[112].mxu0 %v13940_v35 }
0x1068   : > { %8149 = vmatprep.mubr.bf16.mxu0 %v13945_v46  ;;  %v20909_v46 = vld [vmem:[#allocation320_spill] sm:$0xff] }
0x106f   : > { %8150 = vmatmul.mubr.bf16.gmra.mrb[116].mxu0 %v13943_v15 }
0x10ca   : > { %v13060_v53 = vpop.f32.mrb[56].mxu0 }
0x10cb   : > { %v13061_v22 = vpop.f32.mrb[57].mxu0 }
0x10cc   : > { %v13062_v47 = vadd.f32 %v13061_v22, %v13060_v53  ;;  %v13063_v51 = vpop.f32.mrb[58].mxu0 }
0x10cd   : > { %v13064_v38 = vpop.f32.mrb[59].mxu0 }
0x10ce   : > { %v8032_v4 = vadd.f32 %v13062_v47, %v20896_v7  ;;  %v13065_v32 = vadd.f32 %v13064_v38, %v13063_v51  ;;  %v20910_v51 = vld [vmem:[#allocation11_spill] sm:$0xff]  ;;  %v20911_v7 = vld [vmem:[#allocation9_spill] sm:$0xff] }
0x10d0   : > { %v8158_v40 = vmax.f32 %v8032_v4, 0.0  ;;  %v8035_v26 = vadd.f32 %v13065_v32, %v20897_v12 }
0x10d2   : > { %v8159_v55 = vmax.f32 %v8035_v26, 0.0  ;;  %v13066_v11 = vpop.f32.mrb[60].mxu0  ;;  %v19482_v58 = vadd.f32 %v8158_v40, %v20898_v37  ;;  %v20913_v37 = vld [vmem:[#allocation324_spill] sm:$0xff] }
0x10d3   : > { %v13067_v29 = vpop.f32.mrb[61].mxu0 }
0x10d4   : > { %v19485_v13 = vadd.f32 %v8159_v55, %v20899_v21  ;;  %v13068_v33 = vadd.f32 %v13067_v29, %v13066_v11  ;;  %v13069_v57 = vpop.f32.mrb[62].mxu0 }
0x10d5   : > { %v13070_v54 = vpop.f32.mrb[63].mxu0 }
0x10d6   : > { %v8255_v50 = vpack.c.bf16 %v19485_v13, %v19482_v58  ;;  %v8040_v42 = vadd.f32 %v13068_v33, %v20900_v52  ;;  %v13071_v19 = vadd.f32 %v13070_v54, %v13069_v57  ;;  %v20914_v52 = vld [vmem:[#allocation59_spill] sm:$0xff] }
0x10d8   : > { %v8160_v28 = vmax.f32 %v8040_v42, 0.0  ;;  %v8043_v16 = vadd.f32 %v13071_v19, %v20901_v27  ;;  %v20915_v19 = vld [vmem:[#allocation58_spill] sm:$0xff] }
0x10da   : > { %v8161_v62 = vmax.f32 %v8043_v16, 0.0  ;;  %v13072_v31 = vpop.f32.mrb[64].mxu0  ;;  %v19492_v49 = vadd.f32 %v8160_v28, %v20902_v20 }
0x10db   : > { %v13073_v39 = vpop.f32.mrb[65].mxu0 }
0x10dc   : > { %v19495_v6 = vadd.f32 %v8161_v62, %v20903_v56  ;;  %v13074_v0 = vadd.f32 %v13073_v39, %v13072_v31  ;;  %v13075_v10 = vpop.f32.mrb[66].mxu0  ;;  %v20916_v39 = vld [vmem:[#allocation327_spill] sm:$0xff] }
0x10dd   : > { %v13076_v48 = vpop.f32.mrb[67].mxu0 }
0x10de   : > { %v8256_v25 = vpack.c.bf16 %v19495_v6, %v19492_v49  ;;  %v8048_v43 = vadd.f32 %v13074_v0, %v20904_v36  ;;  %v13077_v45 = vadd.f32 %v13076_v48, %v13075_v10  ;;  %v20917_v10 = vld [vmem:[#allocation328_spill] sm:$0xff] }
0x10e0   : > { %v8162_v30 = vmax.f32 %v8048_v43, 0.0  ;;  %v8051_v2 = vadd.f32 %v13077_v45, %v20905_v44 }
0x10e2   : > { %v8163_v18 = vmax.f32 %v8051_v2, 0.0  ;;  %v13078_v24 = vpop.f32.mrb[68].mxu0  ;;  %v19502_v61 = vadd.f32 %v8162_v30, %v20906_v3  ;;  %v20918_v30 = vld [vmem:[#allocation14_spill] sm:$0xff]  ;;  %v20919_v2 = vld [vmem:[#allocation13_spill] sm:$0xff] }
0x10e3   : > { %v13079_v34 = vpop.f32.mrb[69].mxu0 }
0x10e4   : > { %v19505_v1 = vadd.f32 %v8163_v18, %v20907_v41  ;;  %v13080_v63 = vadd.f32 %v13079_v34, %v13078_v24  ;;  %v13081_v17 = vpop.f32.mrb[70].mxu0 }
0x10e5   : > { %v13082_v5 = vpop.f32.mrb[71].mxu0 }
0x10e6   : > { %v8257_v23 = vpack.c.bf16 %v19505_v1, %v19502_v61  ;;  %v8056_v60 = vadd.f32 %v13080_v63, %v20908_v14  ;;  %v13083_v59 = vadd.f32 %v13082_v5, %v13081_v17  ;;  %v20920_v63 = vld [vmem:[#allocation331_spill] sm:$0xff] }
0x10e8   : > { %v8164_v35 = vmax.f32 %v8056_v60, 0.0  ;;  %v8059_v15 = vadd.f32 %v13083_v59, %v20909_v46  ;;  %v20921_v60 = vld [vmem:[#allocation332_spill] sm:$0xff] }
0x10ea   : > { %v8165_v53 = vmax.f32 %v8059_v15, 0.0  ;;  %v13084_v22 = vpop.f32.mrb[72].mxu0  ;;  %v19512_v38 = vadd.f32 %v8164_v35, %v20910_v51 }
0x10eb   : > { %v13085_v47 = vpop.f32.mrb[73].mxu0 }
0x10ec   : > { %v19515_v4 = vadd.f32 %v8165_v53, %v20911_v7  ;;  %v13086_v32 = vadd.f32 %v13085_v47, %v13084_v22  ;;  %v13087_v40 = vpop.f32.mrb[74].mxu0  ;;  %v20922_v53 = vld [vmem:[#allocation63_spill] sm:$0xff]  ;;  %v20923_v47 = vld [vmem:[#allocation62_spill] sm:$0xff] }
0x10ed   : > { %v13088_v12 = vpop.f32.mrb[75].mxu0 }
0x10ee   : > { %v8258_v26 = vpack.c.bf16 %v19515_v4, %v19512_v38  ;;  %v8064_v55 = vadd.f32 %v13086_v32, %v20912_v9  ;;  %v13089_v11 = vadd.f32 %v13088_v12, %v13087_v40  ;;  %v7750_v40 = vpop.permute.xlu0 %7749 }
0x10f0   : > { %v8166_v29 = vmax.f32 %v8064_v55, 0.0  ;;  %v8067_v21 = vadd.f32 %v13089_v11, %v20913_v37 }
0x10f2   : > { %v8167_v33 = vmax.f32 %v8067_v21, 0.0  ;;  %v13090_v57 = vpop.f32.mrb[76].mxu0  ;;  %v19522_v42 = vadd.f32 %v8166_v29, %v20914_v52  ;;  %v7755_v29 = vpop.permute.xlu1 %7754  ;;  %v20924_v52 = vld [vmem:[#allocation17_spill] sm:$0xff] }
0x10f3   : > { %v13091_v54 = vpop.f32.mrb[77].mxu0 }
0x10f4   : > { %v19525_v28 = vadd.f32 %v8167_v33, %v20915_v19  ;;  %v13092_v27 = vadd.f32 %v13091_v54, %v13090_v57  ;;  %v13093_v16 = vpop.f32.mrb[78].mxu0 }
0x10f5   : > { %v13094_v62 = vpop.f32.mrb[79].mxu0 }
0x10f6   : > { %v8259_v31 = vpack.c.bf16 %v19525_v28, %v19522_v42  ;;  %v8072_v20 = vadd.f32 %v13092_v27, %v20916_v39  ;;  %v13095_v56 = vadd.f32 %v13094_v62, %v13093_v16  ;;  %v20925_v27 = vld [vmem:[#allocation15_spill] sm:$0xff] }
0x10f8   : > { %v8168_v0 = vmax.f32 %v8072_v20, 0.0  ;;  %v8075_v48 = vadd.f32 %v13095_v56, %v20917_v10 }
0x10fa   : > { %v8169_v36 = vmax.f32 %v8075_v48, 0.0  ;;  %v13096_v43 = vpop.f32.mrb[80].mxu0  ;;  %v19532_v44 = vadd.f32 %v8168_v0, %v20918_v30  ;;  %v20926_v0 = vld [vmem:[#allocation47_spill] sm:$0xff] }
0x10fb   : > { %v13097_v45 = vpop.f32.mrb[81].mxu0 }
0x10fc   : > { %v19535_v18 = vadd.f32 %v8169_v36, %v20919_v2  ;;  %v13098_v24 = vadd.f32 %v13097_v45, %v13096_v43  ;;  %v13099_v34 = vpop.f32.mrb[82].mxu0  ;;  %v20927_v43 = vld [vmem:[#allocation306_spill] sm:$0xff] }
0x10fd   : > { %v13100_v3 = vpop.f32.mrb[83].mxu0 }
0x10fe   : > { %v8260_v41 = vpack.c.bf16 %v19535_v18, %v19532_v44  ;;  %v8080_v17 = vadd.f32 %v13098_v24, %v20920_v63  ;;  %v13101_v5 = vadd.f32 %v13100_v3, %v13099_v34  ;;  %v20928_v34 = vld [vmem:[#allocation66_spill] sm:$0xff]  ;;  %v20929_v63 = vld [vmem:[#allocation67_spill] sm:$0xff]  ;;  %v20956_v18 = vld [vmem:[#allocation29_spill] sm:$0xff] }
0x1100   : > { %v8170_v14 = vmax.f32 %v8080_v17, 0.0  ;;  %v8083_v59 = vadd.f32 %v13101_v5, %v20921_v60 }
0x1102   : > { %v8171_v35 = vmax.f32 %v8083_v59, 0.0  ;;  %v13102_v46 = vpop.f32.mrb[84].mxu0  ;;  %v19542_v22 = vadd.f32 %v8170_v14, %v20922_v53  ;;  %v20930_v59 = vld [vmem:[#allocation309_spill] sm:$0xff] }
0x1103   : > { %v13103_v15 = vpop.f32.mrb[85].mxu0 }
0x1104   : > { %v19545_v51 = vadd.f32 %v8171_v35, %v20923_v47  ;;  %v13104_v7 = vadd.f32 %v13103_v15, %v13102_v46  ;;  %v13105_v32 = vpop.f32.mrb[86].mxu0  ;;  %v20931_v47 = vld [vmem:[#allocation310_spill] sm:$0xff] }
0x1105   : > { %v13106_v12 = vpop.f32.mrb[87].mxu0 }
0x1106   : > { %v8261_v9 = vpack.c.bf16 %v19545_v51, %v19542_v22  ;;  %v8088_v55 = vadd.f32 %v13104_v7, %v7750_v40  ;;  %v13107_v11 = vadd.f32 %v13106_v12, %v13105_v32  ;;  %v13951_v22 = vld [vmem:[%s20059_s3 + $0xc14] ss:$8 sps:$4 sm:$0xff]   ;;  %v13949_v51 = vld [vmem:[%s20059_s3 + $0xc10] ss:$8 sps:$4 sm:$0xff]  }
0x1108   : > { %v8172_v37 = vmax.f32 %v8088_v55, 0.0  ;;  %v8091_v21 = vadd.f32 %v13107_v11, %v7755_v29  ;;  %v20932_v55 = vld [vmem:[#allocation20_spill] sm:$0xff]  ;;  %v20933_v29 = vld [vmem:[#allocation19_spill] sm:$0xff] }
0x110a   : > { %v8173_v33 = vmax.f32 %v8091_v21, 0.0  ;;  %v13108_v57 = vpop.f32.mrb[88].mxu0  ;;  %v19550_v19 = vadd.f32 %v8172_v37, %v20924_v52 }
0x110b   : > { %v13109_v54 = vpop.f32.mrb[89].mxu0 }
0x110c   : > { %v19553_v16 = vadd.f32 %v8173_v33, %v20925_v27  ;;  %v13110_v62 = vadd.f32 %v13109_v54, %v13108_v57  ;;  %v13111_v39 = vpop.f32.mrb[90].mxu0  ;;  %v20934_v54 = vld [vmem:[#allocation313_spill] sm:$0xff] }
0x110d   : > { %v13112_v20 = vpop.f32.mrb[91].mxu0 }
0x110e   : > { %v8262_v56 = vpack.c.bf16 %v19553_v16, %v19550_v19  ;;  %v8096_v10 = vadd.f32 %v13110_v62, %v20926_v0  ;;  %v13113_v48 = vadd.f32 %v13112_v20, %v13111_v39  ;;  %v20935_v20 = vld [vmem:[#allocation314_spill] sm:$0xff]  ;;  %v13957_v16 = vld [vmem:[%s20059_s3 + $0xc34] ss:$8 sps:$4 sm:$0xff]  }
0x110f   : > { %v13952_v19 = vld [vmem:[%s20059_s3 + $0xc20] ss:$8 sps:$4 sm:$0xff]  }
0x1110   : > { %v8174_v36 = vmax.f32 %v8096_v10, 0.0  ;;  %v8099_v45 = vadd.f32 %v13113_v48, %v20927_v43  ;;  %v20936_v10 = vld [vmem:[#allocation71_spill] sm:$0xff] }
0x1112   : > { %v8175_v30 = vmax.f32 %v8099_v45, 0.0  ;;  %v13114_v2 = vpop.f32.mrb[92].mxu0  ;;  %v8206_v3 = vadd.f32 %v8174_v36, %v20928_v34  ;;  %v20937_v36 = vld [vmem:[#allocation70_spill] sm:$0xff] }
0x1113   : > { %v13115_v24 = vpop.f32.mrb[93].mxu0 }
0x1114   : > { %v8207_v17 = vadd.f32 %v8175_v30, %v20929_v63  ;;  %v13116_v5 = vadd.f32 %v13115_v24, %v13114_v2  ;;  %v13117_v14 = vpop.f32.mrb[94].mxu0  ;;  %v20938_v24 = vld [vmem:[#allocation317_spill] sm:$0xff] }
0x1115   : > { %v13118_v60 = vpop.f32.mrb[95].mxu0 }
0x1116   : > { %v8104_v35 = vadd.f32 %v13116_v5, %v20930_v59  ;;  %v13119_v46 = vadd.f32 %v13118_v60, %v13117_v14  ;;  %v8263_v15 = vpack.c.bf16 %v8207_v17, %v8206_v3  ;;  %v20939_v5 = vld [vmem:[#allocation318_spill] sm:$0xff]  ;;  %v20940_v60 = vld [vmem:[#allocation23_spill] sm:$0xff] }
0x1118   : > { %v8176_v53 = vmax.f32 %v8104_v35, 0.0  ;;  %v8107_v7 = vadd.f32 %v13119_v46, %v20931_v47  ;;  %13156 = vmatprep.subr.bf16.mxu1 %v8263_v15  ;;  %v20941_v35 = vld [vmem:[#allocation21_spill] sm:$0xff] }
0x1119   : > { %13157 = vmatpush3.bf16.msra.mxu1 %v8255_v50 }
0x111a   : > { %v8177_v32 = vmax.f32 %v8107_v7, 0.0  ;;  %v13120_v40 = vpop.f32.mrb[96].mxu0  ;;  %v8208_v11 = vadd.f32 %v8176_v53, %v20932_v55  ;;  %v20942_v7 = vld [vmem:[#allocation321_spill] sm:$0xff] }
0x111b   : > { %v13121_v12 = vpop.f32.mrb[97].mxu0 }
0x111c   : > { %v8209_v37 = vadd.f32 %v8177_v32, %v20933_v29  ;;  %v13122_v21 = vadd.f32 %v13121_v12, %v13120_v40  ;;  %v13123_v33 = vpop.f32.mrb[98].mxu0 }
0x111d   : > { %v13124_v57 = vpop.f32.mrb[99].mxu0 }
0x111e   : > { %v8112_v52 = vadd.f32 %v13122_v21, %v20934_v54  ;;  %v13125_v27 = vadd.f32 %v13124_v57, %v13123_v33  ;;  %v8264_v62 = vpack.c.bf16 %v8209_v37, %v8208_v11  ;;  %v20943_v11 = vld [vmem:[#allocation322_spill] sm:$0xff]  ;;  %v20944_v37 = vld [vmem:[#allocation75_spill] sm:$0xff] }
0x111f   : > { %v20945_v33 = vld [vmem:[#allocation74_spill] sm:$0xff] }
0x1120   : > { %v8178_v39 = vmax.f32 %v8112_v52, 0.0  ;;  %v8115_v0 = vadd.f32 %v13125_v27, %v20935_v20  ;;  %13158 = vmatprep.subr.bf16.mxu1 %v8264_v62  ;;  %v20946_v62 = vld [vmem:[#allocation325_spill] sm:$0xff] }
0x1121   : > { %13159 = vmatpush3.bf16.msra.mxu1 %v8256_v25 }
0x1122   : > { %v8179_v58 = vmax.f32 %v8115_v0, 0.0  ;;  %v13126_v13 = vpop.f32.mrb[100].mxu0  ;;  %v8210_v48 = vadd.f32 %v8178_v39, %v20936_v10  ;;  %v20948_v10 = vld [vmem:[#allocation26_spill] sm:$0xff] }
0x1123   : > { %v13127_v50 = vpop.f32.mrb[101].mxu0 }
0x1124   : > { %v8211_v43 = vadd.f32 %v8179_v58, %v20937_v36  ;;  %v13128_v45 = vadd.f32 %v13127_v50, %v13126_v13  ;;  %v13129_v30 = vpop.f32.mrb[102].mxu0  ;;  %v20947_v13 = vld [vmem:[#allocation326_spill] sm:$0xff]  ;;  %v20949_v36 = vld [vmem:[#allocation25_spill] sm:$0xff] }
0x1125   : > { %v13130_v2 = vpop.f32.mrb[103].mxu0 }
0x1126   : > { %v8120_v34 = vadd.f32 %v13128_v45, %v20938_v24  ;;  %v13131_v3 = vadd.f32 %v13130_v2, %v13129_v30  ;;  %v8265_v63 = vpack.c.bf16 %v8211_v43, %v8210_v48  ;;  %v20950_v24 = vld [vmem:[#allocation329_spill] sm:$0xff] }
0x1128   : > { %v8180_v17 = vmax.f32 %v8120_v34, 0.0  ;;  %v8123_v14 = vadd.f32 %v13131_v3, %v20939_v5  ;;  %13160 = vmatprep.subr.bf16.mxu1 %v8265_v63  ;;  %v20951_v5 = vld [vmem:[#allocation330_spill] sm:$0xff] }
0x1129   : > { %13161 = vmatpush3.bf16.msra.mxu1 %v8257_v23 }
0x112a   : > { %v8181_v49 = vmax.f32 %v8123_v14, 0.0  ;;  %v13132_v6 = vpop.f32.mrb[104].mxu0  ;;  %v8212_v59 = vadd.f32 %v8180_v17, %v20940_v60 }
0x112b   : > { %v13133_v25 = vpop.f32.mrb[105].mxu0 }
0x112c   : > { %v8213_v46 = vadd.f32 %v8181_v49, %v20941_v35  ;;  %v13134_v15 = vadd.f32 %v13133_v25, %v13132_v6  ;;  %v13135_v53 = vpop.f32.mrb[106].mxu0  ;;  %v20952_v49 = vld [vmem:[#allocation79_spill] sm:$0xff]  ;;  %v20953_v25 = vld [vmem:[#allocation78_spill] sm:$0xff] }
0x112d   : > { %v13136_v47 = vpop.f32.mrb[107].mxu0 }
0x112e   : > { %v8128_v32 = vadd.f32 %v13134_v15, %v20942_v7  ;;  %v13137_v40 = vadd.f32 %v13136_v47, %v13135_v53  ;;  %v8266_v12 = vpack.c.bf16 %v8213_v46, %v8212_v59  ;;  %v20954_v15 = vld [vmem:[#allocation333_spill] sm:$0xff] }
0x1130   : > { %v8182_v55 = vmax.f32 %v8128_v32, 0.0  ;;  %v8131_v29 = vadd.f32 %v13137_v40, %v20943_v11  ;;  %13162 = vmatprep.subr.bf16.mxu1 %v8266_v12  ;;  %v20955_v40 = vld [vmem:[#allocation334_spill] sm:$0xff] }
0x1131   : > { %13163 = vmatpush3.bf16.msra.mxu1 %v8258_v26 }
0x1132   : > { %v8183_v61 = vmax.f32 %v8131_v29, 0.0  ;;  %v13138_v1 = vpop.f32.mrb[108].mxu0  ;;  %v8214_v21 = vadd.f32 %v8182_v55, %v20944_v37  ;;  %v20957_v55 = vld [vmem:[#allocation27_spill] sm:$0xff]  ;;  %v13963_v37 = vld [vmem:[%s20059_s3 + $0xc54] ss:$8 sps:$4 sm:$0xff]  }
0x1133   : > { %v13139_v23 = vpop.f32.mrb[109].mxu0 }
0x1134   : > { %v8215_v57 = vadd.f32 %v8183_v61, %v20945_v33  ;;  %v13140_v54 = vadd.f32 %v13139_v23, %v13138_v1  ;;  %v13141_v52 = vpop.f32.mrb[110].mxu0  ;;  %v13946_v61 = vld [vmem:[%s20059_s3 + $0xc00] ss:$8 sps:$4 sm:$0xff]   ;;  %v13960_v1 = vld [vmem:[%s20059_s3 + $0xc44] ss:$8 sps:$4 sm:$0xff]  }
0x1135   : > { %v13142_v27 = vpop.f32.mrb[111].mxu0  ;;  %v13958_v23 = vld [vmem:[%s20059_s3 + $0xc40] ss:$8 sps:$4 sm:$0xff]   ;;  %v13966_v33 = vld [vmem:[%s20059_s3 + $0xc64] ss:$8 sps:$4 sm:$0xff]  }
0x1136   : > { %v8136_v39 = vadd.f32 %v13140_v54, %v20946_v62  ;;  %v13143_v20 = vadd.f32 %v13142_v27, %v13141_v52  ;;  %v8267_v0 = vpack.c.bf16 %v8215_v57, %v8214_v21  ;;  %v13961_v21 = vld [vmem:[%s20059_s3 + $0xc50] ss:$8 sps:$4 sm:$0xff]   ;;  %v13964_v57 = vld [vmem:[%s20059_s3 + $0xc60] ss:$8 sps:$4 sm:$0xff]   ;;  %v13969_v54 = vld [vmem:[%s20059_s3 + $0xc74] ss:$8 sps:$4 sm:$0xff]  }
0x1137   : > { %v13967_v52 = vld [vmem:[%s20059_s3 + $0xc70] ss:$8 sps:$4 sm:$0xff]   ;;  %v13972_v27 = vld [vmem:[%s20059_s3 + $0xc84] ss:$8 sps:$4 sm:$0xff]   ;;  %v13970_v62 = vld [vmem:[%s20059_s3 + $0xc80] ss:$8 sps:$4 sm:$0xff]  }
0x1138   : > { %v8184_v58 = vmax.f32 %v8136_v39, 0.0  ;;  %v8139_v50 = vadd.f32 %v13143_v20, %v20947_v13  ;;  %13164 = vmatprep.subr.bf16.mxu1 %v8267_v0  ;;  %v13975_v39 = vld [vmem:[%s20059_s3 + $0xc94] ss:$8 sps:$4 sm:$0xff]   ;;  %v13973_v20 = vld [vmem:[%s20059_s3 + $0xc90] ss:$8 sps:$4 sm:$0xff]  }
0x1139   : > { %13165 = vmatpush3.bf16.msra.mxu1 %v8259_v31  ;;  %v13978_v0 = vld [vmem:[%s20059_s3 + $0xca4] ss:$8 sps:$4 sm:$0xff]   ;;  %v13981_v13 = vld [vmem:[%s20059_s3 + $0xcb4] ss:$8 sps:$4 sm:$0xff]  }
0x113a   : > { %v8185_v38 = vmax.f32 %v8139_v50, 0.0  ;;  %v13144_v4 = vpop.f32.mrb[112].mxu0  ;;  %v8216_v48 = vadd.f32 %v8184_v58, %v20948_v10  ;;  %v13976_v58 = vld [vmem:[%s20059_s3 + $0xca0] ss:$8 sps:$4 sm:$0xff]   ;;  %v13979_v50 = vld [vmem:[%s20059_s3 + $0xcb0] ss:$8 sps:$4 sm:$0xff]  }
0x113b   : > { %v13145_v26 = vpop.f32.mrb[113].mxu0  ;;  %v13985_v10 = vld [vmem:[%s20059_s3 + $0xcd0] ss:$8 sps:$4 sm:$0xff]  }
0x113c   : > { %v8217_v43 = vadd.f32 %v8185_v38, %v20949_v36  ;;  %v13146_v45 = vadd.f32 %v13145_v26, %v13144_v4  ;;  %v13147_v30 = vpop.f32.mrb[114].mxu0  ;;  %v13984_v38 = vld [vmem:[%s20059_s3 + $0xcc4] ss:$8 sps:$4 sm:$0xff]   ;;  %v13982_v4 = vld [vmem:[%s20059_s3 + $0xcc0] ss:$8 sps:$4 sm:$0xff]  }
0x113d   : > { %v13148_v2 = vpop.f32.mrb[115].mxu0  ;;  %v13987_v26 = vld [vmem:[%s20059_s3 + $0xcd4] ss:$8 sps:$4 sm:$0xff]   ;;  %v13988_v36 = vld [vmem:[%s20059_s3 + $0xce0] ss:$8 sps:$4 sm:$0xff]  }
0x113e   : > { %v8144_v34 = vadd.f32 %v13146_v45, %v20950_v24  ;;  %v13149_v3 = vadd.f32 %v13148_v2, %v13147_v30  ;;  %v8268_v63 = vpack.c.bf16 %v8217_v43, %v8216_v48  ;;  %v13990_v48 = vld [vmem:[%s20059_s3 + $0xce4] ss:$8 sps:$4 sm:$0xff]   ;;  %v13993_v43 = vld [vmem:[%s20059_s3 + $0xcf4] ss:$8 sps:$4 sm:$0xff]   ;;  %v13991_v45 = vld [vmem:[%s20059_s3 + $0xcf0] ss:$8 sps:$4 sm:$0xff]  }
0x1140   : > { %v8186_v17 = vmax.f32 %v8144_v34, 0.0  ;;  %v8147_v14 = vadd.f32 %v13149_v3, %v20951_v5  ;;  %13166 = vmatprep.subr.bf16.mxu1 %v8268_v63  ;;  %v8307_v3 = vpop.permute.xlu0 %8306 }
0x1141   : > { %13167 = vmatpush3.bf16.msra.mxu1 %v8260_v41 }
0x1142   : > { %v8187_v42 = vmax.f32 %v8147_v14, 0.0  ;;  %v13150_v28 = vpop.f32.mrb[116].mxu0  ;;  %v8218_v6 = vadd.f32 %v8186_v17, %v20952_v49  ;;  %v13996_v14 = vld [vmem:[%s20061_s5 + $0x4] ss:$8 sps:$4 sm:$0xff]  }
0x1143   : > { %v13151_v31 = vpop.f32.mrb[117].mxu0  ;;  %9633 = vmatprep.mubr.bf16.mxu0 %v13996_v14 }
0x1144   : > { %v8219_v60 = vadd.f32 %v8187_v42, %v20953_v25  ;;  %v13152_v59 = vadd.f32 %v13151_v31, %v13150_v28  ;;  %v13153_v35 = vpop.f32.mrb[118].mxu0  ;;  %v8312_v42 = vpop.permute.xlu1 %8311 }
0x1145   : > { %v13154_v46 = vpop.f32.mrb[119].mxu0 }
0x1146   : > { %v8152_v53 = vadd.f32 %v13152_v59, %v20954_v15  ;;  %v13155_v47 = vadd.f32 %v13154_v46, %v13153_v35  ;;  %v8269_v7 = vpack.c.bf16 %v8219_v60, %v8218_v6  ;;  %v8317_v46 = vpop.permute.xlu0 %8316 }
0x1148   : > { %v8188_v32 = vmax.f32 %v8152_v53, 0.0  ;;  %v8155_v12 = vadd.f32 %v13155_v47, %v20955_v40  ;;  %13168 = vmatprep.subr.bf16.mxu1 %v8269_v7  ;;  %v8322_v7 = vpop.permute.xlu1 %8321 }
0x1149   : > { %13169 = vmatpush3.bf16.msra.mxu1 %v8261_v9  ;;  %v13954_v9 = vld [vmem:[%s20059_s3 + $0xc24] ss:$8 sps:$4 sm:$0xff]  }
0x114a   : > { %v8189_v44 = vmax.f32 %v8155_v12, 0.0  ;;  %v8220_v41 = vadd.f32 %v8188_v32, %v20956_v18 }
0x114c   : > { %v8221_v11 = vadd.f32 %v8189_v44, %v20957_v55 }
0x114e   : > { %v8270_v29 = vpack.c.bf16 %v8221_v11, %v8220_v41 }
0x1150   : > { %13170 = vmatprep.subr.bf16.mxu1 %v8270_v29  ;;  %v8327_v29 = vpop.permute.xlu0 %8326 }
0x1151   : > { %13171 = vmatpush3.bf16.msra.mxu1 %v8262_v56  ;;  %v13955_v56 = vld [vmem:[%s20059_s3 + $0xc30] ss:$8 sps:$4 sm:$0xff]  }
0x1154   : > { %8657 = vmatmul.mubr.bf16.vlgmr.msra.gmra.mrb[168].mxu1 %v13946_v61 }
0x1155   : > { %8664 = vmatprep.mubr.bf16.mxu1 %v13951_v22 }
0x115c   : > { %8665 = vmatmul.mubr.bf16.gmra.mrb[172].mxu1 %v13949_v51 }
0x115d   : > { %8672 = vmatprep.mubr.bf16.mxu1 %v13954_v9  ;;  %v8332_v9 = vpop.permute.xlu1 %8331 }
0x1164   : > { %8673 = vmatmul.mubr.bf16.gmra.mrb[176].mxu1 %v13952_v19 }
0x1165   : > { %8680 = vmatprep.mubr.bf16.mxu1 %v13957_v16 }
0x116c   : > { %8681 = vmatmul.mubr.bf16.gmra.mrb[180].mxu1 %v13955_v56 }
0x116d   : > { %8688 = vmatprep.mubr.bf16.mxu1 %v13960_v1 }
0x1174   : > { %8689 = vmatmul.mubr.bf16.gmra.mrb[184].mxu1 %v13958_v23 }
0x1175   : > { %8696 = vmatprep.mubr.bf16.mxu1 %v13963_v37 }
0x117c   : > { %8697 = vmatmul.mubr.bf16.gmra.mrb[188].mxu1 %v13961_v21 }
0x117d   : > { %8704 = vmatprep.mubr.bf16.mxu1 %v13966_v33 }
0x1184   : > { %8705 = vmatmul.mubr.bf16.gmra.mrb[192].mxu1 %v13964_v57  ;;  %v8337_v57 = vpop.permute.xlu0 %8336 }
0x1185   : > { %8712 = vmatprep.mubr.bf16.mxu1 %v13969_v54 }
0x118c   : > { %8713 = vmatmul.mubr.bf16.gmra.mrb[196].mxu1 %v13967_v52 }
0x118d   : > { %8720 = vmatprep.mubr.bf16.mxu1 %v13972_v27 }
0x1194   : > { %8721 = vmatmul.mubr.bf16.gmra.mrb[200].mxu1 %v13970_v62  ;;  %v8342_v62 = vpop.permute.xlu1 %8341 }
0x1195   : > { %8728 = vmatprep.mubr.bf16.mxu1 %v13975_v39 }
0x119c   : > { %8729 = vmatmul.mubr.bf16.gmra.mrb[204].mxu1 %v13973_v20 }
0x119d   : > { %8736 = vmatprep.mubr.bf16.mxu1 %v13978_v0 }
0x11a4   : > { %8737 = vmatmul.mubr.bf16.gmra.mrb[208].mxu1 %v13976_v58 }
0x11a5   : > { %8744 = vmatprep.mubr.bf16.mxu1 %v13981_v13 }
0x11ac   : > { %8745 = vmatmul.mubr.bf16.gmra.mrb[212].mxu1 %v13979_v50 }
0x11ad   : > { %8752 = vmatprep.mubr.bf16.mxu1 %v13984_v38 }
0x11b4   : > { %8753 = vmatmul.mubr.bf16.gmra.mrb[216].mxu1 %v13982_v4 }
0x11b5   : > { %8760 = vmatprep.mubr.bf16.mxu1 %v13987_v26  ;;  %v8347_v26 = vpop.permute.xlu0 %8346 }
0x11bc   : > { %8761 = vmatmul.mubr.bf16.gmra.mrb[220].mxu1 %v13985_v10 }
0x11bd   : > { %8768 = vmatprep.mubr.bf16.mxu1 %v13990_v48 }
0x11c4   : > { %8769 = vmatmul.mubr.bf16.gmra.mrb[224].mxu1 %v13988_v36 }
0x11c5   : > { %8776 = vmatprep.mubr.bf16.mxu1 %v13993_v43  ;;  %v8352_v43 = vpop.permute.xlu1 %8351 }
0x11cc   : > { %8777 = vmatmul.mubr.bf16.gmra.mrb[228].mxu1 %v13991_v45 }
0x1227   : > { %v13172_v30 = vpop.f32.mrb[168].mxu1 }
0x1228   : > { %v13173_v2 = vpop.f32.mrb[169].mxu1 }
0x1229   : > { %v13174_v24 = vadd.f32 %v13173_v2, %v13172_v30  ;;  %v13175_v34 = vpop.f32.mrb[170].mxu1 }
0x122a   : > { %v13176_v63 = vpop.f32.mrb[171].mxu1 }
0x122b   : > { %v8659_v17 = vadd.f32 %v13174_v24, %v8307_v3  ;;  %v13177_v5 = vadd.f32 %v13176_v63, %v13175_v34 }
0x122d   : > { %v8662_v28 = vadd.f32 %v13177_v5, %v8312_v42  ;;  %v8785_v31 = vmax.f32 %v8659_v17, 0.0  ;;  %v8357_v5 = vpop.permute.xlu0 %8356 }
0x122f   : > { %v8786_v49 = vmax.f32 %v8662_v28, 0.0  ;;  %v13178_v6 = vpop.f32.mrb[172].mxu1 }
0x1230   : > { %v13179_v25 = vpop.f32.mrb[173].mxu1 }
0x1231   : > { %v8881_v60 = vpack.c.bf16 %v8786_v49, %v8785_v31  ;;  %v13180_v59 = vadd.f32 %v13179_v25, %v13178_v6  ;;  %v13181_v35 = vpop.f32.mrb[174].mxu1  ;;  %v8362_v31 = vpop.permute.xlu1 %8361 }
0x1232   : > { %v13182_v15 = vpop.f32.mrb[175].mxu1 }
0x1233   : > { %v8667_v53 = vadd.f32 %v13180_v59, %v8317_v46  ;;  %v13183_v47 = vadd.f32 %v13182_v15, %v13181_v35  ;;  %9602 = vmatpush1.bf16.msra.mxu0 %v8881_v60 }
0x1234   : > { %9603 = vmatprep.subr.bf16.mxu0 %v20895_v8 }
0x1235   : > { %v8670_v32 = vadd.f32 %v13183_v47, %v8322_v7  ;;  %v8787_v40 = vmax.f32 %v8667_v53, 0.0  ;;  %v8367_v53 = vpop.permute.xlu0 %8366 }
0x1237   : > { %v8788_v12 = vmax.f32 %v8670_v32, 0.0  ;;  %v13184_v44 = vpop.f32.mrb[176].mxu1 }
0x1238   : > { %v13185_v18 = vpop.f32.mrb[177].mxu1 }
0x1239   : > { %v8882_v41 = vpack.c.bf16 %v8788_v12, %v8787_v40  ;;  %v13186_v55 = vadd.f32 %v13185_v18, %v13184_v44  ;;  %v13187_v11 = vpop.f32.mrb[178].mxu1  ;;  %v8372_v40 = vpop.permute.xlu1 %8371 }
0x123a   : > { %v13188_v61 = vpop.f32.mrb[179].mxu1 }
0x123b   : > { %v8675_v22 = vadd.f32 %v13186_v55, %v8327_v29  ;;  %v13189_v51 = vadd.f32 %v13188_v61, %v13187_v11  ;;  %9604 = vmatpush1.bf16.msra.mxu0 %v8882_v41 }
0x123c   : > { %9605 = vmatprep.subr.bf16.mxu0 %v20895_v8 }
0x123d   : > { %v8678_v19 = vadd.f32 %v13189_v51, %v8332_v9  ;;  %v8789_v16 = vmax.f32 %v8675_v22, 0.0  ;;  %v8377_v22 = vpop.permute.xlu0 %8376 }
0x123f   : > { %v8790_v56 = vmax.f32 %v8678_v19, 0.0  ;;  %v13190_v1 = vpop.f32.mrb[180].mxu1 }
0x1240   : > { %v13191_v23 = vpop.f32.mrb[181].mxu1 }
0x1241   : > { %v8883_v37 = vpack.c.bf16 %v8790_v56, %v8789_v16  ;;  %v13192_v21 = vadd.f32 %v13191_v23, %v13190_v1  ;;  %v13193_v33 = vpop.f32.mrb[182].mxu1  ;;  %v8382_v16 = vpop.permute.xlu1 %8381 }
0x1242   : > { %v13194_v54 = vpop.f32.mrb[183].mxu1 }
0x1243   : > { %v8683_v52 = vadd.f32 %v13192_v21, %v8337_v57  ;;  %v13195_v27 = vadd.f32 %v13194_v54, %v13193_v33  ;;  %9606 = vmatpush1.bf16.msra.mxu0 %v8883_v37 }
0x1244   : > { %9607 = vmatprep.subr.bf16.mxu0 %v20895_v8 }
0x1245   : > { %v8686_v39 = vadd.f32 %v13195_v27, %v8342_v62  ;;  %v8791_v20 = vmax.f32 %v8683_v52, 0.0  ;;  %v8387_v52 = vpop.permute.xlu0 %8386 }
0x1247   : > { %v8792_v0 = vmax.f32 %v8686_v39, 0.0  ;;  %v13196_v58 = vpop.f32.mrb[184].mxu1 }
0x1248   : > { %v13197_v13 = vpop.f32.mrb[185].mxu1 }
0x1249   : > { %v8884_v50 = vpack.c.bf16 %v8792_v0, %v8791_v20  ;;  %v13198_v38 = vadd.f32 %v13197_v13, %v13196_v58  ;;  %v13199_v4 = vpop.f32.mrb[186].mxu1  ;;  %v8392_v20 = vpop.permute.xlu1 %8391 }
0x124a   : > { %v13200_v10 = vpop.f32.mrb[187].mxu1 }
0x124b   : > { %v8691_v48 = vadd.f32 %v13198_v38, %v8347_v26  ;;  %v13201_v36 = vadd.f32 %v13200_v10, %v13199_v4  ;;  %9608 = vmatpush1.bf16.msra.mxu0 %v8884_v50 }
0x124c   : > { %9609 = vmatprep.subr.bf16.mxu0 %v20895_v8 }
0x124d   : > { %v8694_v45 = vadd.f32 %v13201_v36, %v8352_v43  ;;  %v8793_v30 = vmax.f32 %v8691_v48, 0.0  ;;  %v8397_v48 = vpop.permute.xlu0 %8396 }
0x124f   : > { %v8794_v2 = vmax.f32 %v8694_v45, 0.0  ;;  %v13202_v24 = vpop.f32.mrb[188].mxu1 }
0x1250   : > { %v13203_v34 = vpop.f32.mrb[189].mxu1 }
0x1251   : > { %v8885_v3 = vpack.c.bf16 %v8794_v2, %v8793_v30  ;;  %v13204_v63 = vadd.f32 %v13203_v34, %v13202_v24  ;;  %v13205_v17 = vpop.f32.mrb[190].mxu1  ;;  %v8402_v30 = vpop.permute.xlu1 %8401 }
0x1252   : > { %v13206_v14 = vpop.f32.mrb[191].mxu1 }
0x1253   : > { %v8699_v42 = vadd.f32 %v13204_v63, %v8357_v5  ;;  %v13207_v28 = vadd.f32 %v13206_v14, %v13205_v17  ;;  %9610 = vmatpush1.bf16.msra.mxu0 %v8885_v3 }
0x1254   : > { %9611 = vmatprep.subr.bf16.mxu0 %v20895_v8 }
0x1255   : > { %v8702_v49 = vadd.f32 %v13207_v28, %v8362_v31  ;;  %v8795_v6 = vmax.f32 %v8699_v42, 0.0  ;;  %v8407_v42 = vpop.permute.xlu0 %8406 }
0x1257   : > { %v8796_v25 = vmax.f32 %v8702_v49, 0.0  ;;  %v13208_v60 = vpop.f32.mrb[192].mxu1 }
0x1258   : > { %v13209_v59 = vpop.f32.mrb[193].mxu1 }
0x1259   : > { %v8886_v35 = vpack.c.bf16 %v8796_v25, %v8795_v6  ;;  %v13210_v46 = vadd.f32 %v13209_v59, %v13208_v60  ;;  %v13211_v15 = vpop.f32.mrb[194].mxu1  ;;  %v8412_v6 = vpop.permute.xlu1 %8411 }
0x125a   : > { %v13212_v47 = vpop.f32.mrb[195].mxu1 }
0x125b   : > { %v8707_v7 = vadd.f32 %v13210_v46, %v8367_v53  ;;  %v13213_v32 = vadd.f32 %v13212_v47, %v13211_v15  ;;  %9612 = vmatpush1.bf16.msra.mxu0 %v8886_v35 }
0x125c   : > { %9613 = vmatprep.subr.bf16.mxu0 %v20895_v8 }
0x125d   : > { %v8710_v12 = vadd.f32 %v13213_v32, %v8372_v40  ;;  %v8797_v44 = vmax.f32 %v8707_v7, 0.0  ;;  %v8417_v7 = vpop.permute.xlu0 %8416 }
0x125f   : > { %v8798_v18 = vmax.f32 %v8710_v12, 0.0  ;;  %v13214_v41 = vpop.f32.mrb[196].mxu1 }
0x1260   : > { %v13215_v55 = vpop.f32.mrb[197].mxu1 }
0x1261   : > { %v8887_v11 = vpack.c.bf16 %v8798_v18, %v8797_v44  ;;  %v13216_v29 = vadd.f32 %v13215_v55, %v13214_v41  ;;  %v13217_v61 = vpop.f32.mrb[198].mxu1  ;;  %v8422_v44 = vpop.permute.xlu1 %8421 }
0x1262   : > { %v13218_v51 = vpop.f32.mrb[199].mxu1 }
0x1263   : > { %v8715_v9 = vadd.f32 %v13216_v29, %v8377_v22  ;;  %v13219_v19 = vadd.f32 %v13218_v51, %v13217_v61  ;;  %9614 = vmatpush1.bf16.msra.mxu0 %v8887_v11 }
0x1264   : > { %9615 = vmatprep.subr.bf16.mxu0 %v20895_v8 }
0x1265   : > { %v8718_v56 = vadd.f32 %v13219_v19, %v8382_v16  ;;  %v8799_v1 = vmax.f32 %v8715_v9, 0.0  ;;  %v8427_v9 = vpop.permute.xlu0 %8426 }
0x1267   : > { %v8800_v23 = vmax.f32 %v8718_v56, 0.0  ;;  %v13220_v37 = vpop.f32.mrb[200].mxu1 }
0x1268   : > { %v13221_v21 = vpop.f32.mrb[201].mxu1 }
0x1269   : > { %v8888_v33 = vpack.c.bf16 %v8800_v23, %v8799_v1  ;;  %v13222_v57 = vadd.f32 %v13221_v21, %v13220_v37  ;;  %v13223_v54 = vpop.f32.mrb[202].mxu1  ;;  %v8432_v1 = vpop.permute.xlu1 %8431 }
0x126a   : > { %v13224_v27 = vpop.f32.mrb[203].mxu1 }
0x126b   : > { %v8723_v62 = vadd.f32 %v13222_v57, %v8387_v52  ;;  %v13225_v39 = vadd.f32 %v13224_v27, %v13223_v54  ;;  %9616 = vmatpush1.bf16.msra.mxu0 %v8888_v33 }
0x126c   : > { %9617 = vmatprep.subr.bf16.mxu0 %v20895_v8 }
0x126d   : > { %v8726_v0 = vadd.f32 %v13225_v39, %v8392_v20  ;;  %v8801_v58 = vmax.f32 %v8723_v62, 0.0  ;;  %v8437_v62 = vpop.permute.xlu0 %8436 }
0x126f   : > { %v8802_v13 = vmax.f32 %v8726_v0, 0.0  ;;  %v13226_v50 = vpop.f32.mrb[204].mxu1 }
0x1270   : > { %v13227_v38 = vpop.f32.mrb[205].mxu1 }
0x1271   : > { %v8889_v4 = vpack.c.bf16 %v8802_v13, %v8801_v58  ;;  %v13228_v26 = vadd.f32 %v13227_v38, %v13226_v50  ;;  %v13229_v10 = vpop.f32.mrb[206].mxu1  ;;  %v8442_v58 = vpop.permute.xlu1 %8441 }
0x1272   : > { %v13230_v36 = vpop.f32.mrb[207].mxu1 }
0x1273   : > { %v8731_v43 = vadd.f32 %v13228_v26, %v8397_v48  ;;  %v13231_v45 = vadd.f32 %v13230_v36, %v13229_v10  ;;  %9618 = vmatpush1.bf16.msra.mxu0 %v8889_v4 }
0x1274   : > { %9619 = vmatprep.subr.bf16.mxu0 %v20895_v8 }
0x1275   : > { %v8734_v2 = vadd.f32 %v13231_v45, %v8402_v30  ;;  %v8803_v24 = vmax.f32 %v8731_v43, 0.0  ;;  %v8447_v43 = vpop.permute.xlu0 %8446 }
0x1277   : > { %v8804_v34 = vmax.f32 %v8734_v2, 0.0  ;;  %v13232_v3 = vpop.f32.mrb[208].mxu1 }
0x1278   : > { %v13233_v63 = vpop.f32.mrb[209].mxu1 }
0x1279   : > { %v8890_v17 = vpack.c.bf16 %v8804_v34, %v8803_v24  ;;  %v13234_v5 = vadd.f32 %v13233_v63, %v13232_v3  ;;  %v13235_v14 = vpop.f32.mrb[210].mxu1  ;;  %v8452_v24 = vpop.permute.xlu1 %8451 }
0x127a   : > { %v13236_v28 = vpop.f32.mrb[211].mxu1 }
0x127b   : > { %v8739_v31 = vadd.f32 %v13234_v5, %v8407_v42  ;;  %v13237_v49 = vadd.f32 %v13236_v28, %v13235_v14  ;;  %9620 = vmatpush1.bf16.msra.mxu0 %v8890_v17 }
0x127c   : > { %9621 = vmatprep.subr.bf16.mxu0 %v20895_v8 }
0x127d   : > { %v8742_v25 = vadd.f32 %v13237_v49, %v8412_v6  ;;  %v8805_v60 = vmax.f32 %v8739_v31, 0.0  ;;  %v8457_v31 = vpop.permute.xlu0 %8456 }
0x127f   : > { %v8806_v59 = vmax.f32 %v8742_v25, 0.0  ;;  %v13238_v35 = vpop.f32.mrb[212].mxu1 }
0x1280   : > { %v13239_v46 = vpop.f32.mrb[213].mxu1 }
0x1281   : > { %v8891_v15 = vpack.c.bf16 %v8806_v59, %v8805_v60  ;;  %v13240_v53 = vadd.f32 %v13239_v46, %v13238_v35  ;;  %v13241_v47 = vpop.f32.mrb[214].mxu1  ;;  %v8462_v60 = vpop.permute.xlu1 %8461 }
0x1282   : > { %v13242_v32 = vpop.f32.mrb[215].mxu1 }
0x1283   : > { %v8747_v40 = vadd.f32 %v13240_v53, %v8417_v7  ;;  %v13243_v12 = vadd.f32 %v13242_v32, %v13241_v47  ;;  %9622 = vmatpush1.bf16.msra.mxu0 %v8891_v15  ;;  %v13994_v53 = vld [vmem:[%s20061_s5] ss:$8 sps:$4 sm:$0xff]   ;;  %v13999_v47 = vld [vmem:[%s20061_s5 + $0x14] ss:$8 sps:$4 sm:$0xff]   ;;  %v13997_v7 = vld [vmem:[%s20061_s5 + $0x10] ss:$8 sps:$4 sm:$0xff]  }
0x1284   : > { %9623 = vmatprep.subr.bf16.mxu0 %v20895_v8  ;;  %v14000_v32 = vld [vmem:[%s20061_s5 + $0x20] ss:$8 sps:$4 sm:$0xff]  }
0x1285   : > { %v8750_v18 = vadd.f32 %v13243_v12, %v8422_v44  ;;  %v8807_v41 = vmax.f32 %v8747_v40, 0.0  ;;  %v14005_v40 = vld [vmem:[%s20061_s5 + $0x34] ss:$8 sps:$4 sm:$0xff]   ;;  %v14003_v12 = vld [vmem:[%s20061_s5 + $0x30] ss:$8 sps:$4 sm:$0xff]  }
0x1286   : > { %v14008_v44 = vld [vmem:[%s20061_s5 + $0x44] ss:$8 sps:$4 sm:$0xff]  }
0x1287   : > { %v8808_v55 = vmax.f32 %v8750_v18, 0.0  ;;  %v13244_v11 = vpop.f32.mrb[216].mxu1  ;;  %v14006_v18 = vld [vmem:[%s20061_s5 + $0x40] ss:$8 sps:$4 sm:$0xff]  }
0x1288   : > { %v13245_v29 = vpop.f32.mrb[217].mxu1 }
0x1289   : > { %v8892_v61 = vpack.c.bf16 %v8808_v55, %v8807_v41  ;;  %v13246_v22 = vadd.f32 %v13245_v29, %v13244_v11  ;;  %v13247_v51 = vpop.f32.mrb[218].mxu1  ;;  %v14011_v41 = vld [vmem:[%s20061_s5 + $0x54] ss:$8 sps:$4 sm:$0xff]   ;;  %v14009_v55 = vld [vmem:[%s20061_s5 + $0x50] ss:$8 sps:$4 sm:$0xff]  }
0x128a   : > { %v13248_v19 = vpop.f32.mrb[219].mxu1  ;;  %v14014_v11 = vld [vmem:[%s20061_s5 + $0x64] ss:$8 sps:$4 sm:$0xff]   ;;  %v14012_v29 = vld [vmem:[%s20061_s5 + $0x60] ss:$8 sps:$4 sm:$0xff]  }
0x128b   : > { %v8755_v16 = vadd.f32 %v13246_v22, %v8427_v9  ;;  %v13249_v56 = vadd.f32 %v13248_v19, %v13247_v51  ;;  %9624 = vmatpush1.bf16.msra.mxu0 %v8892_v61  ;;  %v14017_v61 = vld [vmem:[%s20061_s5 + $0x74] ss:$8 sps:$4 sm:$0xff]   ;;  %v14015_v22 = vld [vmem:[%s20061_s5 + $0x70] ss:$8 sps:$4 sm:$0xff]   ;;  %v14020_v51 = vld [vmem:[%s20061_s5 + $0x84] ss:$8 sps:$4 sm:$0xff]  }
0x128c   : > { %9625 = vmatprep.subr.bf16.mxu0 %v20895_v8  ;;  %v14018_v9 = vld [vmem:[%s20061_s5 + $0x80] ss:$8 sps:$4 sm:$0xff]   ;;  %v14023_v19 = vld [vmem:[%s20061_s5 + $0x94] ss:$8 sps:$4 sm:$0xff]  }
0x128d   : > { %v8758_v23 = vadd.f32 %v13249_v56, %v8432_v1  ;;  %v8809_v37 = vmax.f32 %v8755_v16, 0.0  ;;  %v14021_v16 = vld [vmem:[%s20061_s5 + $0x90] ss:$8 sps:$4 sm:$0xff]   ;;  %v14026_v56 = vld [vmem:[%s20061_s5 + $0xa4] ss:$8 sps:$4 sm:$0xff]  }
0x128e   : > { %v14024_v1 = vld [vmem:[%s20061_s5 + $0xa0] ss:$8 sps:$4 sm:$0xff]  }
0x128f   : > { %v8810_v21 = vmax.f32 %v8758_v23, 0.0  ;;  %v13250_v33 = vpop.f32.mrb[220].mxu1  ;;  %v14029_v23 = vld [vmem:[%s20061_s5 + $0xb4] ss:$8 sps:$4 sm:$0xff]  }
0x1290   : > { %v13251_v57 = vpop.f32.mrb[221].mxu1 }
0x1291   : > { %v8893_v54 = vpack.c.bf16 %v8810_v21, %v8809_v37  ;;  %v13252_v52 = vadd.f32 %v13251_v57, %v13250_v33  ;;  %v13253_v27 = vpop.f32.mrb[222].mxu1  ;;  %v14027_v37 = vld [vmem:[%s20061_s5 + $0xb0] ss:$8 sps:$4 sm:$0xff]   ;;  %v14032_v21 = vld [vmem:[%s20061_s5 + $0xc4] ss:$8 sps:$4 sm:$0xff]  }
0x1292   : > { %v13254_v39 = vpop.f32.mrb[223].mxu1  ;;  %v14030_v33 = vld [vmem:[%s20061_s5 + $0xc0] ss:$8 sps:$4 sm:$0xff]   ;;  %v14035_v57 = vld [vmem:[%s20061_s5 + $0xd4] ss:$8 sps:$4 sm:$0xff]  }
0x1293   : > { %v8763_v20 = vadd.f32 %v13252_v52, %v8437_v62  ;;  %v13255_v0 = vadd.f32 %v13254_v39, %v13253_v27  ;;  %9626 = vmatpush1.bf16.msra.mxu0 %v8893_v54  ;;  %v14033_v54 = vld [vmem:[%s20061_s5 + $0xd0] ss:$8 sps:$4 sm:$0xff]   ;;  %v14038_v52 = vld [vmem:[%s20061_s5 + $0xe4] ss:$8 sps:$4 sm:$0xff]   ;;  %v14036_v27 = vld [vmem:[%s20061_s5 + $0xe0] ss:$8 sps:$4 sm:$0xff]  }
0x1294   : > { %9627 = vmatprep.subr.bf16.mxu0 %v20895_v8  ;;  %v14041_v62 = vld [vmem:[%s20061_s5 + $0xf4] ss:$8 sps:$4 sm:$0xff]   ;;  %v14039_v39 = vld [vmem:[%s20061_s5 + $0xf0] ss:$8 sps:$4 sm:$0xff]  }
0x1295   : > { %v8766_v13 = vadd.f32 %v13255_v0, %v8442_v58  ;;  %v8811_v50 = vmax.f32 %v8763_v20, 0.0  ;;  %v14044_v20 = vld [vmem:[%s20061_s5 + $0x104] ss:$8 sps:$4 sm:$0xff]   ;;  %v14042_v0 = vld [vmem:[%s20061_s5 + $0x100] ss:$8 sps:$4 sm:$0xff]  }
0x1296   : > { %v14047_v58 = vld [vmem:[%s20061_s5 + $0x114] ss:$8 sps:$4 sm:$0xff]  }
0x1297   : > { %v8812_v38 = vmax.f32 %v8766_v13, 0.0  ;;  %v13256_v4 = vpop.f32.mrb[224].mxu1  ;;  %v14045_v13 = vld [vmem:[%s20061_s5 + $0x110] ss:$8 sps:$4 sm:$0xff]  }
0x1298   : > { %v13257_v26 = vpop.f32.mrb[225].mxu1 }
0x1299   : > { %v8894_v10 = vpack.c.bf16 %v8812_v38, %v8811_v50  ;;  %v13258_v48 = vadd.f32 %v13257_v26, %v13256_v4  ;;  %v13259_v36 = vpop.f32.mrb[226].mxu1  ;;  %v14050_v50 = vld [vmem:[%s20061_s5 + $0x124] ss:$8 sps:$4 sm:$0xff]   ;;  %v14048_v38 = vld [vmem:[%s20061_s5 + $0x120] ss:$8 sps:$4 sm:$0xff]  }
0x129a   : > { %v13260_v45 = vpop.f32.mrb[227].mxu1  ;;  %v14053_v4 = vld [vmem:[%s20061_s5 + $0x134] ss:$8 sps:$4 sm:$0xff]   ;;  %v14051_v26 = vld [vmem:[%s20061_s5 + $0x130] ss:$8 sps:$4 sm:$0xff]  }
0x129b   : > { %v8771_v30 = vadd.f32 %v13258_v48, %v8447_v43  ;;  %v13261_v2 = vadd.f32 %v13260_v45, %v13259_v36  ;;  %9628 = vmatpush1.bf16.msra.mxu0 %v8894_v10  ;;  %v14056_v10 = vld [vmem:[%s20061_s5 + $0x144] ss:$8 sps:$4 sm:$0xff]   ;;  %v14054_v48 = vld [vmem:[%s20061_s5 + $0x140] ss:$8 sps:$4 sm:$0xff]   ;;  %v14059_v36 = vld [vmem:[%s20061_s5 + $0x154] ss:$8 sps:$4 sm:$0xff]  }
0x129c   : > { %9629 = vmatprep.subr.bf16.mxu0 %v20895_v8  ;;  %v14057_v43 = vld [vmem:[%s20061_s5 + $0x150] ss:$8 sps:$4 sm:$0xff]   ;;  %v14062_v45 = vld [vmem:[%s20061_s5 + $0x164] ss:$8 sps:$4 sm:$0xff]  }
0x129d   : > { %v8774_v34 = vadd.f32 %v13261_v2, %v8452_v24  ;;  %v8813_v3 = vmax.f32 %v8771_v30, 0.0  ;;  %v14060_v30 = vld [vmem:[%s20061_s5 + $0x160] ss:$8 sps:$4 sm:$0xff]   ;;  %v14065_v2 = vld [vmem:[%s20061_s5 + $0x174] ss:$8 sps:$4 sm:$0xff]  }
0x129e   : > { %v14063_v24 = vld [vmem:[%s20061_s5 + $0x170] ss:$8 sps:$4 sm:$0xff]  }
0x129f   : > { %v8814_v63 = vmax.f32 %v8774_v34, 0.0  ;;  %v13262_v17 = vpop.f32.mrb[228].mxu1  ;;  %v14068_v34 = vld [vmem:[%s20061_s5 + $0x184] ss:$8 sps:$4 sm:$0xff]  }
0x12a0   : > { %v13263_v5 = vpop.f32.mrb[229].mxu1 }
0x12a1   : > { %v8895_v14 = vpack.c.bf16 %v8814_v63, %v8813_v3  ;;  %v13264_v42 = vadd.f32 %v13263_v5, %v13262_v17  ;;  %v13265_v28 = vpop.f32.mrb[230].mxu1  ;;  %v14066_v3 = vld [vmem:[%s20061_s5 + $0x180] ss:$8 sps:$4 sm:$0xff]   ;;  %v14071_v63 = vld [vmem:[%s20061_s5 + $0x194] ss:$8 sps:$4 sm:$0xff]  }
0x12a2   : > { %v13266_v49 = vpop.f32.mrb[231].mxu1  ;;  %v14069_v17 = vld [vmem:[%s20061_s5 + $0x190] ss:$8 sps:$4 sm:$0xff]   ;;  %v14074_v5 = vld [vmem:[%s20061_s5 + $0x1a4] ss:$8 sps:$4 sm:$0xff]  }
0x12a3   : > { %v8779_v6 = vadd.f32 %v13264_v42, %v8457_v31  ;;  %v13267_v25 = vadd.f32 %v13266_v49, %v13265_v28  ;;  %9630 = vmatpush1.bf16.msra.mxu0 %v8895_v14  ;;  %v14072_v14 = vld [vmem:[%s20061_s5 + $0x1a0] ss:$8 sps:$4 sm:$0xff]   ;;  %v14077_v42 = vld [vmem:[%s20061_s5 + $0x1b4] ss:$8 sps:$4 sm:$0xff]   ;;  %v8964_v28 = vpop.permute.xlu0 %8963 }
0x12a4   : > { %9631 = vmatprep.subr.bf16.mxu0 %v20895_v8  ;;  %v14002_v8 = vld [vmem:[%s20061_s5 + $0x24] ss:$8 sps:$4 sm:$0xff]  }
0x12a5   : > { %v8782_v59 = vadd.f32 %v13267_v25, %v8462_v60  ;;  %v8815_v35 = vmax.f32 %v8779_v6, 0.0  ;;  %v14075_v25 = vld [vmem:[%s20061_s5 + $0x1b0] ss:$8 sps:$4 sm:$0xff]   ;;  %v8969_v60 = vpop.permute.xlu1 %8968 }
0x12a7   : > { %v8816_v46 = vmax.f32 %v8782_v59, 0.0 }
0x12a9   : > { %v8896_v15 = vpack.c.bf16 %v8816_v46, %v8815_v35  ;;  %v14080_v35 = vld [vmem:[%s20061_s5 + $0x1c4] ss:$8 sps:$4 sm:$0xff]  }
0x12ab   : > { %9632 = vmatpush1.bf16.msra.mxu0 %v8896_v15 }
0x12ae   : > { %9634 = vmatmul.mubr.bf16.vlgmr.msra.gmra.mrb[120].mxu0 %v13994_v53 }
0x12af   : > { %9641 = vmatprep.mubr.bf16.mxu0 %v13999_v47 }
0x12b6   : > { %9642 = vmatmul.mubr.bf16.gmra.mrb[124].mxu0 %v13997_v7  ;;  %v8974_v7 = vpop.permute.xlu0 %8973 }
0x12b7   : > { %9649 = vmatprep.mubr.bf16.mxu0 %v14002_v8 }
0x12be   : > { %9650 = vmatmul.mubr.bf16.gmra.mrb[128].mxu0 %v14000_v32 }
0x12bf   : > { %9657 = vmatprep.mubr.bf16.mxu0 %v14005_v40 }
0x12c6   : > { %9658 = vmatmul.mubr.bf16.gmra.mrb[132].mxu0 %v14003_v12  ;;  %v14078_v12 = vld [vmem:[%s20061_s5 + $0x1c0] ss:$8 sps:$4 sm:$0xff]  }
0x12c7   : > { %9665 = vmatprep.mubr.bf16.mxu0 %v14008_v44  ;;  %v8979_v44 = vpop.permute.xlu1 %8978 }
0x12ce   : > { %9666 = vmatmul.mubr.bf16.gmra.mrb[136].mxu0 %v14006_v18 }
0x12cf   : > { %9673 = vmatprep.mubr.bf16.mxu0 %v14011_v41  ;;  %v14083_v41 = vld [vmem:[%s20061_s5 + $0x1d4] ss:$8 sps:$4 sm:$0xff]  }
0x12d6   : > { %9674 = vmatmul.mubr.bf16.gmra.mrb[140].mxu0 %v14009_v55 }
0x12d7   : > { %9681 = vmatprep.mubr.bf16.mxu0 %v14014_v11 }
0x12de   : > { %9682 = vmatmul.mubr.bf16.gmra.mrb[144].mxu0 %v14012_v29 }
0x12df   : > { %9689 = vmatprep.mubr.bf16.mxu0 %v14017_v61 }
0x12e6   : > { %9690 = vmatmul.mubr.bf16.gmra.mrb[148].mxu0 %v14015_v22 }
0x12e7   : > { %9697 = vmatprep.mubr.bf16.mxu0 %v14020_v51  ;;  %v8984_v51 = vpop.permute.xlu0 %8983 }
0x12ee   : > { %9698 = vmatmul.mubr.bf16.gmra.mrb[152].mxu0 %v14018_v9 }
0x12ef   : > { %9705 = vmatprep.mubr.bf16.mxu0 %v14023_v19 }
0x12f6   : > { %9706 = vmatmul.mubr.bf16.gmra.mrb[156].mxu0 %v14021_v16 }
0x12f7   : > { %9713 = vmatprep.mubr.bf16.mxu0 %v14026_v56 }
0x12fe   : > { %9714 = vmatmul.mubr.bf16.gmra.mrb[160].mxu0 %v14024_v1 }
0x12ff   : > { %9721 = vmatprep.mubr.bf16.mxu0 %v14029_v23  ;;  %v14081_v23 = vld [vmem:[%s20061_s5 + $0x1d0] ss:$8 sps:$4 sm:$0xff]  }
0x1306   : > { %9722 = vmatmul.mubr.bf16.gmra.mrb[164].mxu0 %v14027_v37  ;;  %v8989_v37 = vpop.permute.xlu1 %8988 }
0x1307   : > { %9729 = vmatprep.mubr.bf16.mxu0 %v14032_v21 }
0x130e   : > { %9730 = vmatmul.mubr.bf16.gmra.mrb[168].mxu0 %v14030_v33 }
0x130f   : > { %9737 = vmatprep.mubr.bf16.mxu0 %v14035_v57  ;;  %v14086_v57 = vld [vmem:[%s20061_s5 + $0x1e4] ss:$8 sps:$4 sm:$0xff]  }
0x1316   : > { %9738 = vmatmul.mubr.bf16.gmra.mrb[172].mxu0 %v14033_v54 }
0x1317   : > { %9745 = vmatprep.mubr.bf16.mxu0 %v14038_v52 }
0x131e   : > { %9746 = vmatmul.mubr.bf16.gmra.mrb[176].mxu0 %v14036_v27 }
0x131f   : > { %9753 = vmatprep.mubr.bf16.mxu0 %v14041_v62 }
0x1326   : > { %9754 = vmatmul.mubr.bf16.gmra.mrb[180].mxu0 %v14039_v39 }
0x1327   : > { %9761 = vmatprep.mubr.bf16.mxu0 %v14044_v20  ;;  %v8994_v20 = vpop.permute.xlu0 %8993 }
0x132e   : > { %9762 = vmatmul.mubr.bf16.gmra.mrb[184].mxu0 %v14042_v0 }
0x132f   : > { %9769 = vmatprep.mubr.bf16.mxu0 %v14047_v58 }
0x1336   : > { %9770 = vmatmul.mubr.bf16.gmra.mrb[188].mxu0 %v14045_v13 }
0x1337   : > { %9777 = vmatprep.mubr.bf16.mxu0 %v14050_v50 }
0x133e   : > { %9778 = vmatmul.mubr.bf16.gmra.mrb[192].mxu0 %v14048_v38 }
0x133f   : > { %9785 = vmatprep.mubr.bf16.mxu0 %v14053_v4  ;;  %v14084_v4 = vld [vmem:[%s20061_s5 + $0x1e0] ss:$8 sps:$4 sm:$0xff]  }
0x1346   : > { %9786 = vmatmul.mubr.bf16.gmra.mrb[196].mxu0 %v14051_v26  ;;  %v8999_v26 = vpop.permute.xlu1 %8998 }
0x1347   : > { %9793 = vmatprep.mubr.bf16.mxu0 %v14056_v10 }
0x134e   : > { %9794 = vmatmul.mubr.bf16.gmra.mrb[200].mxu0 %v14054_v48 }
0x134f   : > { %9801 = vmatprep.mubr.bf16.mxu0 %v14059_v36  ;;  %v14089_v36 = vld [vmem:[%s20061_s5 + $0x1f4] ss:$8 sps:$4 sm:$0xff]  }
0x1356   : > { %9802 = vmatmul.mubr.bf16.gmra.mrb[204].mxu0 %v14057_v43 }
0x1357   : > { %9809 = vmatprep.mubr.bf16.mxu0 %v14062_v45 }
0x135e   : > { %9810 = vmatmul.mubr.bf16.gmra.mrb[208].mxu0 %v14060_v30 }
0x135f   : > { %9817 = vmatprep.mubr.bf16.mxu0 %v14065_v2 }
0x1366   : > { %9818 = vmatmul.mubr.bf16.gmra.mrb[212].mxu0 %v14063_v24 }
0x1367   : > { %9825 = vmatprep.mubr.bf16.mxu0 %v14068_v34 }
0x136e   : > { %9826 = vmatmul.mubr.bf16.gmra.mrb[216].mxu0 %v14066_v3 }
0x136f   : > { %9833 = vmatprep.mubr.bf16.mxu0 %v14071_v63  ;;  %v9004_v63 = vpop.permute.xlu0 %9003 }
0x1376   : > { %9834 = vmatmul.mubr.bf16.gmra.mrb[220].mxu0 %v14069_v17 }
0x1377   : > { %9841 = vmatprep.mubr.bf16.mxu0 %v14074_v5 }
0x137e   : > { %9842 = vmatmul.mubr.bf16.gmra.mrb[224].mxu0 %v14072_v14 }
0x137f   : > { %9849 = vmatprep.mubr.bf16.mxu0 %v14077_v42 }
0x1381   : > { %v9635_v31 = vpop.f32.mrb[120].mxu0 }
0x1382   : > { %v9636_v49 = vadd.f32 %v9635_v31, %v8964_v28  ;;  %v9637_v6 = vpop.f32.mrb[121].mxu0  ;;  %v14087_v31 = vld [vmem:[%s20061_s5 + $0x1f0] ss:$8 sps:$4 sm:$0xff]  }
0x1383   : > { %v9638_v59 = vpop.f32.mrb[122].mxu0 }
0x1384   : > { %v11710_v46 = vmul.f32 -1.442695, %v9636_v49  ;;  %v9639_v15 = vadd.f32 %v9638_v59, %v8969_v60  ;;  %v9640_v53 = vpop.f32.mrb[123].mxu0  ;;  %v9009_v49 = vpop.permute.xlu1 %9008 }
0x1386   : > { %14090 = vpow2.f32 %v11710_v46  ;;  %v11711_v47 = vmul.f32 -1.442695, %v9639_v15  ;;  %9850 = vmatmul.mubr.bf16.gmra.mrb[228].mxu0 %v14075_v25 }
0x1387   : > { %9857 = vmatprep.mubr.bf16.mxu0 %v14080_v35 }
0x1388   : > { %14092 = vpow2.f32 %v11711_v47 }
0x1389   : > { %v9643_v8 = vpop.f32.mrb[124].mxu0 }
0x138a   : > { %v9644_v32 = vadd.f32 %v9643_v8, %v8974_v7  ;;  %v9645_v40 = vpop.f32.mrb[125].mxu0  ;;  %v9014_v7 = vpop.permute.xlu0 %9013 }
0x138b   : > { %v9646_v18 = vpop.f32.mrb[126].mxu0 }
0x138c   : > { %v11712_v55 = vmul.f32 -1.442695, %v9644_v32  ;;  %v9647_v11 = vadd.f32 %v9646_v18, %v8979_v44  ;;  %v9648_v29 = vpop.f32.mrb[127].mxu0  ;;  %v9019_v18 = vpop.permute.xlu1 %9018 }
0x138e   : > { %14094 = vpow2.f32 %v11712_v55  ;;  %v11713_v61 = vmul.f32 -1.442695, %v9647_v11  ;;  %9858 = vmatmul.mubr.bf16.gmra.mrb[232].mxu0 %v14078_v12 }
0x138f   : > { %9865 = vmatprep.mubr.bf16.mxu0 %v14083_v41 }
0x1390   : > { %v14091_v22 = vpop.eup %14090  ;;  %14096 = vpow2.f32 %v11713_v61 }
0x1391   : > { %v10082_v9 = vadd.f32 1.0, %v14091_v22  ;;  %v9651_v19 = vpop.f32.mrb[128].mxu0 }
0x1392   : > { %v14093_v16 = vpop.eup %14092  ;;  %v9652_v56 = vadd.f32 %v9651_v19, %v8984_v51  ;;  %v9653_v1 = vpop.f32.mrb[129].mxu0 }
0x1393   : > { %14098 = vrcp.f32 %v10082_v9  ;;  %v10083_v21 = vadd.f32 1.0, %v14093_v16  ;;  %v9654_v33 = vpop.f32.mrb[130].mxu0  ;;  %v9024_v16 = vpop.permute.xlu0 %9023 }
0x1394   : > { %v11714_v54 = vmul.f32 -1.442695, %v9652_v56  ;;  %v9655_v52 = vadd.f32 %v9654_v33, %v8989_v37  ;;  %v9656_v27 = vpop.f32.mrb[131].mxu0  ;;  %v9029_v33 = vpop.permute.xlu1 %9028 }
0x1395   : > { %14100 = vrcp.f32 %v10083_v21 }
0x1396   : > { %14102 = vpow2.f32 %v11714_v54  ;;  %v11715_v62 = vmul.f32 -1.442695, %v9655_v52  ;;  %9866 = vmatmul.mubr.bf16.gmra.mrb[236].mxu0 %v14081_v23 }
0x1397   : > { %9873 = vmatprep.mubr.bf16.mxu0 %v14086_v57 }
0x1398   : > { %v14095_v39 = vpop.eup %14094  ;;  %14104 = vpow2.f32 %v11715_v62 }
0x1399   : > { %v10084_v0 = vadd.f32 1.0, %v14095_v39  ;;  %v9659_v58 = vpop.f32.mrb[132].mxu0 }
0x139a   : > { %v14097_v13 = vpop.eup %14096  ;;  %v9660_v50 = vadd.f32 %v9659_v58, %v8994_v20  ;;  %v9661_v38 = vpop.f32.mrb[133].mxu0 }
0x139b   : > { %14106 = vrcp.f32 %v10084_v0  ;;  %v10085_v10 = vadd.f32 1.0, %v14097_v13  ;;  %v9662_v48 = vpop.f32.mrb[134].mxu0  ;;  %v9034_v13 = vpop.permute.xlu0 %9033 }
0x139c   : > { %v11716_v43 = vmul.f32 -1.442695, %v9660_v50  ;;  %v9663_v45 = vadd.f32 %v9662_v48, %v8999_v26  ;;  %v9664_v30 = vpop.f32.mrb[135].mxu0  ;;  %v9039_v48 = vpop.permute.xlu1 %9038 }
0x139d   : > { %v14099_v2 = vpop.eup %14098  ;;  %14108 = vrcp.f32 %v10085_v10 }
0x139e   : > { %10275 = vst.msk [vmem:[%s19911_s23] sm:$0xff] %vm10274_vm1, %v14099_v2  ;;  %14110 = vpow2.f32 %v11716_v43  ;;  %v11717_v24 = vmul.f32 -1.442695, %v9663_v45  ;;  %9874 = vmatmul.mubr.bf16.gmra.mrb[240].mxu0 %v14084_v4 }
0x139f   : > { %v14101_v34 = vpop.eup %14100  ;;  %9881 = vmatprep.mubr.bf16.mxu0 %v14089_v36 }
0x13a0   : > { %v14103_v3 = vpop.eup %14102  ;;  %10276 = vst.msk [vmem:[%s19911_s23 + $0x8] sm:$0xff] %vm10274_vm1, %v14101_v34  ;;  %14112 = vpow2.f32 %v11717_v24 }
0x13a1   : > { %v10086_v17 = vadd.f32 1.0, %v14103_v3  ;;  %v9667_v5 = vpop.f32.mrb[136].mxu0 }
0x13a2   : > { %v14105_v14 = vpop.eup %14104  ;;  %v9668_v42 = vadd.f32 %v9667_v5, %v9004_v63  ;;  %v9669_v28 = vpop.f32.mrb[137].mxu0 }
0x13a3   : > { %14114 = vrcp.f32 %v10086_v17  ;;  %v10087_v6 = vadd.f32 1.0, %v14105_v14  ;;  %v9670_v25 = vpop.f32.mrb[138].mxu0  ;;  %v9044_v17 = vpop.permute.xlu0 %9043 }
0x13a4   : > { %v11718_v60 = vmul.f32 -1.442695, %v9668_v42  ;;  %v9671_v59 = vadd.f32 %v9670_v25, %v9009_v49  ;;  %v9672_v35 = vpop.f32.mrb[139].mxu0  ;;  %v9049_v49 = vpop.permute.xlu1 %9048 }
0x13a5   : > { %v14107_v46 = vpop.eup %14106  ;;  %14116 = vrcp.f32 %v10087_v6 }
0x13a6   : > { %10277 = vst.msk [vmem:[%s19911_s23 + $0x10] sm:$0xff] %vm10274_vm1, %v14107_v46  ;;  %14118 = vpow2.f32 %v11718_v60  ;;  %v11719_v15 = vmul.f32 -1.442695, %v9671_v59  ;;  %9882 = vmatmul.mubr.bf16.gmra.mrb[244].mxu0 %v14087_v31 }
0x13a7   : > { %v14109_v53 = vpop.eup %14108 }
0x13a8   : > { %v14111_v47 = vpop.eup %14110  ;;  %10278 = vst.msk [vmem:[%s19911_s23 + $0x18] sm:$0xff] %vm10274_vm1, %v14109_v53  ;;  %14120 = vpow2.f32 %v11719_v15 }
0x13a9   : > { %v10088_v8 = vadd.f32 1.0, %v14111_v47  ;;  %v9675_v32 = vpop.f32.mrb[140].mxu0 }
0x13aa   : > { %v14113_v40 = vpop.eup %14112  ;;  %v9676_v12 = vadd.f32 %v9675_v32, %v9014_v7  ;;  %v9677_v44 = vpop.f32.mrb[141].mxu0 }
0x13ab   : > { %14122 = vrcp.f32 %v10088_v8  ;;  %v10089_v41 = vadd.f32 1.0, %v14113_v40  ;;  %v9678_v55 = vpop.f32.mrb[142].mxu0  ;;  %v9054_v7 = vpop.permute.xlu0 %9053 }
0x13ac   : > { %v11720_v11 = vmul.f32 -1.442695, %v9676_v12  ;;  %v9679_v29 = vadd.f32 %v9678_v55, %v9019_v18  ;;  %v9680_v61 = vpop.f32.mrb[143].mxu0  ;;  %v9059_v18 = vpop.permute.xlu1 %9058 }
0x13ad   : > { %v14115_v22 = vpop.eup %14114  ;;  %14124 = vrcp.f32 %v10089_v41 }
0x13ae   : > { %10279 = vst.msk [vmem:[%s19911_s23 + $0x20] sm:$0xff] %vm10274_vm1, %v14115_v22  ;;  %14126 = vpow2.f32 %v11720_v11  ;;  %v11721_v51 = vmul.f32 -1.442695, %v9679_v29 }
0x13af   : > { %v14117_v9 = vpop.eup %14116 }
0x13b0   : > { %v14119_v19 = vpop.eup %14118  ;;  %10280 = vst.msk [vmem:[%s19911_s23 + $0x28] sm:$0xff] %vm10274_vm1, %v14117_v9  ;;  %14128 = vpow2.f32 %v11721_v51 }
0x13b1   : > { %v10090_v56 = vadd.f32 1.0, %v14119_v19  ;;  %v9683_v1 = vpop.f32.mrb[144].mxu0 }
0x13b2   : > { %v14121_v23 = vpop.eup %14120  ;;  %v9684_v37 = vadd.f32 %v9683_v1, %v9024_v16  ;;  %v9685_v21 = vpop.f32.mrb[145].mxu0 }
0x13b3   : > { %14130 = vrcp.f32 %v10090_v56  ;;  %v10091_v57 = vadd.f32 1.0, %v14121_v23  ;;  %v9686_v54 = vpop.f32.mrb[146].mxu0  ;;  %v9064_v16 = vpop.permute.xlu0 %9063 }
0x13b4   : > { %v11722_v52 = vmul.f32 -1.442695, %v9684_v37  ;;  %v9687_v27 = vadd.f32 %v9686_v54, %v9029_v33  ;;  %v9688_v62 = vpop.f32.mrb[147].mxu0  ;;  %v9069_v33 = vpop.permute.xlu1 %9068 }
0x13b5   : > { %v14123_v39 = vpop.eup %14122  ;;  %14132 = vrcp.f32 %v10091_v57 }
0x13b6   : > { %10281 = vst.msk [vmem:[%s19911_s23 + $0x30] sm:$0xff] %vm10274_vm1, %v14123_v39  ;;  %14134 = vpow2.f32 %v11722_v52  ;;  %v11723_v20 = vmul.f32 -1.442695, %v9687_v27 }
0x13b7   : > { %v14125_v0 = vpop.eup %14124 }
0x13b8   : > { %v14127_v58 = vpop.eup %14126  ;;  %10282 = vst.msk [vmem:[%s19911_s23 + $0x38] sm:$0xff] %vm10274_vm1, %v14125_v0  ;;  %14136 = vpow2.f32 %v11723_v20 }
0x13b9   : > { %v10092_v50 = vadd.f32 1.0, %v14127_v58  ;;  %v9691_v38 = vpop.f32.mrb[148].mxu0 }
0x13ba   : > { %v14129_v4 = vpop.eup %14128  ;;  %v9692_v26 = vadd.f32 %v9691_v38, %v9034_v13  ;;  %v9693_v10 = vpop.f32.mrb[149].mxu0 }
0x13bb   : > { %14138 = vrcp.f32 %v10092_v50  ;;  %v10093_v36 = vadd.f32 1.0, %v14129_v4  ;;  %v9694_v43 = vpop.f32.mrb[150].mxu0  ;;  %v9074_v13 = vpop.permute.xlu0 %9073 }
0x13bc   : > { %v11724_v45 = vmul.f32 -1.442695, %v9692_v26  ;;  %v9695_v30 = vadd.f32 %v9694_v43, %v9039_v48  ;;  %v9696_v2 = vpop.f32.mrb[151].mxu0  ;;  %v9079_v48 = vpop.permute.xlu1 %9078 }
0x13bd   : > { %v14131_v24 = vpop.eup %14130  ;;  %14140 = vrcp.f32 %v10093_v36 }
0x13be   : > { %10283 = vst.msk [vmem:[%s19911_s23 + $0x40] sm:$0xff] %vm10274_vm1, %v14131_v24  ;;  %14142 = vpow2.f32 %v11724_v45  ;;  %v11725_v34 = vmul.f32 -1.442695, %v9695_v30 }
0x13bf   : > { %v14133_v3 = vpop.eup %14132 }
0x13c0   : > { %v14135_v63 = vpop.eup %14134  ;;  %10284 = vst.msk [vmem:[%s19911_s23 + $0x48] sm:$0xff] %vm10274_vm1, %v14133_v3  ;;  %14144 = vpow2.f32 %v11725_v34 }
0x13c1   : > { %v10094_v5 = vadd.f32 1.0, %v14135_v63  ;;  %v9699_v14 = vpop.f32.mrb[152].mxu0 }
0x13c2   : > { %v14137_v42 = vpop.eup %14136  ;;  %v9700_v28 = vadd.f32 %v9699_v14, %v9044_v17  ;;  %v9701_v31 = vpop.f32.mrb[153].mxu0 }
0x13c3   : > { %14146 = vrcp.f32 %v10094_v5  ;;  %v10095_v6 = vadd.f32 1.0, %v14137_v42  ;;  %v9702_v25 = vpop.f32.mrb[154].mxu0  ;;  %v9084_v17 = vpop.permute.xlu0 %9083 }
0x13c4   : > { %v11726_v60 = vmul.f32 -1.442695, %v9700_v28  ;;  %v9703_v59 = vadd.f32 %v9702_v25, %v9049_v49  ;;  %v9704_v35 = vpop.f32.mrb[155].mxu0  ;;  %v9089_v49 = vpop.permute.xlu1 %9088 }
0x13c5   : > { %v14139_v46 = vpop.eup %14138  ;;  %14148 = vrcp.f32 %v10095_v6 }
0x13c6   : > { %10285 = vst.msk [vmem:[%s19911_s23 + $0x50] sm:$0xff] %vm10274_vm1, %v14139_v46  ;;  %14150 = vpow2.f32 %v11726_v60  ;;  %v11727_v15 = vmul.f32 -1.442695, %v9703_v59 }
0x13c7   : > { %v14141_v53 = vpop.eup %14140 }
0x13c8   : > { %v14143_v47 = vpop.eup %14142  ;;  %10286 = vst.msk [vmem:[%s19911_s23 + $0x58] sm:$0xff] %vm10274_vm1, %v14141_v53  ;;  %14152 = vpow2.f32 %v11727_v15 }
0x13c9   : > { %v10096_v8 = vadd.f32 1.0, %v14143_v47  ;;  %v9707_v32 = vpop.f32.mrb[156].mxu0 }
0x13ca   : > { %v14145_v40 = vpop.eup %14144  ;;  %v9708_v12 = vadd.f32 %v9707_v32, %v9054_v7  ;;  %v9709_v44 = vpop.f32.mrb[157].mxu0 }
0x13cb   : > { %14154 = vrcp.f32 %v10096_v8  ;;  %v10097_v41 = vadd.f32 1.0, %v14145_v40  ;;  %v9710_v55 = vpop.f32.mrb[158].mxu0  ;;  %v9094_v7 = vpop.permute.xlu0 %9093 }
0x13cc   : > { %v11728_v11 = vmul.f32 -1.442695, %v9708_v12  ;;  %v9711_v29 = vadd.f32 %v9710_v55, %v9059_v18  ;;  %v9712_v61 = vpop.f32.mrb[159].mxu0  ;;  %v9099_v18 = vpop.permute.xlu1 %9098 }
0x13cd   : > { %v14147_v22 = vpop.eup %14146  ;;  %14156 = vrcp.f32 %v10097_v41 }
0x13ce   : > { %10287 = vst.msk [vmem:[%s19911_s23 + $0x60] sm:$0xff] %vm10274_vm1, %v14147_v22  ;;  %14158 = vpow2.f32 %v11728_v11  ;;  %v11729_v51 = vmul.f32 -1.442695, %v9711_v29 }
0x13cf   : > { %v14149_v9 = vpop.eup %14148 }
0x13d0   : > { %v14151_v19 = vpop.eup %14150  ;;  %10288 = vst.msk [vmem:[%s19911_s23 + $0x68] sm:$0xff] %vm10274_vm1, %v14149_v9  ;;  %14160 = vpow2.f32 %v11729_v51 }
0x13d1   : > { %v10098_v56 = vadd.f32 1.0, %v14151_v19  ;;  %v9715_v1 = vpop.f32.mrb[160].mxu0 }
0x13d2   : > { %v14153_v23 = vpop.eup %14152  ;;  %v9716_v37 = vadd.f32 %v9715_v1, %v9064_v16  ;;  %v9717_v21 = vpop.f32.mrb[161].mxu0 }
0x13d3   : > { %14162 = vrcp.f32 %v10098_v56  ;;  %v10099_v57 = vadd.f32 1.0, %v14153_v23  ;;  %v9718_v54 = vpop.f32.mrb[162].mxu0  ;;  %v9104_v16 = vpop.permute.xlu0 %9103 }
0x13d4   : > { %v11730_v52 = vmul.f32 -1.442695, %v9716_v37  ;;  %v9719_v27 = vadd.f32 %v9718_v54, %v9069_v33  ;;  %v9720_v62 = vpop.f32.mrb[163].mxu0  ;;  %v9109_v33 = vpop.permute.xlu1 %9108 }
0x13d5   : > { %v14155_v39 = vpop.eup %14154  ;;  %14164 = vrcp.f32 %v10099_v57 }
0x13d6   : > { %10289 = vst.msk [vmem:[%s19911_s23 + $0x70] sm:$0xff] %vm10274_vm1, %v14155_v39  ;;  %14166 = vpow2.f32 %v11730_v52  ;;  %v11731_v20 = vmul.f32 -1.442695, %v9719_v27 }
0x13d7   : > { %v14157_v0 = vpop.eup %14156 }
0x13d8   : > { %v14159_v58 = vpop.eup %14158  ;;  %10290 = vst.msk [vmem:[%s19911_s23 + $0x78] sm:$0xff] %vm10274_vm1, %v14157_v0  ;;  %14168 = vpow2.f32 %v11731_v20 }
0x13d9   : > { %v10100_v50 = vadd.f32 1.0, %v14159_v58  ;;  %v9723_v38 = vpop.f32.mrb[164].mxu0 }
0x13da   : > { %v14161_v4 = vpop.eup %14160  ;;  %v9724_v26 = vadd.f32 %v9723_v38, %v9074_v13  ;;  %v9725_v10 = vpop.f32.mrb[165].mxu0 }
0x13db   : > { %14170 = vrcp.f32 %v10100_v50  ;;  %v10101_v36 = vadd.f32 1.0, %v14161_v4  ;;  %v9726_v43 = vpop.f32.mrb[166].mxu0  ;;  %v9114_v13 = vpop.permute.xlu0 %9113 }
0x13dc   : > { %v11732_v45 = vmul.f32 -1.442695, %v9724_v26  ;;  %v9727_v30 = vadd.f32 %v9726_v43, %v9079_v48  ;;  %v9728_v2 = vpop.f32.mrb[167].mxu0  ;;  %v9119_v48 = vpop.permute.xlu1 %9118 }
0x13dd   : > { %v14163_v24 = vpop.eup %14162  ;;  %14172 = vrcp.f32 %v10101_v36 }
0x13de   : > { %10291 = vst.msk [vmem:[%s19911_s23 + $0x80] sm:$0xff] %vm10274_vm1, %v14163_v24  ;;  %14174 = vpow2.f32 %v11732_v45  ;;  %v11733_v34 = vmul.f32 -1.442695, %v9727_v30 }
0x13df   : > { %v14165_v3 = vpop.eup %14164 }
0x13e0   : > { %v14167_v63 = vpop.eup %14166  ;;  %10292 = vst.msk [vmem:[%s19911_s23 + $0x88] sm:$0xff] %vm10274_vm1, %v14165_v3  ;;  %14176 = vpow2.f32 %v11733_v34 }
0x13e1   : > { %v10102_v5 = vadd.f32 1.0, %v14167_v63  ;;  %v9731_v14 = vpop.f32.mrb[168].mxu0 }
0x13e2   : > { %v14169_v42 = vpop.eup %14168  ;;  %v9732_v28 = vadd.f32 %v9731_v14, %v9084_v17  ;;  %v9733_v31 = vpop.f32.mrb[169].mxu0 }
0x13e3   : > { %14178 = vrcp.f32 %v10102_v5  ;;  %v10103_v6 = vadd.f32 1.0, %v14169_v42  ;;  %v9734_v25 = vpop.f32.mrb[170].mxu0  ;;  %v9124_v17 = vpop.permute.xlu0 %9123 }
0x13e4   : > { %v11734_v60 = vmul.f32 -1.442695, %v9732_v28  ;;  %v9735_v59 = vadd.f32 %v9734_v25, %v9089_v49  ;;  %v9736_v35 = vpop.f32.mrb[171].mxu0  ;;  %v9129_v49 = vpop.permute.xlu1 %9128 }
0x13e5   : > { %v14171_v46 = vpop.eup %14170  ;;  %14180 = vrcp.f32 %v10103_v6 }
0x13e6   : > { %10293 = vst.msk [vmem:[%s19911_s23 + $0x90] sm:$0xff] %vm10274_vm1, %v14171_v46  ;;  %14182 = vpow2.f32 %v11734_v60  ;;  %v11735_v15 = vmul.f32 -1.442695, %v9735_v59 }
0x13e7   : > { %v14173_v53 = vpop.eup %14172 }
0x13e8   : > { %v14175_v47 = vpop.eup %14174  ;;  %10294 = vst.msk [vmem:[%s19911_s23 + $0x98] sm:$0xff] %vm10274_vm1, %v14173_v53  ;;  %14184 = vpow2.f32 %v11735_v15 }
0x13e9   : > { %v10104_v8 = vadd.f32 1.0, %v14175_v47  ;;  %v9739_v32 = vpop.f32.mrb[172].mxu0 }
0x13ea   : > { %v14177_v40 = vpop.eup %14176  ;;  %v9740_v12 = vadd.f32 %v9739_v32, %v9094_v7  ;;  %v9741_v44 = vpop.f32.mrb[173].mxu0 }
0x13eb   : > { %14186 = vrcp.f32 %v10104_v8  ;;  %v10105_v41 = vadd.f32 1.0, %v14177_v40  ;;  %v9742_v55 = vpop.f32.mrb[174].mxu0  ;;  %v9134_v7 = vpop.permute.xlu0 %9133 }
0x13ec   : > { %v11736_v11 = vmul.f32 -1.442695, %v9740_v12  ;;  %v9743_v29 = vadd.f32 %v9742_v55, %v9099_v18  ;;  %v9744_v61 = vpop.f32.mrb[175].mxu0  ;;  %v9139_v18 = vpop.permute.xlu1 %9138 }
0x13ed   : > { %v14179_v22 = vpop.eup %14178  ;;  %14188 = vrcp.f32 %v10105_v41 }
0x13ee   : > { %10295 = vst.msk [vmem:[%s19911_s23 + $0xa0] sm:$0xff] %vm10274_vm1, %v14179_v22  ;;  %14190 = vpow2.f32 %v11736_v11  ;;  %v11737_v51 = vmul.f32 -1.442695, %v9743_v29 }
0x13ef   : > { %v14181_v9 = vpop.eup %14180 }
0x13f0   : > { %v14183_v19 = vpop.eup %14182  ;;  %10296 = vst.msk [vmem:[%s19911_s23 + $0xa8] sm:$0xff] %vm10274_vm1, %v14181_v9  ;;  %14192 = vpow2.f32 %v11737_v51 }
0x13f1   : > { %v10106_v56 = vadd.f32 1.0, %v14183_v19  ;;  %v9747_v1 = vpop.f32.mrb[176].mxu0 }
0x13f2   : > { %v14185_v23 = vpop.eup %14184  ;;  %v9748_v37 = vadd.f32 %v9747_v1, %v9104_v16  ;;  %v9749_v21 = vpop.f32.mrb[177].mxu0 }
0x13f3   : > { %14194 = vrcp.f32 %v10106_v56  ;;  %v10107_v57 = vadd.f32 1.0, %v14185_v23  ;;  %v9750_v54 = vpop.f32.mrb[178].mxu0  ;;  %v9144_v16 = vpop.permute.xlu0 %9143 }
0x13f4   : > { %v11738_v52 = vmul.f32 -1.442695, %v9748_v37  ;;  %v9751_v27 = vadd.f32 %v9750_v54, %v9109_v33  ;;  %v9752_v62 = vpop.f32.mrb[179].mxu0  ;;  %v9149_v33 = vpop.permute.xlu1 %9148 }
0x13f5   : > { %v14187_v39 = vpop.eup %14186  ;;  %14196 = vrcp.f32 %v10107_v57 }
0x13f6   : > { %10297 = vst.msk [vmem:[%s19911_s23 + $0xb0] sm:$0xff] %vm10274_vm1, %v14187_v39  ;;  %14198 = vpow2.f32 %v11738_v52  ;;  %v11739_v20 = vmul.f32 -1.442695, %v9751_v27 }
0x13f7   : > { %v14189_v0 = vpop.eup %14188 }
0x13f8   : > { %v14191_v58 = vpop.eup %14190  ;;  %10298 = vst.msk [vmem:[%s19911_s23 + $0xb8] sm:$0xff] %vm10274_vm1, %v14189_v0  ;;  %14200 = vpow2.f32 %v11739_v20 }
0x13f9   : > { %v10108_v50 = vadd.f32 1.0, %v14191_v58  ;;  %v9755_v38 = vpop.f32.mrb[180].mxu0 }
0x13fa   : > { %v14193_v4 = vpop.eup %14192  ;;  %v9756_v26 = vadd.f32 %v9755_v38, %v9114_v13  ;;  %v9757_v10 = vpop.f32.mrb[181].mxu0 }
0x13fb   : > { %14202 = vrcp.f32 %v10108_v50  ;;  %v10109_v36 = vadd.f32 1.0, %v14193_v4  ;;  %v9758_v43 = vpop.f32.mrb[182].mxu0  ;;  %v9154_v13 = vpop.permute.xlu0 %9153 }
0x13fc   : > { %v11740_v45 = vmul.f32 -1.442695, %v9756_v26  ;;  %v9759_v30 = vadd.f32 %v9758_v43, %v9119_v48  ;;  %v9760_v2 = vpop.f32.mrb[183].mxu0  ;;  %v9159_v48 = vpop.permute.xlu1 %9158 }
0x13fd   : > { %v14195_v24 = vpop.eup %14194  ;;  %14204 = vrcp.f32 %v10109_v36 }
0x13fe   : > { %10299 = vst.msk [vmem:[%s19911_s23 + $0xc0] sm:$0xff] %vm10274_vm1, %v14195_v24  ;;  %14206 = vpow2.f32 %v11740_v45  ;;  %v11741_v34 = vmul.f32 -1.442695, %v9759_v30 }
0x13ff   : > { %v14197_v3 = vpop.eup %14196 }
0x1400   : > { %v14199_v63 = vpop.eup %14198  ;;  %10300 = vst.msk [vmem:[%s19911_s23 + $0xc8] sm:$0xff] %vm10274_vm1, %v14197_v3  ;;  %14208 = vpow2.f32 %v11741_v34 }
0x1401   : > { %v10110_v5 = vadd.f32 1.0, %v14199_v63  ;;  %v9763_v14 = vpop.f32.mrb[184].mxu0 }
0x1402   : > { %v14201_v42 = vpop.eup %14200  ;;  %v9764_v28 = vadd.f32 %v9763_v14, %v9124_v17  ;;  %v9765_v31 = vpop.f32.mrb[185].mxu0 }
0x1403   : > { %14210 = vrcp.f32 %v10110_v5  ;;  %v10111_v6 = vadd.f32 1.0, %v14201_v42  ;;  %v9766_v25 = vpop.f32.mrb[186].mxu0  ;;  %v9164_v17 = vpop.permute.xlu0 %9163 }
0x1404   : > { %v11742_v60 = vmul.f32 -1.442695, %v9764_v28  ;;  %v9767_v59 = vadd.f32 %v9766_v25, %v9129_v49  ;;  %v9768_v35 = vpop.f32.mrb[187].mxu0  ;;  %v9169_v49 = vpop.permute.xlu1 %9168 }
0x1405   : > { %v14203_v46 = vpop.eup %14202  ;;  %14212 = vrcp.f32 %v10111_v6 }
0x1406   : > { %10301 = vst.msk [vmem:[%s19911_s23 + $0xd0] sm:$0xff] %vm10274_vm1, %v14203_v46  ;;  %14214 = vpow2.f32 %v11742_v60  ;;  %v11743_v15 = vmul.f32 -1.442695, %v9767_v59 }
0x1407   : > { %v14205_v53 = vpop.eup %14204 }
0x1408   : > { %v14207_v47 = vpop.eup %14206  ;;  %10302 = vst.msk [vmem:[%s19911_s23 + $0xd8] sm:$0xff] %vm10274_vm1, %v14205_v53  ;;  %14216 = vpow2.f32 %v11743_v15 }
0x1409   : > { %v10112_v8 = vadd.f32 1.0, %v14207_v47  ;;  %v9771_v32 = vpop.f32.mrb[188].mxu0 }
0x140a   : > { %v14209_v40 = vpop.eup %14208  ;;  %v9772_v12 = vadd.f32 %v9771_v32, %v9134_v7  ;;  %v9773_v44 = vpop.f32.mrb[189].mxu0 }
0x140b   : > { %14218 = vrcp.f32 %v10112_v8  ;;  %v10113_v41 = vadd.f32 1.0, %v14209_v40  ;;  %v9774_v55 = vpop.f32.mrb[190].mxu0  ;;  %v9174_v7 = vpop.permute.xlu0 %9173 }
0x140c   : > { %v11744_v11 = vmul.f32 -1.442695, %v9772_v12  ;;  %v9775_v29 = vadd.f32 %v9774_v55, %v9139_v18  ;;  %v9776_v61 = vpop.f32.mrb[191].mxu0  ;;  %v9179_v18 = vpop.permute.xlu1 %9178 }
0x140d   : > { %v14211_v22 = vpop.eup %14210  ;;  %14220 = vrcp.f32 %v10113_v41 }
0x140e   : > { %10303 = vst.msk [vmem:[%s19911_s23 + $0xe0] sm:$0xff] %vm10274_vm1, %v14211_v22  ;;  %14222 = vpow2.f32 %v11744_v11  ;;  %v11745_v51 = vmul.f32 -1.442695, %v9775_v29 }
0x140f   : > { %v14213_v9 = vpop.eup %14212 }
0x1410   : > { %v14215_v19 = vpop.eup %14214  ;;  %10304 = vst.msk [vmem:[%s19911_s23 + $0xe8] sm:$0xff] %vm10274_vm1, %v14213_v9  ;;  %14224 = vpow2.f32 %v11745_v51 }
0x1411   : > { %v10114_v56 = vadd.f32 1.0, %v14215_v19  ;;  %v9779_v1 = vpop.f32.mrb[192].mxu0 }
0x1412   : > { %v14217_v23 = vpop.eup %14216  ;;  %v9780_v37 = vadd.f32 %v9779_v1, %v9144_v16  ;;  %v9781_v21 = vpop.f32.mrb[193].mxu0 }
0x1413   : > { %14226 = vrcp.f32 %v10114_v56  ;;  %v10115_v57 = vadd.f32 1.0, %v14217_v23  ;;  %v9782_v54 = vpop.f32.mrb[194].mxu0  ;;  %v9184_v16 = vpop.permute.xlu0 %9183 }
0x1414   : > { %v11746_v52 = vmul.f32 -1.442695, %v9780_v37  ;;  %v9783_v27 = vadd.f32 %v9782_v54, %v9149_v33  ;;  %v9784_v62 = vpop.f32.mrb[195].mxu0  ;;  %v9189_v33 = vpop.permute.xlu1 %9188 }
0x1415   : > { %v14219_v39 = vpop.eup %14218  ;;  %14228 = vrcp.f32 %v10115_v57 }
0x1416   : > { %10305 = vst.msk [vmem:[%s19911_s23 + $0xf0] sm:$0xff] %vm10274_vm1, %v14219_v39  ;;  %14230 = vpow2.f32 %v11746_v52  ;;  %v11747_v20 = vmul.f32 -1.442695, %v9783_v27 }
0x1417   : > { %v14221_v0 = vpop.eup %14220 }
0x1418   : > { %v14223_v58 = vpop.eup %14222  ;;  %10306 = vst.msk [vmem:[%s19911_s23 + $0xf8] sm:$0xff] %vm10274_vm1, %v14221_v0  ;;  %14232 = vpow2.f32 %v11747_v20 }
0x1419   : > { %v10116_v50 = vadd.f32 1.0, %v14223_v58  ;;  %v9787_v38 = vpop.f32.mrb[196].mxu0 }
0x141a   : > { %v14225_v4 = vpop.eup %14224  ;;  %v9788_v26 = vadd.f32 %v9787_v38, %v9154_v13  ;;  %v9789_v10 = vpop.f32.mrb[197].mxu0 }
0x141b   : > { %14234 = vrcp.f32 %v10116_v50  ;;  %v10117_v36 = vadd.f32 1.0, %v14225_v4  ;;  %v9790_v43 = vpop.f32.mrb[198].mxu0  ;;  %v9194_v13 = vpop.permute.xlu0 %9193 }
0x141c   : > { %v11748_v45 = vmul.f32 -1.442695, %v9788_v26  ;;  %v9791_v30 = vadd.f32 %v9790_v43, %v9159_v48  ;;  %v9792_v2 = vpop.f32.mrb[199].mxu0  ;;  %v9199_v48 = vpop.permute.xlu1 %9198 }
0x141d   : > { %v14227_v24 = vpop.eup %14226  ;;  %14236 = vrcp.f32 %v10117_v36 }
0x141e   : > { %10307 = vst.msk [vmem:[%s19911_s23 + $0x100] sm:$0xff] %vm10274_vm1, %v14227_v24  ;;  %14238 = vpow2.f32 %v11748_v45  ;;  %v11749_v34 = vmul.f32 -1.442695, %v9791_v30 }
0x141f   : > { %v14229_v3 = vpop.eup %14228 }
0x1420   : > { %v14231_v63 = vpop.eup %14230  ;;  %10308 = vst.msk [vmem:[%s19911_s23 + $0x108] sm:$0xff] %vm10274_vm1, %v14229_v3  ;;  %14240 = vpow2.f32 %v11749_v34 }
0x1421   : > { %v10118_v5 = vadd.f32 1.0, %v14231_v63  ;;  %v9795_v14 = vpop.f32.mrb[200].mxu0 }
0x1422   : > { %v14233_v42 = vpop.eup %14232  ;;  %v9796_v28 = vadd.f32 %v9795_v14, %v9164_v17  ;;  %v9797_v31 = vpop.f32.mrb[201].mxu0 }
0x1423   : > { %14242 = vrcp.f32 %v10118_v5  ;;  %v10119_v6 = vadd.f32 1.0, %v14233_v42  ;;  %v9798_v25 = vpop.f32.mrb[202].mxu0  ;;  %v9204_v17 = vpop.permute.xlu0 %9203 }
0x1424   : > { %v11750_v60 = vmul.f32 -1.442695, %v9796_v28  ;;  %v9799_v59 = vadd.f32 %v9798_v25, %v9169_v49  ;;  %v9800_v35 = vpop.f32.mrb[203].mxu0  ;;  %v9209_v49 = vpop.permute.xlu1 %9208 }
0x1425   : > { %v14235_v46 = vpop.eup %14234  ;;  %14244 = vrcp.f32 %v10119_v6 }
0x1426   : > { %10309 = vst.msk [vmem:[%s19911_s23 + $0x110] sm:$0xff] %vm10274_vm1, %v14235_v46  ;;  %14246 = vpow2.f32 %v11750_v60  ;;  %v11751_v15 = vmul.f32 -1.442695, %v9799_v59 }
0x1427   : > { %v14237_v53 = vpop.eup %14236 }
0x1428   : > { %v14239_v47 = vpop.eup %14238  ;;  %10310 = vst.msk [vmem:[%s19911_s23 + $0x118] sm:$0xff] %vm10274_vm1, %v14237_v53  ;;  %14248 = vpow2.f32 %v11751_v15 }
0x1429   : > { %v10120_v8 = vadd.f32 1.0, %v14239_v47  ;;  %v9803_v32 = vpop.f32.mrb[204].mxu0 }
0x142a   : > { %v14241_v40 = vpop.eup %14240  ;;  %v9804_v12 = vadd.f32 %v9803_v32, %v9174_v7  ;;  %v9805_v44 = vpop.f32.mrb[205].mxu0 }
0x142b   : > { %14250 = vrcp.f32 %v10120_v8  ;;  %v10121_v41 = vadd.f32 1.0, %v14241_v40  ;;  %v9806_v55 = vpop.f32.mrb[206].mxu0  ;;  %v9214_v7 = vpop.permute.xlu0 %9213 }
0x142c   : > { %v11752_v11 = vmul.f32 -1.442695, %v9804_v12  ;;  %v9807_v29 = vadd.f32 %v9806_v55, %v9179_v18  ;;  %v9808_v61 = vpop.f32.mrb[207].mxu0  ;;  %v9219_v18 = vpop.permute.xlu1 %9218 }
0x142d   : > { %v14243_v22 = vpop.eup %14242  ;;  %14252 = vrcp.f32 %v10121_v41 }
0x142e   : > { %10311 = vst.msk [vmem:[%s19911_s23 + $0x120] sm:$0xff] %vm10274_vm1, %v14243_v22  ;;  %14254 = vpow2.f32 %v11752_v11  ;;  %v11753_v51 = vmul.f32 -1.442695, %v9807_v29 }
0x142f   : > { %v14245_v9 = vpop.eup %14244 }
0x1430   : > { %v14247_v19 = vpop.eup %14246  ;;  %10312 = vst.msk [vmem:[%s19911_s23 + $0x128] sm:$0xff] %vm10274_vm1, %v14245_v9  ;;  %14256 = vpow2.f32 %v11753_v51 }
0x1431   : > { %v10122_v56 = vadd.f32 1.0, %v14247_v19  ;;  %v9811_v1 = vpop.f32.mrb[208].mxu0 }
0x1432   : > { %v14249_v23 = vpop.eup %14248  ;;  %v9812_v37 = vadd.f32 %v9811_v1, %v9184_v16  ;;  %v9813_v21 = vpop.f32.mrb[209].mxu0 }
0x1433   : > { %14258 = vrcp.f32 %v10122_v56  ;;  %v10123_v57 = vadd.f32 1.0, %v14249_v23  ;;  %v9814_v54 = vpop.f32.mrb[210].mxu0  ;;  %v9224_v16 = vpop.permute.xlu0 %9223 }
0x1434   : > { %v11754_v52 = vmul.f32 -1.442695, %v9812_v37  ;;  %v9815_v27 = vadd.f32 %v9814_v54, %v9189_v33  ;;  %v9816_v62 = vpop.f32.mrb[211].mxu0  ;;  %v9229_v33 = vpop.permute.xlu1 %9228 }
0x1435   : > { %v14251_v39 = vpop.eup %14250  ;;  %14260 = vrcp.f32 %v10123_v57 }
0x1436   : > { %10313 = vst.msk [vmem:[%s19911_s23 + $0x130] sm:$0xff] %vm10274_vm1, %v14251_v39  ;;  %14262 = vpow2.f32 %v11754_v52  ;;  %v11755_v20 = vmul.f32 -1.442695, %v9815_v27 }
0x1437   : > { %v14253_v0 = vpop.eup %14252 }
0x1438   : > { %v14255_v58 = vpop.eup %14254  ;;  %10314 = vst.msk [vmem:[%s19911_s23 + $0x138] sm:$0xff] %vm10274_vm1, %v14253_v0  ;;  %14264 = vpow2.f32 %v11755_v20 }
0x1439   : > { %v10124_v50 = vadd.f32 1.0, %v14255_v58  ;;  %v9819_v38 = vpop.f32.mrb[212].mxu0 }
0x143a   : > { %v14257_v4 = vpop.eup %14256  ;;  %v9820_v26 = vadd.f32 %v9819_v38, %v9194_v13  ;;  %v9821_v10 = vpop.f32.mrb[213].mxu0 }
0x143b   : > { %14266 = vrcp.f32 %v10124_v50  ;;  %v10125_v36 = vadd.f32 1.0, %v14257_v4  ;;  %v9822_v43 = vpop.f32.mrb[214].mxu0  ;;  %v9234_v13 = vpop.permute.xlu0 %9233 }
0x143c   : > { %v11756_v45 = vmul.f32 -1.442695, %v9820_v26  ;;  %v9823_v30 = vadd.f32 %v9822_v43, %v9199_v48  ;;  %v9824_v2 = vpop.f32.mrb[215].mxu0  ;;  %v9239_v48 = vpop.permute.xlu1 %9238 }
0x143d   : > { %v14259_v24 = vpop.eup %14258  ;;  %14268 = vrcp.f32 %v10125_v36 }
0x143e   : > { %10315 = vst.msk [vmem:[%s19911_s23 + $0x140] sm:$0xff] %vm10274_vm1, %v14259_v24  ;;  %14270 = vpow2.f32 %v11756_v45  ;;  %v11757_v34 = vmul.f32 -1.442695, %v9823_v30 }
0x143f   : > { %v14261_v3 = vpop.eup %14260 }
0x1440   : > { %v14263_v63 = vpop.eup %14262  ;;  %10316 = vst.msk [vmem:[%s19911_s23 + $0x148] sm:$0xff] %vm10274_vm1, %v14261_v3  ;;  %14272 = vpow2.f32 %v11757_v34 }
0x1441   : > { %v10126_v5 = vadd.f32 1.0, %v14263_v63  ;;  %v9827_v14 = vpop.f32.mrb[216].mxu0 }
0x1442   : > { %v14265_v42 = vpop.eup %14264  ;;  %v9828_v28 = vadd.f32 %v9827_v14, %v9204_v17  ;;  %v9829_v31 = vpop.f32.mrb[217].mxu0 }
0x1443   : > { %14274 = vrcp.f32 %v10126_v5  ;;  %v10127_v6 = vadd.f32 1.0, %v14265_v42  ;;  %v9830_v25 = vpop.f32.mrb[218].mxu0  ;;  %v9244_v17 = vpop.permute.xlu0 %9243 }
0x1444   : > { %v11758_v60 = vmul.f32 -1.442695, %v9828_v28  ;;  %v9831_v59 = vadd.f32 %v9830_v25, %v9209_v49  ;;  %v9832_v35 = vpop.f32.mrb[219].mxu0  ;;  %v9249_v49 = vpop.permute.xlu1 %9248 }
0x1445   : > { %v14267_v46 = vpop.eup %14266  ;;  %14276 = vrcp.f32 %v10127_v6 }
0x1446   : > { %10317 = vst.msk [vmem:[%s19911_s23 + $0x150] sm:$0xff] %vm10274_vm1, %v14267_v46  ;;  %14278 = vpow2.f32 %v11758_v60  ;;  %v11759_v15 = vmul.f32 -1.442695, %v9831_v59 }
0x1447   : > { %v14269_v53 = vpop.eup %14268 }
0x1448   : > { %v14271_v47 = vpop.eup %14270  ;;  %10318 = vst.msk [vmem:[%s19911_s23 + $0x158] sm:$0xff] %vm10274_vm1, %v14269_v53  ;;  %14280 = vpow2.f32 %v11759_v15 }
0x1449   : > { %v10128_v8 = vadd.f32 1.0, %v14271_v47  ;;  %v9835_v32 = vpop.f32.mrb[220].mxu0 }
0x144a   : > { %v14273_v40 = vpop.eup %14272  ;;  %v9836_v12 = vadd.f32 %v9835_v32, %v9214_v7  ;;  %v9837_v44 = vpop.f32.mrb[221].mxu0 }
0x144b   : > { %14282 = vrcp.f32 %v10128_v8  ;;  %v10129_v41 = vadd.f32 1.0, %v14273_v40  ;;  %v9838_v55 = vpop.f32.mrb[222].mxu0  ;;  %v9254_v7 = vpop.permute.xlu0 %9253 }
0x144c   : > { %v11760_v11 = vmul.f32 -1.442695, %v9836_v12  ;;  %v9839_v29 = vadd.f32 %v9838_v55, %v9219_v18  ;;  %v9840_v61 = vpop.f32.mrb[223].mxu0  ;;  %v9259_v18 = vpop.permute.xlu1 %9258 }
0x144d   : > { %v14275_v22 = vpop.eup %14274  ;;  %14284 = vrcp.f32 %v10129_v41 }
0x144e   : > { %10319 = vst.msk [vmem:[%s19911_s23 + $0x160] sm:$0xff] %vm10274_vm1, %v14275_v22  ;;  %14286 = vpow2.f32 %v11760_v11  ;;  %v11761_v51 = vmul.f32 -1.442695, %v9839_v29 }
0x144f   : > { %v14277_v9 = vpop.eup %14276 }
0x1450   : > { %v14279_v19 = vpop.eup %14278  ;;  %10320 = vst.msk [vmem:[%s19911_s23 + $0x168] sm:$0xff] %vm10274_vm1, %v14277_v9  ;;  %14288 = vpow2.f32 %v11761_v51 }
0x1451   : > { %v10130_v56 = vadd.f32 1.0, %v14279_v19  ;;  %v9843_v1 = vpop.f32.mrb[224].mxu0 }
0x1452   : > { %v14281_v23 = vpop.eup %14280  ;;  %v9844_v37 = vadd.f32 %v9843_v1, %v9224_v16  ;;  %v9845_v21 = vpop.f32.mrb[225].mxu0 }
0x1453   : > { %14290 = vrcp.f32 %v10130_v56  ;;  %v10131_v57 = vadd.f32 1.0, %v14281_v23  ;;  %v9846_v54 = vpop.f32.mrb[226].mxu0  ;;  %v9264_v16 = vpop.permute.xlu0 %9263 }
0x1454   : > { %v11762_v52 = vmul.f32 -1.442695, %v9844_v37  ;;  %v9847_v27 = vadd.f32 %v9846_v54, %v9229_v33  ;;  %v9848_v62 = vpop.f32.mrb[227].mxu0  ;;  %v9269_v33 = vpop.permute.xlu1 %9268 }
0x1455   : > { %v14283_v39 = vpop.eup %14282  ;;  %14292 = vrcp.f32 %v10131_v57 }
0x1456   : > { %10321 = vst.msk [vmem:[%s19911_s23 + $0x170] sm:$0xff] %vm10274_vm1, %v14283_v39  ;;  %14294 = vpow2.f32 %v11762_v52  ;;  %v11763_v20 = vmul.f32 -1.442695, %v9847_v27 }
0x1457   : > { %v14285_v0 = vpop.eup %14284 }
0x1458   : > { %v14287_v58 = vpop.eup %14286  ;;  %10322 = vst.msk [vmem:[%s19911_s23 + $0x178] sm:$0xff] %vm10274_vm1, %v14285_v0  ;;  %14296 = vpow2.f32 %v11763_v20 }
0x1459   : > { %v10132_v50 = vadd.f32 1.0, %v14287_v58  ;;  %v9851_v38 = vpop.f32.mrb[228].mxu0 }
0x145a   : > { %v14289_v4 = vpop.eup %14288  ;;  %v9852_v26 = vadd.f32 %v9851_v38, %v9234_v13  ;;  %v9853_v10 = vpop.f32.mrb[229].mxu0 }
0x145b   : > { %14298 = vrcp.f32 %v10132_v50  ;;  %v10133_v36 = vadd.f32 1.0, %v14289_v4  ;;  %v9854_v43 = vpop.f32.mrb[230].mxu0  ;;  %v9274_v13 = vpop.permute.xlu0 %9273 }
0x145c   : > { %v11764_v45 = vmul.f32 -1.442695, %v9852_v26  ;;  %v9855_v30 = vadd.f32 %v9854_v43, %v9239_v48  ;;  %v9856_v2 = vpop.f32.mrb[231].mxu0  ;;  %v9279_v48 = vpop.permute.xlu1 %9278 }
0x145d   : > { %v14291_v24 = vpop.eup %14290  ;;  %14300 = vrcp.f32 %v10133_v36 }
0x145e   : > { %10323 = vst.msk [vmem:[%s19911_s23 + $0x180] sm:$0xff] %vm10274_vm1, %v14291_v24  ;;  %14302 = vpow2.f32 %v11764_v45  ;;  %v11765_v34 = vmul.f32 -1.442695, %v9855_v30 }
0x145f   : > { %v14293_v3 = vpop.eup %14292 }
0x1460   : > { %v14295_v63 = vpop.eup %14294  ;;  %10324 = vst.msk [vmem:[%s19911_s23 + $0x188] sm:$0xff] %vm10274_vm1, %v14293_v3  ;;  %14304 = vpow2.f32 %v11765_v34 }
0x1461   : > { %v10134_v5 = vadd.f32 1.0, %v14295_v63  ;;  %v9859_v14 = vpop.f32.mrb[232].mxu0 }
0x1462   : > { %v14297_v42 = vpop.eup %14296  ;;  %v9860_v28 = vadd.f32 %v9859_v14, %v9244_v17  ;;  %v9861_v31 = vpop.f32.mrb[233].mxu0 }
0x1463   : > { %14306 = vrcp.f32 %v10134_v5  ;;  %v10135_v6 = vadd.f32 1.0, %v14297_v42  ;;  %v9862_v25 = vpop.f32.mrb[234].mxu0 }
0x1464   : > { %v11766_v60 = vmul.f32 -1.442695, %v9860_v28  ;;  %v9863_v59 = vadd.f32 %v9862_v25, %v9249_v49  ;;  %v9864_v35 = vpop.f32.mrb[235].mxu0 }
0x1465   : > { %v14299_v46 = vpop.eup %14298  ;;  %14308 = vrcp.f32 %v10135_v6 }
0x1466   : > { %10325 = vst.msk [vmem:[%s19911_s23 + $0x190] sm:$0xff] %vm10274_vm1, %v14299_v46  ;;  %14310 = vpow2.f32 %v11766_v60  ;;  %v11767_v15 = vmul.f32 -1.442695, %v9863_v59 }
0x1467   : > { %v14301_v53 = vpop.eup %14300 }
0x1468   : > { %v14303_v47 = vpop.eup %14302  ;;  %10326 = vst.msk [vmem:[%s19911_s23 + $0x198] sm:$0xff] %vm10274_vm1, %v14301_v53  ;;  %14312 = vpow2.f32 %v11767_v15 }
0x1469   : > { %v10136_v8 = vadd.f32 1.0, %v14303_v47  ;;  %v9867_v32 = vpop.f32.mrb[236].mxu0 }
0x146a   : > { %v14305_v40 = vpop.eup %14304  ;;  %v9868_v12 = vadd.f32 %v9867_v32, %v9254_v7  ;;  %v9869_v44 = vpop.f32.mrb[237].mxu0 }
0x146b   : > { %14314 = vrcp.f32 %v10136_v8  ;;  %v10137_v41 = vadd.f32 1.0, %v14305_v40  ;;  %v9870_v55 = vpop.f32.mrb[238].mxu0 }
0x146c   : > { %v11768_v11 = vmul.f32 -1.442695, %v9868_v12  ;;  %v9871_v29 = vadd.f32 %v9870_v55, %v9259_v18  ;;  %v9872_v61 = vpop.f32.mrb[239].mxu0 }
0x146d   : > { %v14307_v22 = vpop.eup %14306  ;;  %14316 = vrcp.f32 %v10137_v41 }
0x146e   : > { %10327 = vst.msk [vmem:[%s19911_s23 + $0x1a0] sm:$0xff] %vm10274_vm1, %v14307_v22  ;;  %14318 = vpow2.f32 %v11768_v11  ;;  %v11769_v51 = vmul.f32 -1.442695, %v9871_v29 }
0x146f   : > { %v14309_v9 = vpop.eup %14308 }
0x1470   : > { %v14311_v19 = vpop.eup %14310  ;;  %10328 = vst.msk [vmem:[%s19911_s23 + $0x1a8] sm:$0xff] %vm10274_vm1, %v14309_v9  ;;  %14320 = vpow2.f32 %v11769_v51 }
0x1471   : > { %v10138_v56 = vadd.f32 1.0, %v14311_v19  ;;  %v9875_v1 = vpop.f32.mrb[240].mxu0 }
0x1472   : > { %v14313_v23 = vpop.eup %14312  ;;  %v9876_v37 = vadd.f32 %v9875_v1, %v9264_v16  ;;  %v9877_v21 = vpop.f32.mrb[241].mxu0 }
0x1473   : > { %14322 = vrcp.f32 %v10138_v56  ;;  %v10139_v57 = vadd.f32 1.0, %v14313_v23  ;;  %v9878_v54 = vpop.f32.mrb[242].mxu0 }
0x1474   : > { %v11770_v52 = vmul.f32 -1.442695, %v9876_v37  ;;  %v9879_v27 = vadd.f32 %v9878_v54, %v9269_v33  ;;  %v9880_v62 = vpop.f32.mrb[243].mxu0 }
0x1475   : > { %v14315_v39 = vpop.eup %14314  ;;  %14324 = vrcp.f32 %v10139_v57 }
0x1476   : > { %10329 = vst.msk [vmem:[%s19911_s23 + $0x1b0] sm:$0xff] %vm10274_vm1, %v14315_v39  ;;  %14326 = vpow2.f32 %v11770_v52  ;;  %v11771_v20 = vmul.f32 -1.442695, %v9879_v27 }
0x1477   : > { %v14317_v0 = vpop.eup %14316 }
0x1478   : > { %v14319_v58 = vpop.eup %14318  ;;  %10330 = vst.msk [vmem:[%s19911_s23 + $0x1b8] sm:$0xff] %vm10274_vm1, %v14317_v0  ;;  %14328 = vpow2.f32 %v11771_v20 }
0x1479   : > { %v10140_v50 = vadd.f32 1.0, %v14319_v58  ;;  %v9883_v38 = vpop.f32.mrb[244].mxu0 }
0x147a   : > { %v14321_v4 = vpop.eup %14320  ;;  %v9884_v26 = vadd.f32 %v9883_v38, %v9274_v13  ;;  %v9885_v10 = vpop.f32.mrb[245].mxu0 }
0x147b   : > { %14330 = vrcp.f32 %v10140_v50  ;;  %v10141_v36 = vadd.f32 1.0, %v14321_v4  ;;  %v9886_v43 = vpop.f32.mrb[246].mxu0 }
0x147c   : > { %v11772_v45 = vmul.f32 -1.442695, %v9884_v26  ;;  %v9887_v30 = vadd.f32 %v9886_v43, %v9279_v48  ;;  %v9888_v2 = vpop.f32.mrb[247].mxu0 }
0x147d   : > { %v14323_v24 = vpop.eup %14322  ;;  %14332 = vrcp.f32 %v10141_v36 }
0x147e   : > { %10331 = vst.msk [vmem:[%s19911_s23 + $0x1c0] sm:$0xff] %vm10274_vm1, %v14323_v24  ;;  %14334 = vpow2.f32 %v11772_v45  ;;  %v11773_v34 = vmul.f32 -1.442695, %v9887_v30 }
0x147f   : > { %v14325_v3 = vpop.eup %14324 }
0x1480   : > { %v14327_v63 = vpop.eup %14326  ;;  %10332 = vst.msk [vmem:[%s19911_s23 + $0x1c8] sm:$0xff] %vm10274_vm1, %v14325_v3  ;;  %14336 = vpow2.f32 %v11773_v34 }
0x1481   : > { %v10142_v17 = vadd.f32 1.0, %v14327_v63 }
0x1482   : > { %v14329_v5 = vpop.eup %14328 }
0x1483   : > { %14338 = vrcp.f32 %v10142_v17  ;;  %v10143_v14 = vadd.f32 1.0, %v14329_v5 }
0x1485   : > { %v14331_v42 = vpop.eup %14330  ;;  %14340 = vrcp.f32 %v10143_v14 }
0x1486   : > { %10333 = vst.msk [vmem:[%s19911_s23 + $0x1d0] sm:$0xff] %vm10274_vm1, %v14331_v42 }
0x1487   : > { %v14333_v28 = vpop.eup %14332 }
0x1488   : > { %v14335_v31 = vpop.eup %14334  ;;  %10334 = vst.msk [vmem:[%s19911_s23 + $0x1d8] sm:$0xff] %vm10274_vm1, %v14333_v28 }
0x1489   : > { %v10144_v49 = vadd.f32 1.0, %v14335_v31 }
0x148a   : > { %v14337_v6 = vpop.eup %14336 }
0x148b   : > { %14342 = vrcp.f32 %v10144_v49  ;;  %v10145_v25 = vadd.f32 1.0, %v14337_v6 }
0x148d   : > { %v14339_v60 = vpop.eup %14338  ;;  %14344 = vrcp.f32 %v10145_v25 }
0x148e   : > { %10335 = vst.msk [vmem:[%s19911_s23 + $0x1e0] sm:$0xff] %vm10274_vm1, %v14339_v60 }
0x148f   : > { %v14341_v59 = vpop.eup %14340 }
0x1490   : > { %10336 = vst.msk [vmem:[%s19911_s23 + $0x1e8] sm:$0xff] %vm10274_vm1, %v14341_v59 }
0x1495   : > { %v14343_v35 = vpop.eup %14342 }
0x1496   : > { %10337 = vst.msk [vmem:[%s19911_s23 + $0x1f0] sm:$0xff] %vm10274_vm1, %v14343_v35 }
0x1497   : > { %v14345_v46 = vpop.eup %14344 }
0x1498   : > { %10338 = vst.msk [vmem:[%s19911_s23 + $0x1f8] sm:$0xff] %vm10274_vm1, %v14345_v46 }
0x1499 PF: > { %s17_s26 = sadd.s32 1, %s14368_s26   ;;  %s20958_s24 = smov %s14364_s25 }
0x149a   : > { %p14_p5 = scmp.ge.s32.totalorder %s17_s26, 4   ;;  %s20959_s25 = smov %s20961_s27 }
0x149c   :  { %16 = sbr.rel (!%p14_p5) target bundleno = 2 (0x2), region = 102 }

</bundles_post_ra>
